<compile_context>
chip_gen: v5e
topology: v5e:2x2
jax: 0.10.0
libtpu: 0.0.40
codegen_flags: <defaults>
</compile_context>

<pallas_src>
import functools

import jax
import jax.numpy as jnp
from jax.experimental import pallas as pl
from jax.experimental.pallas import tpu as pltpu


def _round_up(x, m):
    return (x + m - 1) // m * m


# ----------------------------------------------------------------------------
# Fused kernel: patchify-conv stem (stand-in) + l1 -> ReLU -> l2 head + pool
# ----------------------------------------------------------------------------
def _fused_kernel(p_ref, ws_ref, bs_ref, w1_ref, b1_ref, w2_ref, b2_ref,
                  emb_ref, pool_ref, *, bb, n_tok, inv_n_tok):
    # ---- stem stand-in: patchify conv (BN folded) + SiLU -------------------
    fea = jnp.dot(p_ref[...], ws_ref[...], preferred_element_type=jnp.float32)
    fea = fea + bs_ref[...]
    fea = fea * jax.nn.sigmoid(fea)        # SiLU in f32 (v5e VPU/EUP lack bf16)

    # ---- head: l1 -> ReLU -> l2 (bf16 MXU operands, f32 accumulation) ------
    x = jnp.dot(fea.astype(jnp.bfloat16), w1_ref[...],
                preferred_element_type=jnp.float32) + b1_ref[...]
    x = jnp.maximum(x, 0.0)                                   # F.relu (f32)
    x = jnp.dot(x.astype(jnp.bfloat16), w2_ref[...],
                preferred_element_type=jnp.float32) + b2_ref[...]
    emb_ref[...] = x.astype(emb_ref.dtype)                    # [(bb*n_tok), 768]

    # ---- token-mean pool ----------------------------------------------------
    # Each tile covers whole batches (block_m = bb * n_tok, rows batch-major),
    # so the pool is a reshape + sum over the token axis: VPU/XLU work, off the
    # MXU, and every grid step writes its own *final* pool rows -> the single
    # grid axis stays fully "parallel" (shards across v7x's two TensorCores).
    out_dim = x.shape[-1]
    pool_ref[...] = (jnp.sum(x.reshape(bb, n_tok, out_dim), axis=1)
                     * jnp.float32(inv_n_tok))


# ----------------------------------------------------------------------------
# Tiling / VMEM sizing helpers (per TPU generation)
# ----------------------------------------------------------------------------
def _tile_vmem_bytes(bb, *, n_tok, kp, d, out_dim, emb_bytes,
                     patch_bufs, weight_bufs):
    bm = bb * n_tok
    patches = patch_bufs * bm * kp * 2                               # bf16
    weights = weight_bufs * (kp * d * 2 + d * 4 + d * d * 2 + d * 4
                             + d * out_dim * 2 + out_dim * 4)
    outs = 2 * (bm * out_dim * emb_bytes + bb * out_dim * 4)         # dbl-buffered
    inter = bm * (d * 4 + d * 2 + out_dim * 4 + d * 2)               # fea/x f32 + casts
    return patches + weights + outs + inter


def _choose_batches_per_tile(b, n_tok, tile_bytes_fn, vmem_budget, target_rows):
    """Largest batches-per-tile fitting VMEM; prefer multiples of 8 so the
    pool-output store is sublane-full."""
    bb_pref = max(1, min(max(1, target_rows // n_tok), _round_up(b, 8)))
    cands = list(range(_round_up(bb_pref, 8), 0, -8))                # 8-aligned first
    cands += [bb for bb in range(min(bb_pref, 7), 0, -1)
              if (bb * n_tok) % 8 == 0]                              # legal fallbacks
    cands.append(1)
    for bb in cands:
        if tile_bytes_fn(bb) <= vmem_budget:
            return bb
    return 1


# ----------------------------------------------------------------------------
# Full forward
# ----------------------------------------------------------------------------
def model_efficientv2_forward(img, params, *, patch, single_buffer_weights=True,
                              emb_dtype=jnp.float32):
    """img: [B, 3, H, W] (NCHW, PyTorch convention), float32."""
    b, c, h, w = img.shape
    n1, n2 = h // patch, w // patch
    n_tok = n1 * n2
    m = b * n_tok

    kp = params["w_stem"].shape[0]          # padded contraction dim (mult of 256)
    kp_raw = patch * patch * c
    d = params["w1"].shape[0]
    out_dim = params["w2"].shape[1]

    # ---- per-generation VMEM budget & row target ----------------------------
    try:
        vmem_cap = int(pltpu.get_tpu_info().vmem_capacity_bytes)
    except Exception:
        vmem_cap = 64 << 20                            # conservative (v7x-sized)
    vmem_budget = int(vmem_cap * 0.70)                 # headroom for compiler scratch
    target_rows = 1024 if vmem_cap >= (100 << 20) else 512   # v5e/v6e vs v7x

    emb_bytes = jnp.dtype(emb_dtype).itemsize
    weight_bufs = 1 if single_buffer_weights else 2
    tile_bytes_fn = functools.partial(
        _tile_vmem_bytes, n_tok=n_tok, kp=kp, d=d, out_dim=out_dim,
        emb_bytes=emb_bytes, patch_bufs=2, weight_bufs=weight_bufs)

    bb = _choose_batches_per_tile(b, n_tok, tile_bytes_fn, vmem_budget, target_rows)
    block_m = bb * n_tok
    b_pad = _round_up(b, bb)
    num_tiles = b_pad // bb
    m_pad = b_pad * n_tok

    need = tile_bytes_fn(bb)
    vmem_limit = int(min(max(need + (8 << 20), 16 << 20), vmem_cap - (4 << 20)))

    # ---- patch extraction glue (stand-in for the backbone's striding) ------
    # Single transpose, in bf16, with one fused pad for both K (-> kp) and M
    # (-> padded batches).  Row order is (b, n1, n2)-major, i.e. exactly
    # rearrange('b d n1 n2 -> b (n1 n2) d') flattened over (b, n).
    # TODO(synk): for large real images, move the patch gather into a BlockSpec
    # index_map over (b, n1, n2) so the DMA does it instead of XLA copies.
    x = img.astype(jnp.bfloat16).reshape(b, c, n1, patch, n2, patch)
    x = jnp.transpose(x, (0, 2, 4, 3, 5, 1))                   # [b,n1,n2,p,p,c]
    patches = x.reshape(m, kp_raw)
    patches = jnp.pad(patches, ((0, m_pad - m), (0, kp - kp_raw)))

    # ---- specs ---------------------------------------------------------------
    def _resident(shape):
        # Constant block index => fetched once; single-buffer to save VMEM.
        if single_buffer_weights:
            return pl.BlockSpec(shape, lambda i: (0, 0),
                                pipeline_mode=pl.Buffered(1))
        return pl.BlockSpec(shape, lambda i: (0, 0))

    flops = (2 * m_pad * (kp * d + d * d + d * out_dim) + m_pad * out_dim)
    bytes_accessed = (m_pad * kp * 2
                      + (kp * d + d * d + d * out_dim) * 2
                      + (2 * d + out_dim) * 4
                      + m_pad * out_dim * emb_bytes
                      + b_pad * out_dim * 4)

    emb_flat, pool = pl.pallas_call(
        functools.partial(_fused_kernel, bb=bb, n_tok=n_tok,
                          inv_n_tok=1.0 / float(n_tok)),
        out_shape=(
            jax.ShapeDtypeStruct((m_pad, out_dim), emb_dtype),
            jax.ShapeDtypeStruct((b_pad, out_dim), jnp.float32),
        ),
        grid=(num_tiles,),
        in_specs=[
            pl.BlockSpec((block_m, kp), lambda i: (i, 0)),     # patches: streamed M tiles
            _resident((kp, d)),                                # w_stem
            _resident((1, d)),                                 # b_stem
            _resident((d, d)),                                 # w1
            _resident((1, d)),                                 # b1
            _resident((d, out_dim)),                           # w2
            _resident((1, out_dim)),                           # b2
        ],
        out_specs=(
            pl.BlockSpec((block_m, out_dim), lambda i: (i, 0)),
            pl.BlockSpec((bb, out_dim), lambda i: (i, 0)),     # sublane-full (bb % 8 == 0)
        ),
        compiler_params=pltpu.CompilerParams(
            dimension_semantics=("parallel",),
            vmem_limit_bytes=vmem_limit,
        ),
        cost_estimate=pl.CostEstimate(
            flops=flops, transcendentals=m_pad * d, bytes_accessed=bytes_accessed),
    )(patches, params["w_stem"], params["b_stem"],
      params["w1"], params["b1"], params["w2"], params["b2"])

    # rearrange '(b n) d -> b n d'; drop batch padding; pool already mean-scaled.
    out_emb = emb_flat[: b * n_tok].reshape(b, n_tok, out_dim)
    out_pool = pool[:b]
    return out_emb, out_pool


# ----------------------------------------------------------------------------
# Deterministic synthetic parameters (bf16 weights, f32 biases)
# ----------------------------------------------------------------------------
def make_params(key, *, patch, num_ftrs, out_dim):
    ks = jax.random.split(key, 6)
    scale = 0.02
    kp_raw = patch * patch * 3
    kp = _round_up(kp_raw, 256)          # pad contraction dim to MXU width
    w_stem = scale * jax.random.normal(ks[0], (kp_raw, num_ftrs), jnp.float32)
    w_stem = jnp.pad(w_stem, ((0, kp - kp_raw), (0, 0)))
    # Linear weights stored transposed to [in, out] (y = x @ W + b), equivalent
    # to PyTorch's x @ weight.T with weight [out, in].
    return {
        "w_stem": w_stem.astype(jnp.bfloat16),
        "b_stem": scale * jax.random.normal(ks[1], (1, num_ftrs), jnp.float32),
        "w1": (scale * jax.random.normal(ks[2], (num_ftrs, num_ftrs),
                                         jnp.float32)).astype(jnp.bfloat16),
        "b1": scale * jax.random.normal(ks[3], (1, num_ftrs), jnp.float32),
        "w2": (scale * jax.random.normal(ks[4], (num_ftrs, out_dim),
                                         jnp.float32)).astype(jnp.bfloat16),
        "b2": scale * jax.random.normal(ks[5], (1, out_dim), jnp.float32),
    }


# ----------------------------------------------------------------------------
# Pure-JAX reference (mirrors the kernel math) for a sanity check
# ----------------------------------------------------------------------------
def _reference_forward(img, params, *, patch):
    b, c, h, w = img.shape
    n1, n2 = h // patch, w // patch
    x = img.astype(jnp.bfloat16).reshape(b, c, n1, patch, n2, patch)
    x = jnp.transpose(x, (0, 2, 4, 3, 5, 1)).reshape(b * n1 * n2, patch * patch * c)
    x = x.astype(jnp.float32)
    kp = params["w_stem"].shape[0]
    x = jnp.pad(x, ((0, 0), (0, kp - x.shape[1])))
    fea = x @ params["w_stem"].astype(jnp.float32) + params["b_stem"]
    fea = fea * jax.nn.sigmoid(fea)
    # NOTE: reference keeps fea/x in f32; the kernel feeds bf16 MXU operands
    # (f32 accumulation) -- the comparison tolerances absorb this mismatch.
    y = jnp.maximum(fea @ params["w1"].astype(jnp.float32) + params["b1"], 0.0)
    y = y @ params["w2"].astype(jnp.float32) + params["b2"]
    out_emb = y.reshape(b, n1 * n2, -1)
    return out_emb, jnp.mean(out_emb, axis=1)


if __name__ == "__main__":
    key = jax.random.PRNGKey(0)
    k_img, k_par = jax.random.split(key)

    BATCH, H, W = 2, 32, 32          # small synthetic image
    PATCH = 8                        # -> 4x4 feature map (n_tok = 16)
    NUM_FTRS = 256                   # MXU-width multiple; real EffNetV2-S is 1280
    OUT_DIM = 768                    # fixed by the module (l2 output)

    img = jax.random.normal(k_img, (BATCH, 3, H, W), jnp.float32)
    params = make_params(k_par, patch=PATCH, num_ftrs=NUM_FTRS, out_dim=OUT_DIM)

    def _run(single_buffer_weights):
        fwd = jax.jit(functools.partial(model_efficientv2_forward, patch=PATCH,
                                        single_buffer_weights=single_buffer_weights))
        out = fwd(img, params)
        jax.block_until_ready(out)
        return out

    try:
        out_emb, out_pool = _run(True)
    except Exception:
        # TODO(synk): pl.Buffered(1) unsupported on this jax build; fall back to
        # default double-buffered weight specs (correctness unchanged).
        out_emb, out_pool = _run(False)

    n_tok = (H // PATCH) * (W // PATCH)
    assert out_emb.shape == (BATCH, n_tok, OUT_DIM)
    assert out_pool.shape == (BATCH, OUT_DIM)

    ref_emb, ref_pool = _reference_forward(img, params, patch=PATCH)
    assert jnp.allclose(out_emb.astype(jnp.float32), ref_emb, rtol=5e-2, atol=1e-2)
    assert jnp.allclose(out_pool, ref_pool, rtol=5e-2, atol=1e-2)
    print("KERNEL_OK")
</pallas_src>

<mosaic_0001>
module attributes {stable_mosaic.version = 11 : i64} {
  func.func @_fused_kernel(%arg0: i32, %arg1: memref<128x256xbf16, #tpu.memory_space<vmem>>, %arg2: memref<256x256xbf16, #tpu.memory_space<vmem>>, %arg3: memref<1x256xf32, #tpu.memory_space<vmem>>, %arg4: memref<256x256xbf16, #tpu.memory_space<vmem>>, %arg5: memref<1x256xf32, #tpu.memory_space<vmem>>, %arg6: memref<256x768xbf16, #tpu.memory_space<vmem>>, %arg7: memref<1x768xf32, #tpu.memory_space<vmem>>, %arg8: memref<128x768xf32, #tpu.memory_space<vmem>>, %arg9: memref<8x768xf32, #tpu.memory_space<vmem>>) attributes {dimension_semantics = [#tpu.dimension_semantics<parallel>], iteration_bounds = array<i64: 1>, scalar_prefetch = 0 : i64, scratch_operands = 0 : i64, tpu.core_type = #tpu.core_type<tc>, window_params = [{transform_indices = @transform_0, window_bounds = array<i64: 128, 256>}, {pipeline_mode = #tpu.pipeline_mode<synchronous>, transform_indices = @transform_1, window_bounds = array<i64: 256, 256>}, {pipeline_mode = #tpu.pipeline_mode<synchronous>, transform_indices = @transform_2, window_bounds = array<i64: 1, 256>}, {pipeline_mode = #tpu.pipeline_mode<synchronous>, transform_indices = @transform_3, window_bounds = array<i64: 256, 256>}, {pipeline_mode = #tpu.pipeline_mode<synchronous>, transform_indices = @transform_4, window_bounds = array<i64: 1, 256>}, {pipeline_mode = #tpu.pipeline_mode<synchronous>, transform_indices = @transform_5, window_bounds = array<i64: 256, 768>}, {pipeline_mode = #tpu.pipeline_mode<synchronous>, transform_indices = @transform_6, window_bounds = array<i64: 1, 768>}, {transform_indices = @transform_7, window_bounds = array<i64: 128, 768>}, {transform_indices = @transform_8, window_bounds = array<i64: 8, 768>}]} {
    %c0 = arith.constant 0 : index
    %c0_0 = arith.constant 0 : index
    %0 = vector.load %arg1[%c0, %c0_0] : memref<128x256xbf16, #tpu.memory_space<vmem>>, vector<128x256xbf16>
    %c0_1 = arith.constant 0 : index
    %c0_2 = arith.constant 0 : index
    %1 = vector.load %arg2[%c0_1, %c0_2] : memref<256x256xbf16, #tpu.memory_space<vmem>>, vector<256x256xbf16>
    %cst = arith.constant dense<0.000000e+00> : vector<128x256xf32>
    %2 = tpu.matmul %0, %1, %cst {dimension_numbers = #tpu.dot_dimension_numbers<[1], [0], [0], [1], [0, 0, 1, 1], [], []>} : vector<128x256xbf16>, vector<256x256xbf16>, vector<128x256xf32> -> vector<128x256xf32>
    %c0_3 = arith.constant 0 : index
    %c0_4 = arith.constant 0 : index
    %3 = vector.load %arg3[%c0_3, %c0_4] : memref<1x256xf32, #tpu.memory_space<vmem>>, vector<1x256xf32>
    %4 = vector.broadcast %3 : vector<1x256xf32> to vector<128x256xf32>
    %5 = arith.addf %2, %4 : vector<128x256xf32>
    %6 = arith.negf %5 : vector<128x256xf32>
    %7 = math.exp %6 : vector<128x256xf32>
    %cst_5 = arith.constant 1.000000e+00 : f32
    %8 = vector.broadcast %cst_5 : f32 to vector<128x256xf32>
    %9 = arith.addf %8, %7 : vector<128x256xf32>
    %10 = arith.divf %8, %9 : vector<128x256xf32>
    %11 = arith.mulf %5, %10 : vector<128x256xf32>
    %12 = arith.truncf %11 : vector<128x256xf32> to vector<128x256xbf16>
    %c0_6 = arith.constant 0 : index
    %c0_7 = arith.constant 0 : index
    %13 = vector.load %arg4[%c0_6, %c0_7] : memref<256x256xbf16, #tpu.memory_space<vmem>>, vector<256x256xbf16>
    %cst_8 = arith.constant dense<0.000000e+00> : vector<128x256xf32>
    %14 = tpu.matmul %12, %13, %cst_8 {dimension_numbers = #tpu.dot_dimension_numbers<[1], [0], [0], [1], [0, 0, 1, 1], [], []>} : vector<128x256xbf16>, vector<256x256xbf16>, vector<128x256xf32> -> vector<128x256xf32>
    %c0_9 = arith.constant 0 : index
    %c0_10 = arith.constant 0 : index
    %15 = vector.load %arg5[%c0_9, %c0_10] : memref<1x256xf32, #tpu.memory_space<vmem>>, vector<1x256xf32>
    %16 = vector.broadcast %15 : vector<1x256xf32> to vector<128x256xf32>
    %17 = arith.addf %14, %16 : vector<128x256xf32>
    %cst_11 = arith.constant 0.000000e+00 : f32
    %18 = vector.broadcast %cst_11 : f32 to vector<128x256xf32>
    %19 = arith.maximumf %17, %18 : vector<128x256xf32>
    %20 = arith.truncf %19 : vector<128x256xf32> to vector<128x256xbf16>
    %c0_12 = arith.constant 0 : index
    %c0_13 = arith.constant 0 : index
    %21 = vector.load %arg6[%c0_12, %c0_13] : memref<256x768xbf16, #tpu.memory_space<vmem>>, vector<256x768xbf16>
    %cst_14 = arith.constant dense<0.000000e+00> : vector<128x768xf32>
    %22 = tpu.matmul %20, %21, %cst_14 {dimension_numbers = #tpu.dot_dimension_numbers<[1], [0], [0], [1], [0, 0, 1, 1], [], []>} : vector<128x256xbf16>, vector<256x768xbf16>, vector<128x768xf32> -> vector<128x768xf32>
    %c0_15 = arith.constant 0 : index
    %c0_16 = arith.constant 0 : index
    %23 = vector.load %arg7[%c0_15, %c0_16] : memref<1x768xf32, #tpu.memory_space<vmem>>, vector<1x768xf32>
    %24 = vector.broadcast %23 : vector<1x768xf32> to vector<128x768xf32>
    %25 = arith.addf %22, %24 : vector<128x768xf32>
    %c0_17 = arith.constant 0 : index
    %c0_18 = arith.constant 0 : index
    %26 = vector.load %arg8[%c0_17, %c0_18] : memref<128x768xf32, #tpu.memory_space<vmem>>, vector<128x768xf32>
    tpu.vector_store %arg8[%c0_17, %c0_18], %25 {strides = array<i32>} : memref<128x768xf32, #tpu.memory_space<vmem>>, vector<128x768xf32>,
    %27 = vector.shape_cast %25 : vector<128x768xf32> to vector<8x16x768xf32>
    %cst_19 = arith.constant dense<0.000000e+00> : vector<8x768xf32>
    %28 = vector.multi_reduction <add>, %27, %cst_19 [1] : vector<8x16x768xf32> to vector<8x768xf32>
    %cst_20 = arith.constant 6.250000e-02 : f32
    %29 = vector.broadcast %cst_20 : f32 to vector<8x768xf32>
    %30 = arith.mulf %28, %29 : vector<8x768xf32>
    %c0_21 = arith.constant 0 : index
    %c0_22 = arith.constant 0 : index
    %31 = vector.load %arg9[%c0_21, %c0_22] : memref<8x768xf32, #tpu.memory_space<vmem>>, vector<8x768xf32>
    tpu.vector_store %arg9[%c0_21, %c0_22], %30 {strides = array<i32>} : memref<8x768xf32, #tpu.memory_space<vmem>>, vector<8x768xf32>,
    return
  }
  func.func @transform_0(%arg0: i32) -> (i32, i32) {
    %c0_i32 = arith.constant 0 : i32
    %c0_i32_0 = arith.constant 0 : i32
    return %arg0, %c0_i32 : i32, i32
  }
  func.func @transform_1(%arg0: i32) -> (i32, i32) {
    %c0_i32 = arith.constant 0 : i32
    %c0_i32_0 = arith.constant 0 : i32
    %c0_i32_1 = arith.constant 0 : i32
    return %c0_i32, %c0_i32_0 : i32, i32
  }
  func.func @transform_2(%arg0: i32) -> (i32, i32) {
    %c0_i32 = arith.constant 0 : i32
    %c0_i32_0 = arith.constant 0 : i32
    %c0_i32_1 = arith.constant 0 : i32
    return %c0_i32, %c0_i32_0 : i32, i32
  }
  func.func @transform_3(%arg0: i32) -> (i32, i32) {
    %c0_i32 = arith.constant 0 : i32
    %c0_i32_0 = arith.constant 0 : i32
    %c0_i32_1 = arith.constant 0 : i32
    return %c0_i32, %c0_i32_0 : i32, i32
  }
  func.func @transform_4(%arg0: i32) -> (i32, i32) {
    %c0_i32 = arith.constant 0 : i32
    %c0_i32_0 = arith.constant 0 : i32
    %c0_i32_1 = arith.constant 0 : i32
    return %c0_i32, %c0_i32_0 : i32, i32
  }
  func.func @transform_5(%arg0: i32) -> (i32, i32) {
    %c0_i32 = arith.constant 0 : i32
    %c0_i32_0 = arith.constant 0 : i32
    %c0_i32_1 = arith.constant 0 : i32
    return %c0_i32, %c0_i32_0 : i32, i32
  }
  func.func @transform_6(%arg0: i32) -> (i32, i32) {
    %c0_i32 = arith.constant 0 : i32
    %c0_i32_0 = arith.constant 0 : i32
    %c0_i32_1 = arith.constant 0 : i32
    return %c0_i32, %c0_i32_0 : i32, i32
  }
  func.func @transform_7(%arg0: i32) -> (i32, i32) {
    %c0_i32 = arith.constant 0 : i32
    %c0_i32_0 = arith.constant 0 : i32
    return %arg0, %c0_i32 : i32, i32
  }
  func.func @transform_8(%arg0: i32) -> (i32, i32) {
    %c0_i32 = arith.constant 0 : i32
    %c0_i32_0 = arith.constant 0 : i32
    return %arg0, %c0_i32 : i32, i32
  }
}

module attributes {stable_mosaic.version = 11 : i64} {
  func.func @_fused_kernel(%arg0: i32, %arg1: memref<128x256xbf16, #tpu.memory_space<vmem>>, %arg2: memref<256x256xbf16, #tpu.memory_space<vmem>>, %arg3: memref<1x256xf32, #tpu.memory_space<vmem>>, %arg4: memref<256x256xbf16, #tpu.memory_space<vmem>>, %arg5: memref<1x256xf32, #tpu.memory_space<vmem>>, %arg6: memref<256x768xbf16, #tpu.memory_space<vmem>>, %arg7: memref<1x768xf32, #tpu.memory_space<vmem>>, %arg8: memref<128x768xf32, #tpu.memory_space<vmem>>, %arg9: memref<8x768xf32, #tpu.memory_space<vmem>>) attributes {dimension_semantics = [#tpu.dimension_semantics<parallel>], iteration_bounds = array<i64: 1>, scalar_prefetch = 0 : i64, scratch_operands = 0 : i64, tpu.core_type = #tpu.core_type<tc>, window_params = [{transform_indices = @transform_0, window_bounds = array<i64: 128, 256>}, {pipeline_mode = #tpu.pipeline_mode<synchronous>, transform_indices = @transform_1, window_bounds = array<i64: 256, 256>}, {pipeline_mode = #tpu.pipeline_mode<synchronous>, transform_indices = @transform_2, window_bounds = array<i64: 1, 256>}, {pipeline_mode = #tpu.pipeline_mode<synchronous>, transform_indices = @transform_3, window_bounds = array<i64: 256, 256>}, {pipeline_mode = #tpu.pipeline_mode<synchronous>, transform_indices = @transform_4, window_bounds = array<i64: 1, 256>}, {pipeline_mode = #tpu.pipeline_mode<synchronous>, transform_indices = @transform_5, window_bounds = array<i64: 256, 768>}, {pipeline_mode = #tpu.pipeline_mode<synchronous>, transform_indices = @transform_6, window_bounds = array<i64: 1, 768>}, {transform_indices = @transform_7, window_bounds = array<i64: 128, 768>}, {transform_indices = @transform_8, window_bounds = array<i64: 8, 768>}]} {
    %c0 = arith.constant 0 : index
    %c0_0 = arith.constant 0 : index
    %0 = vector.load %arg1[%c0, %c0_0] : memref<128x256xbf16, #tpu.memory_space<vmem>>, vector<128x256xbf16>
    %c0_1 = arith.constant 0 : index
    %c0_2 = arith.constant 0 : index
    %1 = vector.load %arg2[%c0_1, %c0_2] : memref<256x256xbf16, #tpu.memory_space<vmem>>, vector<256x256xbf16>
    %cst = arith.constant dense<0.000000e+00> : vector<128x256xf32>
    %2 = tpu.matmul %0, %1, %cst {dimension_numbers = #tpu.dot_dimension_numbers<[1], [0], [0], [1], [0, 0, 1, 1], [], []>} : vector<128x256xbf16>, vector<256x256xbf16>, vector<128x256xf32> -> vector<128x256xf32>
    %c0_3 = arith.constant 0 : index
    %c0_4 = arith.constant 0 : index
    %3 = vector.load %arg3[%c0_3, %c0_4] : memref<1x256xf32, #tpu.memory_space<vmem>>, vector<1x256xf32>
    %4 = vector.broadcast %3 : vector<1x256xf32> to vector<128x256xf32>
    %5 = arith.addf %2, %4 : vector<128x256xf32>
    %6 = arith.negf %5 : vector<128x256xf32>
    %7 = math.exp %6 : vector<128x256xf32>
    %cst_5 = arith.constant 1.000000e+00 : f32
    %8 = vector.broadcast %cst_5 : f32 to vector<128x256xf32>
    %9 = arith.addf %8, %7 : vector<128x256xf32>
    %10 = arith.divf %8, %9 : vector<128x256xf32>
    %11 = arith.mulf %5, %10 : vector<128x256xf32>
    %12 = arith.truncf %11 : vector<128x256xf32> to vector<128x256xbf16>
    %c0_6 = arith.constant 0 : index
    %c0_7 = arith.constant 0 : index
    %13 = vector.load %arg4[%c0_6, %c0_7] : memref<256x256xbf16, #tpu.memory_space<vmem>>, vector<256x256xbf16>
    %cst_8 = arith.constant dense<0.000000e+00> : vector<128x256xf32>
    %14 = tpu.matmul %12, %13, %cst_8 {dimension_numbers = #tpu.dot_dimension_numbers<[1], [0], [0], [1], [0, 0, 1, 1], [], []>} : vector<128x256xbf16>, vector<256x256xbf16>, vector<128x256xf32> -> vector<128x256xf32>
    %c0_9 = arith.constant 0 : index
    %c0_10 = arith.constant 0 : index
    %15 = vector.load %arg5[%c0_9, %c0_10] : memref<1x256xf32, #tpu.memory_space<vmem>>, vector<1x256xf32>
    %16 = vector.broadcast %15 : vector<1x256xf32> to vector<128x256xf32>
    %17 = arith.addf %14, %16 : vector<128x256xf32>
    %cst_11 = arith.constant 0.000000e+00 : f32
    %18 = vector.broadcast %cst_11 : f32 to vector<128x256xf32>
    %19 = arith.maximumf %17, %18 : vector<128x256xf32>
    %20 = arith.truncf %19 : vector<128x256xf32> to vector<128x256xbf16>
    %c0_12 = arith.constant 0 : index
    %c0_13 = arith.constant 0 : index
    %21 = vector.load %arg6[%c0_12, %c0_13] : memref<256x768xbf16, #tpu.memory_space<vmem>>, vector<256x768xbf16>
    %cst_14 = arith.constant dense<0.000000e+00> : vector<128x768xf32>
    %22 = tpu.matmul %20, %21, %cst_14 {dimension_numbers = #tpu.dot_dimension_numbers<[1], [0], [0], [1], [0, 0, 1, 1], [], []>} : vector<128x256xbf16>, vector<256x768xbf16>, vector<128x768xf32> -> vector<128x768xf32>
    %c0_15 = arith.constant 0 : index
    %c0_16 = arith.constant 0 : index
    %23 = vector.load %arg7[%c0_15, %c0_16] : memref<1x768xf32, #tpu.memory_space<vmem>>, vector<1x768xf32>
    %24 = vector.broadcast %23 : vector<1x768xf32> to vector<128x768xf32>
    %25 = arith.addf %22, %24 : vector<128x768xf32>
    %c0_17 = arith.constant 0 : index
    %c0_18 = arith.constant 0 : index
    %26 = vector.load %arg8[%c0_17, %c0_18] : memref<128x768xf32, #tpu.memory_space<vmem>>, vector<128x768xf32>
    tpu.vector_store %arg8[%c0_17, %c0_18], %25 {strides = array<i32>} : memref<128x768xf32, #tpu.memory_space<vmem>>, vector<128x768xf32>,
    %27 = vector.shape_cast %25 : vector<128x768xf32> to vector<8x16x768xf32>
    %cst_19 = arith.constant dense<0.000000e+00> : vector<8x768xf32>
    %28 = vector.multi_reduction <add>, %27, %cst_19 [1] : vector<8x16x768xf32> to vector<8x768xf32>
    %cst_20 = arith.constant 6.250000e-02 : f32
    %29 = vector.broadcast %cst_20 : f32 to vector<8x768xf32>
    %30 = arith.mulf %28, %29 : vector<8x768xf32>
    %c0_21 = arith.constant 0 : index
    %c0_22 = arith.constant 0 : index
    %31 = vector.load %arg9[%c0_21, %c0_22] : memref<8x768xf32, #tpu.memory_space<vmem>>, vector<8x768xf32>
    tpu.vector_store %arg9[%c0_21, %c0_22], %30 {strides = array<i32>} : memref<8x768xf32, #tpu.memory_space<vmem>>, vector<8x768xf32>,
    return
  }
  func.func @transform_0(%arg0: i32) -> (i32, i32) {
    %c0_i32 = arith.constant 0 : i32
    %c0_i32_0 = arith.constant 0 : i32
    return %arg0, %c0_i32 : i32, i32
  }
  func.func @transform_1(%arg0: i32) -> (i32, i32) {
    %c0_i32 = arith.constant 0 : i32
    %c0_i32_0 = arith.constant 0 : i32
    %c0_i32_1 = arith.constant 0 : i32
    return %c0_i32, %c0_i32_0 : i32, i32
  }
  func.func @transform_2(%arg0: i32) -> (i32, i32) {
    %c0_i32 = arith.constant 0 : i32
    %c0_i32_0 = arith.constant 0 : i32
    %c0_i32_1 = arith.constant 0 : i32
    return %c0_i32, %c0_i32_0 : i32, i32
  }
  func.func @transform_3(%arg0: i32) -> (i32, i32) {
    %c0_i32 = arith.constant 0 : i32
    %c0_i32_0 = arith.constant 0 : i32
    %c0_i32_1 = arith.constant 0 : i32
    return %c0_i32, %c0_i32_0 : i32, i32
  }
  func.func @transform_4(%arg0: i32) -> (i32, i32) {
    %c0_i32 = arith.constant 0 : i32
    %c0_i32_0 = arith.constant 0 : i32
    %c0_i32_1 = arith.constant 0 : i32
    return %c0_i32, %c0_i32_0 : i32, i32
  }
  func.func @transform_5(%arg0: i32) -> (i32, i32) {
    %c0_i32 = arith.constant 0 : i32
    %c0_i32_0 = arith.constant 0 : i32
    %c0_i32_1 = arith.constant 0 : i32
    return %c0_i32, %c0_i32_0 : i32, i32
  }
  func.func @transform_6(%arg0: i32) -> (i32, i32) {
    %c0_i32 = arith.constant 0 : i32
    %c0_i32_0 = arith.constant 0 : i32
    %c0_i32_1 = arith.constant 0 : i32
    return %c0_i32, %c0_i32_0 : i32, i32
  }
  func.func @transform_7(%arg0: i32) -> (i32, i32) {
    %c0_i32 = arith.constant 0 : i32
    %c0_i32_0 = arith.constant 0 : i32
    return %arg0, %c0_i32 : i32, i32
  }
  func.func @transform_8(%arg0: i32) -> (i32, i32) {
    %c0_i32 = arith.constant 0 : i32
    %c0_i32_0 = arith.constant 0 : i32
    return %arg0, %c0_i32 : i32, i32
  }
}

</mosaic_0001>

<bundles_post_ra>
// kernel: model_efficientv2_forward.1
= control target key start
LH: loop header
LB: loop body
LE: loop exit
PB: predicated region body
PF: predicated region fallthrough
CT: control target
= control target key end

     0   :  { %s7222_s1 = inlined_call_operand.vmem [shape: bf16[256,256], index: 1, kind: input, shape index: {}]   ;;  %s7223_s0 = inlined_call_operand.vmem [shape: bf16[128,256], index: 0, kind: input, shape index: {}]   ;;  %s7224_s3 = inlined_call_operand.vmem [shape: bf16[256,256], index: 3, kind: input, shape index: {}]   ;;  %s7225_s2 = inlined_call_operand.vmem [shape: f32[1,256], index: 2, kind: input, shape index: {}]   ;;  %s7226_s5 = inlined_call_operand.vmem [shape: bf16[256,768], index: 5, kind: input, shape index: {}]   ;;  %s7227_s4 = inlined_call_operand.vmem [shape: f32[1,256], index: 4, kind: input, shape index: {}]   ;;  %s7228_s6 = inlined_call_operand.vmem [shape: f32[1,768], index: 6, kind: input, shape index: {}]   ;;  %s7229_s7 = inlined_call_operand.vmem [shape: f32[128,768], index: 7, kind: output, shape index: {0}]   ;;  %s7230_s8 = inlined_call_operand.vmem [shape: f32[8,768], index: 8, kind: output, shape index: {1}]  }
   0x1   :  { %v3513_v0 = vld [vmem:[%s7222_s1 + $0x70] sm:$0xf]  ;;  %v4158_v1 = vld [vmem:[%s7222_s1 + $0x74] sm:$0xf0]  ;;  %v4157_v5 = vld [vmem:[%s7222_s1 + $0x74] sm:$0xf] }
   0x2   :  { %v3577_v2 = vld [vmem:[%s7222_s1 + $0xf0] sm:$0xf]  ;;  %v3514_v3 = vor.u32 %v4158_v1, %v3513_v0  ;;  %v4174_v4 = vld [vmem:[%s7222_s1 + $0xf4] sm:$0xf0]  ;;  %v3515_v6 = vld [vmem:[%s7222_s1 + $0x78] sm:$0xf0] }
   0x3   :  { %v3578_v7 = vor.u32 %v4174_v4, %v3577_v2  ;;  %v3518_v8 = vor.u32 %v4157_v5, %v3515_v6  ;;  %v4173_v9 = vld [vmem:[%s7222_s1 + $0xf4] sm:$0xf]  ;;  %v3579_v10 = vld [vmem:[%s7222_s1 + $0xf8] sm:$0xf0]  ;;  %v3505_v11 = vld [vmem:[%s7222_s1 + $0x60] sm:$0xf] }
   0x4   :  { %322 = vmatpush.bf16.msra.mxu0 %v3514_v3  ;;  %v3582_v12 = vor.u32 %v4173_v9, %v3579_v10  ;;  %v4156_v13 = vld [vmem:[%s7222_s1 + $0x64] sm:$0xf0]  ;;  %v3569_v14 = vld [vmem:[%s7222_s1 + $0xe0] sm:$0xf]  ;;  %v4155_v18 = vld [vmem:[%s7222_s1 + $0x64] sm:$0xf] }
   0x5   :  { %v4172_v15 = vld [vmem:[%s7222_s1 + $0xe4] sm:$0xf0]  ;;  %371 = vmatpush.bf16.msra.mxu1 %v3578_v7  ;;  %420 = vmatpush.bf16.msra.mxu2 %v3518_v8  ;;  %v3506_v16 = vor.u32 %v4156_v13, %v3505_v11  ;;  %v3507_v19 = vld [vmem:[%s7222_s1 + $0x68] sm:$0xf0]  ;;  %v4171_v20 = vld [vmem:[%s7222_s1 + $0xe4] sm:$0xf] }
   0x6   :  { %v3570_v17 = vor.u32 %v4172_v15, %v3569_v14  ;;  %469 = vmatpush.bf16.msra.mxu3 %v3582_v12  ;;  %v3510_v21 = vor.u32 %v4155_v18, %v3507_v19  ;;  %v3571_v22 = vld [vmem:[%s7222_s1 + $0xe8] sm:$0xf0]  ;;  %v3497_v23 = vld [vmem:[%s7222_s1 + $0x50] sm:$0xf]  ;;  %v4154_v24 = vld [vmem:[%s7222_s1 + $0x54] sm:$0xf0] }
   0x7   :  { %v3574_v25 = vor.u32 %v4171_v20, %v3571_v22  ;;  %v3561_v26 = vld [vmem:[%s7222_s1 + $0xd0] sm:$0xf]  ;;  %v4170_v27 = vld [vmem:[%s7222_s1 + $0xd4] sm:$0xf0]  ;;  %v4153_v28 = vld [vmem:[%s7222_s1 + $0x54] sm:$0xf]  ;;  %v3498_v29 = vor.u32 %v4154_v24, %v3497_v23 }
   0x8   :  { %323 = vmatpush.bf16.msra.mxu0 %v3506_v16  ;;  %v3499_v30 = vld [vmem:[%s7222_s1 + $0x58] sm:$0xf0]  ;;  %v4169_v31 = vld [vmem:[%s7222_s1 + $0xd4] sm:$0xf]  ;;  %v3562_v33 = vor.u32 %v4170_v27, %v3561_v26  ;;  %v3489_v35 = vld [vmem:[%s7222_s1 + $0x40] sm:$0xf] }
   0x9   :  { %v3563_v32 = vld [vmem:[%s7222_s1 + $0xd8] sm:$0xf0]  ;;  %372 = vmatpush.bf16.msra.mxu1 %v3570_v17  ;;  %421 = vmatpush.bf16.msra.mxu2 %v3510_v21  ;;  %v3502_v34 = vor.u32 %v4153_v28, %v3499_v30  ;;  %v4152_v36 = vld [vmem:[%s7222_s1 + $0x44] sm:$0xf0]  ;;  %v3553_v37 = vld [vmem:[%s7222_s1 + $0xc0] sm:$0xf] }
   0xa   :  { %470 = vmatpush.bf16.msra.mxu3 %v3574_v25  ;;  %v3566_v38 = vor.u32 %v4169_v31, %v3563_v32  ;;  %v4168_v39 = vld [vmem:[%s7222_s1 + $0xc4] sm:$0xf0]  ;;  %v4151_v40 = vld [vmem:[%s7222_s1 + $0x44] sm:$0xf]  ;;  %v3491_v41 = vld [vmem:[%s7222_s1 + $0x48] sm:$0xf0]  ;;  %v3490_v44 = vor.u32 %v4152_v36, %v3489_v35 }
   0xb   :  { %v4167_v42 = vld [vmem:[%s7222_s1 + $0xc4] sm:$0xf]  ;;  %v3555_v43 = vld [vmem:[%s7222_s1 + $0xc8] sm:$0xf0]  ;;  %v3554_v45 = vor.u32 %v4168_v39, %v3553_v37  ;;  %v3494_v46 = vor.u32 %v4151_v40, %v3491_v41  ;;  %v3481_v47 = vld [vmem:[%s7222_s1 + $0x30] sm:$0xf] }
   0xc   :  { %324 = vmatpush.bf16.msra.mxu0 %v3498_v29  ;;  %v4150_v48 = vld [vmem:[%s7222_s1 + $0x34] sm:$0xf0]  ;;  %v3545_v49 = vld [vmem:[%s7222_s1 + $0xb0] sm:$0xf]  ;;  %v3558_v50 = vor.u32 %v4167_v42, %v3555_v43  ;;  %v4149_v52 = vld [vmem:[%s7222_s1 + $0x34] sm:$0xf] }
   0xd   :  { %373 = vmatpush.bf16.msra.mxu1 %v3562_v33  ;;  %422 = vmatpush.bf16.msra.mxu2 %v3502_v34  ;;  %v4166_v51 = vld [vmem:[%s7222_s1 + $0xb4] sm:$0xf0]  ;;  %v3483_v53 = vld [vmem:[%s7222_s1 + $0x38] sm:$0xf0]  ;;  %v4165_v54 = vld [vmem:[%s7222_s1 + $0xb4] sm:$0xf]  ;;  %v3482_v56 = vor.u32 %v4150_v48, %v3481_v47 }
   0xe   :  { %471 = vmatpush.bf16.msra.mxu3 %v3566_v38  ;;  %v3547_v55 = vld [vmem:[%s7222_s1 + $0xb8] sm:$0xf0]  ;;  %v3546_v57 = vor.u32 %v4166_v51, %v3545_v49  ;;  %v3486_v58 = vor.u32 %v4149_v52, %v3483_v53  ;;  %v3473_v59 = vld [vmem:[%s7222_s1 + $0x20] sm:$0xf]  ;;  %v4148_v60 = vld [vmem:[%s7222_s1 + $0x24] sm:$0xf0] }
   0xf   :  { %v3537_v61 = vld [vmem:[%s7222_s1 + $0xa0] sm:$0xf]  ;;  %v3550_v62 = vor.u32 %v4165_v54, %v3547_v55  ;;  %v4164_v63 = vld [vmem:[%s7222_s1 + $0xa4] sm:$0xf0]  ;;  %v4147_v0 = vld [vmem:[%s7222_s1 + $0x24] sm:$0xf]  ;;  %v3474_v4 = vor.u32 %v4148_v60, %v3473_v59 }
  0x10   :  { %325 = vmatpush.bf16.msra.mxu0 %v3490_v44  ;;  %v3475_v1 = vld [vmem:[%s7222_s1 + $0x28] sm:$0xf0]  ;;  %v4163_v2 = vld [vmem:[%s7222_s1 + $0xa4] sm:$0xf]  ;;  %v3538_v5 = vor.u32 %v4164_v63, %v3537_v61  ;;  %v3465_v7 = vld [vmem:[%s7222_s1 + $0x10] sm:$0xf] }
  0x11   :  { %374 = vmatpush.bf16.msra.mxu1 %v3554_v45  ;;  %423 = vmatpush.bf16.msra.mxu2 %v3494_v46  ;;  %v3539_v3 = vld [vmem:[%s7222_s1 + $0xa8] sm:$0xf0]  ;;  %v3478_v6 = vor.u32 %v4147_v0, %v3475_v1  ;;  %v4146_v8 = vld [vmem:[%s7222_s1 + $0x14] sm:$0xf0]  ;;  %v3529_v9 = vld [vmem:[%s7222_s1 + $0x90] sm:$0xf] }
  0x12   :  { %472 = vmatpush.bf16.msra.mxu3 %v3558_v50  ;;  %v3542_v10 = vor.u32 %v4163_v2, %v3539_v3  ;;  %v4162_v11 = vld [vmem:[%s7222_s1 + $0x94] sm:$0xf0]  ;;  %v4145_v12 = vld [vmem:[%s7222_s1 + $0x14] sm:$0xf]  ;;  %v3467_v13 = vld [vmem:[%s7222_s1 + $0x18] sm:$0xf0]  ;;  %v3466_v16 = vor.u32 %v4146_v8, %v3465_v7 }
  0x13   :  { %v4161_v14 = vld [vmem:[%s7222_s1 + $0x94] sm:$0xf]  ;;  %v3531_v15 = vld [vmem:[%s7222_s1 + $0x98] sm:$0xf0]  ;;  %v3530_v17 = vor.u32 %v4162_v11, %v3529_v9  ;;  %v3470_v18 = vor.u32 %v4145_v12, %v3467_v13  ;;  %v3457_v19 = vld [vmem:[%s7222_s1] sm:$0xf] }
  0x14   :  { %326 = vmatpush.bf16.msra.mxu0 %v3482_v56  ;;  %v4144_v20 = vld [vmem:[%s7222_s1 + $0x4] sm:$0xf0]  ;;  %v3521_v21 = vld [vmem:[%s7222_s1 + $0x80] sm:$0xf]  ;;  %v3534_v22 = vor.u32 %v4161_v14, %v3531_v15  ;;  %v4143_v24 = vld [vmem:[%s7222_s1 + $0x4] sm:$0xf] }
  0x15   :  { %375 = vmatpush.bf16.msra.mxu1 %v3546_v57  ;;  %424 = vmatpush.bf16.msra.mxu2 %v3486_v58  ;;  %v4160_v23 = vld [vmem:[%s7222_s1 + $0x84] sm:$0xf0]  ;;  %v3459_v25 = vld [vmem:[%s7222_s1 + $0x8] sm:$0xf0]  ;;  %v4159_v26 = vld [vmem:[%s7222_s1 + $0x84] sm:$0xf]  ;;  %v3458_v28 = vor.u32 %v4144_v20, %v3457_v19 }
  0x16   :  { %473 = vmatpush.bf16.msra.mxu3 %v3550_v62  ;;  %v3523_v27 = vld [vmem:[%s7222_s1 + $0x88] sm:$0xf0]  ;;  %v3393_v29 = vld [vmem:[%s7223_s0] sm:$0xf]  ;;  %v4128_v30 = vld [vmem:[%s7223_s0 + $0x4] sm:$0xf0]  ;;  %v3522_v31 = vor.u32 %v4160_v23, %v3521_v21  ;;  %v3462_v32 = vor.u32 %v4143_v24, %v3459_v25 }
  0x17   :  { %v4127_v33 = vld [vmem:[%s7223_s0 + $0x4] sm:$0xf]  ;;  %v3395_v34 = vld [vmem:[%s7223_s0 + $0x8] sm:$0xf0]  ;;  %v3526_v35 = vor.u32 %v4159_v26, %v3523_v27  ;;  %v3394_v36 = vor.u32 %v4128_v30, %v3393_v29  ;;  %v4189_v38 = vld [vmem:[%s7224_s3 + $0x74] sm:$0xf] }
  0x18   :  { %327 = vmatpush.bf16.msra.mxu0 %v3474_v4  ;;  %v3398_v37 = vor.u32 %v4127_v33, %v3395_v34  ;;  %v3675_v39 = vld [vmem:[%s7224_s3 + $0x78] sm:$0xf0]  ;;  %v3401_v41 = vld [vmem:[%s7223_s0 + $0x10] sm:$0xf]  ;;  %v4130_v42 = vld [vmem:[%s7223_s0 + $0x14] sm:$0xf0] }
  0x19   :  { %376 = vmatpush.bf16.msra.mxu1 %v3538_v5  ;;  %425 = vmatpush.bf16.msra.mxu2 %v3478_v6  ;;  %v3678_v40 = vor.u32 %v4189_v38, %v3675_v39  ;;  %v4129_v43 = vld [vmem:[%s7223_s0 + $0x14] sm:$0xf]  ;;  %v3403_v44 = vld [vmem:[%s7223_s0 + $0x18] sm:$0xf0]  ;;  %v3402_v45 = vor.u32 %v4130_v42, %v3401_v41  ;;  %v3673_v49 = vld [vmem:[%s7224_s3 + $0x70] sm:$0xf] }
  0x1a   :  { %474 = vmatpush.bf16.msra.mxu3 %v3542_v10  ;;  %v3406_v46 = vor.u32 %v4129_v43, %v3403_v44  ;;  %v4205_v47 = vld [vmem:[%s7224_s3 + $0xf4] sm:$0xf]  ;;  %v3739_v48 = vld [vmem:[%s7224_s3 + $0xf8] sm:$0xf0]  ;;  %v4190_v51 = vld [vmem:[%s7224_s3 + $0x74] sm:$0xf0] }
  0x1b   :  { %v3742_v50 = vor.u32 %v4205_v47, %v3739_v48  ;;  %v3737_v52 = vld [vmem:[%s7224_s3 + $0xf0] sm:$0xf]  ;;  %v4206_v53 = vld [vmem:[%s7224_s3 + $0xf4] sm:$0xf0]  ;;  %v3674_v54 = vor.u32 %v4190_v51, %v3673_v49  ;;  %v4187_v56 = vld [vmem:[%s7224_s3 + $0x64] sm:$0xf] }
  0x1c   :  { %328 = vmatpush.bf16.msra.mxu0 %v3466_v16  ;;  %v3738_v55 = vor.u32 %v4206_v53, %v3737_v52  ;;  %v3667_v57 = vld [vmem:[%s7224_s3 + $0x68] sm:$0xf0]  ;;  %v3409_v59 = vld [vmem:[%s7223_s0 + $0x20] sm:$0xf]  ;;  %v4132_v60 = vld [vmem:[%s7223_s0 + $0x24] sm:$0xf0] }
  0x1d   :  { %377 = vmatpush.bf16.msra.mxu1 %v3530_v17  ;;  %426 = vmatpush.bf16.msra.mxu2 %v3470_v18  ;;  %v3670_v58 = vor.u32 %v4187_v56, %v3667_v57  ;;  %v4131_v61 = vld [vmem:[%s7223_s0 + $0x24] sm:$0xf]  ;;  %v3411_v62 = vld [vmem:[%s7223_s0 + $0x28] sm:$0xf0]  ;;  %v3410_v63 = vor.u32 %v4132_v60, %v3409_v59  ;;  %v3665_v3 = vld [vmem:[%s7224_s3 + $0x60] sm:$0xf] }
  0x1e   :  { %475 = vmatpush.bf16.msra.mxu3 %v3534_v22  ;;  %v3414_v0 = vor.u32 %v4131_v61, %v3411_v62  ;;  %v4203_v1 = vld [vmem:[%s7224_s3 + $0xe4] sm:$0xf]  ;;  %v3731_v2 = vld [vmem:[%s7224_s3 + $0xe8] sm:$0xf0]  ;;  %v4188_v5 = vld [vmem:[%s7224_s3 + $0x64] sm:$0xf0] }
  0x1f   :  { %v3734_v4 = vor.u32 %v4203_v1, %v3731_v2  ;;  %v3729_v6 = vld [vmem:[%s7224_s3 + $0xe0] sm:$0xf]  ;;  %v4204_v7 = vld [vmem:[%s7224_s3 + $0xe4] sm:$0xf0]  ;;  %v3666_v8 = vor.u32 %v4188_v5, %v3665_v3  ;;  %v4185_v10 = vld [vmem:[%s7224_s3 + $0x54] sm:$0xf] }
  0x20   :  { %329 = vmatpush.bf16.msra.mxu0 %v3458_v28  ;;  %v3730_v9 = vor.u32 %v4204_v7, %v3729_v6  ;;  %v3659_v11 = vld [vmem:[%s7224_s3 + $0x58] sm:$0xf0]  ;;  %v3417_v13 = vld [vmem:[%s7223_s0 + $0x30] sm:$0xf]  ;;  %v4134_v14 = vld [vmem:[%s7223_s0 + $0x34] sm:$0xf0] }
  0x21   :  { %378 = vmatpush.bf16.msra.mxu1 %v3522_v31  ;;  %427 = vmatpush.bf16.msra.mxu2 %v3462_v32  ;;  %v3662_v12 = vor.u32 %v4185_v10, %v3659_v11  ;;  %v4133_v15 = vld [vmem:[%s7223_s0 + $0x34] sm:$0xf]  ;;  %v3419_v16 = vld [vmem:[%s7223_s0 + $0x38] sm:$0xf0]  ;;  %v3418_v17 = vor.u32 %v4134_v14, %v3417_v13  ;;  %v3657_v21 = vld [vmem:[%s7224_s3 + $0x50] sm:$0xf] }
  0x22   :  { %476 = vmatpush.bf16.msra.mxu3 %v3526_v35  ;;  %v3422_v18 = vor.u32 %v4133_v15, %v3419_v16  ;;  %v4201_v19 = vld [vmem:[%s7224_s3 + $0xd4] sm:$0xf]  ;;  %v3723_v20 = vld [vmem:[%s7224_s3 + $0xd8] sm:$0xf0]  ;;  %v4186_v23 = vld [vmem:[%s7224_s3 + $0x54] sm:$0xf0] }
  0x23   :  { %330 = vmatmul.bf16.vlgmr.msra.gmra.mxu0 %v3394_v36  ;;  %v3726_v22 = vor.u32 %v4201_v19, %v3723_v20  ;;  %v3721_v24 = vld [vmem:[%s7224_s3 + $0xd0] sm:$0xf]  ;;  %v4202_v25 = vld [vmem:[%s7224_s3 + $0xd4] sm:$0xf0]  ;;  %v3658_v26 = vor.u32 %v4186_v23, %v3657_v21  ;;  %v4183_v28 = vld [vmem:[%s7224_s3 + $0x44] sm:$0xf] }
  0x24   :  { %379 = vmatmul.bf16.vlgmr.msra.gmra.mxu1 %v3398_v37  ;;  %428 = vmatmul.bf16.vlgmr.msra.gmra.mxu2 %v3394_v36  ;;  %v3722_v27 = vor.u32 %v4202_v25, %v3721_v24  ;;  %v3651_v29 = vld [vmem:[%s7224_s3 + $0x48] sm:$0xf0]  ;;  %v3425_v31 = vld [vmem:[%s7223_s0 + $0x40] sm:$0xf]  ;;  %v4136_v32 = vld [vmem:[%s7223_s0 + $0x44] sm:$0xf0] }
  0x25   :  { %477 = vmatmul.bf16.vlgmr.msra.gmra.mxu3 %v3398_v37  ;;  %1470 = vmatpush.bf16.msrb.mxu2 %v3678_v40  ;;  %v3654_v30 = vor.u32 %v4183_v28, %v3651_v29  ;;  %v4135_v33 = vld [vmem:[%s7223_s0 + $0x44] sm:$0xf]  ;;  %v3427_v34 = vld [vmem:[%s7223_s0 + $0x48] sm:$0xf0]  ;;  %v3426_v35 = vor.u32 %v4136_v32, %v3425_v31  ;;  %v3649_v39 = vld [vmem:[%s7224_s3 + $0x40] sm:$0xf] }
  0x26   :  { %1519 = vmatpush.bf16.msrb.mxu3 %v3742_v50  ;;  %1372 = vmatpush.bf16.msrb.mxu0 %v3674_v54  ;;  %v3430_v36 = vor.u32 %v4135_v33, %v3427_v34  ;;  %v4199_v37 = vld [vmem:[%s7224_s3 + $0xc4] sm:$0xf]  ;;  %v3715_v38 = vld [vmem:[%s7224_s3 + $0xc8] sm:$0xf0]  ;;  %v4184_v41 = vld [vmem:[%s7224_s3 + $0x44] sm:$0xf0] }
  0x27   :  { %1421 = vmatpush.bf16.msrb.mxu1 %v3738_v55  ;;  %v3718_v40 = vor.u32 %v4199_v37, %v3715_v38  ;;  %v3713_v42 = vld [vmem:[%s7224_s3 + $0xc0] sm:$0xf]  ;;  %v4200_v43 = vld [vmem:[%s7224_s3 + $0xc4] sm:$0xf0]  ;;  %v3650_v44 = vor.u32 %v4184_v41, %v3649_v39  ;;  %v3643_v47 = vld [vmem:[%s7224_s3 + $0x38] sm:$0xf0] }
  0x28   :  { %v3433_v49 = vld [vmem:[%s7223_s0 + $0x50] sm:$0xf]  ;;  %v4138_v50 = vld [vmem:[%s7223_s0 + $0x54] sm:$0xf0]  ;;  %v4137_v51 = vld [vmem:[%s7223_s0 + $0x54] sm:$0xf] }
  0x29   :  { %1471 = vmatpush.bf16.msrb.mxu2 %v3670_v58  ;;  %v3435_v52 = vld [vmem:[%s7223_s0 + $0x58] sm:$0xf0]  ;;  %v3434_v53 = vor.u32 %v4138_v50, %v3433_v49  ;;  %v4197_v55 = vld [vmem:[%s7224_s3 + $0xb4] sm:$0xf]  ;;  %v3641_v57 = vld [vmem:[%s7224_s3 + $0x30] sm:$0xf] }
  0x2a   :  { %1520 = vmatpush.bf16.msrb.mxu3 %v3734_v4  ;;  %1373 = vmatpush.bf16.msrb.mxu0 %v3666_v8  ;;  %v3438_v54 = vor.u32 %v4137_v51, %v3435_v52  ;;  %v3707_v56 = vld [vmem:[%s7224_s3 + $0xb8] sm:$0xf0]  ;;  %v4182_v59 = vld [vmem:[%s7224_s3 + $0x34] sm:$0xf0]  ;;  %v3705_v60 = vld [vmem:[%s7224_s3 + $0xb0] sm:$0xf] }
  0x2b   :  { %1422 = vmatpush.bf16.msrb.mxu1 %v3730_v9  ;;  %v3710_v58 = vor.u32 %v4197_v55, %v3707_v56  ;;  %v4198_v61 = vld [vmem:[%s7224_s3 + $0xb4] sm:$0xf0]  ;;  %v3642_v62 = vor.u32 %v4182_v59, %v3641_v57  ;;  %v4140_v1 = vld [vmem:[%s7223_s0 + $0x64] sm:$0xf0]  ;;  %v4139_v2 = vld [vmem:[%s7223_s0 + $0x64] sm:$0xf] }
  0x2c   :  { %v3443_v3 = vld [vmem:[%s7223_s0 + $0x68] sm:$0xf0]  ;;  %v3449_v6 = vld [vmem:[%s7223_s0 + $0x70] sm:$0xf]  ;;  %v4142_v7 = vld [vmem:[%s7223_s0 + $0x74] sm:$0xf0] }
  0x2d   :  { %1472 = vmatpush.bf16.msrb.mxu2 %v3662_v12  ;;  %v3446_v5 = vor.u32 %v4139_v2, %v3443_v3  ;;  %v4141_v8 = vld [vmem:[%s7223_s0 + $0x74] sm:$0xf]  ;;  %v3451_v9 = vld [vmem:[%s7223_s0 + $0x78] sm:$0xf0]  ;;  %v3450_v10 = vor.u32 %v4142_v7, %v3449_v6  ;;  %v76_v12 = vld [vmem:[%s7225_s2] sm:$0x3] }
  0x2e   :  { %1521 = vmatpush.bf16.msrb.mxu3 %v3726_v22  ;;  %1374 = vmatpush.bf16.msrb.mxu0 %v3658_v26  ;;  %v3454_v11 = vor.u32 %v4141_v8, %v3451_v9  ;;  %v4888_v13 = vperm.slane %v76_v12, 0  ;;  %v4195_v19 = vld [vmem:[%s7224_s3 + $0xa4] sm:$0xf]  ;;  %v3699_v21 = vld [vmem:[%s7224_s3 + $0xa8] sm:$0xf0] }
  0x2f   :  { %1423 = vmatpush.bf16.msrb.mxu1 %v3722_v27  ;;  %v3633_v22 = vld [vmem:[%s7224_s3 + $0x20] sm:$0xf]  ;;  %v4180_v23 = vld [vmem:[%s7224_s3 + $0x24] sm:$0xf0]  ;;  %v3702_v25 = vor.u32 %v4195_v19, %v3699_v21  ;;  %v4911_v27 = vperm.slane %v76_v12, 1 }
  0x30   :  { %v3634_v26 = vor.u32 %v4180_v23, %v3633_v22  ;;  %v4196_v31 = vld [vmem:[%s7224_s3 + $0xa4] sm:$0xf0]  ;;  %v3627_v37 = vld [vmem:[%s7224_s3 + $0x18] sm:$0xf0]  ;;  %v3625_v38 = vld [vmem:[%s7224_s3 + $0x10] sm:$0xf] }
  0x31   :  { %1473 = vmatpush.bf16.msrb.mxu2 %v3654_v30  ;;  %v3697_v30 = vld [vmem:[%s7224_s3 + $0xa0] sm:$0xf]  ;;  %v4193_v50 = vld [vmem:[%s7224_s3 + $0x94] sm:$0xf]  ;;  %v3691_v51 = vld [vmem:[%s7224_s3 + $0x98] sm:$0xf0] }
  0x32   :  { %1522 = vmatpush.bf16.msrb.mxu3 %v3718_v40  ;;  %1375 = vmatpush.bf16.msrb.mxu0 %v3650_v44  ;;  %v3698_v34 = vor.u32 %v4196_v31, %v3697_v30  ;;  %v4194_v55 = vld [vmem:[%s7224_s3 + $0x94] sm:$0xf0]  ;;  %v4175_v56 = vld [vmem:[%s7224_s3 + $0x4] sm:$0xf]  ;;  %v3619_v59 = vld [vmem:[%s7224_s3 + $0x8] sm:$0xf0] }
  0x33   :  { %335 = vmatmul.bf16.gmra.mxu0 %v3402_v45  ;;  %v4176_v2 = vld [vmem:[%s7224_s3 + $0x4] sm:$0xf0]  ;;  %v3683_v19 = vld [vmem:[%s7224_s3 + $0x88] sm:$0xf0]  ;;  %v3681_v22 = vld [vmem:[%s7224_s3 + $0x80] sm:$0xf] }
  0x34   :  { %384 = vmatmul.bf16.gmra.mxu1 %v3406_v46  ;;  %433 = vmatmul.bf16.gmra.mxu2 %v3402_v45  ;;  %v3714_v45 = vor.u32 %v4200_v43, %v3713_v42  ;;  %v4178_v42 = vld [vmem:[%s7224_s3 + $0x14] sm:$0xf0]  ;;  %v4192_v23 = vld [vmem:[%s7224_s3 + $0x84] sm:$0xf0] }
  0x35   :  { %482 = vmatmul.bf16.gmra.mxu3 %v3406_v46  ;;  %v4181_v46 = vld [vmem:[%s7224_s3 + $0x34] sm:$0xf]  ;;  %v3626_v44 = vor.u32 %v4178_v42, %v3625_v38  ;;  %v3682_v31 = vor.u32 %v4192_v23, %v3681_v22 }
  0x36   :  { %v3646_v48 = vor.u32 %v4181_v46, %v3643_v47  ;;  %1424 = vmatpush.bf16.msrb.mxu1 %v3714_v45  ;;  %1523 = vmatpush.bf16.msrb.mxu3 %v3710_v58 }
  0x37   :  { %1376 = vmatpush.bf16.msrb.mxu0 %v3642_v62 }
  0x38   :  { %1474 = vmatpush.bf16.msrb.mxu2 %v3646_v48 }
  0x3a   :  { %1524 = vmatpush.bf16.msrb.mxu3 %v3702_v25 }
  0x3b   :  { %1377 = vmatpush.bf16.msrb.mxu0 %v3634_v26 }
  0x3f   :  { %1378 = vmatpush.bf16.msrb.mxu0 %v3626_v44 }
  0x43   :  { %340 = vmatmul.bf16.gmra.mxu0 %v3410_v63 }
  0x44   :  { %389 = vmatmul.bf16.gmra.mxu1 %v3414_v0  ;;  %438 = vmatmul.bf16.gmra.mxu2 %v3410_v63  ;;  %v3706_v63 = vor.u32 %v4198_v61, %v3705_v60 }
  0x45   :  { %487 = vmatmul.bf16.gmra.mxu3 %v3414_v0  ;;  %v3441_v0 = vld [vmem:[%s7223_s0 + $0x60] sm:$0xf] }
  0x46   :  { %1425 = vmatpush.bf16.msrb.mxu1 %v3706_v63  ;;  %v3442_v4 = vor.u32 %v4140_v1, %v3441_v0  ;;  %v3622_v0 = vor.u32 %v4175_v56, %v3619_v59  ;;  %v3617_v1 = vld [vmem:[%s7224_s3] sm:$0xf] }
  0x47   :  { %v3618_v3 = vor.u32 %v4176_v2, %v3617_v1 }
  0x49   :  { %1379 = vmatpush.bf16.msrb.mxu0 %v3618_v3 }
  0x4a   :  { %1426 = vmatpush.bf16.msrb.mxu1 %v3698_v34 }
  0x53   :  { %345 = vmatmul.bf16.gmra.mxu0 %v3418_v17 }
  0x54   :  { %394 = vmatmul.bf16.gmra.mxu1 %v3422_v18  ;;  %443 = vmatmul.bf16.gmra.mxu2 %v3418_v17  ;;  %v4179_v17 = vld [vmem:[%s7224_s3 + $0x24] sm:$0xf] }
  0x55   :  { %492 = vmatmul.bf16.gmra.mxu3 %v3422_v18  ;;  %v3635_v18 = vld [vmem:[%s7224_s3 + $0x28] sm:$0xf0] }
  0x56   :  { %v3638_v20 = vor.u32 %v4179_v17, %v3635_v18  ;;  %v4191_v18 = vld [vmem:[%s7224_s3 + $0x84] sm:$0xf] }
  0x57   :  { %v3686_v30 = vor.u32 %v4191_v18, %v3683_v19 }
  0x58   :  { %1475 = vmatpush.bf16.msrb.mxu2 %v3638_v20 }
  0x63   :  { %350 = vmatmul.bf16.gmra.mxu0 %v3426_v35 }
  0x64   :  { %399 = vmatmul.bf16.gmra.mxu1 %v3430_v36  ;;  %448 = vmatmul.bf16.gmra.mxu2 %v3426_v35 }
  0x65   :  { %497 = vmatmul.bf16.gmra.mxu3 %v3430_v36  ;;  %v4177_v36 = vld [vmem:[%s7224_s3 + $0x14] sm:$0xf] }
  0x66   :  { %v3630_v41 = vor.u32 %v4177_v36, %v3627_v37 }
  0x68   :  { %1476 = vmatpush.bf16.msrb.mxu2 %v3630_v41 }
  0x6c   :  { %1477 = vmatpush.bf16.msrb.mxu2 %v3622_v0 }
  0x73   :  { %355 = vmatmul.bf16.gmra.mxu0 %v3434_v53 }
  0x74   :  { %404 = vmatmul.bf16.gmra.mxu1 %v3438_v54  ;;  %453 = vmatmul.bf16.gmra.mxu2 %v3434_v53  ;;  %v3694_v53 = vor.u32 %v4193_v50, %v3691_v51 }
  0x75   :  { %502 = vmatmul.bf16.gmra.mxu3 %v3438_v54  ;;  %v3689_v54 = vld [vmem:[%s7224_s3 + $0x90] sm:$0xf] }
  0x76   :  { %1525 = vmatpush.bf16.msrb.mxu3 %v3694_v53  ;;  %v3690_v63 = vor.u32 %v4194_v55, %v3689_v54 }
  0x78   :  { %1427 = vmatpush.bf16.msrb.mxu1 %v3690_v63 }
  0x7a   :  { %1526 = vmatpush.bf16.msrb.mxu3 %v3686_v30 }
  0x7c   :  { %1428 = vmatpush.bf16.msrb.mxu1 %v3682_v31 }
  0x83   :  { %360 = vmatmul.bf16.gmra.mxu0 %v3442_v4 }
  0x84   :  { %409 = vmatmul.bf16.gmra.mxu1 %v3446_v5  ;;  %458 = vmatmul.bf16.gmra.mxu2 %v3442_v4 }
  0x85   :  { %507 = vmatmul.bf16.gmra.mxu3 %v3446_v5 }
  0x93   :  { %365 = vmatmul.bf16.gmra.mxu0 %v3450_v10 }
  0x94   :  { %414 = vmatmul.bf16.gmra.mxu1 %v3454_v11  ;;  %463 = vmatmul.bf16.gmra.mxu2 %v3450_v10 }
  0x95   :  { %512 = vmatmul.bf16.gmra.mxu3 %v3454_v11 }
  0xa0   :  { %v331_v14 = vpop.f32.mrf.mxu0 }
  0xa1   :  { %v332_v15 = vadd.f32 %v331_v14, %v4888_v13  ;;  %v380_v16 = vpop.f32.mrf.mxu1 }
  0xa3   :  { %v4909_v24 = vadd.f32 %v380_v16, %v332_v15 }
  0xa5   :  { %v3583_v28 = vmul.f32 -1.442695, %v4909_v24 }
  0xa7   :  { %4303 = vpow2.f32 %v3583_v28  ;;  %v429_v29 = vpop.f32.mrf.mxu2 }
  0xa8   :  { %v430_v32 = vadd.f32 %v429_v29, %v4911_v27  ;;  %v478_v33 = vpop.f32.mrf.mxu3  ;;  %v333_v35 = vpop.f32.mrf.mxu0 }
  0xa9   :  { %v334_v39 = vadd.f32 %v333_v35, %v4888_v13  ;;  %v382_v40 = vpop.f32.mrf.mxu1 }
  0xaa   :  { %v4934_v43 = vadd.f32 %v478_v33, %v430_v32 }
  0xab   :  { %v4936_v45 = vadd.f32 %v382_v40, %v334_v39 }
  0xac   :  { %v3584_v46 = vmul.f32 -1.442695, %v4934_v43 }
  0xad   :  { %v4304_v47 = vpop.eup %4303  ;;  %v3585_v48 = vmul.f32 -1.442695, %v4936_v45 }
  0xae   :  { %v4940_v49 = vadd.f32 1.0, %v4304_v47  ;;  %4305 = vpow2.f32 %v3584_v46 }
  0xaf   :  { %4307 = vpow2.f32 %v3585_v48  ;;  %v431_v52 = vpop.f32.mrf.mxu2 }
  0xb0   :  { %4309 = vrcp.f32 %v4940_v49  ;;  %v480_v57 = vpop.f32.mrf.mxu3  ;;  %v336_v58 = vpop.f32.mrf.mxu0  ;;  %v432_v60 = vadd.f32 %v431_v52, %v4911_v27  ;;  %vm651_vm1 = vweird.f32 %v4940_v49  ;;  %v655_v53 = vand.u32 2147483647, %v4940_v49 }
  0xb1   :  { %v337_v61 = vadd.f32 %v336_v58, %v4888_v13  ;;  %v385_v62 = vpop.f32.mrf.mxu1  ;;  %v657_v54 = vand.u32 2147483648, %v4940_v49 }
  0xb2   :  { %v4969_v4 = vadd.f32 %v480_v57, %v432_v60  ;;  %vm656_vm5 = vcmp.eq.f32.partialorder %v655_v53, 8.507059e+37 }
  0xb3   :  { %v4971_v5 = vadd.f32 %v385_v62, %v337_v61  ;;  %v658_v0 = vor.u32 1.1754944e-38, %v657_v54 }
  0xb4   :  { %v4306_v6 = vpop.eup %4305  ;;  %v3586_v9 = vmul.f32 -1.442695, %v4969_v4 }
  0xb5   :  { %v4308_v7 = vpop.eup %4307  ;;  %v4973_v8 = vadd.f32 1.0, %v4306_v6  ;;  %v3587_v12 = vmul.f32 -1.442695, %v4971_v5 }
  0xb6   :  { %v4976_v10 = vpop.eup %4309  ;;  %v4978_v11 = vadd.f32 1.0, %v4308_v7 }
  0xb7   :  { %v647_v14 = vmul.f32 %v4976_v10, %v4940_v49  ;;  %4311 = vrcp.f32 %v4973_v8  ;;  %v434_v15 = vpop.f32.mrf.mxu2  ;;  %vm652_vm0 = vweird.f32 %v4976_v10  ;;  %v672_v1 = vand.u32 2147483648, %v4973_v8 }
  0xb8   :  { %4313 = vrcp.f32 %v4978_v11  ;;  %v483_v16 = vpop.f32.mrf.mxu3  ;;  %v338_v17 = vpop.f32.mrf.mxu0  ;;  %v435_v25 = vadd.f32 %v434_v15, %v4911_v27  ;;  %v687_v55 = vand.u32 2147483648, %v4978_v11  ;;  %vm5024_vm2 = vmor %vm651_vm1, %vm652_vm0  ;;  %v685_v58 = vand.u32 2147483647, %v4978_v11 }
  0xb9   :  { %v648_v20 = vsub.f32 1.0, %v647_v14  ;;  %4315 = vpow2.f32 %v3586_v9  ;;  %v387_v21 = vpop.f32.mrf.mxu1  ;;  %v339_v26 = vadd.f32 %v338_v17, %v4888_v13  ;;  %vm681_vm4 = vweird.f32 %v4978_v11 }
  0xba   :  { %4317 = vpow2.f32 %v3587_v12  ;;  %v5000_v29 = vadd.f32 %v483_v16, %v435_v25  ;;  %v688_v2 = vor.u32 1.1754944e-38, %v687_v55  ;;  %vm686_vm8 = vcmp.eq.f32.partialorder %v685_v58, 8.507059e+37 }
  0xbb   :  { %v649_v28 = vmul.f32 %v4976_v10, %v648_v20  ;;  %v5004_v33 = vadd.f32 %v387_v21, %v339_v26  ;;  %vm666_vm9 = vweird.f32 %v4973_v8  ;;  %v670_v22 = vand.u32 2147483647, %v4973_v8 }
  0xbc   :  { %v3588_v36 = vmul.f32 -1.442695, %v5000_v29 }
  0xbd   :  { %v5002_v32 = vpop.eup %4311  ;;  %v3589_v39 = vmul.f32 -1.442695, %v5004_v33  ;;  %v650_v42 = vadd.f32 %v4976_v10, %v649_v28  ;;  %v673_v28 = vor.u32 1.1754944e-38, %v672_v1  ;;  %vm671_vm12 = vcmp.eq.f32.partialorder %v670_v22, 8.507059e+37 }
  0xbe   :  { %v4314_v34 = vpop.eup %4313  ;;  %v662_v35 = vmul.f32 %v5002_v32, %v4973_v8  ;;  %4319 = vpow2.f32 %v3588_v36  ;;  %vm667_vm7 = vweird.f32 %v5002_v32 }
  0xbf   :  { %v4316_v37 = vpop.eup %4315  ;;  %v677_v38 = vmul.f32 %v4314_v34, %v4978_v11  ;;  %v436_v40 = vpop.f32.mrf.mxu2  ;;  %4321 = vpow2.f32 %v3589_v39  ;;  %vm682_vm3 = vweird.f32 %v4314_v34  ;;  %v654_v59 = vsel %vm5024_vm2, %v4976_v10, %v650_v42  ;;  %vm5059_vm10 = vmor %vm666_vm9, %vm667_vm7 }
  0xc0   :  { %v4318_v41 = vpop.eup %4317  ;;  %v663_v44 = vsub.f32 1.0, %v662_v35  ;;  %v5013_v46 = vadd.f32 1.0, %v4316_v37  ;;  %v485_v47 = vpop.f32.mrf.mxu3  ;;  %v437_v61 = vadd.f32 %v436_v40, %v4911_v27  ;;  %vm683_vm6 = vmor %vm681_vm4, %vm682_vm3  ;;  %v659_v11 = vsel %vm656_vm5, %v658_v0, %v654_v59 }
  0xc1   :  { %v341_v48 = vpop.f32.mrf.mxu0  ;;  %v678_v50 = vsub.f32 1.0, %v677_v38  ;;  %v5016_v51 = vadd.f32 1.0, %v4318_v41  ;;  %v390_v52 = vpop.f32.mrf.mxu1  ;;  %v1126_v26 = vmul.f32 %v659_v11, %v4909_v24 }
  0xc2   :  { %4323 = vrcp.f32 %v5013_v46  ;;  %v664_v49 = vmul.f32 %v5002_v32, %v663_v44  ;;  %v342_v62 = vadd.f32 %v341_v48, %v4888_v13  ;;  %v5048_v20 = vadd.f32 %v485_v47, %v437_v61 }
  0xc3   :  { %v679_v57 = vmul.f32 %v4314_v34, %v678_v50  ;;  %4325 = vrcp.f32 %v5016_v51  ;;  %v700_v31 = vand.u32 2147483647, %v5013_v46  ;;  %v702_v35 = vand.u32 2147483648, %v5013_v46 }
  0xc4   :  { %v4320_v63 = vpop.eup %4319  ;;  %v5043_v15 = vadd.f32 %v390_v52, %v342_v62  ;;  %v665_v18 = vadd.f32 %v5002_v32, %v664_v49  ;;  %v3590_v37 = vmul.f32 -1.442695, %v5048_v20  ;;  %vm696_vm13 = vweird.f32 %v5013_v46 }
  0xc5   :  { %v680_v60 = vadd.f32 %v4314_v34, %v679_v57  ;;  %v4322_v3 = vpop.eup %4321  ;;  %v5039_v7 = vadd.f32 1.0, %v4320_v63  ;;  %vm701_vm15 = vcmp.eq.f32.partialorder %v700_v31, 8.507059e+37  ;;  %v717_v11 = vand.u32 2147483648, %v5016_v51 }
  0xc6   :  { %v5041_v14 = vadd.f32 1.0, %v4322_v3  ;;  %v669_v24 = vsel %vm5059_vm10, %v5002_v32, %v665_v18  ;;  %v703_v32 = vor.u32 1.1754944e-38, %v702_v35  ;;  %vm711_vm1 = vweird.f32 %v5016_v51 }
  0xc7   :  { %v684_v6 = vsel %vm683_vm6, %v4314_v34, %v680_v60  ;;  %v439_v9 = vpop.f32.mrf.mxu2  ;;  %4327 = vrcp.f32 %v5039_v7  ;;  %v674_v47 = vsel %vm671_vm12, %v673_v28, %v669_v24  ;;  %v718_v35 = vor.u32 1.1754944e-38, %v717_v11 }
  0xc8   :  { %v4324_v10 = vpop.eup %4323  ;;  %v689_v12 = vsel %vm686_vm8, %v688_v2, %v684_v6  ;;  %v488_v16 = vpop.f32.mrf.mxu3  ;;  %4329 = vrcp.f32 %v5041_v14  ;;  %v440_v8 = vadd.f32 %v439_v9, %v4911_v27  ;;  %v1127_v49 = vmul.f32 %v674_v47, %v4934_v43 }
  0xc9   :  { %v343_v17 = vpop.f32.mrf.mxu0  ;;  %v692_v19 = vmul.f32 %v4324_v10, %v5013_v46  ;;  %v392_v21 = vpop.f32.mrf.mxu1  ;;  %v1128_v23 = vmul.f32 %v689_v12, %v4936_v45  ;;  %v3591_v45 = vmul.f32 -1.442695, %v5043_v15  ;;  %vm697_vm11 = vweird.f32 %v4324_v10 }
  0xca   :  { %v5053_v25 = vpop.eup %4325  ;;  %v5073_v39 = vadd.f32 %v488_v16, %v440_v8  ;;  %vm698_vm14 = vmor %vm696_vm13, %vm697_vm11  ;;  %v344_v54 = vadd.f32 %v343_v17, %v4888_v13  ;;  %vm741_vm2 = vweird.f32 %v5041_v14  ;;  %vm726_vm7 = vweird.f32 %v5039_v7 }
  0xcb   :  { %v693_v30 = vsub.f32 1.0, %v692_v19  ;;  %v707_v38 = vmul.f32 %v5053_v25, %v5016_v51  ;;  %4331 = vpow2.f32 %v3591_v45  ;;  %v1158_v40 = vpack.c.bf16 %v1128_v23, %v1126_v26 }
  0xcc   :  { %v3592_v48 = vmul.f32 -1.442695, %v5073_v39  ;;  %4333 = vpow2.f32 %v3590_v37  ;;  %v5092_v1 = vadd.f32 %v392_v21, %v344_v54  ;;  %vm712_vm0 = vweird.f32 %v5053_v25 }
  0xcd   :  { %v694_v36 = vmul.f32 %v4324_v10, %v693_v30  ;;  %v5075_v41 = vpop.eup %4327  ;;  %1380 = vmatmul.bf16.vlgmr.msrb.gmra.mxu0 %v1158_v40  ;;  %1478 = vmatmul.bf16.vlgmr.msrb.gmra.mxu2 %v1158_v40  ;;  %v708_v58 = vsub.f32 1.0, %v707_v38  ;;  %v715_v30 = vand.u32 2147483647, %v5016_v51  ;;  %vm5120_vm3 = vmor %vm711_vm1, %vm712_vm0  ;;  %v747_v40 = vand.u32 2147483648, %v5041_v14 }
  0xce   :  { %v5081_v57 = vpop.eup %4329  ;;  %v722_v59 = vmul.f32 %v5075_v41, %v5039_v7  ;;  %4335 = vpow2.f32 %v3592_v48  ;;  %v3593_v19 = vmul.f32 -1.442695, %v5092_v1  ;;  %vm727_vm4 = vweird.f32 %v5075_v41 }
  0xcf   :  { %v695_v42 = vadd.f32 %v4324_v10, %v694_v36  ;;  %v441_v44 = vpop.f32.mrf.mxu2  ;;  %v737_v3 = vmul.f32 %v5081_v57, %v5041_v14  ;;  %v709_v6 = vmul.f32 %v5053_v25, %v708_v58  ;;  %vm742_vm5 = vweird.f32 %v5081_v57  ;;  %vm5149_vm9 = vmor %vm726_vm7, %vm727_vm4 }
  0xd0   :  { %v490_v50 = vpop.f32.mrf.mxu3  ;;  %v442_v62 = vadd.f32 %v441_v44, %v4911_v27  ;;  %v723_v9 = vsub.f32 1.0, %v722_v59  ;;  %vm716_vm6 = vcmp.eq.f32.partialorder %v715_v30, 8.507059e+37  ;;  %vm5143_vm8 = vmor %vm741_vm2, %vm742_vm5  ;;  %v748_v58 = vor.u32 1.1754944e-38, %v747_v40  ;;  %v3915_v40 = vld [vmem:[%s7226_s5 + $0x168] sm:$0xf0] }
  0xd1   :  { %v346_v52 = vpop.f32.mrf.mxu0  ;;  %v699_v53 = vsel %vm698_vm14, %v4324_v10, %v695_v42  ;;  %v395_v56 = vpop.f32.mrf.mxu1  ;;  %v738_v18 = vsub.f32 1.0, %v737_v3  ;;  %v710_v22 = vadd.f32 %v5053_v25, %v709_v6 }
  0xd2   :  { %v347_v55 = vadd.f32 %v346_v52, %v4888_v13  ;;  %v704_v46 = vsel %vm701_vm15, %v703_v32, %v699_v53  ;;  %v4332_v61 = vpop.eup %4331  ;;  %v5100_v12 = vadd.f32 %v490_v50, %v442_v62  ;;  %v724_v23 = vmul.f32 %v5075_v41, %v723_v9 }
  0xd3   :  { %v1129_v60 = vmul.f32 %v704_v46, %v4969_v4  ;;  %v5090_v0 = vadd.f32 1.0, %v4332_v61  ;;  %v4334_v4 = vpop.eup %4333  ;;  %v739_v8 = vmul.f32 %v5081_v57, %v738_v18  ;;  %v714_v37 = vsel %vm5120_vm3, %v5053_v25, %v710_v22 }
  0xd4   :  { %v5088_v63 = vadd.f32 %v395_v56, %v347_v55  ;;  %v4336_v21 = vpop.eup %4335  ;;  %v5107_v26 = vadd.f32 1.0, %v4334_v4  ;;  %v3594_v45 = vmul.f32 -1.442695, %v5100_v12  ;;  %v725_v38 = vadd.f32 %v5075_v41, %v724_v23 }
  0xd5   :  { %v1159_v2 = vpack.c.bf16 %v1129_v60, %v1127_v49  ;;  %4337 = vrcp.f32 %v5090_v0  ;;  %v5125_v51 = vadd.f32 1.0, %v4336_v21  ;;  %v740_v47 = vadd.f32 %v5081_v57, %v739_v8 }
  0xd6   :  { %v3595_v43 = vmul.f32 -1.442695, %v5088_v63  ;;  %v745_v32 = vand.u32 2147483647, %v5041_v14  ;;  %v732_v25 = vand.u32 2147483648, %v5039_v7  ;;  %v719_v53 = vsel %vm716_vm6, %v718_v35, %v714_v37 }
  0xd7   :  { %1429 = vmatmul.bf16.vlgmr.msrb.gmra.mxu1 %v1159_v2  ;;  %1527 = vmatmul.bf16.vlgmr.msrb.gmra.mxu3 %v1159_v2  ;;  %v444_v10 = vpop.f32.mrf.mxu2  ;;  %v730_v55 = vand.u32 2147483647, %v5039_v7  ;;  %v744_v14 = vsel %vm5143_vm8, %v5081_v57, %v740_v47  ;;  %v729_v56 = vsel %vm5149_vm9, %v5075_v41, %v725_v38  ;;  %v777_v57 = vand.u32 2147483648, %v5090_v0 }
  0xd8   :  { %v445_v16 = vadd.f32 %v444_v10, %v4911_v27  ;;  %4339 = vpow2.f32 %v3595_v43  ;;  %v493_v28 = vpop.f32.mrf.mxu3  ;;  %vm746_vm10 = vcmp.eq.f32.partialorder %v745_v32, 8.507059e+37  ;;  %v733_v2 = vor.u32 1.1754944e-38, %v732_v25 }
  0xd9   :  { %v348_v17 = vpop.f32.mrf.mxu0  ;;  %v397_v34 = vpop.f32.mrf.mxu1  ;;  %4341 = vpow2.f32 %v3593_v19  ;;  %v749_v3 = vsel %vm746_vm10, %v748_v58, %v744_v14  ;;  %v1130_v41 = vmul.f32 %v719_v53, %v4971_v5  ;;  %vm731_vm11 = vcmp.eq.f32.partialorder %v730_v55, 8.507059e+37 }
  0xda   :  { %v5111_v31 = vadd.f32 %v493_v28, %v445_v16  ;;  %4343 = vrcp.f32 %v5107_v26  ;;  %v349_v46 = vadd.f32 %v348_v17, %v4888_v13  ;;  %v1132_v6 = vmul.f32 %v749_v3, %v5004_v33 }
  0xdb   :  { %v5116_v24 = vpop.eup %4337  ;;  %4345 = vpow2.f32 %v3594_v45  ;;  %v734_v4 = vsel %vm731_vm11, %v733_v2, %v729_v56  ;;  %v775_v10 = vand.u32 2147483647, %v5090_v0  ;;  %v5183_v21 = vor.u32 1.1754944e-38, %v777_v57 }
  0xdc   :  { %v767_v42 = vmul.f32 %v5116_v24, %v5090_v0  ;;  %v3596_v44 = vmul.f32 -1.442695, %v5111_v31  ;;  %4347 = vrcp.f32 %v5125_v51  ;;  %v5179_v5 = vadd.f32 %v397_v34, %v349_v46  ;;  %v4249_v34 = vld [vmem:[%s7226_s5 + $0x154] sm:$0xf] }
  0xdd   :  { %v790_v22 = vand.u32 2147483647, %v5125_v51  ;;  %v1160_v23 = vpack.c.bf16 %v1132_v6, %v1130_v41  ;;  %vm771_vm12 = vweird.f32 %v5090_v0  ;;  %v792_v30 = vand.u32 2147483648, %v5125_v51 }
  0xde   :  { %v4340_v48 = vpop.eup %4339  ;;  %v768_v61 = vsub.f32 1.0, %v767_v42  ;;  %4349 = vpow2.f32 %v3596_v44  ;;  %v5195_v8 = vmul.f32 %v734_v4, %v5000_v29  ;;  %vm5197_vm13 = vcmp.eq.f32.partialorder %v775_v10, 8.507059e+37  ;;  %v4297_v29 = vld [vmem:[%s7226_s5 + $0x2d4] sm:$0xf]  ;;  %v4107_v42 = vld [vmem:[%s7226_s5 + $0x2e8] sm:$0xf0] }
  0xdf   :  { %v446_v59 = vpop.f32.mrf.mxu2  ;;  %v4342_v60 = vpop.eup %4341  ;;  %v5163_v62 = vadd.f32 1.0, %v4340_v48  ;;  %1385 = vmatmul.bf16.gmra.mxu0 %v1160_v23  ;;  %1483 = vmatmul.bf16.gmra.mxu2 %v1160_v23  ;;  %vm772_vm14 = vweird.f32 %v5116_v24  ;;  %v3597_v47 = vmul.f32 -1.442695, %v5179_v5  ;;  %v760_v25 = vand.u32 2147483647, %v5107_v26 }
  0xe0   :  { %v5165_v7 = vpop.eup %4343  ;;  %v5171_v11 = vadd.f32 1.0, %v4342_v60  ;;  %v495_v16 = vpop.f32.mrf.mxu3  ;;  %v769_v19 = vmul.f32 %v5116_v24, %v768_v61  ;;  %v447_v38 = vadd.f32 %v446_v59, %v4911_v27  ;;  %v762_v55 = vand.u32 2147483648, %v5107_v26  ;;  %vm5233_vm1 = vmor %vm771_vm12, %vm772_vm14  ;;  %v4252_v4 = vld [vmem:[%s7226_s5 + $0x164] sm:$0xf0]  ;;  %v4105_v23 = vld [vmem:[%s7226_s5 + $0x2d0] sm:$0xf] }
  0xe1   :  { %v351_v52 = vpop.f32.mrf.mxu0  ;;  %v400_v9 = vpop.f32.mrf.mxu1  ;;  %4351 = vrcp.f32 %v5163_v62  ;;  %v752_v33 = vmul.f32 %v5165_v7, %v5107_v26  ;;  %vm757_vm15 = vweird.f32 %v5165_v7  ;;  %v3918_v14 = vor.u32 %v4249_v34, %v3915_v40 }
  0xe2   :  { %v352_v49 = vadd.f32 %v351_v52, %v4888_v13  ;;  %v4346_v43 = vpop.eup %4345  ;;  %4353 = vrcp.f32 %v5171_v11  ;;  %v770_v44 = vadd.f32 %v5116_v24, %v769_v19  ;;  %v4110_v56 = vor.u32 %v4297_v29, %v4107_v42 }
  0xe3   :  { %v5175_v18 = vpop.eup %4347  ;;  %v5188_v35 = vadd.f32 1.0, %v4346_v43  ;;  %v753_v32 = vsub.f32 1.0, %v752_v33  ;;  %v5226_v58 = vadd.f32 %v495_v16, %v447_v38  ;;  %vm756_vm0 = vweird.f32 %v5107_v26  ;;  %2304 = vmatpush.bf16.msra.mxu2 %v3918_v14  ;;  %v4300_v38 = vld [vmem:[%s7226_s5 + $0x2e4] sm:$0xf0] }
  0xe4   :  { %v5173_v17 = vadd.f32 %v400_v9, %v352_v49  ;;  %v4350_v28 = vpop.eup %4349  ;;  %v782_v37 = vmul.f32 %v5175_v18, %v5125_v51  ;;  %2353 = vmatpush.bf16.msra.mxu3 %v4110_v56  ;;  %v774_v26 = vsel %vm5233_vm1, %v5116_v24, %v770_v44  ;;  %vm786_vm2 = vweird.f32 %v5125_v51  ;;  %vm758_vm3 = vmor %vm756_vm0, %vm757_vm15  ;;  %v3913_v24 = vld [vmem:[%s7226_s5 + $0x150] sm:$0xf] }
  0xe5   :  { %v5217_v48 = vadd.f32 1.0, %v4350_v28  ;;  %v754_v54 = vmul.f32 %v5165_v7, %v753_v32  ;;  %v763_v57 = vor.u32 1.1754944e-38, %v762_v55  ;;  %vm761_vm4 = vcmp.eq.f32.partialorder %v760_v25, 8.507059e+37 }
  0xe6   :  { %v3599_v45 = vmul.f32 -1.442695, %v5173_v17  ;;  %v783_v46 = vsub.f32 1.0, %v782_v37  ;;  %v837_v19 = vand.u32 2147483648, %v5163_v62  ;;  %v779_v28 = vsel %vm5197_vm13, %v5183_v21, %v774_v26 }
  0xe7   :  { %v449_v50 = vpop.f32.mrf.mxu2  ;;  %v5221_v53 = vpop.eup %4351  ;;  %v755_v49 = vadd.f32 %v5165_v7, %v754_v54  ;;  %vm5282_vm5 = vcmp.eq.f32.partialorder %v790_v22, 8.507059e+37  ;;  %v3914_v42 = vor.u32 %v4252_v4, %v3913_v24  ;;  %vm787_vm6 = vweird.f32 %v5175_v18 }
  0xe8   :  { %4355 = vpow2.f32 %v3599_v45  ;;  %v450_v60 = vadd.f32 %v449_v50, %v4911_v27  ;;  %v5240_v2 = vpop.eup %4353  ;;  %v827_v0 = vmul.f32 %v5221_v53, %v5163_v62  ;;  %v498_v3 = vpop.f32.mrf.mxu3  ;;  %v784_v16 = vmul.f32 %v5175_v18, %v783_v46  ;;  %vm5312_vm8 = vmor %vm786_vm2, %vm787_vm6 }
  0xe9   :  { %v353_v52 = vpop.f32.mrf.mxu0  ;;  %4357 = vrcp.f32 %v5188_v35  ;;  %v402_v41 = vpop.f32.mrf.mxu1  ;;  %v759_v6 = vsel %vm758_vm3, %v5165_v7, %v755_v49  ;;  %v3598_v7 = vmul.f32 -1.442695, %v5226_v58  ;;  %v835_v32 = vand.u32 2147483647, %v5163_v62  ;;  %2206 = vmatpush.bf16.msra.mxu0 %v3914_v42 }
  0xea   :  { %4359 = vpow2.f32 %v3597_v47  ;;  %v354_v61 = vadd.f32 %v353_v52, %v4888_v13  ;;  %v5252_v9 = vadd.f32 %v498_v3, %v450_v60  ;;  %v764_v33 = vsel %vm761_vm4, %v763_v57, %v759_v6 }
  0xeb   :  { %4361 = vrcp.f32 %v5217_v48  ;;  %v1133_v34 = vmul.f32 %v764_v33, %v5048_v20  ;;  %v828_v36 = vsub.f32 1.0, %v827_v0  ;;  %v797_v20 = vmul.f32 %v5240_v2, %v5171_v11 }
  0xec   :  { %v5254_v43 = vadd.f32 %v402_v41, %v354_v61  ;;  %v3600_v37 = vmul.f32 -1.442695, %v5252_v9  ;;  %v793_v47 = vor.u32 1.1754944e-38, %v792_v30  ;;  %v785_v25 = vadd.f32 %v5175_v18, %v784_v16 }
  0xed   :  { %vm831_vm7 = vweird.f32 %v5163_v62  ;;  %v1161_v50 = vpack.c.bf16 %v1133_v34, %v5195_v8  ;;  %v4106_v52 = vor.u32 %v4300_v38, %v4105_v23  ;;  %v5300_v14 = vmul.f32 %v779_v28, %v5043_v15  ;;  %v4243_v62 = vld [vmem:[%s7226_s5 + $0x124] sm:$0xf] }
  0xee   :  { %v4356_v10 = vpop.eup %4355  ;;  %v3601_v21 = vmul.f32 -1.442695, %v5254_v43  ;;  %v5302_v30 = vor.u32 1.1754944e-38, %v837_v19  ;;  %v850_v56 = vand.u32 2147483647, %v5217_v48  ;;  %v829_v46 = vmul.f32 %v5221_v53, %v828_v36 }
  0xef   :  { %v5271_v45 = vadd.f32 1.0, %v4356_v10  ;;  %v5278_v40 = vpop.eup %4357  ;;  %v451_v54 = vpop.f32.mrf.mxu2  ;;  %1434 = vmatmul.bf16.gmra.mxu1 %v1161_v50  ;;  %1532 = vmatmul.bf16.gmra.mxu3 %v1161_v50  ;;  %v798_v8 = vsub.f32 1.0, %v797_v20  ;;  %v789_v0 = vsel %vm5312_vm8, %v5175_v18, %v785_v25  ;;  %vm832_vm9 = vweird.f32 %v5221_v53 }
  0xf0   :  { %v4360_v44 = vpop.eup %4359  ;;  %2255 = vmatpush.bf16.msra.mxu1 %v4106_v52  ;;  %v452_v60 = vadd.f32 %v451_v54, %v4911_v27  ;;  %v812_v26 = vmul.f32 %v5278_v40, %v5188_v35  ;;  %vm802_vm10 = vweird.f32 %v5240_v2  ;;  %v500_v57 = vpop.f32.mrf.mxu3  ;;  %v807_v6 = vand.u32 2147483648, %v5171_v11  ;;  %vm5365_vm14 = vmor %vm831_vm7, %vm832_vm9  ;;  %v4291_v54 = vld [vmem:[%s7226_s5 + $0x2a4] sm:$0xf] }
  0xf1   :  { %4363 = vrcp.f32 %v5271_v45  ;;  %v5294_v22 = vpop.eup %4361  ;;  %v356_v55 = vpop.f32.mrf.mxu0  ;;  %v5306_v59 = vadd.f32 1.0, %v4360_v44  ;;  %v799_v51 = vmul.f32 %v5240_v2, %v798_v8  ;;  %v830_v18 = vadd.f32 %v5221_v53, %v829_v46 }
  0xf2   :  { %4365 = vpow2.f32 %v3600_v37  ;;  %v842_v49 = vmul.f32 %v5294_v22, %v5217_v48  ;;  %v357_v61 = vadd.f32 %v356_v55, %v4888_v13  ;;  %v405_v3 = vpop.f32.mrf.mxu1  ;;  %v5331_v24 = vadd.f32 %v500_v57, %v452_v60  ;;  %v4083_v55 = vld [vmem:[%s7226_s5 + $0x2b8] sm:$0xf0] }
  0xf3   :  { %4367 = vpow2.f32 %v3601_v21  ;;  %v813_v10 = vsub.f32 1.0, %v812_v26  ;;  %v800_v19 = vadd.f32 %v5240_v2, %v799_v51  ;;  %vm801_vm11 = vweird.f32 %v5171_v11 }
  0xf4   :  { %4369 = vpow2.f32 %v3598_v7  ;;  %v5333_v4 = vadd.f32 %v405_v3, %v357_v61  ;;  %v805_v7 = vand.u32 2147483647, %v5171_v11  ;;  %v794_v23 = vsel %vm5282_vm5, %v793_v47, %v789_v0  ;;  %vm5350_vm13 = vmor %vm801_vm11, %vm802_vm10 }
  0xf5   :  { %vm5341_vm12 = vcmp.eq.f32.partialorder %v835_v32, 8.507059e+37  ;;  %v843_v34 = vsub.f32 1.0, %v842_v49  ;;  %v852_v37 = vand.u32 2147483648, %v5217_v48  ;;  %4371 = vrcp.f32 %v5306_v59  ;;  %v4081_v49 = vld [vmem:[%s7226_s5 + $0x2a0] sm:$0xf] }
  0xf6   :  { %v804_v21 = vsel %vm5350_vm13, %v5240_v2, %v800_v19  ;;  %v3602_v42 = vmul.f32 -1.442695, %v5331_v24  ;;  %vm846_vm15 = vweird.f32 %v5217_v48  ;;  %v808_v47 = vor.u32 1.1754944e-38, %v807_v6 }
  0xf7   :  { %v5328_v41 = vpop.eup %4363  ;;  %v3603_v32 = vmul.f32 -1.442695, %v5333_v4  ;;  %v814_v2 = vmul.f32 %v5278_v40, %v813_v10  ;;  %v834_v25 = vsel %vm5365_vm14, %v5221_v53, %v830_v18  ;;  %vm847_vm0 = vweird.f32 %v5294_v22  ;;  %v3891_v53 = vld [vmem:[%s7226_s5 + $0x138] sm:$0xf0]  ;;  %v454_v15 = vpop.f32.mrf.mxu2 }
  0xf8   :  { %v4366_v16 = vpop.eup %4365  ;;  %v887_v44 = vmul.f32 %v5328_v41, %v5271_v45  ;;  %vm806_vm1 = vcmp.eq.f32.partialorder %v805_v7, 8.507059e+37  ;;  %v844_v50 = vmul.f32 %v5294_v22, %v843_v34  ;;  %vm817_vm2 = vweird.f32 %v5278_v40  ;;  %vm5437_vm7 = vmor %vm846_vm15, %vm847_vm0 }
  0xf9   :  { %v4368_v33 = vpop.eup %4367  ;;  %v5346_v38 = vadd.f32 1.0, %v4366_v16  ;;  %v809_v52 = vsel %vm806_vm1, %v808_v47, %v804_v21  ;;  %vm816_vm3 = vweird.f32 %v5188_v35  ;;  %v820_v8 = vand.u32 2147483647, %v5188_v35  ;;  %v358_v0 = vpop.f32.mrf.mxu0 }
  0xfa   :  { %v4370_v11 = vpop.eup %4369  ;;  %v5355_v29 = vadd.f32 1.0, %v4368_v33  ;;  %v1136_v46 = vmul.f32 %v809_v52, %v5092_v1  ;;  %vm5399_vm4 = vcmp.eq.f32.partialorder %v850_v56, 8.507059e+37  ;;  %v888_v60 = vsub.f32 1.0, %v887_v44  ;;  %vm5412_vm5 = vmor %vm816_vm3, %vm817_vm2  ;;  %v503_v33 = vpop.f32.mrf.mxu3 }
  0xfb   :  { %4373 = vrcp.f32 %v5346_v38  ;;  %v815_v61 = vadd.f32 %v5278_v40, %v814_v2  ;;  %v822_v26 = vand.u32 2147483648, %v5188_v35  ;;  %v5405_v1 = vpop.eup %4371  ;;  %v5407_v51 = vadd.f32 1.0, %v4370_v11 }
  0xfc   :  { %4375 = vrcp.f32 %v5355_v29  ;;  %v1162_v57 = vpack.c.bf16 %v1136_v46, %v5300_v14  ;;  %v3894_v3 = vor.u32 %v4243_v62, %v3891_v53  ;;  %v4086_v6 = vor.u32 %v4291_v54, %v4083_v55  ;;  %v4246_v53 = vld [vmem:[%s7226_s5 + $0x134] sm:$0xf0] }
  0xfd   :  { %4377 = vpow2.f32 %v3602_v42  ;;  %v845_v10 = vadd.f32 %v5294_v22, %v844_v50  ;;  %v819_v35 = vsel %vm5412_vm5, %v5278_v40, %v815_v61  ;;  %v823_v16 = vor.u32 1.1754944e-38, %v822_v26 }
  0xfe   :  { %4379 = vpow2.f32 %v3603_v32  ;;  %v455_v18 = vadd.f32 %v454_v15, %v4911_v27  ;;  %v1135_v14 = vmul.f32 %v794_v23, %v5073_v39  ;;  %v839_v7 = vsel %vm5341_vm12, %v5302_v30, %v834_v25  ;;  %1390 = vmatmul.bf16.gmra.mxu0 %v1162_v57  ;;  %1488 = vmatmul.bf16.gmra.mxu2 %v1162_v57  ;;  %v407_v39 = vpop.f32.mrf.mxu1 }
  0xff   :  { %vm821_vm6 = vcmp.eq.f32.partialorder %v820_v8, 8.507059e+37  ;;  %v359_v34 = vadd.f32 %v358_v0, %v4888_v13  ;;  %v853_v40 = vor.u32 1.1754944e-38, %v852_v37  ;;  %v889_v11 = vmul.f32 %v5328_v41, %v888_v60  ;;  %2305 = vmatpush.bf16.msra.mxu2 %v3894_v3  ;;  %2354 = vmatpush.bf16.msra.mxu3 %v4086_v6  ;;  %v456_v3 = vpop.f32.mrf.mxu2 }
 0x100   :  { %v824_v21 = vsel %vm821_vm6, %v823_v16, %v819_v35  ;;  %v5431_v42 = vadd.f32 %v503_v33, %v455_v18  ;;  %4381 = vrcp.f32 %v5407_v51  ;;  %v895_v28 = vand.u32 2147483647, %v5271_v45 }
 0x101   :  { %v5421_v19 = vpop.eup %4373  ;;  %v1137_v37 = vmul.f32 %v824_v21, %v5100_v12  ;;  %v5444_v20 = vadd.f32 %v407_v39, %v359_v34  ;;  %v5447_v47 = vmul.f32 %v839_v7, %v5088_v63  ;;  %v849_v48 = vsel %vm5437_vm7, %v5294_v22, %v845_v10  ;;  %v3889_v22 = vld [vmem:[%s7226_s5 + $0x120] sm:$0xf] }
 0x102   :  { %v5428_v36 = vpop.eup %4375  ;;  %v902_v32 = vmul.f32 %v5421_v19, %v5346_v38  ;;  %v3604_v50 = vmul.f32 -1.442695, %v5431_v42  ;;  %v890_v63 = vadd.f32 %v5328_v41, %v889_v11  ;;  %vm892_vm8 = vweird.f32 %v5328_v41  ;;  %v505_v7 = vpop.f32.mrf.mxu3 }
 0x103   :  { %v4378_v23 = vpop.eup %4377  ;;  %v917_v25 = vmul.f32 %v5428_v36, %v5355_v29  ;;  %v1163_v12 = vpack.c.bf16 %v1137_v37, %v1135_v14  ;;  %v897_v52 = vand.u32 2147483648, %v5271_v45  ;;  %v854_v54 = vsel %vm5399_vm4, %v853_v40, %v849_v48  ;;  %v361_v40 = vpop.f32.mrf.mxu0 }
 0x104   :  { %v4380_v44 = vpop.eup %4379  ;;  %v5454_v2 = vadd.f32 1.0, %v4378_v23  ;;  %vm891_vm9 = vweird.f32 %v5271_v45  ;;  %vm5474_vm10 = vcmp.eq.f32.partialorder %v895_v28, 8.507059e+37  ;;  %v3605_v46 = vmul.f32 -1.442695, %v5444_v20  ;;  %v4294_v45 = vld [vmem:[%s7226_s5 + $0x2b4] sm:$0xf0] }
 0x105   :  { %v5458_v62 = vadd.f32 1.0, %v4380_v44  ;;  %1439 = vmatmul.bf16.gmra.mxu1 %v1163_v12  ;;  %1537 = vmatmul.bf16.gmra.mxu3 %v1163_v12  ;;  %v912_v8 = vand.u32 2147483648, %v5346_v38  ;;  %v927_v15 = vand.u32 2147483648, %v5355_v29  ;;  %v857_v60 = vmul.f32 %v5405_v1, %v5306_v59  ;;  %vm5494_vm11 = vmor %vm891_vm9, %vm892_vm8 }
 0x106   :  { %4383 = vrcp.f32 %v5454_v2  ;;  %v5490_v61 = vpop.eup %4381  ;;  %v903_v0 = vsub.f32 1.0, %v902_v32  ;;  %v918_v57 = vsub.f32 1.0, %v917_v25  ;;  %v3890_v56 = vor.u32 %v4246_v53, %v3889_v22  ;;  %v410_v11 = vpop.f32.mrf.mxu1 }
 0x107   :  { %4385 = vrcp.f32 %v5458_v62  ;;  %v5499_v6 = vmul.f32 %v854_v54, %v5111_v31  ;;  %v894_v10 = vsel %vm5494_vm11, %v5328_v41, %v890_v63  ;;  %v898_v35 = vor.u32 1.1754944e-38, %v897_v52 }
 0x108   :  { %4387 = vpow2.f32 %v3604_v50  ;;  %vm906_vm12 = vweird.f32 %v5346_v38  ;;  %v910_v16 = vand.u32 2147483647, %v5346_v38  ;;  %v925_v18 = vand.u32 2147483647, %v5355_v29  ;;  %2207 = vmatpush.bf16.msra.mxu0 %v3890_v56  ;;  %v5564_v56 = vpop.f32.mrf.mxu2 }
 0x109   :  { %4389 = vpow2.f32 %v3605_v46  ;;  %v4082_v14 = vor.u32 %v4294_v45, %v4081_v49  ;;  %v5509_v34 = vor.u32 1.1754944e-38, %v912_v8  ;;  %vm921_vm13 = vweird.f32 %v5355_v29 }
 0x10a   :  { %v5512_v31 = vor.u32 1.1754944e-38, %v927_v15  ;;  %v858_v41 = vsub.f32 1.0, %v857_v60  ;;  %v899_v21 = vsel %vm5474_vm10, %v898_v35, %v894_v10  ;;  %v904_v39 = vmul.f32 %v5421_v19, %v903_v0 }
 0x10b   :  { %v919_v23 = vmul.f32 %v5428_v36, %v918_v57  ;;  %2256 = vmatpush.bf16.msra.mxu1 %v4082_v14  ;;  %v457_v30 = vadd.f32 %v456_v3, %v4911_v27  ;;  %v865_v48 = vand.u32 2147483647, %v5306_v59  ;;  %v867_v32 = vand.u32 2147483648, %v5306_v59 }
 0x10c   :  { %v5507_v33 = vpop.eup %4383  ;;  %v859_v44 = vmul.f32 %v5405_v1, %v858_v41  ;;  %vm907_vm14 = vweird.f32 %v5421_v19  ;;  %vm5527_vm15 = vcmp.eq.f32.partialorder %v910_v16, 8.507059e+37  ;;  %vm5531_vm0 = vcmp.eq.f32.partialorder %v925_v18, 8.507059e+37  ;;  %v5584_v18 = vpop.f32.mrf.mxu3 }
 0x10d   :  { %v5519_v28 = vpop.eup %4385  ;;  %v932_v37 = vmul.f32 %v5507_v33, %v5454_v2  ;;  %vm862_vm1 = vweird.f32 %v5405_v1  ;;  %v5536_v63 = vadd.f32 %v505_v7, %v457_v30  ;;  %v362_v52 = vadd.f32 %v361_v40, %v4888_v13  ;;  %vm5554_vm6 = vmor %vm906_vm12, %vm907_vm14  ;;  %v4237_v30 = vld [vmem:[%s7226_s5 + $0xf4] sm:$0xf] }
 0x10e   :  { %v4388_v25 = vpop.eup %4387  ;;  %vm922_vm2 = vweird.f32 %v5428_v36  ;;  %v860_v53 = vadd.f32 %v5405_v1, %v859_v44  ;;  %vm861_vm3 = vweird.f32 %v5306_v59  ;;  %v905_v55 = vadd.f32 %v5421_v19, %v904_v39  ;;  %v5591_v39 = vpop.f32.mrf.mxu1 }
 0x10f   :  { %v5540_v22 = vadd.f32 1.0, %v4388_v25  ;;  %v4390_v54 = vpop.eup %4389  ;;  %v920_v46 = vadd.f32 %v5428_v36, %v919_v23  ;;  %v947_v8 = vmul.f32 %v5519_v28, %v5458_v62  ;;  %v3606_v15 = vmul.f32 -1.442695, %v5536_v63  ;;  %vm863_vm4 = vmor %vm861_vm3, %vm862_vm1 }
 0x110   :  { %v933_v49 = vsub.f32 1.0, %v932_v37  ;;  %v942_v45 = vand.u32 2147483648, %v5454_v2  ;;  %vm866_vm5 = vcmp.eq.f32.partialorder %v865_v48, 8.507059e+37  ;;  %v868_v60 = vor.u32 1.1754944e-38, %v867_v32  ;;  %vm5570_vm7 = vmor %vm921_vm13, %vm922_vm2  ;;  %v3867_v37 = vld [vmem:[%s7226_s5 + $0x108] sm:$0xf0]  ;;  %v5644_v59 = vpop.f32.mrf.mxu2 }
 0x111   :  { %4391 = vrcp.f32 %v5540_v22  ;;  %v5559_v26 = vadd.f32 1.0, %v4390_v54  ;;  %v864_v0 = vsel %vm863_vm4, %v5405_v1, %v860_v53  ;;  %v5562_v57 = vadd.f32 %v410_v11, %v362_v52  ;;  %v363_v11 = vpop.f32.mrf.mxu0  ;;  %v4285_v48 = vld [vmem:[%s7226_s5 + $0x274] sm:$0xf]  ;;  %v4059_v32 = vld [vmem:[%s7226_s5 + $0x288] sm:$0xf0] }
 0x112   :  { %v957_v3 = vand.u32 2147483648, %v5458_v62  ;;  %v869_v10 = vsel %vm866_vm5, %v868_v60, %v864_v0  ;;  %4393 = vpow2.f32 %v3606_v15  ;;  %v872_v35 = vmul.f32 %v5490_v61, %v5407_v51 }
 0x113   :  { %v909_v1 = vsel %vm5554_vm6, %v5421_v19, %v905_v55  ;;  %v924_v16 = vsel %vm5570_vm7, %v5428_v36, %v920_v46  ;;  %v948_v29 = vsub.f32 1.0, %v947_v8  ;;  %4395 = vrcp.f32 %v5559_v26 }
 0x114   :  { %v934_v14 = vmul.f32 %v5507_v33, %v933_v49  ;;  %v940_v7 = vand.u32 2147483647, %v5454_v2  ;;  %v5588_v41 = vor.u32 1.1754944e-38, %v942_v45  ;;  %v955_v40 = vand.u32 2147483647, %v5458_v62 }
 0x115   :  { %v5594_v19 = vmul.f32 %v899_v21, %v5173_v17  ;;  %vm936_vm8 = vweird.f32 %v5454_v2  ;;  %v1140_v36 = vmul.f32 %v869_v10, %v5179_v5  ;;  %v3607_v23 = vmul.f32 -1.442695, %v5562_v57 }
 0x116   :  { %v914_v44 = vsel %vm5527_vm15, %v5509_v34, %v909_v1  ;;  %v929_v17 = vsel %vm5531_vm0, %v5512_v31, %v924_v16  ;;  %v5611_v21 = vor.u32 1.1754944e-38, %v957_v3  ;;  %v873_v5 = vsub.f32 1.0, %v872_v35 }
 0x117   :  { %v5619_v25 = vpop.eup %4391  ;;  %vm937_vm9 = vweird.f32 %v5507_v33  ;;  %v949_v34 = vmul.f32 %v5519_v28, %v948_v29  ;;  %vm951_vm10 = vweird.f32 %v5458_v62  ;;  %v1164_v31 = vpack.c.bf16 %v1140_v36, %v5447_v47 }
 0x118   :  { %4397 = vpow2.f32 %v3607_v23  ;;  %v4394_v12 = vpop.eup %4393  ;;  %v935_v50 = vadd.f32 %v5507_v33, %v934_v14  ;;  %vm5626_vm11 = vcmp.eq.f32.partialorder %v940_v7, 8.507059e+37  ;;  %v874_v53 = vmul.f32 %v5490_v61, %v873_v5  ;;  %vm5662_vm0 = vmor %vm936_vm8, %vm937_vm9  ;;  %v510_v7 = vpop.f32.mrf.mxu3 }
 0x119   :  { %vm877_vm12 = vweird.f32 %v5490_v61  ;;  %v882_v54 = vand.u32 2147483648, %v5407_v51  ;;  %v5633_v55 = vpop.eup %4395  ;;  %1395 = vmatmul.bf16.gmra.mxu0 %v1164_v31  ;;  %1493 = vmatmul.bf16.gmra.mxu2 %v1164_v31  ;;  %v5635_v46 = vadd.f32 1.0, %v4394_v12  ;;  %v880_v47 = vand.u32 2147483647, %v5407_v51  ;;  %v366_v1 = vpop.f32.mrf.mxu0  ;;  %v3865_v31 = vld [vmem:[%s7226_s5 + $0xf0] sm:$0xf] }
 0x11a   :  { %v3870_v8 = vor.u32 %v4237_v30, %v3867_v37  ;;  %v4062_v15 = vor.u32 %v4285_v48, %v4059_v32  ;;  %v962_v49 = vmul.f32 %v5619_v25, %v5540_v22  ;;  %v977_v45 = vmul.f32 %v5633_v55, %v5559_v26  ;;  %v4240_v12 = vld [vmem:[%s7226_s5 + $0x104] sm:$0xf0] }
 0x11b   :  { %v875_v60 = vadd.f32 %v5490_v61, %v874_v53  ;;  %vm876_vm13 = vweird.f32 %v5407_v51  ;;  %v5647_v0 = vmul.f32 %v914_v44, %v5252_v9  ;;  %v1144_v38 = vmul.f32 %v929_v17, %v5254_v43 }
 0x11c   :  { %vm952_vm14 = vweird.f32 %v5519_v28  ;;  %4399 = vrcp.f32 %v5635_v46  ;;  %vm5654_vm15 = vmor %vm876_vm13, %vm877_vm12  ;;  %2306 = vmatpush.bf16.msra.mxu2 %v3870_v8  ;;  %2355 = vmatpush.bf16.msra.mxu3 %v4062_v15  ;;  %v5667_v43 = vadd.f32 %v5519_v28, %v949_v34  ;;  %v972_v51 = vand.u32 2147483648, %v5540_v22  ;;  %v464_v15 = vpop.f32.mrf.mxu2 }
 0x11d   :  { %v879_v10 = vsel %vm5654_vm15, %v5490_v61, %v875_v60  ;;  %v883_v35 = vor.u32 1.1754944e-38, %v882_v54  ;;  %v939_v2 = vsel %vm5662_vm0, %v5507_v33, %v935_v50  ;;  %vm881_vm1 = vcmp.eq.f32.partialorder %v880_v47, 8.507059e+37  ;;  %v415_v61 = vpop.f32.mrf.mxu1  ;;  %vm5694_vm3 = vmor %vm951_vm10, %vm952_vm14  ;;  %v4288_v54 = vld [vmem:[%s7226_s5 + $0x284] sm:$0xf0] }
 0x11e   :  { %v4398_v16 = vpop.eup %4397  ;;  %v460_v29 = vadd.f32 %v5564_v56, %v4911_v27  ;;  %v364_v14 = vadd.f32 %v363_v11, %v4888_v13  ;;  %v963_v36 = vsub.f32 1.0, %v962_v49  ;;  %v978_v23 = vsub.f32 1.0, %v977_v45  ;;  %v4234_v49 = vld [vmem:[%s7226_s5 + $0xd4] sm:$0xf0] }
 0x11f   :  { %v5679_v30 = vadd.f32 1.0, %v4398_v16  ;;  %v884_v37 = vsel %vm881_vm1, %v883_v35, %v879_v10  ;;  %vm966_vm2 = vweird.f32 %v5540_v22  ;;  %v987_v44 = vand.u32 2147483648, %v5559_v26 }
 0x120   :  { %v1141_v17 = vmul.f32 %v884_v37, %v5226_v58  ;;  %v5685_v33 = vadd.f32 %v5584_v18, %v460_v29  ;;  %v5688_v56 = vadd.f32 %v5591_v39, %v364_v14  ;;  %v970_v5 = vand.u32 2147483647, %v5540_v22  ;;  %v3843_v37 = vld [vmem:[%s7226_s5 + $0xd8] sm:$0xf0] }
 0x121   :  { %v5699_v48 = vor.u32 1.1754944e-38, %v972_v51  ;;  %v985_v58 = vand.u32 2147483647, %v5559_v26  ;;  %4401 = vrcp.f32 %v5679_v30  ;;  %v944_v39 = vsel %vm5626_vm11, %v5588_v41, %v939_v2  ;;  %v368_v9 = vpop.f32.mrf.mxu0 }
 0x122   :  { %v5703_v18 = vpop.eup %4399  ;;  %v954_v32 = vsel %vm5694_vm3, %v5519_v28, %v5667_v43  ;;  %vm981_vm4 = vweird.f32 %v5559_v26  ;;  %v1165_v34 = vpack.c.bf16 %v1141_v17, %v5499_v6  ;;  %v964_v50 = vmul.f32 %v5619_v25, %v963_v36  ;;  %v4057_v6 = vld [vmem:[%s7226_s5 + $0x270] sm:$0xf]  ;;  %v4033_v28 = vld [vmem:[%s7226_s5 + $0x240] sm:$0xf] }
 0x123   :  { %v979_v41 = vmul.f32 %v5633_v55, %v978_v23  ;;  %v992_v52 = vmul.f32 %v5703_v18, %v5635_v46  ;;  %v3608_v53 = vmul.f32 -1.442695, %v5685_v33  ;;  %vm967_vm5 = vweird.f32 %v5619_v25  ;;  %v4231_v23 = vld [vmem:[%s7226_s5 + $0xc4] sm:$0xf] }
 0x124   :  { %vm982_vm6 = vweird.f32 %v5633_v55  ;;  %v5733_v47 = vor.u32 1.1754944e-38, %v987_v44  ;;  %1444 = vmatmul.bf16.gmra.mxu1 %v1165_v34  ;;  %1542 = vmatmul.bf16.gmra.mxu3 %v1165_v34  ;;  %v3609_v8 = vmul.f32 -1.442695, %v5688_v56  ;;  %vm5736_vm7 = vcmp.eq.f32.partialorder %v985_v58, 8.507059e+37  ;;  %v513_v44 = vpop.f32.mrf.mxu3  ;;  %vm5779_vm10 = vmor %vm966_vm2, %vm967_vm5 }
 0x125   :  { %v993_v45 = vsub.f32 1.0, %v992_v52  ;;  %v1002_v60 = vand.u32 2147483648, %v5635_v46  ;;  %4403 = vpow2.f32 %v3608_v53  ;;  %v3866_v3 = vor.u32 %v4240_v12, %v3865_v31  ;;  %vm5795_vm11 = vmor %vm981_vm4, %vm982_vm6 }
 0x126   :  { %vm5743_vm8 = vcmp.eq.f32.partialorder %v955_v40, 8.507059e+37  ;;  %4405 = vpow2.f32 %v3609_v8  ;;  %v4058_v10 = vor.u32 %v4288_v54, %v4057_v6  ;;  %v1166_v35 = vpack.c.bf16 %v1144_v38, %v5594_v19 }
 0x127   :  { %v462_v16 = vadd.f32 %v5644_v59, %v4911_v27  ;;  %v5750_v2 = vpop.eup %4401  ;;  %v965_v29 = vadd.f32 %v5619_v25, %v964_v50  ;;  %vm5753_vm9 = vcmp.eq.f32.partialorder %v970_v5, 8.507059e+37  ;;  %v980_v62 = vadd.f32 %v5633_v55, %v979_v41  ;;  %2208 = vmatpush.bf16.msra.mxu0 %v3866_v3 }
 0x128   :  { %v367_v40 = vadd.f32 %v366_v1, %v4888_v13  ;;  %v465_v36 = vadd.f32 %v464_v15, %v4911_v27  ;;  %v1145_v19 = vmul.f32 %v944_v39, %v5331_v24  ;;  %v1007_v59 = vmul.f32 %v5750_v2, %v5679_v30  ;;  %2257 = vmatpush.bf16.msra.mxu1 %v4058_v10  ;;  %v4279_v1 = vld [vmem:[%s7226_s5 + $0x244] sm:$0xf]  ;;  %v4035_v39 = vld [vmem:[%s7226_s5 + $0x258] sm:$0xf0] }
 0x129   :  { %v5763_v38 = vadd.f32 %v510_v7, %v462_v16  ;;  %v369_v24 = vadd.f32 %v368_v9, %v4888_v13  ;;  %v994_v17 = vmul.f32 %v5703_v18, %v993_v45  ;;  %v3846_v58 = vor.u32 %v4231_v23, %v3843_v37  ;;  %v417_v13 = vpop.f32.mrf.mxu1  ;;  %1400 = vmatmul.bf16.gmra.mxu0 %v1166_v35 }
 0x12a   :  { %v5784_v5 = vadd.f32 %v415_v61, %v367_v40  ;;  %v5789_v34 = vadd.f32 %v513_v44, %v465_v36  ;;  %v1008_v31 = vsub.f32 1.0, %v1007_v59  ;;  %1498 = vmatmul.bf16.gmra.mxu2 %v1166_v35  ;;  %v4038_v12 = vor.u32 %v4279_v1, %v4035_v39  ;;  %v466_v39 = vpop.f32.mrf.mxu2  ;;  %v4228_v59 = vld [vmem:[%s7226_s5 + $0xa4] sm:$0xf0] }
 0x12b   :  { %v3610_v61 = vmul.f32 -1.442695, %v5763_v38  ;;  %v5800_v50 = vadd.f32 %v417_v13, %v369_v24  ;;  %v4404_v41 = vpop.eup %4403  ;;  %v969_v52 = vsel %vm5779_vm10, %v5619_v25, %v965_v29  ;;  %v984_v26 = vsel %vm5795_vm11, %v5633_v55, %v980_v62  ;;  %2307 = vmatpush.bf16.msra.mxu2 %v3846_v58 }
 0x12c   :  { %v1000_v53 = vand.u32 2147483647, %v5635_v46  ;;  %v3611_v6 = vmul.f32 -1.442695, %v5784_v5  ;;  %v4406_v54 = vpop.eup %4405  ;;  %vm997_vm12 = vweird.f32 %v5703_v18  ;;  %v5811_v8 = vadd.f32 1.0, %v4404_v41  ;;  %2356 = vmatpush.bf16.msra.mxu3 %v4038_v12 }
 0x12d   :  { %4407 = vpow2.f32 %v3610_v61  ;;  %v3612_v15 = vmul.f32 -1.442695, %v5789_v34  ;;  %v995_v25 = vadd.f32 %v5703_v18, %v994_v17  ;;  %v5815_v45 = vadd.f32 1.0, %v4406_v54 }
 0x12e   :  { %4409 = vpow2.f32 %v3611_v6  ;;  %v3613_v55 = vmul.f32 -1.442695, %v5800_v50  ;;  %v989_v3 = vsel %vm5736_vm7, %v5733_v47, %v984_v26  ;;  %v1003_v9 = vor.u32 1.1754944e-38, %v1002_v60  ;;  %v3841_v47 = vld [vmem:[%s7226_s5 + $0xc0] sm:$0xf] }
 0x12f   :  { %v1009_v10 = vmul.f32 %v5750_v2, %v1008_v31  ;;  %4411 = vrcp.f32 %v5811_v8  ;;  %v959_v35 = vsel %vm5743_vm8, %v5611_v21, %v954_v32  ;;  %vm996_vm13 = vweird.f32 %v5635_v46  ;;  %v4282_v32 = vld [vmem:[%s7226_s5 + $0x254] sm:$0xf0]  ;;  %v3819_v46 = vld [vmem:[%s7226_s5 + $0xa8] sm:$0xf0] }
 0x130   :  { %4413 = vrcp.f32 %v5815_v45  ;;  %v974_v21 = vsel %vm5753_vm9, %v5699_v48, %v969_v52  ;;  %vm5847_vm14 = vmor %vm996_vm13, %vm997_vm12  ;;  %v1015_v43 = vand.u32 2147483647, %v5679_v30  ;;  %v1167_v11 = vpack.c.bf16 %v1145_v19, %v5647_v0 }
 0x131   :  { %4415 = vpow2.f32 %v3612_v15  ;;  %v1148_v60 = vmul.f32 %v989_v3, %v5444_v20  ;;  %v999_v48 = vsel %vm5847_vm14, %v5703_v18, %v995_v25  ;;  %v1017_v51 = vand.u32 2147483648, %v5679_v30 }
 0x132   :  { %4417 = vpow2.f32 %v3613_v55  ;;  %v1010_v29 = vadd.f32 %v5750_v2, %v1009_v10  ;;  %vm1012_vm15 = vweird.f32 %v5750_v2  ;;  %v3842_v0 = vor.u32 %v4234_v49, %v3841_v47  ;;  %v515_v47 = vpop.f32.mrf.mxu3 }
 0x133   :  { %v4408_v16 = vpop.eup %4407  ;;  %v4034_v14 = vor.u32 %v4282_v32, %v4033_v28  ;;  %v1146_v40 = vmul.f32 %v959_v35, %v5333_v4  ;;  %vm1001_vm0 = vcmp.eq.f32.partialorder %v1000_v53, 8.507059e+37  ;;  %vm1011_vm1 = vweird.f32 %v5679_v30  ;;  %v4273_v32 = vld [vmem:[%s7226_s5 + $0x214] sm:$0xf] }
 0x134   :  { %v4410_v62 = vpop.eup %4409  ;;  %v5865_v20 = vadd.f32 1.0, %v4408_v16  ;;  %v1147_v18 = vmul.f32 %v974_v21, %v5431_v42  ;;  %v1004_v19 = vsel %vm1001_vm0, %v1003_v9, %v999_v48  ;;  %vm5870_vm2 = vcmp.eq.f32.partialorder %v1015_v43, 8.507059e+37  ;;  %1449 = vmatmul.bf16.gmra.mxu1 %v1167_v11  ;;  %1547 = vmatmul.bf16.gmra.mxu3 %v1167_v11  ;;  %vm5878_vm3 = vmor %vm1011_vm1, %vm1012_vm15  ;;  %v4225_v21 = vld [vmem:[%s7226_s5 + $0x94] sm:$0xf] }
 0x135   :  { %v5867_v36 = vpop.eup %4411  ;;  %v5874_v23 = vadd.f32 1.0, %v4410_v62  ;;  %v1018_v30 = vor.u32 1.1754944e-38, %v1017_v51  ;;  %2209 = vmatpush.bf16.msra.mxu0 %v3842_v0  ;;  %2258 = vmatpush.bf16.msra.mxu1 %v4034_v14  ;;  %v1168_v1 = vpack.c.bf16 %v1148_v60, %v1146_v40  ;;  %v1014_v24 = vsel %vm5878_vm3, %v5750_v2, %v1010_v29  ;;  %v4011_v60 = vld [vmem:[%s7226_s5 + $0x228] sm:$0xf0] }
 0x136   :  { %v4414_v37 = vpop.eup %4413  ;;  %v1022_v42 = vmul.f32 %v5867_v36, %v5811_v8  ;;  %4419 = vrcp.f32 %v5865_v20  ;;  %v1032_v7 = vand.u32 2147483648, %v5811_v8  ;;  %v1045_v58 = vand.u32 2147483647, %v5815_v45 }
 0x137   :  { %v4416_v44 = vpop.eup %4415  ;;  %v1037_v17 = vmul.f32 %v4414_v37, %v5815_v45  ;;  %v1149_v22 = vmul.f32 %v1004_v19, %v5536_v63  ;;  %vm1026_vm4 = vweird.f32 %v5811_v8  ;;  %v1047_v31 = vand.u32 2147483648, %v5815_v45  ;;  %v3817_v19 = vld [vmem:[%s7226_s5 + $0x90] sm:$0xf] }
 0x138   :  { %v4418_v13 = vpop.eup %4417  ;;  %4421 = vrcp.f32 %v5874_v23  ;;  %v1023_v61 = vsub.f32 1.0, %v1022_v42  ;;  %v1030_v12 = vand.u32 2147483647, %v5811_v8  ;;  %vm1041_vm5 = vweird.f32 %v5815_v45 }
 0x139   :  { %v1038_v2 = vsub.f32 1.0, %v1037_v17  ;;  %v5899_v41 = vsel %vm5870_vm2, %v1018_v30, %v1014_v24  ;;  %v5901_v52 = vadd.f32 1.0, %v4416_v44  ;;  %v5903_v26 = vadd.f32 1.0, %v4418_v13  ;;  %1405 = vmatmul.bf16.gmra.mxu0 %v1168_v1  ;;  %v4276_v17 = vld [vmem:[%s7226_s5 + $0x224] sm:$0xf0] }
 0x13a   :  { %v467_v63 = vadd.f32 %v466_v39, %v4911_v27  ;;  %v5906_v53 = vor.u32 1.1754944e-38, %v1032_v7  ;;  %vm1042_vm6 = vweird.f32 %v4414_v37  ;;  %vm5908_vm7 = vcmp.eq.f32.partialorder %v1045_v58, 8.507059e+37  ;;  %1503 = vmatmul.bf16.gmra.mxu2 %v1168_v1  ;;  %v4009_v7 = vld [vmem:[%s7226_s5 + $0x210] sm:$0xf]  ;;  %v4219_v58 = vld [vmem:[%s7226_s5 + $0x64] sm:$0xf] }
 0x13b   :  { %v1039_v6 = vmul.f32 %v4414_v37, %v1038_v2  ;;  %v1048_v25 = vor.u32 1.1754944e-38, %v1047_v31  ;;  %v1060_v55 = vand.u32 2147483647, %v5865_v20  ;;  %v1062_v3 = vand.u32 2147483648, %v5865_v20  ;;  %vm1043_vm9 = vmor %vm1041_vm5, %vm1042_vm6  ;;  %v3795_v13 = vld [vmem:[%s7226_s5 + $0x78] sm:$0xf0] }
 0x13c   :  { %v5912_v15 = vpop.eup %4419  ;;  %v1169_v9 = vpack.c.bf16 %v1149_v22, %v1147_v18  ;;  %v1024_v27 = vmul.f32 %v5867_v36, %v1023_v61  ;;  %4423 = vrcp.f32 %v5901_v52  ;;  %vm1027_vm8 = vweird.f32 %v5867_v36  ;;  %v4267_v22 = vld [vmem:[%s7226_s5 + $0x1e4] sm:$0xf]  ;;  %v3987_v31 = vld [vmem:[%s7226_s5 + $0x1f8] sm:$0xf0]  ;;  %v3793_v2 = vld [vmem:[%s7226_s5 + $0x60] sm:$0xf] }
 0x13d   :  { %v1040_v10 = vadd.f32 %v4414_v37, %v1039_v6  ;;  %v1052_v35 = vmul.f32 %v5912_v15, %v5865_v20  ;;  %vm1056_vm10 = vweird.f32 %v5865_v20  ;;  %4425 = vrcp.f32 %v5903_v26  ;;  %vm5959_vm13 = vmor %vm1026_vm4, %vm1027_vm8  ;;  %v3985_v6 = vld [vmem:[%s7226_s5 + $0x1e0] sm:$0xf]  ;;  %v4210_v44 = vld [vmem:[%s7226_s5 + $0x14] sm:$0xf0] }
 0x13e   :  { %v5920_v49 = vpop.eup %4421  ;;  %v5928_v28 = vadd.f32 %v515_v47, %v467_v63  ;;  %vm1057_vm11 = vweird.f32 %v5912_v15  ;;  %vm5947_vm12 = vcmp.eq.f32.partialorder %v1060_v55, 8.507059e+37  ;;  %v1063_v16 = vor.u32 1.1754944e-38, %v1062_v3  ;;  %v4222_v63 = vld [vmem:[%s7226_s5 + $0x74] sm:$0xf0]  ;;  %v4213_v55 = vld [vmem:[%s7226_s5 + $0x34] sm:$0xf] }
 0x13f   :  { %v1044_v43 = vsel %vm1043_vm9, %v4414_v37, %v1040_v10  ;;  %v1053_v11 = vsub.f32 1.0, %v1052_v35  ;;  %v1067_v45 = vmul.f32 %v5920_v49, %v5874_v23  ;;  %v1075_v29 = vand.u32 2147483647, %v5874_v23  ;;  %vm5975_vm14 = vmor %vm1056_vm10, %vm1057_vm11  ;;  %v3771_v3 = vld [vmem:[%s7226_s5 + $0x48] sm:$0xf0] }
 0x140   :  { %v1049_v48 = vsel %vm5908_vm7, %v1048_v25, %v1044_v43  ;;  %v5953_v0 = vadd.f32 %v5867_v36, %v1024_v27  ;;  %v1077_v18 = vand.u32 2147483648, %v5874_v23  ;;  %v1105_v37 = vand.u32 2147483647, %v5903_v26  ;;  %v4270_v25 = vld [vmem:[%s7226_s5 + $0x1f4] sm:$0xf0] }
 0x141   :  { %v1054_v62 = vmul.f32 %v5912_v15, %v1053_v11  ;;  %v1068_v40 = vsub.f32 1.0, %v1067_v45  ;;  %v3614_v4 = vmul.f32 -1.442695, %v5928_v28  ;;  %v3822_v30 = vor.u32 %v4225_v21, %v3819_v46  ;;  %v4261_v10 = vld [vmem:[%s7226_s5 + $0x1b4] sm:$0xf] }
 0x142   :  { %v4014_v42 = vor.u32 %v4273_v32, %v4011_v60  ;;  %v5981_v1 = vpop.eup %4423  ;;  %vm5983_vm15 = vcmp.eq.f32.partialorder %v1030_v12, 8.507059e+37  ;;  %v1152_v24 = vmul.f32 %v1049_v48, %v5688_v56  ;;  %v3818_v56 = vor.u32 %v4228_v59, %v3817_v19  ;;  %v3963_v35 = vld [vmem:[%s7226_s5 + $0x1c8] sm:$0xf0]  ;;  %v3769_v43 = vld [vmem:[%s7226_s5 + $0x30] sm:$0xf] }
 0x143   :  { %v1055_v20 = vadd.f32 %v5912_v15, %v1054_v62  ;;  %v5998_v39 = vpop.eup %4425  ;;  %4427 = vpow2.f32 %v3614_v4  ;;  %2308 = vmatpush.bf16.msra.mxu2 %v3822_v30  ;;  %v1150_v61 = vmul.f32 %v5899_v41, %v5562_v57  ;;  %v1029_v57 = vsel %vm5959_vm13, %v5867_v36, %v5953_v0  ;;  %v4216_v32 = vld [vmem:[%s7226_s5 + $0x44] sm:$0xf0]  ;;  %v3961_v60 = vld [vmem:[%s7226_s5 + $0x1b0] sm:$0xf]  ;;  %v4207_v30 = vld [vmem:[%s7226_s5 + $0x4] sm:$0xf] }
 0x144   :  { %2357 = vmatpush.bf16.msra.mxu3 %v4014_v42  ;;  %v1097_v12 = vmul.f32 %v5998_v39, %v5903_v26  ;;  %1454 = vmatmul.bf16.gmra.mxu1 %v1169_v9  ;;  %v4010_v54 = vor.u32 %v4276_v17, %v4009_v7  ;;  %v1069_v36 = vmul.f32 %v5920_v49, %v1068_v40  ;;  %vm1102_vm0 = vweird.f32 %v5998_v39  ;;  %v4264_v48 = vld [vmem:[%s7226_s5 + $0x1c4] sm:$0xf0]  ;;  %v3747_v42 = vld [vmem:[%s7226_s5 + $0x18] sm:$0xf0]  ;;  %v4255_v17 = vld [vmem:[%s7226_s5 + $0x184] sm:$0xf] }
 0x145   :  { %1552 = vmatmul.bf16.gmra.mxu3 %v1169_v9  ;;  %v1059_v41 = vsel %vm5975_vm14, %v5912_v15, %v1055_v20  ;;  %2210 = vmatpush.bf16.msra.mxu0 %v3818_v56  ;;  %v6041_v9 = vmul.f32 %v5981_v1, %v5901_v52  ;;  %v1170_v27 = vpack.c.bf16 %v1152_v24, %v1150_v61  ;;  %vm1072_vm1 = vweird.f32 %v5920_v49  ;;  %v3745_v56 = vld [vmem:[%s7226_s5] sm:$0xf] }
 0x146   :  { %v1098_v15 = vsub.f32 1.0, %v1097_v12  ;;  %2259 = vmatpush.bf16.msra.mxu1 %v4010_v54  ;;  %v3798_v47 = vor.u32 %v4219_v58, %v3795_v13  ;;  %v3990_v21 = vor.u32 %v4267_v22, %v3987_v31  ;;  %v3794_v46 = vor.u32 %v4222_v63, %v3793_v2  ;;  %v3939_v58 = vld [vmem:[%s7226_s5 + $0x198] sm:$0xf0]  ;;  %v3937_v22 = vld [vmem:[%s7226_s5 + $0x180] sm:$0xf] }
 0x147   :  { %v1064_v11 = vsel %vm5947_vm12, %v1063_v16, %v1059_v41  ;;  %vm1101_vm2 = vweird.f32 %v5903_v26  ;;  %v1107_v16 = vand.u32 2147483648, %v5903_v26  ;;  %v3986_v0 = vor.u32 %v4270_v25, %v3985_v6 }
 0x148   :  { %v1099_v45 = vmul.f32 %v5998_v39, %v1098_v15  ;;  %2309 = vmatpush.bf16.msra.mxu2 %v3798_v47  ;;  %2358 = vmatpush.bf16.msra.mxu3 %v3990_v21  ;;  %v3774_v14 = vor.u32 %v4213_v55, %v3771_v3  ;;  %v3966_v62 = vor.u32 %v4261_v10, %v3963_v35  ;;  %v1083_v19 = vsub.f32 1.0, %v6041_v9  ;;  %vm6073_vm3 = vmor %vm1101_vm2, %vm1102_vm0  ;;  %v4250_v3 = vld [vmem:[%s7226_s5 + $0x15c] sm:$0xf] }
 0x149   :  { %v4428_v51 = vpop.eup %4427  ;;  %v1070_v40 = vadd.f32 %v5920_v49, %v1069_v36  ;;  %1410 = vmatmul.bf16.gmra.mxu0 %v1170_v27  ;;  %v1034_v24 = vsel %vm5983_vm15, %v5906_v53, %v1029_v57  ;;  %v3770_v20 = vor.u32 %v4216_v32, %v3769_v43  ;;  %v3962_v7 = vor.u32 %v4264_v48, %v3961_v60  ;;  %v1206_v32 = vld [vmem:[%s7227_s4] sm:$0x3] }
 0x14a   :  { %v1100_v59 = vadd.f32 %v5998_v39, %v1099_v45  ;;  %v6077_v4 = vadd.f32 1.0, %v4428_v51  ;;  %1508 = vmatmul.bf16.gmra.mxu2 %v1170_v27  ;;  %2211 = vmatpush.bf16.msra.mxu0 %v3794_v46  ;;  %v1153_v13 = vmul.f32 %v1064_v11, %v5763_v38  ;;  %vm1071_vm4 = vweird.f32 %v5874_v23  ;;  %v4258_v38 = vld [vmem:[%s7226_s5 + $0x194] sm:$0xf0]  ;;  %v6126_v41 = vpop.f32.mrf.mxu0  ;;  %v3923_v23 = vld [vmem:[%s7226_s5 + $0x170] sm:$0xf0] }
 0x14b   :  { %2260 = vmatpush.bf16.msra.mxu1 %v3986_v0  ;;  %vm6114_vm5 = vmor %vm1071_vm4, %vm1072_vm1  ;;  %v3750_v61 = vor.u32 %v4207_v30, %v3747_v42  ;;  %v1151_v12 = vmul.f32 %v1034_v24, %v5685_v33  ;;  %vm1106_vm6 = vcmp.eq.f32.partialorder %v1105_v37, 8.507059e+37  ;;  %v3942_v63 = vor.u32 %v4255_v17, %v3939_v58  ;;  %v4115_v27 = vld [vmem:[%s7226_s5 + $0x2f0] sm:$0xf0]  ;;  %v4253_v30 = vld [vmem:[%s7226_s5 + $0x16c] sm:$0xf0] }
 0x14c   :  { %v1104_v53 = vsel %vm6073_vm3, %v5998_v39, %v1100_v59  ;;  %4429 = vrcp.f32 %v6077_v4  ;;  %v1108_v39 = vor.u32 1.1754944e-38, %v1107_v16  ;;  %2310 = vmatpush.bf16.msra.mxu2 %v3774_v14  ;;  %2359 = vmatpush.bf16.msra.mxu3 %v3966_v62  ;;  %v1074_v2 = vsel %vm6114_vm5, %v5920_v49, %v1070_v40  ;;  %v4113_v58 = vld [vmem:[%s7226_s5 + $0x2d8] sm:$0xf] }
 0x14d   :  { %v1078_v6 = vor.u32 1.1754944e-38, %v1077_v18  ;;  %v3746_v54 = vor.u32 %v4210_v44, %v3745_v56  ;;  %v3938_v25 = vor.u32 %v4258_v38, %v3937_v22  ;;  %vm1076_vm7 = vcmp.eq.f32.partialorder %v1075_v29, 8.507059e+37  ;;  %v4301_v56 = vld [vmem:[%s7226_s5 + $0x2ec] sm:$0xf0] }
 0x14e   :  { %v1109_v57 = vsel %vm1106_vm6, %v1108_v39, %v1104_v53  ;;  %2212 = vmatpush.bf16.msra.mxu0 %v3770_v20  ;;  %v1084_v33 = vmul.f32 %v5981_v1, %v1083_v19  ;;  %v1171_v49 = vpack.c.bf16 %v1153_v13, %v1151_v12  ;;  %v3926_v36 = vor.u32 %v4250_v3, %v3923_v23  ;;  %v4244_v12 = vld [vmem:[%s7226_s5 + $0x12c] sm:$0xf]  ;;  %v3897_v23 = vld [vmem:[%s7226_s5 + $0x128] sm:$0xf] }
 0x14f   :  { %2261 = vmatpush.bf16.msra.mxu1 %v3962_v7  ;;  %v1079_v55 = vsel %vm1076_vm7, %v1078_v6, %v1074_v2  ;;  %v1156_v18 = vmul.f32 %v1109_v57, %v5800_v50  ;;  %vm1087_vm8 = vweird.f32 %v5981_v1  ;;  %v4298_v50 = vld [vmem:[%s7226_s5 + $0x2dc] sm:$0xf]  ;;  %v1092_v10 = vand.u32 2147483648, %v5901_v52  ;;  %v3899_v2 = vld [vmem:[%s7226_s5 + $0x140] sm:$0xf0] }
 0x150   :  { %2311 = vmatpush.bf16.msra.mxu2 %v3750_v61  ;;  %2360 = vmatpush.bf16.msra.mxu3 %v3942_v63  ;;  %v1154_v9 = vmul.f32 %v1079_v55, %v5784_v5  ;;  %v1085_v15 = vadd.f32 %v5981_v1, %v1084_v33  ;;  %v4118_v47 = vor.u32 %v4298_v50, %v4115_v27  ;;  %vm1086_vm9 = vweird.f32 %v5901_v52  ;;  %v1479_v51 = vpop.f32.mrf.mxu2  ;;  %v4292_v63 = vld [vmem:[%s7226_s5 + $0x2ac] sm:$0xf]  ;;  %v4091_v57 = vld [vmem:[%s7226_s5 + $0x2c0] sm:$0xf0] }
 0x151   :  { %v1090_v5 = vand.u32 2147483647, %v5901_v52  ;;  %v1122_v21 = vand.u32 2147483648, %v6077_v4  ;;  %vm6154_vm10 = vmor %vm1086_vm9, %vm1087_vm8  ;;  %v1120_v45 = vand.u32 2147483647, %v6077_v4  ;;  %v1093_v60 = vor.u32 1.1754944e-38, %v1092_v10 }
 0x152   :  { %v4430_v37 = vpop.eup %4429  ;;  %2213 = vmatpush.bf16.msra.mxu0 %v3746_v54  ;;  %v1172_v46 = vpack.c.bf16 %v1156_v18, %v1154_v9  ;;  %v1089_v52 = vsel %vm6154_vm10, %v5981_v1, %v1085_v15  ;;  %vm1116_vm12 = vweird.f32 %v6077_v4  ;;  %v1383_v16 = vpop.f32.mrf.mxu0  ;;  %v6166_v14 = vperm.slane %v1206_v32, 0 }
 0x153   :  { %v1112_v29 = vmul.f32 %v4430_v37, %v6077_v4  ;;  %2262 = vmatpush.bf16.msra.mxu1 %v3938_v25  ;;  %vm1117_vm11 = vweird.f32 %v4430_v37  ;;  %vm1091_vm13 = vcmp.eq.f32.partialorder %v1090_v5, 8.507059e+37  ;;  %v1123_v0 = vor.u32 1.1754944e-38, %v1122_v21  ;;  %v3921_v4 = vld [vmem:[%s7226_s5 + $0x158] sm:$0xf]  ;;  %v4089_v5 = vld [vmem:[%s7226_s5 + $0x2a8] sm:$0xf] }
 0x154   :  { %v6131_v26 = vpop.f32.mrf.mxu1  ;;  %1459 = vmatmul.bf16.gmra.mxu1 %v1171_v49  ;;  %2500 = vmatpush.bf16.msrb.mxu2 %v3926_v36  ;;  %vm1118_vm14 = vmor %vm1116_vm12, %vm1117_vm11  ;;  %v1094_v62 = vsel %vm1091_vm13, %v1093_v60, %v1089_v52  ;;  %vm1121_vm15 = vcmp.eq.f32.partialorder %v1120_v45, 8.507059e+37  ;;  %v1384_v1 = vadd.f32 %v1383_v16, %v6166_v14  ;;  %v3922_v24 = vor.u32 %v4253_v30, %v3921_v4  ;;  %v4295_v21 = vld [vmem:[%s7226_s5 + $0x2bc] sm:$0xf0]  ;;  %v3875_v4 = vld [vmem:[%s7226_s5 + $0x110] sm:$0xf0] }
 0x155   :  { %1557 = vmatmul.bf16.gmra.mxu3 %v1171_v49  ;;  %v1113_v35 = vsub.f32 1.0, %v1112_v29  ;;  %v1155_v20 = vmul.f32 %v1094_v62, %v5789_v34  ;;  %v1382_v7 = vadd.f32 %v6126_v41, %v6166_v14  ;;  %v4114_v13 = vor.u32 %v4301_v56, %v4113_v58  ;;  %v4247_v29 = vld [vmem:[%s7226_s5 + $0x13c] sm:$0xf0]  ;;  %v4286_v30 = vld [vmem:[%s7226_s5 + $0x27c] sm:$0xf] }
 0x156   :  { %2549 = vmatpush.bf16.msrb.mxu3 %v4118_v47  ;;  %2402 = vmatpush.bf16.msrb.mxu0 %v3922_v24  ;;  %v6186_v38 = vperm.slane %v1206_v32, 1  ;;  %v3902_v6 = vor.u32 %v4244_v12, %v3899_v2  ;;  %v4094_v25 = vor.u32 %v4292_v63, %v4091_v57  ;;  %v3898_v36 = vor.u32 %v4247_v29, %v3897_v23  ;;  %v4067_v24 = vld [vmem:[%s7226_s5 + $0x290] sm:$0xf0]  ;;  %v4241_v12 = vld [vmem:[%s7226_s5 + $0x10c] sm:$0xf0] }
 0x157   :  { %v1114_v11 = vmul.f32 %v4430_v37, %v1113_v35  ;;  %2451 = vmatpush.bf16.msrb.mxu1 %v4114_v13  ;;  %v4090_v43 = vor.u32 %v4295_v21, %v4089_v5  ;;  %v4065_v63 = vld [vmem:[%s7226_s5 + $0x278] sm:$0xf]  ;;  %vm3322_vm0 = vcmask 1041409   ;;  %vm3324_vm1 = vcmask 1042434  }
 0x158   :  { %v1481_v34 = vpop.f32.mrf.mxu2  ;;  %v1480_v41 = vadd.f32 %v1479_v51, %v6186_v38  ;;  %2501 = vmatpush.bf16.msrb.mxu2 %v3902_v6  ;;  %v4289_v6 = vld [vmem:[%s7226_s5 + $0x28c] sm:$0xf0]  ;;  %vm3326_vm2 = vcmask 1043459   ;;  %vm3328_vm3 = vcmask 1044484   ;;  %vm3330_vm4 = vcmask 1045509  }
 0x159   :  { %v1115_v48 = vadd.f32 %v4430_v37, %v1114_v11  ;;  %1415 = vmatmul.bf16.gmra.mxu0 %v1172_v46  ;;  %v1482_v61 = vadd.f32 %v1481_v34, %v6186_v38  ;;  %vm3332_vm5 = vcmask 1046534   ;;  %vm3334_vm6 = vcmask 1047559  }
 0x15a   :  { %1513 = vmatmul.bf16.gmra.mxu2 %v1172_v46  ;;  %v1528_v19 = vpop.f32.mrf.mxu3  ;;  %2550 = vmatpush.bf16.msrb.mxu3 %v4094_v25  ;;  %v4066_v25 = vor.u32 %v4289_v6, %v4065_v63 }
 0x15b   :  { %v1119_v40 = vsel %vm1118_vm14, %v4430_v37, %v1115_v48  ;;  %v1529_v49 = vadd.f32 %v1528_v19, %v1480_v41  ;;  %2403 = vmatpush.bf16.msrb.mxu0 %v3898_v36  ;;  %2452 = vmatpush.bf16.msrb.mxu1 %v4090_v43  ;;  %v4280_v36 = vld [vmem:[%s7226_s5 + $0x24c] sm:$0xf] }
 0x15c   :  { %v1432_v59 = vpop.f32.mrf.mxu1  ;;  %v1124_v8 = vsel %vm1121_vm15, %v1123_v0, %v1119_v40  ;;  %v1386_v33 = vpop.f32.mrf.mxu0 }
 0x15d   :  { %v1157_v42 = vmul.f32 %v1124_v8, %v5928_v28  ;;  %v1433_v17 = vadd.f32 %v1432_v59, %v1384_v1  ;;  %v1431_v28 = vadd.f32 %v6131_v26, %v1382_v7  ;;  %v1569_v26 = vmax.f32 %v1529_v49, 0.0  ;;  %v4238_v1 = vld [vmem:[%s7226_s5 + $0xfc] sm:$0xf] }
 0x15e   :  { %v1387_v15 = vadd.f32 %v1386_v33, %v6166_v14 }
 0x15f   :  { %v1173_v53 = vpack.c.bf16 %v1157_v42, %v1155_v20  ;;  %v1570_v44 = vmax.f32 %v1433_v17, 0.0  ;;  %v1568_v22 = vmax.f32 %v1431_v28, 0.0  ;;  %v3878_v42 = vor.u32 %v4238_v1, %v3875_v4  ;;  %2453 = vmatpush.bf16.msrb.mxu1 %v4066_v25  ;;  %v3803_v25 = vld [vmem:[%s7226_s5 + $0x80] sm:$0xf0] }
 0x160   :  { %v4070_v20 = vor.u32 %v4286_v30, %v4067_v24 }
 0x161   :  { %v6188_v39 = vpack.c.bf16 %v1570_v44, %v1568_v22  ;;  %2502 = vmatpush.bf16.msrb.mxu2 %v3878_v42 }
 0x162   :  { %v1530_v31 = vpop.f32.mrf.mxu3  ;;  %v1484_v18 = vpop.f32.mrf.mxu2  ;;  %2551 = vmatpush.bf16.msrb.mxu3 %v4070_v20 }
 0x163   :  { %v1531_v54 = vadd.f32 %v1530_v31, %v1482_v61  ;;  %v1485_v45 = vadd.f32 %v1484_v18, %v6186_v38  ;;  %v3873_v61 = vld [vmem:[%s7226_s5 + $0xf8] sm:$0xf]  ;;  %v3851_v18 = vld [vmem:[%s7226_s5 + $0xe0] sm:$0xf0] }
 0x164   :  { %1464 = vmatmul.bf16.gmra.mxu1 %v1173_v53  ;;  %v1388_v9 = vpop.f32.mrf.mxu0  ;;  %v3874_v2 = vor.u32 %v4241_v12, %v3873_v61 }
 0x165   :  { %1562 = vmatmul.bf16.gmra.mxu3 %v1173_v53  ;;  %v1571_v55 = vmax.f32 %v1531_v54, 0.0  ;;  %v1389_v10 = vadd.f32 %v1388_v9, %v6166_v14  ;;  %v4043_v9 = vld [vmem:[%s7226_s5 + $0x260] sm:$0xf0] }
 0x166   :  { %2404 = vmatpush.bf16.msrb.mxu0 %v3874_v2 }
 0x167   :  { %v6206_v3 = vpack.c.bf16 %v1571_v55, %v1569_v26 }
 0x169   :  { %2214 = vmatmul.bf16.vlgmr.msra.gmra.mxu0 %v6188_v39 }
 0x16a   :  { %2312 = vmatmul.bf16.vlgmr.msra.gmra.mxu2 %v6188_v39  ;;  %v1486_v46 = vpop.f32.mrf.mxu2 }
 0x16b   :  { %v1487_v48 = vadd.f32 %v1486_v46, %v6186_v38  ;;  %v4283_v46 = vld [vmem:[%s7226_s5 + $0x25c] sm:$0xf0] }
 0x16c   :  { %v1435_v37 = vpop.f32.mrf.mxu1 }
 0x16d   :  { %v1436_v27 = vadd.f32 %v1435_v37, %v1387_v15  ;;  %v4232_v37 = vld [vmem:[%s7226_s5 + $0xcc] sm:$0xf] }
 0x16e   :  { %v3854_v23 = vor.u32 %v4232_v37, %v3851_v18  ;;  %v3995_v37 = vld [vmem:[%s7226_s5 + $0x200] sm:$0xf0] }
 0x16f   :  { %v1572_v11 = vmax.f32 %v1436_v27, 0.0 }
 0x170   :  { %2503 = vmatpush.bf16.msrb.mxu2 %v3854_v23 }
 0x172   :  { %v1533_v50 = vpop.f32.mrf.mxu3 }
 0x173   :  { %v1534_v52 = vadd.f32 %v1533_v50, %v1485_v45  ;;  %v4046_v50 = vor.u32 %v4280_v36, %v4043_v9  ;;  %v4226_v45 = vld [vmem:[%s7226_s5 + $0x9c] sm:$0xf] }
 0x174   :  { %2263 = vmatmul.bf16.vlgmr.msra.gmra.mxu1 %v6206_v3  ;;  %v1437_v35 = vpop.f32.mrf.mxu1 }
 0x175   :  { %2361 = vmatmul.bf16.vlgmr.msra.gmra.mxu3 %v6206_v3  ;;  %v1438_v47 = vadd.f32 %v1437_v35, %v1389_v10  ;;  %v1573_v62 = vmax.f32 %v1534_v52, 0.0  ;;  %v3849_v10 = vld [vmem:[%s7226_s5 + $0xc8] sm:$0xf]  ;;  %v4235_v35 = vld [vmem:[%s7226_s5 + $0xdc] sm:$0xf0] }
 0x176   :  { %2552 = vmatpush.bf16.msrb.mxu3 %v4046_v50  ;;  %v3850_v21 = vor.u32 %v4235_v35, %v3849_v10 }
 0x177   :  { %v1574_v32 = vmax.f32 %v1438_v47, 0.0  ;;  %v4041_v47 = vld [vmem:[%s7226_s5 + $0x248] sm:$0xf] }
 0x178   :  { %v4042_v43 = vor.u32 %v4283_v46, %v4041_v47  ;;  %2405 = vmatpush.bf16.msrb.mxu0 %v3850_v21 }
 0x179   :  { %v6225_v60 = vpack.c.bf16 %v1574_v32, %v1572_v11  ;;  %v3827_v32 = vld [vmem:[%s7226_s5 + $0xb0] sm:$0xf0] }
 0x17a   :  { %v1535_v16 = vpop.f32.mrf.mxu3  ;;  %2454 = vmatpush.bf16.msrb.mxu1 %v4042_v43 }
 0x17b   :  { %v1391_v51 = vpop.f32.mrf.mxu0  ;;  %v1536_v0 = vadd.f32 %v1535_v16, %v1487_v48  ;;  %2219 = vmatmul.bf16.gmra.mxu0 %v6225_v60  ;;  %2317 = vmatmul.bf16.gmra.mxu2 %v6225_v60  ;;  %v3830_v48 = vor.u32 %v4226_v45, %v3827_v32  ;;  %v4274_v16 = vld [vmem:[%s7226_s5 + $0x21c] sm:$0xf]  ;;  %v4223_v45 = vld [vmem:[%s7226_s5 + $0x7c] sm:$0xf0]  ;;  %v3993_v32 = vld [vmem:[%s7226_s5 + $0x1e8] sm:$0xf] }
 0x17c   :  { %v1392_v17 = vadd.f32 %v1391_v51, %v6166_v14 }
 0x17d   :  { %v1575_v40 = vmax.f32 %v1536_v0, 0.0  ;;  %v4019_v0 = vld [vmem:[%s7226_s5 + $0x230] sm:$0xf0]  ;;  %2504 = vmatpush.bf16.msrb.mxu2 %v3830_v48 }
 0x17f   :  { %v6230_v19 = vpack.c.bf16 %v1575_v40, %v1573_v62 }
 0x181   :  { %v1489_v8 = vpop.f32.mrf.mxu2 }
 0x182   :  { %v1440_v59 = vpop.f32.mrf.mxu1  ;;  %v1490_v22 = vadd.f32 %v1489_v8, %v6186_v38 }
 0x183   :  { %v1393_v7 = vpop.f32.mrf.mxu0  ;;  %v1441_v56 = vadd.f32 %v1440_v59, %v1392_v17  ;;  %v4022_v59 = vor.u32 %v4274_v16, %v4019_v0  ;;  %v4271_v16 = vld [vmem:[%s7226_s5 + $0x1fc] sm:$0xf0] }
 0x184   :  { %2268 = vmatmul.bf16.gmra.mxu1 %v6230_v19  ;;  %v1394_v13 = vadd.f32 %v1393_v7, %v6166_v14 }
 0x185   :  { %2366 = vmatmul.bf16.gmra.mxu3 %v6230_v19  ;;  %v1576_v34 = vmax.f32 %v1441_v56, 0.0 }
 0x186   :  { %2553 = vmatpush.bf16.msrb.mxu3 %v4022_v59 }
 0x188   :  { %v1538_v58 = vpop.f32.mrf.mxu3 }
 0x189   :  { %v1491_v44 = vpop.f32.mrf.mxu2  ;;  %v1539_v57 = vadd.f32 %v1538_v58, %v1490_v22 }
 0x18a   :  { %v1442_v53 = vpop.f32.mrf.mxu1  ;;  %v1492_v54 = vadd.f32 %v1491_v44, %v6186_v38 }
 0x18b   :  { %v1443_v28 = vadd.f32 %v1442_v53, %v1394_v13  ;;  %v1577_v55 = vmax.f32 %v1539_v57, 0.0  ;;  %v3825_v13 = vld [vmem:[%s7226_s5 + $0x98] sm:$0xf]  ;;  %v4229_v53 = vld [vmem:[%s7226_s5 + $0xac] sm:$0xf0] }
 0x18c   :  { %v3826_v22 = vor.u32 %v4229_v53, %v3825_v13 }
 0x18d   :  { %v1578_v31 = vmax.f32 %v1443_v28, 0.0  ;;  %v4017_v28 = vld [vmem:[%s7226_s5 + $0x218] sm:$0xf] }
 0x18e   :  { %2406 = vmatpush.bf16.msrb.mxu0 %v3826_v22 }
 0x18f   :  { %v6261_v41 = vpack.c.bf16 %v1578_v31, %v1576_v34  ;;  %v4277_v31 = vld [vmem:[%s7226_s5 + $0x22c] sm:$0xf0] }
 0x190   :  { %v1540_v33 = vpop.f32.mrf.mxu3  ;;  %v4018_v12 = vor.u32 %v4277_v31, %v4017_v28 }
 0x191   :  { %v1541_v49 = vadd.f32 %v1540_v33, %v1492_v54  ;;  %2224 = vmatmul.bf16.gmra.mxu0 %v6261_v41  ;;  %2322 = vmatmul.bf16.gmra.mxu2 %v6261_v41  ;;  %v4220_v54 = vld [vmem:[%s7226_s5 + $0x6c] sm:$0xf] }
 0x192   :  { %2455 = vmatpush.bf16.msrb.mxu1 %v4018_v12 }
 0x193   :  { %v1579_v26 = vmax.f32 %v1541_v49, 0.0  ;;  %v3806_v49 = vor.u32 %v4220_v54, %v3803_v25  ;;  %v3777_v25 = vld [vmem:[%s7226_s5 + $0x38] sm:$0xf] }
 0x195   :  { %v6272_v29 = vpack.c.bf16 %v1579_v26, %v1577_v55  ;;  %v4268_v26 = vld [vmem:[%s7226_s5 + $0x1ec] sm:$0xf]  ;;  %2505 = vmatpush.bf16.msrb.mxu2 %v3806_v49  ;;  %v3969_v49 = vld [vmem:[%s7226_s5 + $0x1b8] sm:$0xf] }
 0x196   :  { %v1396_v15 = vpop.f32.mrf.mxu0  ;;  %v3998_v36 = vor.u32 %v4268_v26, %v3995_v37 }
 0x197   :  { %2273 = vmatmul.bf16.gmra.mxu1 %v6272_v29  ;;  %2371 = vmatmul.bf16.gmra.mxu3 %v6272_v29  ;;  %v1397_v51 = vadd.f32 %v1396_v15, %v6166_v14 }
 0x198   :  { %2554 = vmatpush.bf16.msrb.mxu3 %v3998_v36 }
 0x19c   :  { %v1494_v27 = vpop.f32.mrf.mxu2 }
 0x19d   :  { %v1495_v24 = vadd.f32 %v1494_v27, %v6186_v38 }
 0x19e   :  { %v1398_v5 = vpop.f32.mrf.mxu0 }
 0x19f   :  { %v1399_v1 = vadd.f32 %v1398_v5, %v6166_v14 }
 0x1a1   :  { %v1445_v11 = vpop.f32.mrf.mxu1 }
 0x1a2   :  { %v1446_v8 = vadd.f32 %v1445_v11, %v1397_v51  ;;  %v3801_v11 = vld [vmem:[%s7226_s5 + $0x68] sm:$0xf] }
 0x1a3   :  { %v3802_v51 = vor.u32 %v4223_v45, %v3801_v11  ;;  %v3947_v11 = vld [vmem:[%s7226_s5 + $0x1a0] sm:$0xf0]  ;;  %v3753_v45 = vld [vmem:[%s7226_s5 + $0x8] sm:$0xf] }
 0x1a4   :  { %v1496_v52 = vpop.f32.mrf.mxu2  ;;  %v1580_v42 = vmax.f32 %v1446_v8, 0.0 }
 0x1a5   :  { %v1497_v56 = vadd.f32 %v1496_v52, %v6186_v38  ;;  %2407 = vmatpush.bf16.msrb.mxu0 %v3802_v51  ;;  %v4211_v51 = vld [vmem:[%s7226_s5 + $0x1c] sm:$0xf0] }
 0x1a6   :  { %v1401_v40 = vpop.f32.mrf.mxu0 }
 0x1a7   :  { %v1543_v62 = vpop.f32.mrf.mxu3  ;;  %v1402_v55 = vadd.f32 %v1401_v40, %v6166_v14 }
 0x1a8   :  { %v1544_v17 = vadd.f32 %v1543_v62, %v1495_v24  ;;  %v3994_v62 = vor.u32 %v4271_v16, %v3993_v32  ;;  %v3945_v16 = vld [vmem:[%s7226_s5 + $0x188] sm:$0xf] }
 0x1a9   :  { %v1447_v4 = vpop.f32.mrf.mxu1 }
 0x1aa   :  { %v1448_v30 = vadd.f32 %v1447_v4, %v1399_v1  ;;  %v1581_v63 = vmax.f32 %v1544_v17, 0.0  ;;  %2456 = vmatpush.bf16.msrb.mxu1 %v3994_v62  ;;  %v4214_v4 = vld [vmem:[%s7226_s5 + $0x3c] sm:$0xf]  ;;  %v3971_v17 = vld [vmem:[%s7226_s5 + $0x1d0] sm:$0xf0] }
 0x1ac   :  { %v1582_v20 = vmax.f32 %v1448_v30, 0.0  ;;  %v3779_v30 = vld [vmem:[%s7226_s5 + $0x50] sm:$0xf0] }
 0x1ad   :  { %v1499_v7 = vpop.f32.mrf.mxu2  ;;  %v3782_v24 = vor.u32 %v4214_v4, %v3779_v30 }
 0x1ae   :  { %v6309_v58 = vpack.c.bf16 %v1582_v20, %v1580_v42  ;;  %v1403_v34 = vpop.f32.mrf.mxu0  ;;  %v1500_v35 = vadd.f32 %v1499_v7, %v6186_v38  ;;  %v4262_v7 = vld [vmem:[%s7226_s5 + $0x1bc] sm:$0xf] }
 0x1af   :  { %v1545_v44 = vpop.f32.mrf.mxu3  ;;  %v1404_v15 = vadd.f32 %v1403_v34, %v6166_v14  ;;  %2506 = vmatpush.bf16.msrb.mxu2 %v3782_v24  ;;  %v3974_v53 = vor.u32 %v4262_v7, %v3971_v17 }
 0x1b0   :  { %v1546_v61 = vadd.f32 %v1545_v44, %v1497_v56  ;;  %2229 = vmatmul.bf16.gmra.mxu0 %v6309_v58  ;;  %2327 = vmatmul.bf16.gmra.mxu2 %v6309_v58 }
 0x1b1   :  { %v1450_v2 = vpop.f32.mrf.mxu1  ;;  %2555 = vmatpush.bf16.msrb.mxu3 %v3974_v53 }
 0x1b2   :  { %v1583_v6 = vmax.f32 %v1546_v61, 0.0  ;;  %v1451_v9 = vadd.f32 %v1450_v2, %v1402_v55 }
 0x1b4   :  { %v6326_v57 = vpack.c.bf16 %v1583_v6, %v1581_v63  ;;  %v1584_v10 = vmax.f32 %v1451_v9, 0.0 }
 0x1b5   :  { %v1501_v33 = vpop.f32.mrf.mxu2 }
 0x1b6   :  { %2278 = vmatmul.bf16.gmra.mxu1 %v6326_v57  ;;  %2376 = vmatmul.bf16.gmra.mxu3 %v6326_v57  ;;  %v1406_v23 = vpop.f32.mrf.mxu0  ;;  %v1502_v43 = vadd.f32 %v1501_v33, %v6186_v38  ;;  %v4217_v33 = vld [vmem:[%s7226_s5 + $0x4c] sm:$0xf0] }
 0x1b7   :  { %v1548_v18 = vpop.f32.mrf.mxu3  ;;  %v1407_v20 = vadd.f32 %v1406_v23, %v6166_v14  ;;  %v3778_v37 = vor.u32 %v4217_v33, %v3777_v25  ;;  %v4299_v33 = vld [vmem:[%s7226_s5 + $0x2e4] sm:$0xf] }
 0x1b8   :  { %v1549_v21 = vadd.f32 %v1548_v18, %v1500_v35  ;;  %v4265_v18 = vld [vmem:[%s7226_s5 + $0x1cc] sm:$0xf0]  ;;  %v3755_v35 = vld [vmem:[%s7226_s5 + $0x20] sm:$0xf0] }
 0x1b9   :  { %v1452_v50 = vpop.f32.mrf.mxu1  ;;  %v3970_v36 = vor.u32 %v4265_v18, %v3969_v49  ;;  %2408 = vmatpush.bf16.msrb.mxu0 %v3778_v37  ;;  %v4123_v49 = vld [vmem:[%s7226_s5 + $0x2f8] sm:$0xf0] }
 0x1ba   :  { %v1453_v27 = vadd.f32 %v1452_v50, %v1404_v15  ;;  %v1585_v59 = vmax.f32 %v1549_v21, 0.0  ;;  %v4126_v18 = vor.u32 %v4299_v33, %v4123_v49 }
 0x1bb   :  { %2457 = vmatpush.bf16.msrb.mxu1 %v3970_v36 }
 0x1bc   :  { %v1586_v47 = vmax.f32 %v1453_v27, 0.0 }
 0x1bd   :  { %v1504_v5 = vpop.f32.mrf.mxu2 }
 0x1be   :  { %v6345_v46 = vpack.c.bf16 %v1586_v47, %v1584_v10  ;;  %v1408_v48 = vpop.f32.mrf.mxu0  ;;  %v1505_v61 = vadd.f32 %v1504_v5, %v6186_v38  ;;  %v4208_v10 = vld [vmem:[%s7226_s5 + $0xc] sm:$0xf] }
 0x1bf   :  { %v1550_v52 = vpop.f32.mrf.mxu3  ;;  %v1409_v44 = vadd.f32 %v1408_v48, %v6166_v14  ;;  %v3758_v5 = vor.u32 %v4208_v10, %v3755_v35  ;;  %v6461_v10 = vld [vmem:[%s7228_s6] sm:$0x3f] }
 0x1c0   :  { %v1551_v0 = vadd.f32 %v1550_v52, %v1502_v43  ;;  %2234 = vmatmul.bf16.gmra.mxu0 %v6345_v46  ;;  %2332 = vmatmul.bf16.gmra.mxu2 %v6345_v46  ;;  %v4256_v43 = vld [vmem:[%s7226_s5 + $0x18c] sm:$0xf] }
 0x1c1   :  { %v1455_v40 = vpop.f32.mrf.mxu1  ;;  %2507 = vmatpush.bf16.msrb.mxu2 %v3758_v5  ;;  %v3950_v48 = vor.u32 %v4256_v43, %v3947_v11  ;;  %v4302_v5 = vld [vmem:[%s7226_s5 + $0x2f4] sm:$0xf0] }
 0x1c2   :  { %v1587_v8 = vmax.f32 %v1551_v0, 0.0  ;;  %v1456_v28 = vadd.f32 %v1455_v40, %v1407_v20  ;;  %v4259_v0 = vld [vmem:[%s7226_s5 + $0x19c] sm:$0xf0] }
 0x1c3   :  { %2556 = vmatpush.bf16.msrb.mxu3 %v3950_v48 }
 0x1c4   :  { %v6362_v1 = vpack.c.bf16 %v1587_v8, %v1585_v59  ;;  %v1588_v31 = vmax.f32 %v1456_v28, 0.0  ;;  %v3754_v59 = vor.u32 %v4211_v51, %v3753_v45  ;;  %v3946_v8 = vor.u32 %v4259_v0, %v3945_v16 }
 0x1c5   :  { %v1506_v42 = vpop.f32.mrf.mxu2  ;;  %v6471_v45 = vperm.slane %v6461_v10, 0 }
 0x1c6   :  { %2283 = vmatmul.bf16.gmra.mxu1 %v6362_v1  ;;  %2381 = vmatmul.bf16.gmra.mxu3 %v6362_v1  ;;  %v1411_v13 = vpop.f32.mrf.mxu0  ;;  %v1507_v54 = vadd.f32 %v1506_v42, %v6186_v38 }
 0x1c7   :  { %v1412_v21 = vadd.f32 %v1411_v13, %v6166_v14  ;;  %2409 = vmatpush.bf16.msrb.mxu0 %v3754_v59  ;;  %2458 = vmatpush.bf16.msrb.mxu1 %v3946_v8  ;;  %v3907_v59 = vld [vmem:[%s7226_s5 + $0x148] sm:$0xf0] }
 0x1c8   :  { %v1553_v56 = vpop.f32.mrf.mxu3  ;;  %2745 = vmatpush.bf16.msra.mxu3 %v4126_v18 }
 0x1c9   :  { %v1457_v34 = vpop.f32.mrf.mxu1  ;;  %v1554_v63 = vadd.f32 %v1553_v56, %v1505_v61 }
 0x1ca   :  { %v1458_v22 = vadd.f32 %v1457_v34, %v1409_v44  ;;  %v4251_v34 = vld [vmem:[%s7226_s5 + $0x164] sm:$0xf] }
 0x1cb   :  { %v1589_v15 = vmax.f32 %v1554_v63, 0.0 }
 0x1cc   :  { %v1590_v12 = vmax.f32 %v1458_v22, 0.0  ;;  %v3931_v22 = vld [vmem:[%s7226_s5 + $0x178] sm:$0xf0] }
 0x1cd   :  { %v1509_v2 = vpop.f32.mrf.mxu2  ;;  %v3934_v61 = vor.u32 %v4251_v34, %v3931_v22 }
 0x1ce   :  { %v6381_v6 = vpack.c.bf16 %v1590_v12, %v1588_v31  ;;  %v1413_v26 = vpop.f32.mrf.mxu0  ;;  %v1510_v24 = vadd.f32 %v1509_v2, %v6186_v38 }
 0x1cf   :  { %v1414_v40 = vadd.f32 %v1413_v26, %v6166_v14  ;;  %2696 = vmatpush.bf16.msra.mxu2 %v3934_v61 }
 0x1d0   :  { %v1555_v55 = vpop.f32.mrf.mxu3  ;;  %2239 = vmatmul.bf16.gmra.mxu0 %v6381_v6  ;;  %2337 = vmatmul.bf16.gmra.mxu2 %v6381_v6 }
 0x1d1   :  { %v1556_v23 = vadd.f32 %v1555_v55, %v1507_v54  ;;  %v1460_v9 = vpop.f32.mrf.mxu1  ;;  %v3929_v55 = vld [vmem:[%s7226_s5 + $0x160] sm:$0xf] }
 0x1d2   :  { %v1461_v62 = vadd.f32 %v1460_v9, %v1412_v21 }
 0x1d3   :  { %v1591_v50 = vmax.f32 %v1556_v23, 0.0  ;;  %v4254_v23 = vld [vmem:[%s7226_s5 + $0x174] sm:$0xf0] }
 0x1d4   :  { %v1592_v42 = vmax.f32 %v1461_v62, 0.0 }
 0x1d5   :  { %v6398_v27 = vpack.c.bf16 %v1591_v50, %v1589_v15  ;;  %v1511_v47 = vpop.f32.mrf.mxu2  ;;  %v3930_v15 = vor.u32 %v4254_v23, %v3929_v55  ;;  %v4097_v55 = vld [vmem:[%s7226_s5 + $0x2b0] sm:$0xf] }
 0x1d6   :  { %v1416_v52 = vpop.f32.mrf.mxu0  ;;  %v1512_v13 = vadd.f32 %v1511_v47, %v6186_v38  ;;  %v4121_v47 = vld [vmem:[%s7226_s5 + $0x2e0] sm:$0xf] }
 0x1d7   :  { %2288 = vmatmul.bf16.gmra.mxu1 %v6398_v27  ;;  %2386 = vmatmul.bf16.gmra.mxu3 %v6398_v27  ;;  %v1417_v25 = vadd.f32 %v1416_v52, %v6166_v14  ;;  %v4122_v21 = vor.u32 %v4302_v5, %v4121_v47 }
 0x1d8   :  { %v1558_v32 = vpop.f32.mrf.mxu3  ;;  %2598 = vmatpush.bf16.msra.mxu0 %v3930_v15 }
 0x1d9   :  { %v1462_v4 = vpop.f32.mrf.mxu1  ;;  %v1559_v17 = vadd.f32 %v1558_v32, %v1510_v24  ;;  %2647 = vmatpush.bf16.msra.mxu1 %v4122_v21  ;;  %v4239_v21 = vld [vmem:[%s7226_s5 + $0x104] sm:$0xf] }
 0x1da   :  { %v1463_v30 = vadd.f32 %v1462_v4, %v1414_v40  ;;  %v4245_v40 = vld [vmem:[%s7226_s5 + $0x134] sm:$0xf] }
 0x1db   :  { %v1593_v12 = vmax.f32 %v1559_v17, 0.0 }
 0x1dc   :  { %v1594_v20 = vmax.f32 %v1463_v30, 0.0  ;;  %v3910_v30 = vor.u32 %v4245_v40, %v3907_v59  ;;  %v3881_v59 = vld [vmem:[%s7226_s5 + $0x100] sm:$0xf] }
 0x1dd   :  { %v1514_v7 = vpop.f32.mrf.mxu2 }
 0x1de   :  { %v6429_v56 = vpack.c.bf16 %v1594_v20, %v1592_v42  ;;  %v1418_v28 = vpop.f32.mrf.mxu0  ;;  %v1515_v43 = vadd.f32 %v1514_v7, %v6186_v38  ;;  %v6486_v20 = vperm.slane %v6461_v10, 1  ;;  %2697 = vmatpush.bf16.msra.mxu2 %v3910_v30 }
 0x1df   :  { %v1419_v9 = vadd.f32 %v1418_v28, %v6166_v14  ;;  %v3905_v28 = vld [vmem:[%s7226_s5 + $0x130] sm:$0xf] }
 0x1e0   :  { %v1560_v53 = vpop.f32.mrf.mxu3  ;;  %2244 = vmatmul.bf16.gmra.mxu0 %v6429_v56  ;;  %2342 = vmatmul.bf16.gmra.mxu2 %v6429_v56 }
 0x1e1   :  { %v1561_v44 = vadd.f32 %v1560_v53, %v1512_v13  ;;  %v1465_v31 = vpop.f32.mrf.mxu1  ;;  %v4293_v13 = vld [vmem:[%s7226_s5 + $0x2b4] sm:$0xf]  ;;  %v4099_v53 = vld [vmem:[%s7226_s5 + $0x2c8] sm:$0xf0] }
 0x1e2   :  { %v1466_v36 = vadd.f32 %v1465_v31, %v1417_v25  ;;  %v4102_v22 = vor.u32 %v4293_v13, %v4099_v53  ;;  %v4248_v31 = vld [vmem:[%s7226_s5 + $0x144] sm:$0xf0] }
 0x1e3   :  { %v1595_v2 = vmax.f32 %v1561_v44, 0.0 }
 0x1e4   :  { %v1596_v14 = vmax.f32 %v1466_v36, 0.0  ;;  %2746 = vmatpush.bf16.msra.mxu3 %v4102_v22 }
 0x1e5   :  { %v6440_v63 = vpack.c.bf16 %v1595_v2, %v1593_v12  ;;  %v1516_v54 = vpop.f32.mrf.mxu2  ;;  %v3906_v2 = vor.u32 %v4248_v31, %v3905_v28 }
 0x1e6   :  { %v2215_v37 = vpop.f32.mrf.mxu0  ;;  %v1517_v51 = vadd.f32 %v1516_v54, %v6186_v38 }
 0x1e7   :  { %2293 = vmatmul.bf16.gmra.mxu1 %v6440_v63  ;;  %2391 = vmatmul.bf16.gmra.mxu3 %v6440_v63  ;;  %v2216_v62 = vadd.f32 %v2215_v37, %v6471_v45 }
 0x1e8   :  { %v1563_v26 = vpop.f32.mrf.mxu3  ;;  %2599 = vmatpush.bf16.msra.mxu0 %v3906_v2 }
 0x1e9   :  { %v1467_v50 = vpop.f32.mrf.mxu1  ;;  %v1564_v52 = vadd.f32 %v1563_v26, %v1515_v43  ;;  %v4296_v26 = vld [vmem:[%s7226_s5 + $0x2c4] sm:$0xf0] }
 0x1ea   :  { %v1468_v35 = vadd.f32 %v1467_v50, %v1419_v9  ;;  %v4098_v37 = vor.u32 %v4296_v26, %v4097_v55 }
 0x1eb   :  { %v1597_v38 = vmax.f32 %v1564_v52, 0.0 }
 0x1ec   :  { %v1598_v11 = vmax.f32 %v1468_v35, 0.0  ;;  %2648 = vmatpush.bf16.msra.mxu1 %v4098_v37 }
 0x1ed   :  { %v2313_v32 = vpop.f32.mrf.mxu2 }
 0x1ee   :  { %v6473_v48 = vpack.c.bf16 %v1598_v11, %v1596_v14  ;;  %v2217_v4 = vpop.f32.mrf.mxu0  ;;  %v2314_v17 = vadd.f32 %v2313_v32, %v6486_v20  ;;  %v3883_v14 = vld [vmem:[%s7226_s5 + $0x118] sm:$0xf0] }
 0x1ef   :  { %v2218_v61 = vadd.f32 %v2217_v4, %v6471_v45  ;;  %v3886_v43 = vor.u32 %v4239_v21, %v3883_v14  ;;  %v4233_v14 = vld [vmem:[%s7226_s5 + $0xd4] sm:$0xf] }
 0x1f0   :  { %v1565_v16 = vpop.f32.mrf.mxu3  ;;  %2249 = vmatmul.bf16.gmra.mxu0 %v6473_v48  ;;  %2347 = vmatmul.bf16.gmra.mxu2 %v6473_v48 }
 0x1f1   :  { %v1566_v0 = vadd.f32 %v1565_v16, %v1517_v51  ;;  %v2264_v8 = vpop.f32.mrf.mxu1  ;;  %2698 = vmatpush.bf16.msra.mxu2 %v3886_v43  ;;  %v4287_v51 = vld [vmem:[%s7226_s5 + $0x284] sm:$0xf]  ;;  %v4075_v16 = vld [vmem:[%s7226_s5 + $0x298] sm:$0xf0]  ;;  %v3859_v43 = vld [vmem:[%s7226_s5 + $0xe8] sm:$0xf0] }
 0x1f2   :  { %v2265_v24 = vadd.f32 %v2264_v8, %v2216_v62  ;;  %v4078_v40 = vor.u32 %v4287_v51, %v4075_v16  ;;  %v4242_v8 = vld [vmem:[%s7226_s5 + $0x114] sm:$0xf0]  ;;  %v4051_v51 = vld [vmem:[%s7226_s5 + $0x268] sm:$0xf0] }
 0x1f3   :  { %v1599_v42 = vmax.f32 %v1566_v0, 0.0 }
 0x1f4   :  { %2794 = vst [vmem:[%s7229_s7] sm:$0xff] %v2265_v24  ;;  %2747 = vmatpush.bf16.msra.mxu3 %v4078_v40 }
 0x1f5   :  { %v6488_v7 = vpack.c.bf16 %v1599_v42, %v1597_v38  ;;  %v2315_v34 = vpop.f32.mrf.mxu2  ;;  %v3882_v38 = vor.u32 %v4242_v8, %v3881_v59 }
 0x1f6   :  { %v2316_v18 = vadd.f32 %v2315_v34, %v6486_v20 }
 0x1f7   :  { %2298 = vmatmul.bf16.gmra.mxu1 %v6488_v7  ;;  %2396 = vmatmul.bf16.gmra.mxu3 %v6488_v7 }
 0x1f8   :  { %v2362_v44 = vpop.f32.mrf.mxu3  ;;  %v2220_v33 = vpop.f32.mrf.mxu0  ;;  %2600 = vmatpush.bf16.msra.mxu0 %v3882_v38 }
 0x1f9   :  { %v2363_v12 = vadd.f32 %v2362_v44, %v2314_v17  ;;  %v2266_v54 = vpop.f32.mrf.mxu1  ;;  %v2221_v36 = vadd.f32 %v2220_v33, %v6471_v45  ;;  %v4290_v33 = vld [vmem:[%s7226_s5 + $0x294] sm:$0xf0] }
 0x1fa   :  { %v2267_v25 = vadd.f32 %v2266_v54, %v2218_v61 }
 0x1fb   :  { %2795 = vst [vmem:[%s7229_s7 + $0x8] sm:$0xff] %v2363_v12 }
 0x1fc   :  { %2800 = vst [vmem:[%s7229_s7 + $0x30] sm:$0xff] %v2267_v25  ;;  %v2890_v49 = vadd.f32 %v2267_v25, %v2265_v24  ;;  %v4073_v25 = vld [vmem:[%s7226_s5 + $0x280] sm:$0xf] }
 0x1fe   :  { %v2318_v50 = vpop.f32.mrf.mxu2  ;;  %v2891_v35 = vrot.slane %v2890_v49, 4 }
 0x1ff   :  { %v2319_v52 = vadd.f32 %v2318_v50, %v6486_v20 }
 0x200   :  { %v2364_v23 = vpop.f32.mrf.mxu3  ;;  %2410 = vmatmul.bf16.vlgmr.msrb.gmra.mxu0 %v6188_v39  ;;  %2508 = vmatmul.bf16.vlgmr.msrb.gmra.mxu2 %v6188_v39  ;;  %v2222_v11 = vpop.f32.mrf.mxu0  ;;  %v2892_v32 = vadd.f32 %v2891_v35, %v2890_v49  ;;  %v4074_v49 = vor.u32 %v4290_v33, %v4073_v25 }
 0x201   :  { %v2365_v9 = vadd.f32 %v2364_v23, %v2316_v18  ;;  %v2269_v15 = vpop.f32.mrf.mxu1  ;;  %v2223_v4 = vadd.f32 %v2222_v11, %v6471_v45 }
 0x202   :  { %v2270_v5 = vadd.f32 %v2269_v15, %v2221_v36  ;;  %v2893_v24 = vrot.slane %v2892_v32, 2  ;;  %2649 = vmatpush.bf16.msra.mxu1 %v4074_v49 }
 0x203   :  { %2801 = vst [vmem:[%s7229_s7 + $0x38] sm:$0xff] %v2365_v9  ;;  %v2897_v47 = vadd.f32 %v2365_v9, %v2363_v12 }
 0x204   :  { %2806 = vst [vmem:[%s7229_s7 + $0x60] sm:$0xff] %v2270_v5  ;;  %v2894_v44 = vadd.f32 %v2893_v24, %v2892_v32  ;;  %v3862_v32 = vor.u32 %v4233_v14, %v3859_v43 }
 0x205   :  { %v2898_v0 = vrot.slane %v2897_v47, 4 }
 0x206   :  { %v2320_v53 = vpop.f32.mrf.mxu2  ;;  %v2895_v55 = vrot.slane %v2894_v44, 1  ;;  %2699 = vmatpush.bf16.msra.mxu2 %v3862_v32  ;;  %v4284_v32 = vld [vmem:[%s7226_s5 + $0x264] sm:$0xf0] }
 0x207   :  { %2459 = vmatmul.bf16.vlgmr.msrb.gmra.mxu1 %v6206_v3  ;;  %2557 = vmatmul.bf16.vlgmr.msrb.gmra.mxu3 %v6206_v3  ;;  %v2899_v13 = vadd.f32 %v2898_v0, %v2897_v47  ;;  %v2321_v22 = vadd.f32 %v2320_v53, %v6486_v20 }
 0x208   :  { %v2367_v62 = vpop.f32.mrf.mxu3  ;;  %v2896_v35 = vadd.f32 %v2895_v55, %v2894_v44  ;;  %v4236_v44 = vld [vmem:[%s7226_s5 + $0xe4] sm:$0xf0] }
 0x209   :  { %v2368_v30 = vadd.f32 %v2367_v62, %v2319_v52  ;;  %v2271_v42 = vpop.f32.mrf.mxu1  ;;  %v2900_v31 = vrot.slane %v2899_v13, 2  ;;  %v4281_v52 = vld [vmem:[%s7226_s5 + $0x254] sm:$0xf] }
 0x20a   :  { %v2272_v17 = vadd.f32 %v2271_v42, %v2223_v4  ;;  %v4054_v62 = vor.u32 %v4281_v52, %v4051_v51  ;;  %v3226_v59 = vmul.f32 0.0625, %v2896_v35 }
 0x20b   :  { %2807 = vst [vmem:[%s7229_s7 + $0x68] sm:$0xff] %v2368_v30  ;;  %v2901_v18 = vadd.f32 %v2900_v31, %v2899_v13 }
 0x20c   :  { %2812 = vst [vmem:[%s7229_s7 + $0x90] sm:$0xff] %v2272_v17  ;;  %v2932_v28 = vadd.f32 %v2272_v17, %v2270_v5  ;;  %2748 = vmatpush.bf16.msra.mxu3 %v4054_v62 }
 0x20d   :  { %v2902_v11 = vrot.slane %v2901_v18, 1 }
 0x20e   :  { %v2933_v34 = vrot.slane %v2932_v28, 4  ;;  %v2225_v61 = vpop.f32.mrf.mxu0 }
 0x20f   :  { %v2226_v36 = vadd.f32 %v2225_v61, %v6471_v45  ;;  %v2903_v38 = vadd.f32 %v2902_v11, %v2901_v18  ;;  %v4049_v11 = vld [vmem:[%s7226_s5 + $0x250] sm:$0xf] }
 0x210   :  { %v2369_v12 = vpop.f32.mrf.mxu3  ;;  %2415 = vmatmul.bf16.gmra.mxu0 %v6225_v60  ;;  %2513 = vmatmul.bf16.gmra.mxu2 %v6225_v60  ;;  %v2934_v2 = vadd.f32 %v2933_v34, %v2932_v28  ;;  %v3857_v28 = vld [vmem:[%s7226_s5 + $0xd0] sm:$0xf]  ;;  %v4050_v52 = vor.u32 %v4284_v32, %v4049_v11  ;;  %v4221_v11 = vld [vmem:[%s7226_s5 + $0x74] sm:$0xf]  ;;  %v3811_v32 = vld [vmem:[%s7226_s5 + $0x88] sm:$0xf0] }
 0x211   :  { %v2370_v54 = vadd.f32 %v2369_v12, %v2321_v22  ;;  %v3858_v22 = vor.u32 %v4236_v44, %v3857_v28 }
 0x212   :  { %v2935_v26 = vrot.slane %v2934_v2, 2  ;;  %2650 = vmatpush.bf16.msra.mxu1 %v4050_v52 }
 0x213   :  { %2813 = vst [vmem:[%s7229_s7 + $0x98] sm:$0xff] %v2370_v54  ;;  %v2939_v37 = vadd.f32 %v2370_v54, %v2368_v30  ;;  %2601 = vmatpush.bf16.msra.mxu0 %v3858_v22 }
 0x214   :  { %v2936_v23 = vadd.f32 %v2935_v26, %v2934_v2  ;;  %v2274_v15 = vpop.f32.mrf.mxu1  ;;  %v2323_v50 = vpop.f32.mrf.mxu2  ;;  %v3227_v2 = vmul.f32 0.0625, %v2903_v38  ;;  %v3835_v38 = vld [vmem:[%s7226_s5 + $0xb8] sm:$0xf0] }
 0x215   :  { %v2940_v9 = vrot.slane %v2939_v37, 4  ;;  %v2275_v21 = vadd.f32 %v2274_v15, %v2226_v36  ;;  %v2324_v30 = vadd.f32 %v2323_v50, %v6486_v20 }
 0x216   :  { %v2937_v47 = vrot.slane %v2936_v23, 1  ;;  %v2227_v40 = vpop.f32.mrf.mxu0 }
 0x217   :  { %2464 = vmatmul.bf16.gmra.mxu1 %v6230_v19  ;;  %2562 = vmatmul.bf16.gmra.mxu3 %v6230_v19  ;;  %v2941_v5 = vadd.f32 %v2940_v9, %v2939_v37  ;;  %2818 = vst [vmem:[%s7229_s7 + $0xc0] sm:$0xff] %v2275_v21  ;;  %v2228_v13 = vadd.f32 %v2227_v40, %v6471_v45 }
 0x218   :  { %v2938_v16 = vadd.f32 %v2937_v47, %v2936_v23 }
 0x219   :  { %v2942_v0 = vrot.slane %v2941_v5, 2 }
 0x21a   :  { %v3232_v8 = vmul.f32 0.0625, %v2938_v16  ;;  %v2372_v42 = vpop.f32.mrf.mxu3 }
 0x21b   :  { %v2943_v4 = vadd.f32 %v2942_v0, %v2941_v5  ;;  %v2373_v53 = vadd.f32 %v2372_v42, %v2324_v30  ;;  %v4227_v30 = vld [vmem:[%s7226_s5 + $0xa4] sm:$0xf] }
 0x21c   :  { %v3323_v24 = vsel %vm3322_vm0, %v3232_v8, %v3226_v59  ;;  %v2276_v34 = vpop.f32.mrf.mxu1  ;;  %v2325_v12 = vpop.f32.mrf.mxu2 }
 0x21d   :  { %v2944_v17 = vrot.slane %v2943_v4, 1  ;;  %2819 = vst [vmem:[%s7229_s7 + $0xc8] sm:$0xff] %v2373_v53  ;;  %v2277_v61 = vadd.f32 %v2276_v34, %v2228_v13  ;;  %v2326_v55 = vadd.f32 %v2325_v12, %v6486_v20  ;;  %v4027_v13 = vld [vmem:[%s7226_s5 + $0x238] sm:$0xf0]  ;;  %v4230_v34 = vld [vmem:[%s7226_s5 + $0xb4] sm:$0xf0] }
 0x21f   :  { %v2945_v31 = vadd.f32 %v2944_v17, %v2943_v4  ;;  %2824 = vst [vmem:[%s7229_s7 + $0xf0] sm:$0xff] %v2277_v61  ;;  %v2974_v25 = vadd.f32 %v2277_v61, %v2275_v21  ;;  %v4275_v17 = vld [vmem:[%s7226_s5 + $0x224] sm:$0xf] }
 0x220   :  { %2420 = vmatmul.bf16.gmra.mxu0 %v6261_v41  ;;  %2518 = vmatmul.bf16.gmra.mxu2 %v6261_v41  ;;  %v4030_v44 = vor.u32 %v4275_v17, %v4027_v13 }
 0x221   :  { %v3233_v54 = vmul.f32 0.0625, %v2945_v31  ;;  %v2975_v49 = vrot.slane %v2974_v25, 4 }
 0x222   :  { %v2374_v26 = vpop.f32.mrf.mxu3  ;;  %2749 = vmatpush.bf16.msra.mxu3 %v4030_v44 }
 0x223   :  { %v3336_v33 = vsel %vm3322_vm0, %v3233_v54, %v3227_v2  ;;  %v2976_v37 = vadd.f32 %v2975_v49, %v2974_v25  ;;  %v2375_v18 = vadd.f32 %v2374_v26, %v2326_v55  ;;  %v4025_v26 = vld [vmem:[%s7226_s5 + $0x220] sm:$0xf] }
 0x225   :  { %v2977_v23 = vrot.slane %v2976_v37, 2  ;;  %2825 = vst [vmem:[%s7229_s7 + $0xf8] sm:$0xff] %v2375_v18  ;;  %v2981_v36 = vadd.f32 %v2375_v18, %v2373_v53  ;;  %v3833_v53 = vld [vmem:[%s7226_s5 + $0xa0] sm:$0xf] }
 0x226   :  { %v3834_v22 = vor.u32 %v4230_v34, %v3833_v53 }
 0x227   :  { %2469 = vmatmul.bf16.gmra.mxu1 %v6272_v29  ;;  %2567 = vmatmul.bf16.gmra.mxu3 %v6272_v29  ;;  %v2978_v9 = vadd.f32 %v2977_v23, %v2976_v37  ;;  %v2982_v15 = vrot.slane %v2981_v36, 4  ;;  %v4278_v37 = vld [vmem:[%s7226_s5 + $0x234] sm:$0xf0] }
 0x228   :  { %2602 = vmatpush.bf16.msra.mxu0 %v3834_v22  ;;  %v4026_v18 = vor.u32 %v4278_v37, %v4025_v26  ;;  %v4272_v26 = vld [vmem:[%s7226_s5 + $0x204] sm:$0xf0] }
 0x229   :  { %v2979_v50 = vrot.slane %v2978_v9, 1  ;;  %v2983_v35 = vadd.f32 %v2982_v15, %v2981_v36 }
 0x22a   :  { %2651 = vmatpush.bf16.msra.mxu1 %v4026_v18 }
 0x22b   :  { %v2980_v47 = vadd.f32 %v2979_v50, %v2978_v9  ;;  %v2984_v5 = vrot.slane %v2983_v35, 2 }
 0x22d   :  { %v2230_v21 = vpop.f32.mrf.mxu0  ;;  %v3238_v14 = vmul.f32 0.0625, %v2980_v47  ;;  %v2985_v43 = vadd.f32 %v2984_v5, %v2983_v35 }
 0x22e   :  { %v2231_v0 = vadd.f32 %v2230_v21, %v6471_v45 }
 0x22f   :  { %v6620_v51 = vsel %vm3324_vm1, %v3238_v14, %v3323_v24  ;;  %v2986_v16 = vrot.slane %v2985_v43, 1  ;;  %v3838_v24 = vor.u32 %v4227_v30, %v3835_v38 }
 0x230   :  { %2425 = vmatmul.bf16.gmra.mxu0 %v6309_v58  ;;  %2523 = vmatmul.bf16.gmra.mxu2 %v6309_v58 }
 0x231   :  { %v2987_v62 = vadd.f32 %v2986_v16, %v2985_v43  ;;  %2700 = vmatpush.bf16.msra.mxu2 %v3838_v24  ;;  %v3814_v16 = vor.u32 %v4221_v11, %v3811_v32 }
 0x233   :  { %v2279_v40 = vpop.f32.mrf.mxu1  ;;  %v2328_v59 = vpop.f32.mrf.mxu2  ;;  %v3239_v8 = vmul.f32 0.0625, %v2987_v62  ;;  %v4003_v62 = vld [vmem:[%s7226_s5 + $0x208] sm:$0xf0] }
 0x234   :  { %v2280_v4 = vadd.f32 %v2279_v40, %v2231_v0  ;;  %v2329_v31 = vadd.f32 %v2328_v59, %v6486_v20  ;;  %v4269_v0 = vld [vmem:[%s7226_s5 + $0x1f4] sm:$0xf]  ;;  %v3809_v40 = vld [vmem:[%s7226_s5 + $0x70] sm:$0xf] }
 0x235   :  { %v2232_v42 = vpop.f32.mrf.mxu0  ;;  %v6641_v28 = vsel %vm3324_vm1, %v3239_v8, %v3336_v33  ;;  %2701 = vmatpush.bf16.msra.mxu2 %v3814_v16  ;;  %v4006_v30 = vor.u32 %v4269_v0, %v4003_v62  ;;  %v3785_v16 = vld [vmem:[%s7226_s5 + $0x40] sm:$0xf]  ;;  %v4218_v0 = vld [vmem:[%s7226_s5 + $0x54] sm:$0xf0] }
 0x236   :  { %2830 = vst [vmem:[%s7229_s7 + $0x120] sm:$0xff] %v2280_v4  ;;  %v2233_v12 = vadd.f32 %v2232_v42, %v6471_v45 }
 0x237   :  { %2474 = vmatmul.bf16.gmra.mxu1 %v6326_v57  ;;  %2572 = vmatmul.bf16.gmra.mxu3 %v6326_v57 }
 0x238   :  { %2750 = vmatpush.bf16.msra.mxu3 %v4006_v30 }
 0x239   :  { %v2377_v61 = vpop.f32.mrf.mxu3 }
 0x23a   :  { %v2378_v2 = vadd.f32 %v2377_v61, %v2329_v31 }
 0x23b   :  { %v2281_v54 = vpop.f32.mrf.mxu1  ;;  %v2330_v25 = vpop.f32.mrf.mxu2 }
 0x23c   :  { %2831 = vst [vmem:[%s7229_s7 + $0x128] sm:$0xff] %v2378_v2  ;;  %v2282_v33 = vadd.f32 %v2281_v54, %v2233_v12  ;;  %v2331_v36 = vadd.f32 %v2330_v25, %v6486_v20 }
 0x23d   :  { %v2235_v49 = vpop.f32.mrf.mxu0 }
 0x23e   :  { %2836 = vst [vmem:[%s7229_s7 + $0x150] sm:$0xff] %v2282_v33  ;;  %v3016_v55 = vadd.f32 %v2282_v33, %v2280_v4  ;;  %v2236_v50 = vadd.f32 %v2235_v49, %v6471_v45  ;;  %v4224_v4 = vld [vmem:[%s7226_s5 + $0x84] sm:$0xf0] }
 0x23f   :  { %v3810_v38 = vor.u32 %v4224_v4, %v3809_v40  ;;  %v3786_v40 = vor.u32 %v4218_v0, %v3785_v16 }
 0x240   :  { %v3017_v23 = vrot.slane %v3016_v55, 4  ;;  %2430 = vmatmul.bf16.gmra.mxu0 %v6345_v46  ;;  %2528 = vmatmul.bf16.gmra.mxu2 %v6345_v46 }
 0x241   :  { %v2379_v9 = vpop.f32.mrf.mxu3  ;;  %2603 = vmatpush.bf16.msra.mxu0 %v3810_v38 }
 0x242   :  { %v3018_v15 = vadd.f32 %v3017_v23, %v3016_v55  ;;  %v2380_v35 = vadd.f32 %v2379_v9, %v2331_v36  ;;  %v4001_v55 = vld [vmem:[%s7226_s5 + $0x1f0] sm:$0xf] }
 0x243   :  { %v2284_v47 = vpop.f32.mrf.mxu1  ;;  %v2333_v5 = vpop.f32.mrf.mxu2  ;;  %v4002_v37 = vor.u32 %v4272_v26, %v4001_v55  ;;  %v4209_v55 = vld [vmem:[%s7226_s5 + $0x14] sm:$0xf]  ;;  %v3763_v26 = vld [vmem:[%s7226_s5 + $0x28] sm:$0xf0] }
 0x244   :  { %v3019_v21 = vrot.slane %v3018_v15, 2  ;;  %2837 = vst [vmem:[%s7229_s7 + $0x158] sm:$0xff] %v2380_v35  ;;  %v3023_v14 = vadd.f32 %v2380_v35, %v2378_v2  ;;  %v6672_v43 = vadd.f32 %v2284_v47, %v2236_v50  ;;  %v2334_v17 = vadd.f32 %v2333_v5, %v6486_v20 }
 0x245   :  { %v2237_v52 = vpop.f32.mrf.mxu0  ;;  %2652 = vmatpush.bf16.msra.mxu1 %v4002_v37  ;;  %2604 = vmatpush.bf16.msra.mxu0 %v3786_v40  ;;  %v3953_v40 = vld [vmem:[%s7226_s5 + $0x190] sm:$0xf] }
 0x246   :  { %v3020_v59 = vadd.f32 %v3019_v21, %v3018_v15  ;;  %v3024_v8 = vrot.slane %v3023_v14, 4  ;;  %2842 = vst [vmem:[%s7229_s7 + $0x180] sm:$0xff] %v6672_v43  ;;  %v2238_v34 = vadd.f32 %v2237_v52, %v6471_v45  ;;  %v4215_v21 = vld [vmem:[%s7226_s5 + $0x44] sm:$0xf]  ;;  %v3979_v52 = vld [vmem:[%s7226_s5 + $0x1d8] sm:$0xf0] }
 0x247   :  { %2479 = vmatmul.bf16.gmra.mxu1 %v6362_v1  ;;  %2577 = vmatmul.bf16.gmra.mxu3 %v6362_v1 }
 0x248   :  { %v3021_v42 = vrot.slane %v3020_v59, 1  ;;  %v3025_v24 = vadd.f32 %v3024_v8, %v3023_v14  ;;  %v3787_v14 = vld [vmem:[%s7226_s5 + $0x58] sm:$0xf0] }
 0x249   :  { %v2382_v13 = vpop.f32.mrf.mxu3  ;;  %v3790_v32 = vor.u32 %v4215_v21, %v3787_v14 }
 0x24a   :  { %v3022_v53 = vadd.f32 %v3021_v42, %v3020_v59  ;;  %v3026_v44 = vrot.slane %v3025_v24, 2  ;;  %v6700_v22 = vadd.f32 %v2382_v13, %v2334_v17  ;;  %v3977_v13 = vld [vmem:[%s7226_s5 + $0x1c0] sm:$0xf] }
 0x24b   :  { %v2286_v31 = vpop.f32.mrf.mxu1  ;;  %v2335_v61 = vpop.f32.mrf.mxu2  ;;  %2702 = vmatpush.bf16.msra.mxu2 %v3790_v32 }
 0x24c   :  { %v3244_v12 = vmul.f32 0.0625, %v3022_v53  ;;  %v3027_v2 = vadd.f32 %v3026_v44, %v3025_v24  ;;  %2843 = vst [vmem:[%s7229_s7 + $0x188] sm:$0xff] %v6700_v22  ;;  %v6706_v54 = vadd.f32 %v2286_v31, %v2238_v34  ;;  %v2336_v23 = vadd.f32 %v2335_v61, %v6486_v20  ;;  %v4266_v53 = vld [vmem:[%s7226_s5 + $0x1d4] sm:$0xf0] }
 0x24d   :  { %v2240_v25 = vpop.f32.mrf.mxu0  ;;  %v3978_v44 = vor.u32 %v4266_v53, %v3977_v13 }
 0x24e   :  { %v6710_v33 = vsel %vm3326_vm2, %v3244_v12, %v6620_v51  ;;  %v3028_v49 = vrot.slane %v3027_v2, 1  ;;  %2848 = vst [vmem:[%s7229_s7 + $0x1b0] sm:$0xff] %v6706_v54  ;;  %v2241_v9 = vadd.f32 %v2240_v25, %v6471_v45 }
 0x24f   :  { %2653 = vmatpush.bf16.msra.mxu1 %v3978_v44 }
 0x250   :  { %v3029_v18 = vadd.f32 %v3028_v49, %v3027_v2  ;;  %2435 = vmatmul.bf16.gmra.mxu0 %v6381_v6  ;;  %2533 = vmatmul.bf16.gmra.mxu2 %v6381_v6 }
 0x251   :  { %v2384_v51 = vpop.f32.mrf.mxu3 }
 0x252   :  { %v3245_v36 = vmul.f32 0.0625, %v3029_v18  ;;  %v6726_v15 = vadd.f32 %v2384_v51, %v2336_v23  ;;  %v3766_v18 = vor.u32 %v4209_v55, %v3763_v26  ;;  %v4257_v23 = vld [vmem:[%s7226_s5 + $0x194] sm:$0xf]  ;;  %v3955_v51 = vld [vmem:[%s7226_s5 + $0x1a8] sm:$0xf0] }
 0x253   :  { %v2338_v35 = vpop.f32.mrf.mxu2 }
 0x254   :  { %v2289_v50 = vpop.f32.mrf.mxu1  ;;  %v6730_v47 = vsel %vm3326_vm2, %v3245_v36, %v6641_v28  ;;  %2849 = vst [vmem:[%s7229_s7 + $0x1b8] sm:$0xff] %v6726_v15  ;;  %v4263_v28 = vld [vmem:[%s7226_s5 + $0x1c4] sm:$0xf]  ;;  %v2339_v59 = vadd.f32 %v2338_v35, %v6486_v20  ;;  %v3761_v36 = vld [vmem:[%s7226_s5 + $0x10] sm:$0xf]  ;;  %2703 = vmatpush.bf16.msra.mxu2 %v3766_v18 }
 0x255   :  { %v2290_v5 = vadd.f32 %v2289_v50, %v2241_v9  ;;  %v2242_v11 = vpop.f32.mrf.mxu0  ;;  %v3982_v62 = vor.u32 %v4263_v28, %v3979_v52  ;;  %v4212_v9 = vld [vmem:[%s7226_s5 + $0x24] sm:$0xf0]  ;;  %v3958_v50 = vor.u32 %v4257_v23, %v3955_v51  ;;  %v3058_v28 = vadd.f32 %v6706_v54, %v6672_v43 }
 0x256   :  { %v2243_v4 = vadd.f32 %v2242_v11, %v6471_v45  ;;  %v3762_v35 = vor.u32 %v4212_v9, %v3761_v36 }
 0x257   :  { %2854 = vst [vmem:[%s7229_s7 + $0x1e0] sm:$0xff] %v2290_v5  ;;  %2484 = vmatmul.bf16.gmra.mxu1 %v6398_v27  ;;  %2582 = vmatmul.bf16.gmra.mxu3 %v6398_v27  ;;  %v3059_v54 = vrot.slane %v3058_v28, 4 }
 0x258   :  { %2751 = vmatpush.bf16.msra.mxu3 %v3982_v62  ;;  %2605 = vmatpush.bf16.msra.mxu0 %v3762_v35 }
 0x25a   :  { %v2387_v8 = vpop.f32.mrf.mxu3 }
 0x25b   :  { %v2388_v30 = vadd.f32 %v2387_v8, %v2339_v59  ;;  %v2340_v42 = vpop.f32.mrf.mxu2  ;;  %v4260_v59 = vld [vmem:[%s7226_s5 + $0x1a4] sm:$0xf0] }
 0x25c   :  { %v2291_v38 = vpop.f32.mrf.mxu1  ;;  %v2341_v34 = vadd.f32 %v2340_v42, %v6486_v20  ;;  %2752 = vmatpush.bf16.msra.mxu3 %v3958_v50  ;;  %v3065_v42 = vadd.f32 %v6726_v15, %v6700_v22 }
 0x25d   :  { %2855 = vst [vmem:[%s7229_s7 + $0x1e8] sm:$0xff] %v2388_v30  ;;  %v2292_v24 = vadd.f32 %v2291_v38, %v2243_v4  ;;  %v2245_v17 = vpop.f32.mrf.mxu0  ;;  %v3954_v4 = vor.u32 %v4260_v59, %v3953_v40  ;;  %v6842_v59 = vperm.slane %v6461_v10, 2 }
 0x25e   :  { %v2246_v61 = vadd.f32 %v2245_v17, %v6471_v45  ;;  %v3066_v55 = vrot.slane %v3065_v42, 4 }
 0x25f   :  { %2860 = vst [vmem:[%s7229_s7 + $0x210] sm:$0xff] %v2292_v24  ;;  %v3100_v52 = vadd.f32 %v2292_v24, %v2290_v5  ;;  %2654 = vmatpush.bf16.msra.mxu1 %v3954_v4 }
 0x260   :  { %2440 = vmatmul.bf16.gmra.mxu0 %v6429_v56  ;;  %2538 = vmatmul.bf16.gmra.mxu2 %v6429_v56  ;;  %v3067_v23 = vadd.f32 %v3066_v55, %v3065_v42  ;;  %v6852_v55 = vperm.slane %v6461_v10, 3 }
 0x261   :  { %v3101_v5 = vrot.slane %v3100_v52, 4 }
 0x262   :  { %v2389_v31 = vpop.f32.mrf.mxu3 }
 0x263   :  { %v2390_v12 = vadd.f32 %v2389_v31, %v2341_v34  ;;  %v2343_v25 = vpop.f32.mrf.mxu2  ;;  %v3060_v34 = vadd.f32 %v3059_v54, %v3058_v28  ;;  %v3102_v31 = vadd.f32 %v3101_v5, %v3100_v52 }
 0x264   :  { %v2294_v2 = vpop.f32.mrf.mxu1  ;;  %v2344_v21 = vadd.f32 %v2343_v25, %v6486_v20 }
 0x265   :  { %2861 = vst [vmem:[%s7229_s7 + $0x218] sm:$0xff] %v2390_v12  ;;  %v2295_v49 = vadd.f32 %v2294_v2, %v2246_v61  ;;  %v2247_v37 = vpop.f32.mrf.mxu0  ;;  %v3107_v24 = vadd.f32 %v2390_v12, %v2388_v30  ;;  %v3061_v15 = vrot.slane %v3060_v34, 2  ;;  %v3103_v30 = vrot.slane %v3102_v31, 2 }
 0x266   :  { %v2248_v11 = vadd.f32 %v2247_v37, %v6471_v45 }
 0x267   :  { %2866 = vst [vmem:[%s7229_s7 + $0x240] sm:$0xff] %v2295_v49  ;;  %2489 = vmatmul.bf16.gmra.mxu1 %v6440_v63  ;;  %2587 = vmatmul.bf16.gmra.mxu3 %v6440_v63  ;;  %v3108_v26 = vrot.slane %v3107_v24, 4 }
 0x269   :  { %v3109_v51 = vadd.f32 %v3108_v26, %v3107_v24 }
 0x26a   :  { %v2392_v14 = vpop.f32.mrf.mxu3 }
 0x26b   :  { %v2393_v32 = vadd.f32 %v2392_v14, %v2344_v21  ;;  %v2345_v0 = vpop.f32.mrf.mxu2  ;;  %v3062_v21 = vadd.f32 %v3061_v15, %v3060_v34  ;;  %v3104_v14 = vadd.f32 %v3103_v30, %v3102_v31 }
 0x26c   :  { %v2296_v16 = vpop.f32.mrf.mxu1  ;;  %v2346_v38 = vadd.f32 %v2345_v0, %v6486_v20  ;;  %v3110_v0 = vrot.slane %v3109_v51, 2 }
 0x26d   :  { %2867 = vst [vmem:[%s7229_s7 + $0x248] sm:$0xff] %v2393_v32  ;;  %v2297_v62 = vadd.f32 %v2296_v16, %v2248_v11  ;;  %v2250_v8 = vpop.f32.mrf.mxu0  ;;  %v3068_v16 = vrot.slane %v3067_v23, 2  ;;  %v3105_v4 = vrot.slane %v3104_v14, 1 }
 0x26e   :  { %v2251_v53 = vadd.f32 %v2250_v8, %v6471_v45  ;;  %v3063_v8 = vrot.slane %v3062_v21, 1  ;;  %v3111_v42 = vadd.f32 %v3110_v0, %v3109_v51 }
 0x26f   :  { %2872 = vst [vmem:[%s7229_s7 + $0x270] sm:$0xff] %v2297_v62  ;;  %v3142_v43 = vadd.f32 %v2297_v62, %v2295_v49  ;;  %v3106_v31 = vadd.f32 %v3105_v4, %v3104_v14 }
 0x270   :  { %2445 = vmatmul.bf16.gmra.mxu0 %v6473_v48  ;;  %2543 = vmatmul.bf16.gmra.mxu2 %v6473_v48  ;;  %v3064_v34 = vadd.f32 %v3063_v8, %v3062_v21 }
 0x271   :  { %v3143_v17 = vrot.slane %v3142_v43, 4  ;;  %v3256_v10 = vmul.f32 0.0625, %v3106_v31 }
 0x272   :  { %v2394_v13 = vpop.f32.mrf.mxu3 }
 0x273   :  { %v2395_v44 = vadd.f32 %v2394_v13, %v2346_v38  ;;  %v2348_v2 = vpop.f32.mrf.mxu2  ;;  %v3144_v37 = vadd.f32 %v3143_v17, %v3142_v43  ;;  %v3069_v38 = vadd.f32 %v3068_v16, %v3067_v23 }
 0x274   :  { %v2299_v61 = vpop.f32.mrf.mxu1  ;;  %v2349_v18 = vadd.f32 %v2348_v2, %v6486_v20 }
 0x275   :  { %2873 = vst [vmem:[%s7229_s7 + $0x278] sm:$0xff] %v2395_v44  ;;  %v3149_v25 = vadd.f32 %v2395_v44, %v2393_v32  ;;  %v2300_v49 = vadd.f32 %v2299_v61, %v2251_v53  ;;  %v2252_v22 = vpop.f32.mrf.mxu0  ;;  %v3145_v36 = vrot.slane %v3144_v37, 2  ;;  %v3070_v26 = vrot.slane %v3069_v38, 1 }
 0x276   :  { %v2253_v50 = vadd.f32 %v2252_v22, %v6471_v45 }
 0x277   :  { %2878 = vst [vmem:[%s7229_s7 + $0x2a0] sm:$0xff] %v2300_v49  ;;  %2494 = vmatmul.bf16.gmra.mxu1 %v6488_v7  ;;  %2592 = vmatmul.bf16.gmra.mxu3 %v6488_v7  ;;  %v3150_v12 = vrot.slane %v3149_v25, 4  ;;  %v3146_v62 = vadd.f32 %v3145_v36, %v3144_v37  ;;  %v3112_v37 = vrot.slane %v3111_v42, 1 }
 0x279   :  { %v3151_v11 = vadd.f32 %v3150_v12, %v3149_v25  ;;  %v3147_v24 = vrot.slane %v3146_v62, 1 }
 0x27a   :  { %v2397_v9 = vpop.f32.mrf.mxu3 }
 0x27b   :  { %v2398_v35 = vadd.f32 %v2397_v9, %v2349_v18  ;;  %v2350_v28 = vpop.f32.mrf.mxu2  ;;  %v3152_v43 = vrot.slane %v3151_v11, 2  ;;  %v3148_v22 = vadd.f32 %v3147_v24, %v3146_v62  ;;  %v3250_v18 = vmul.f32 0.0625, %v3064_v34 }
 0x27c   :  { %v2301_v32 = vpop.f32.mrf.mxu1  ;;  %v2351_v5 = vadd.f32 %v2350_v28, %v6486_v20 }
 0x27d   :  { %2879 = vst [vmem:[%s7229_s7 + $0x2a8] sm:$0xff] %v2398_v35  ;;  %v2302_v52 = vadd.f32 %v2301_v32, %v2253_v50  ;;  %v2411_v40 = vpop.f32.mrf.mxu0  ;;  %v3153_v61 = vadd.f32 %v3152_v43, %v3151_v11  ;;  %v3071_v50 = vadd.f32 %v3070_v26, %v3069_v38  ;;  %v3262_v21 = vmul.f32 0.0625, %v3148_v22 }
 0x27e   :  { %v2412_v53 = vadd.f32 %v2411_v40, %v6842_v59 }
 0x27f   :  { %2884 = vst [vmem:[%s7229_s7 + $0x2d0] sm:$0xff] %v2302_v52  ;;  %v3184_v45 = vadd.f32 %v2302_v52, %v2300_v49  ;;  %v3154_v23 = vrot.slane %v3153_v61, 1  ;;  %v3251_v43 = vmul.f32 0.0625, %v3071_v50 }
 0x280   :  { %2606 = vmatmul.bf16.vlgmr.msra.gmra.mxu0 %v6188_v39  ;;  %2704 = vmatmul.bf16.vlgmr.msra.gmra.mxu2 %v6188_v39 }
 0x281   :  { %v3185_v54 = vrot.slane %v3184_v45, 4  ;;  %v3155_v16 = vadd.f32 %v3154_v23, %v3153_v61 }
 0x282   :  { %v2399_v17 = vpop.f32.mrf.mxu3 }
 0x283   :  { %v3186_v13 = vadd.f32 %v3185_v54, %v3184_v45  ;;  %v2400_v44 = vadd.f32 %v2399_v17, %v2351_v5  ;;  %v2509_v25 = vpop.f32.mrf.mxu2  ;;  %v3263_v17 = vmul.f32 0.0625, %v3155_v16 }
 0x284   :  { %v2460_v2 = vpop.f32.mrf.mxu1  ;;  %v2510_v9 = vadd.f32 %v2509_v25, %v6852_v55 }
 0x285   :  { %v3187_v49 = vrot.slane %v3186_v13, 2  ;;  %2885 = vst [vmem:[%s7229_s7 + $0x2d8] sm:$0xff] %v2400_v44  ;;  %v3191_v20 = vadd.f32 %v2400_v44, %v2398_v35  ;;  %v2461_v39 = vadd.f32 %v2460_v2, %v2412_v53  ;;  %v2413_v15 = vpop.f32.mrf.mxu0  ;;  %v3113_v35 = vadd.f32 %v3112_v37, %v3111_v42 }
 0x286   :  { %v2414_v28 = vadd.f32 %v2413_v15, %v6842_v59  ;;  %v3339_v44 = vsel %vm3328_vm3, %v3251_v43, %v6730_v47 }
 0x287   :  { %v3188_v30 = vadd.f32 %v3187_v49, %v3186_v13  ;;  %v3192_v12 = vrot.slane %v3191_v20, 4  ;;  %2796 = vst [vmem:[%s7229_s7 + $0x10] sm:$0xff] %v2461_v39  ;;  %2655 = vmatmul.bf16.vlgmr.msra.gmra.mxu1 %v6206_v3  ;;  %2753 = vmatmul.bf16.vlgmr.msra.gmra.mxu3 %v6206_v3  ;;  %v3329_v3 = vsel %vm3328_vm3, %v3250_v18, %v6710_v33  ;;  %v3257_v38 = vmul.f32 0.0625, %v3113_v35 }
 0x288   :  { %v3331_v40 = vsel %vm3330_vm4, %v3256_v10, %v3329_v3 }
 0x289   :  { %v3189_v51 = vrot.slane %v3188_v30, 1  ;;  %v3193_v36 = vadd.f32 %v3192_v12, %v3191_v20  ;;  %v3333_v54 = vsel %vm3332_vm5, %v3262_v21, %v3331_v40  ;;  %v3340_v31 = vsel %vm3330_vm4, %v3257_v38, %v3339_v44 }
 0x28a   :  { %v2558_v14 = vpop.f32.mrf.mxu3  ;;  %v3341_v49 = vsel %vm3332_vm5, %v3263_v17, %v3340_v31 }
 0x28b   :  { %v3190_v11 = vadd.f32 %v3189_v51, %v3188_v30  ;;  %v3194_v32 = vrot.slane %v3193_v36, 2  ;;  %v2559_v52 = vadd.f32 %v2558_v14, %v2510_v9  ;;  %v2511_v62 = vpop.f32.mrf.mxu2 }
 0x28c   :  { %v2462_v0 = vpop.f32.mrf.mxu1  ;;  %v2512_v53 = vadd.f32 %v2511_v62, %v6852_v55 }
 0x28d   :  { %v3268_v45 = vmul.f32 0.0625, %v3190_v11  ;;  %v3195_v8 = vadd.f32 %v3194_v32, %v3193_v36  ;;  %2797 = vst [vmem:[%s7229_s7 + $0x18] sm:$0xff] %v2559_v52  ;;  %v2463_v4 = vadd.f32 %v2462_v0, %v2414_v28  ;;  %v2416_v5 = vpop.f32.mrf.mxu0 }
 0x28e   :  { %v2417_v2 = vadd.f32 %v2416_v5, %v6842_v59 }
 0x28f   :  { %v3335_v33 = vsel %vm3334_vm6, %v3268_v45, %v3333_v54  ;;  %v3196_v42 = vrot.slane %v3195_v8, 1  ;;  %2802 = vst [vmem:[%s7229_s7 + $0x40] sm:$0xff] %v2463_v4  ;;  %v2904_v24 = vadd.f32 %v2463_v4, %v2461_v39 }
 0x290   :  { %3377 = vst [vmem:[%s7230_s8] sm:$0xff] %v3335_v33  ;;  %2611 = vmatmul.bf16.gmra.mxu0 %v6225_v60  ;;  %2709 = vmatmul.bf16.gmra.mxu2 %v6225_v60 }
 0x291   :  { %v3197_v13 = vadd.f32 %v3196_v42, %v3195_v8  ;;  %v2905_v37 = vrot.slane %v2904_v24, 4 }
 0x292   :  { %v2560_v34 = vpop.f32.mrf.mxu3 }
 0x293   :  { %v3269_v61 = vmul.f32 0.0625, %v3197_v13  ;;  %v2561_v25 = vadd.f32 %v2560_v34, %v2512_v53  ;;  %v2514_v39 = vpop.f32.mrf.mxu2  ;;  %v2906_v15 = vadd.f32 %v2905_v37, %v2904_v24 }
 0x294   :  { %v2465_v20 = vpop.f32.mrf.mxu1  ;;  %v2515_v30 = vadd.f32 %v2514_v39, %v6852_v55 }
 0x295   :  { %v3342_v26 = vsel %vm3334_vm6, %v3269_v61, %v3341_v49  ;;  %2803 = vst [vmem:[%s7229_s7 + $0x48] sm:$0xff] %v2561_v25  ;;  %v2911_v60 = vadd.f32 %v2561_v25, %v2559_v52  ;;  %v2466_v47 = vadd.f32 %v2465_v20, %v2417_v2  ;;  %v2418_v22 = vpop.f32.mrf.mxu0  ;;  %v2907_v9 = vrot.slane %v2906_v15, 2 }
 0x296   :  { %3378 = vst [vmem:[%s7230_s8 + $0x8] sm:$0xff] %v3342_v26  ;;  %v2419_v23 = vadd.f32 %v2418_v22, %v6842_v59 }
 0x297   :  { %2808 = vst [vmem:[%s7229_s7 + $0x70] sm:$0xff] %v2466_v47  ;;  %2660 = vmatmul.bf16.gmra.mxu1 %v6230_v19  ;;  %2758 = vmatmul.bf16.gmra.mxu3 %v6230_v19  ;;  %v2912_v12 = vrot.slane %v2911_v60, 4  ;;  %v2908_v14 = vadd.f32 %v2907_v9, %v2906_v15 }
 0x299   :  { %v2913_v35 = vadd.f32 %v2912_v12, %v2911_v60  ;;  %v2909_v45 = vrot.slane %v2908_v14, 1 }
 0x29a   :  { %v2563_v18 = vpop.f32.mrf.mxu3 }
 0x29b   :  { %v2564_v10 = vadd.f32 %v2563_v18, %v2515_v30  ;;  %v2516_v36 = vpop.f32.mrf.mxu2  ;;  %v2914_v28 = vrot.slane %v2913_v35, 2  ;;  %v2910_v33 = vadd.f32 %v2909_v45, %v2908_v14 }
 0x29c   :  { %v2467_v51 = vpop.f32.mrf.mxu1  ;;  %v2517_v32 = vadd.f32 %v2516_v36, %v6852_v55 }
 0x29d   :  { %2809 = vst [vmem:[%s7229_s7 + $0x78] sm:$0xff] %v2564_v10  ;;  %v2468_v50 = vadd.f32 %v2467_v51, %v2419_v23  ;;  %v2421_v21 = vpop.f32.mrf.mxu0  ;;  %v2915_v54 = vadd.f32 %v2914_v28, %v2913_v35  ;;  %v3228_v49 = vmul.f32 0.0625, %v2910_v33 }
 0x29e   :  { %v2422_v16 = vadd.f32 %v2421_v21, %v6842_v59 }
 0x29f   :  { %2814 = vst [vmem:[%s7229_s7 + $0xa0] sm:$0xff] %v2468_v50  ;;  %v2946_v19 = vadd.f32 %v2468_v50, %v2466_v47  ;;  %v2916_v13 = vrot.slane %v2915_v54, 1 }
 0x2a0   :  { %2616 = vmatmul.bf16.gmra.mxu0 %v6261_v41  ;;  %2714 = vmatmul.bf16.gmra.mxu2 %v6261_v41 }
 0x2a1   :  { %v2947_v11 = vrot.slane %v2946_v19, 4  ;;  %v2917_v26 = vadd.f32 %v2916_v13, %v2915_v54 }
 0x2a2   :  { %v2565_v52 = vpop.f32.mrf.mxu3 }
 0x2a3   :  { %v2948_v3 = vadd.f32 %v2947_v11, %v2946_v19  ;;  %v2566_v0 = vadd.f32 %v2565_v52, %v2517_v32  ;;  %v2519_v40 = vpop.f32.mrf.mxu2  ;;  %v3229_v18 = vmul.f32 0.0625, %v2917_v26 }
 0x2a4   :  { %v2470_v62 = vpop.f32.mrf.mxu1  ;;  %v2520_v17 = vadd.f32 %v2519_v40, %v6852_v55 }
 0x2a5   :  { %v2949_v8 = vrot.slane %v2948_v3, 2  ;;  %2815 = vst [vmem:[%s7229_s7 + $0xa8] sm:$0xff] %v2566_v0  ;;  %v2953_v4 = vadd.f32 %v2566_v0, %v2564_v10  ;;  %v2471_v43 = vadd.f32 %v2470_v62, %v2422_v16  ;;  %v2423_v5 = vpop.f32.mrf.mxu0 }
 0x2a6   :  { %v2424_v31 = vadd.f32 %v2423_v5, %v6842_v59 }
 0x2a7   :  { %v2950_v38 = vadd.f32 %v2949_v8, %v2948_v3  ;;  %v2954_v41 = vrot.slane %v2953_v4, 4  ;;  %2820 = vst [vmem:[%s7229_s7 + $0xd0] sm:$0xff] %v2471_v43  ;;  %2665 = vmatmul.bf16.gmra.mxu1 %v6272_v29  ;;  %2763 = vmatmul.bf16.gmra.mxu3 %v6272_v29 }
 0x2a9   :  { %v2951_v42 = vrot.slane %v2950_v38, 1  ;;  %v2955_v24 = vadd.f32 %v2954_v41, %v2953_v4 }
 0x2aa   :  { %v2568_v53 = vpop.f32.mrf.mxu3 }
 0x2ab   :  { %v2952_v44 = vadd.f32 %v2951_v42, %v2950_v38  ;;  %v2956_v34 = vrot.slane %v2955_v24, 2  ;;  %v2569_v61 = vadd.f32 %v2568_v53, %v2520_v17  ;;  %v2521_v25 = vpop.f32.mrf.mxu2 }
 0x2ac   :  { %v2472_v2 = vpop.f32.mrf.mxu1  ;;  %v2522_v12 = vadd.f32 %v2521_v25, %v6852_v55 }
 0x2ad   :  { %v3234_v20 = vmul.f32 0.0625, %v2952_v44  ;;  %v2957_v39 = vadd.f32 %v2956_v34, %v2955_v24  ;;  %2821 = vst [vmem:[%s7229_s7 + $0xd8] sm:$0xff] %v2569_v61  ;;  %v2473_v29 = vadd.f32 %v2472_v2, %v2424_v31  ;;  %v2426_v37 = vpop.f32.mrf.mxu0 }
 0x2ae   :  { %v2427_v36 = vadd.f32 %v2426_v37, %v6842_v59 }
 0x2af   :  { %v3343_v60 = vsel %vm3322_vm0, %v3234_v20, %v3228_v49  ;;  %v2958_v47 = vrot.slane %v2957_v39, 1  ;;  %2826 = vst [vmem:[%s7229_s7 + $0x100] sm:$0xff] %v2473_v29  ;;  %v2988_v22 = vadd.f32 %v2473_v29, %v2471_v43 }
 0x2b0   :  { %2621 = vmatmul.bf16.gmra.mxu0 %v6309_v58  ;;  %2719 = vmatmul.bf16.gmra.mxu2 %v6309_v58 }
 0x2b1   :  { %v2959_v15 = vadd.f32 %v2958_v47, %v2957_v39  ;;  %v2989_v30 = vrot.slane %v2988_v22, 4 }
 0x2b2   :  { %v2570_v23 = vpop.f32.mrf.mxu3 }
 0x2b3   :  { %v3235_v10 = vmul.f32 0.0625, %v2959_v15  ;;  %v2990_v51 = vadd.f32 %v2989_v30, %v2988_v22  ;;  %v2571_v9 = vadd.f32 %v2570_v23, %v2522_v12  ;;  %v2524_v35 = vpop.f32.mrf.mxu2 }
 0x2b4   :  { %v2475_v50 = vpop.f32.mrf.mxu1  ;;  %v2525_v16 = vadd.f32 %v2524_v35, %v6852_v55 }
 0x2b5   :  { %v3350_v21 = vsel %vm3322_vm0, %v3235_v10, %v3229_v18  ;;  %v2991_v19 = vrot.slane %v2990_v51, 2  ;;  %2827 = vst [vmem:[%s7229_s7 + $0x108] sm:$0xff] %v2571_v9  ;;  %v2995_v14 = vadd.f32 %v2571_v9, %v2569_v61  ;;  %v2476_v11 = vadd.f32 %v2475_v50, %v2427_v36  ;;  %v2428_v32 = vpop.f32.mrf.mxu0 }
 0x2b6   :  { %v2429_v45 = vadd.f32 %v2428_v32, %v6842_v59 }
 0x2b7   :  { %v2992_v58 = vadd.f32 %v2991_v19, %v2990_v51  ;;  %v2996_v28 = vrot.slane %v2995_v14, 4  ;;  %2832 = vst [vmem:[%s7229_s7 + $0x130] sm:$0xff] %v2476_v11  ;;  %2670 = vmatmul.bf16.gmra.mxu1 %v6326_v57  ;;  %2768 = vmatmul.bf16.gmra.mxu3 %v6326_v57 }
 0x2b9   :  { %v2993_v52 = vrot.slane %v2992_v58, 1  ;;  %v2997_v3 = vadd.f32 %v2996_v28, %v2995_v14 }
 0x2ba   :  { %v2573_v0 = vpop.f32.mrf.mxu3 }
 0x2bb   :  { %v2994_v62 = vadd.f32 %v2993_v52, %v2992_v58  ;;  %v2998_v40 = vrot.slane %v2997_v3, 2  ;;  %v2574_v8 = vadd.f32 %v2573_v0, %v2525_v16  ;;  %v2526_v43 = vpop.f32.mrf.mxu2 }
 0x2bc   :  { %v2477_v4 = vpop.f32.mrf.mxu1  ;;  %v2527_v13 = vadd.f32 %v2526_v43, %v6852_v55 }
 0x2bd   :  { %v3240_v54 = vmul.f32 0.0625, %v2994_v62  ;;  %v2999_v5 = vadd.f32 %v2998_v40, %v2997_v3  ;;  %2833 = vst [vmem:[%s7229_s7 + $0x138] sm:$0xff] %v2574_v8  ;;  %v2478_v38 = vadd.f32 %v2477_v4, %v2429_v45  ;;  %v2431_v57 = vpop.f32.mrf.mxu0 }
 0x2be   :  { %v2432_v31 = vadd.f32 %v2431_v57, %v6842_v59 }
 0x2bf   :  { %v3344_v41 = vsel %vm3324_vm1, %v3240_v54, %v3343_v60  ;;  %v3000_v33 = vrot.slane %v2999_v5, 1  ;;  %2838 = vst [vmem:[%s7229_s7 + $0x160] sm:$0xff] %v2478_v38  ;;  %v3030_v42 = vadd.f32 %v2478_v38, %v2476_v11 }
 0x2c0   :  { %2626 = vmatmul.bf16.gmra.mxu0 %v6345_v46  ;;  %2724 = vmatmul.bf16.gmra.mxu2 %v6345_v46 }
 0x2c1   :  { %v3001_v24 = vadd.f32 %v3000_v33, %v2999_v5  ;;  %v3031_v17 = vrot.slane %v3030_v42, 4 }
 0x2c2   :  { %v2575_v53 = vpop.f32.mrf.mxu3 }
 0x2c3   :  { %v3241_v44 = vmul.f32 0.0625, %v3001_v24  ;;  %v3032_v34 = vadd.f32 %v3031_v17, %v3030_v42  ;;  %v2576_v61 = vadd.f32 %v2575_v53, %v2527_v13  ;;  %v2529_v25 = vpop.f32.mrf.mxu2 }
 0x2c4   :  { %v2480_v2 = vpop.f32.mrf.mxu1  ;;  %v2530_v22 = vadd.f32 %v2529_v25, %v6852_v55 }
 0x2c5   :  { %v3351_v49 = vsel %vm3324_vm1, %v3241_v44, %v3350_v21  ;;  %v3033_v20 = vrot.slane %v3032_v34, 2  ;;  %2839 = vst [vmem:[%s7229_s7 + $0x168] sm:$0xff] %v2576_v61  ;;  %v3037_v39 = vadd.f32 %v2576_v61, %v2574_v8  ;;  %v6954_v29 = vadd.f32 %v2480_v2, %v2432_v31  ;;  %v2433_v26 = vpop.f32.mrf.mxu0 }
 0x2c6   :  { %v2434_v18 = vadd.f32 %v2433_v26, %v6842_v59 }
 0x2c7   :  { %v3034_v46 = vadd.f32 %v3033_v20, %v3032_v34  ;;  %v3038_v37 = vrot.slane %v3037_v39, 4  ;;  %2844 = vst [vmem:[%s7229_s7 + $0x190] sm:$0xff] %v6954_v29  ;;  %2675 = vmatmul.bf16.gmra.mxu1 %v6362_v1  ;;  %2773 = vmatmul.bf16.gmra.mxu3 %v6362_v1 }
 0x2c9   :  { %v3035_v60 = vrot.slane %v3034_v46, 1  ;;  %v3039_v47 = vadd.f32 %v3038_v37, %v3037_v39 }
 0x2ca   :  { %v2578_v15 = vpop.f32.mrf.mxu3 }
 0x2cb   :  { %v3036_v30 = vadd.f32 %v3035_v60, %v3034_v46  ;;  %v3040_v12 = vrot.slane %v3039_v47, 2  ;;  %v6964_v23 = vadd.f32 %v2578_v15, %v2530_v22  ;;  %v2531_v51 = vpop.f32.mrf.mxu2 }
 0x2cc   :  { %v2482_v10 = vpop.f32.mrf.mxu1  ;;  %v2532_v14 = vadd.f32 %v2531_v51, %v6852_v55 }
 0x2cd   :  { %v3246_v36 = vmul.f32 0.0625, %v3036_v30  ;;  %v3041_v9 = vadd.f32 %v3040_v12, %v3039_v47  ;;  %2845 = vst [vmem:[%s7229_s7 + $0x198] sm:$0xff] %v6964_v23  ;;  %v2483_v1 = vadd.f32 %v2482_v10, %v2434_v18  ;;  %v2436_v50 = vpop.f32.mrf.mxu0 }
 0x2ce   :  { %v2437_v58 = vadd.f32 %v2436_v50, %v6842_v59 }
 0x2cf   :  { %v6971_v35 = vsel %vm3326_vm2, %v3246_v36, %v3344_v41  ;;  %v3042_v21 = vrot.slane %v3041_v9, 1  ;;  %2850 = vst [vmem:[%s7229_s7 + $0x1c0] sm:$0xff] %v2483_v1  ;;  %v3072_v34 = vadd.f32 %v2483_v1, %v6954_v29 }
 0x2d0   :  { %2631 = vmatmul.bf16.gmra.mxu0 %v6381_v6  ;;  %2729 = vmatmul.bf16.gmra.mxu2 %v6381_v6 }
 0x2d1   :  { %v3043_v19 = vadd.f32 %v3042_v21, %v3041_v9  ;;  %v3073_v20 = vrot.slane %v3072_v34, 4 }
 0x2d2   :  { %v2580_v11 = vpop.f32.mrf.mxu3 }
 0x2d3   :  { %v3247_v32 = vmul.f32 0.0625, %v3043_v19  ;;  %v2581_v28 = vadd.f32 %v2580_v11, %v2532_v14  ;;  %v2534_v3 = vpop.f32.mrf.mxu2  ;;  %v3074_v15 = vadd.f32 %v3073_v20, %v3072_v34 }
 0x2d4   :  { %v2485_v52 = vpop.f32.mrf.mxu1  ;;  %v2535_v6 = vadd.f32 %v2534_v3, %v6852_v55 }
 0x2d5   :  { %v6981_v16 = vsel %vm3326_vm2, %v3247_v32, %v3351_v49  ;;  %2851 = vst [vmem:[%s7229_s7 + $0x1c8] sm:$0xff] %v2581_v28  ;;  %v2486_v0 = vadd.f32 %v2485_v52, %v2437_v58  ;;  %v2438_v62 = vpop.f32.mrf.mxu0  ;;  %v3079_v29 = vadd.f32 %v2581_v28, %v6964_v23  ;;  %v3075_v1 = vrot.slane %v3074_v15, 2 }
 0x2d6   :  { %v2439_v45 = vadd.f32 %v2438_v62, %v6842_v59 }
 0x2d7   :  { %2856 = vst [vmem:[%s7229_s7 + $0x1f0] sm:$0xff] %v2486_v0  ;;  %2680 = vmatmul.bf16.gmra.mxu1 %v6398_v27  ;;  %2778 = vmatmul.bf16.gmra.mxu3 %v6398_v27  ;;  %v3080_v36 = vrot.slane %v3079_v29, 4  ;;  %v3076_v3 = vadd.f32 %v3075_v1, %v3074_v15 }
 0x2d9   :  { %v3081_v14 = vadd.f32 %v3080_v36, %v3079_v29 }
 0x2da   :  { %v2583_v40 = vpop.f32.mrf.mxu3 }
 0x2db   :  { %v2584_v8 = vadd.f32 %v2583_v40, %v2535_v6  ;;  %v2536_v43 = vpop.f32.mrf.mxu2 }
 0x2dc   :  { %v2487_v4 = vpop.f32.mrf.mxu1  ;;  %v2537_v27 = vadd.f32 %v2536_v43, %v6852_v55 }
 0x2dd   :  { %2857 = vst [vmem:[%s7229_s7 + $0x1f8] sm:$0xff] %v2584_v8  ;;  %v2488_v54 = vadd.f32 %v2487_v4, %v2439_v45  ;;  %v2441_v5 = vpop.f32.mrf.mxu0  ;;  %v3082_v45 = vrot.slane %v3081_v14, 2 }
 0x2de   :  { %v2442_v57 = vadd.f32 %v2441_v5, %v6842_v59 }
 0x2df   :  { %2862 = vst [vmem:[%s7229_s7 + $0x220] sm:$0xff] %v2488_v54  ;;  %v3114_v31 = vadd.f32 %v2488_v54, %v2486_v0  ;;  %v4431_v54 = vld [vmem:[%s7228_s6] sm:$0x3f] }
 0x2e0   :  { %2636 = vmatmul.bf16.gmra.mxu0 %v6429_v56  ;;  %2734 = vmatmul.bf16.gmra.mxu2 %v6429_v56  ;;  %v7044_v5 = vperm.slane %v4431_v54, 4  ;;  %v7051_v20 = vperm.slane %v4431_v54, 5 }
 0x2e1   :  { %v3115_v39 = vrot.slane %v3114_v31, 4 }
 0x2e2   :  { %v2585_v38 = vpop.f32.mrf.mxu3 }
 0x2e3   :  { %v2586_v41 = vadd.f32 %v2585_v38, %v2537_v27  ;;  %v2539_v42 = vpop.f32.mrf.mxu2  ;;  %v3116_v30 = vadd.f32 %v3115_v39, %v3114_v31  ;;  %v3077_v27 = vrot.slane %v3076_v3, 1 }
 0x2e4   :  { %v2490_v33 = vpop.f32.mrf.mxu1  ;;  %v2540_v56 = vadd.f32 %v2539_v42, %v6852_v55  ;;  %v3083_v42 = vadd.f32 %v3082_v45, %v3081_v14 }
 0x2e5   :  { %2863 = vst [vmem:[%s7229_s7 + $0x228] sm:$0xff] %v2586_v41  ;;  %v2491_v24 = vadd.f32 %v2490_v33, %v2442_v57  ;;  %v2443_v17 = vpop.f32.mrf.mxu0  ;;  %v3121_v46 = vadd.f32 %v2586_v41, %v2584_v8  ;;  %v3117_v50 = vrot.slane %v3116_v30, 2  ;;  %v3078_v34 = vadd.f32 %v3077_v27, %v3076_v3 }
 0x2e6   :  { %v2444_v53 = vadd.f32 %v2443_v17, %v6842_v59  ;;  %v3084_v39 = vrot.slane %v3083_v42, 1 }
 0x2e7   :  { %2868 = vst [vmem:[%s7229_s7 + $0x250] sm:$0xff] %v2491_v24  ;;  %2685 = vmatmul.bf16.gmra.mxu1 %v6440_v63  ;;  %2783 = vmatmul.bf16.gmra.mxu3 %v6440_v63  ;;  %v3118_v0 = vadd.f32 %v3117_v50, %v3116_v30 }
 0x2e9   :  { %v3119_v38 = vrot.slane %v3118_v0, 1 }
 0x2ea   :  { %v2588_v13 = vpop.f32.mrf.mxu3 }
 0x2eb   :  { %v2589_v44 = vadd.f32 %v2588_v13, %v2540_v56  ;;  %v2541_v2 = vpop.f32.mrf.mxu2  ;;  %v3120_v31 = vadd.f32 %v3119_v38, %v3118_v0 }
 0x2ec   :  { %v2492_v61 = vpop.f32.mrf.mxu1  ;;  %v2542_v26 = vadd.f32 %v2541_v2, %v6852_v55 }
 0x2ed   :  { %2869 = vst [vmem:[%s7229_s7 + $0x258] sm:$0xff] %v2589_v44  ;;  %v2493_v25 = vadd.f32 %v2492_v61, %v2444_v53  ;;  %v2446_v49 = vpop.f32.mrf.mxu0  ;;  %v3258_v15 = vmul.f32 0.0625, %v3120_v31 }
 0x2ee   :  { %v2447_v47 = vadd.f32 %v2446_v49, %v6842_v59 }
 0x2ef   :  { %2874 = vst [vmem:[%s7229_s7 + $0x280] sm:$0xff] %v2493_v25  ;;  %v3156_v63 = vadd.f32 %v2493_v25, %v2491_v24 }
 0x2f0   :  { %2641 = vmatmul.bf16.gmra.mxu0 %v6473_v48  ;;  %2739 = vmatmul.bf16.gmra.mxu2 %v6473_v48  ;;  %v3122_v48 = vrot.slane %v3121_v46, 4 }
 0x2f1   :  { %v3157_v37 = vrot.slane %v3156_v63, 4 }
 0x2f2   :  { %v2590_v60 = vpop.f32.mrf.mxu3  ;;  %v3123_v11 = vadd.f32 %v3122_v48, %v3121_v46 }
 0x2f3   :  { %v2591_v22 = vadd.f32 %v2590_v60, %v2542_v26  ;;  %v2544_v18 = vpop.f32.mrf.mxu2  ;;  %v3158_v9 = vadd.f32 %v3157_v37, %v3156_v63 }
 0x2f4   :  { %v2495_v12 = vpop.f32.mrf.mxu1  ;;  %v2545_v19 = vadd.f32 %v2544_v18, %v6852_v55  ;;  %v3124_v8 = vrot.slane %v3123_v11, 2 }
 0x2f5   :  { %2875 = vst [vmem:[%s7229_s7 + $0x288] sm:$0xff] %v2591_v22  ;;  %v3163_v10 = vadd.f32 %v2591_v22, %v2589_v44  ;;  %v2496_v51 = vadd.f32 %v2495_v12, %v2447_v47  ;;  %v2448_v23 = vpop.f32.mrf.mxu0  ;;  %v3159_v32 = vrot.slane %v3158_v9, 2  ;;  %v3252_v47 = vmul.f32 0.0625, %v3078_v34 }
 0x2f6   :  { %v2449_v28 = vadd.f32 %v2448_v23, %v6842_v59  ;;  %v3125_v24 = vadd.f32 %v3124_v8, %v3123_v11 }
 0x2f7   :  { %2880 = vst [vmem:[%s7229_s7 + $0x2b0] sm:$0xff] %v2496_v51  ;;  %2690 = vmatmul.bf16.gmra.mxu1 %v6488_v7  ;;  %2788 = vmatmul.bf16.gmra.mxu3 %v6488_v7  ;;  %v3164_v21 = vrot.slane %v3163_v10, 4  ;;  %v3160_v4 = vadd.f32 %v3159_v32, %v3158_v9 }
 0x2f8   :  { %v3126_v26 = vrot.slane %v3125_v24, 1 }
 0x2f9   :  { %v3165_v62 = vadd.f32 %v3164_v21, %v3163_v10  ;;  %v3161_v17 = vrot.slane %v3160_v4, 1  ;;  %v3085_v10 = vadd.f32 %v3084_v39, %v3083_v42  ;;  %v3346_v21 = vsel %vm3328_vm3, %v3252_v47, %v6971_v35 }
 0x2fa   :  { %v2593_v58 = vpop.f32.mrf.mxu3  ;;  %v3347_v32 = vsel %vm3330_vm4, %v3258_v15, %v3346_v21 }
 0x2fb   :  { %v2594_v52 = vadd.f32 %v2593_v58, %v2545_v19  ;;  %v2546_v40 = vpop.f32.mrf.mxu2  ;;  %v3166_v57 = vrot.slane %v3165_v62, 2  ;;  %v3162_v29 = vadd.f32 %v3161_v17, %v3160_v4  ;;  %v3253_v3 = vmul.f32 0.0625, %v3085_v10 }
 0x2fc   :  { %v2497_v6 = vpop.f32.mrf.mxu1  ;;  %v2547_v33 = vadd.f32 %v2546_v40, %v6852_v55 }
 0x2fd   :  { %2881 = vst [vmem:[%s7229_s7 + $0x2b8] sm:$0xff] %v2594_v52  ;;  %v2498_v7 = vadd.f32 %v2497_v6, %v2449_v28  ;;  %v2607_v43 = vpop.f32.mrf.mxu0  ;;  %v3167_v61 = vadd.f32 %v3166_v57, %v3165_v62  ;;  %v3264_v36 = vmul.f32 0.0625, %v3162_v29 }
 0x2fe   :  { %v2608_v53 = vadd.f32 %v2607_v43, %v7044_v5  ;;  %v3353_v43 = vsel %vm3328_vm3, %v3253_v3, %v6981_v16 }
 0x2ff   :  { %2886 = vst [vmem:[%s7229_s7 + $0x2e0] sm:$0xff] %v2498_v7  ;;  %v3198_v59 = vadd.f32 %v2498_v7, %v2496_v51  ;;  %v3168_v22 = vrot.slane %v3167_v61, 1  ;;  %v3127_v51 = vadd.f32 %v3126_v26, %v3125_v24  ;;  %v3348_v0 = vsel %vm3332_vm5, %v3264_v36, %v3347_v32 }
 0x301   :  { %v3199_v41 = vrot.slane %v3198_v59, 4  ;;  %v3169_v19 = vadd.f32 %v3168_v22, %v3167_v61  ;;  %v3259_v6 = vmul.f32 0.0625, %v3127_v51 }
 0x302   :  { %v2595_v56 = vpop.f32.mrf.mxu3 }
 0x303   :  { %v3200_v13 = vadd.f32 %v3199_v41, %v3198_v59  ;;  %v2596_v44 = vadd.f32 %v2595_v56, %v2547_v33  ;;  %v2705_v25 = vpop.f32.mrf.mxu2  ;;  %v3265_v45 = vmul.f32 0.0625, %v3169_v19  ;;  %v3354_v54 = vsel %vm3330_vm4, %v3259_v6, %v3353_v43 }
 0x304   :  { %v2656_v2 = vpop.f32.mrf.mxu1  ;;  %v2706_v18 = vadd.f32 %v2705_v25, %v7051_v20 }
 0x305   :  { %v3201_v49 = vrot.slane %v3200_v13, 2  ;;  %2887 = vst [vmem:[%s7229_s7 + $0x2e8] sm:$0xff] %v2596_v44  ;;  %v3205_v63 = vadd.f32 %v2596_v44, %v2594_v52  ;;  %v2657_v55 = vadd.f32 %v2656_v2, %v2608_v53  ;;  %v2609_v46 = vpop.f32.mrf.mxu0  ;;  %v3355_v41 = vsel %vm3332_vm5, %v3265_v45, %v3354_v54 }
 0x306   :  { %v2610_v1 = vadd.f32 %v2609_v46, %v7044_v5 }
 0x307   :  { %v3202_v37 = vadd.f32 %v3201_v49, %v3200_v13  ;;  %v3206_v60 = vrot.slane %v3205_v63, 4  ;;  %2798 = vst [vmem:[%s7229_s7 + $0x20] sm:$0xff] %v2657_v55 }
 0x309   :  { %v3203_v30 = vrot.slane %v3202_v37, 1  ;;  %v3207_v12 = vadd.f32 %v3206_v60, %v3205_v63 }
 0x30a   :  { %v2754_v48 = vpop.f32.mrf.mxu3 }
 0x30b   :  { %v3204_v9 = vadd.f32 %v3203_v30, %v3202_v37  ;;  %v3208_v23 = vrot.slane %v3207_v12, 2  ;;  %v2755_v50 = vadd.f32 %v2754_v48, %v2706_v18  ;;  %v2707_v11 = vpop.f32.mrf.mxu2 }
 0x30c   :  { %v2658_v14 = vpop.f32.mrf.mxu1  ;;  %v2708_v4 = vadd.f32 %v2707_v11, %v7051_v20 }
 0x30d   :  { %v3270_v58 = vmul.f32 0.0625, %v3204_v9  ;;  %v3209_v28 = vadd.f32 %v3208_v23, %v3207_v12  ;;  %2799 = vst [vmem:[%s7229_s7 + $0x28] sm:$0xff] %v2755_v50  ;;  %v2659_v52 = vadd.f32 %v2658_v14, %v2610_v1  ;;  %v2612_v62 = vpop.f32.mrf.mxu0 }
 0x30e   :  { %v2613_v38 = vadd.f32 %v2612_v62, %v7044_v5 }
 0x30f   :  { %v3349_v40 = vsel %vm3334_vm6, %v3270_v58, %v3348_v0  ;;  %v3210_v35 = vrot.slane %v3209_v28, 1  ;;  %2804 = vst [vmem:[%s7229_s7 + $0x50] sm:$0xff] %v2659_v52  ;;  %v2918_v7 = vadd.f32 %v2659_v52, %v2657_v55 }
 0x310   :  { %3379 = vst [vmem:[%s7230_s8 + $0x10] sm:$0xff] %v3349_v40 }
 0x311   :  { %v3211_v8 = vadd.f32 %v3210_v35, %v3209_v28  ;;  %v2919_v17 = vrot.slane %v2918_v7, 4 }
 0x312   :  { %v2756_v59 = vpop.f32.mrf.mxu3 }
 0x313   :  { %v3271_v27 = vmul.f32 0.0625, %v3211_v8  ;;  %v2757_v57 = vadd.f32 %v2756_v59, %v2708_v4  ;;  %v2710_v42 = vpop.f32.mrf.mxu2  ;;  %v2920_v53 = vadd.f32 %v2919_v17, %v2918_v7 }
 0x314   :  { %v2661_v33 = vpop.f32.mrf.mxu1  ;;  %v2711_v44 = vadd.f32 %v2710_v42, %v7051_v20 }
 0x315   :  { %v3356_v24 = vsel %vm3334_vm6, %v3271_v27, %v3355_v41  ;;  %2805 = vst [vmem:[%s7229_s7 + $0x58] sm:$0xff] %v2757_v57  ;;  %v2925_v56 = vadd.f32 %v2757_v57, %v2755_v50  ;;  %v2662_v16 = vadd.f32 %v2661_v33, %v2613_v38  ;;  %v2614_v13 = vpop.f32.mrf.mxu0  ;;  %v2921_v63 = vrot.slane %v2920_v53, 2 }
 0x316   :  { %3380 = vst [vmem:[%s7230_s8 + $0x18] sm:$0xff] %v3356_v24  ;;  %v2615_v61 = vadd.f32 %v2614_v13, %v7044_v5 }
 0x317   :  { %2810 = vst [vmem:[%s7229_s7 + $0x80] sm:$0xff] %v2662_v16  ;;  %v2926_v34 = vrot.slane %v2925_v56, 4  ;;  %v2922_v46 = vadd.f32 %v2921_v63, %v2920_v53 }
 0x319   :  { %v2927_v39 = vadd.f32 %v2926_v34, %v2925_v56  ;;  %v2923_v51 = vrot.slane %v2922_v46, 1 }
 0x31a   :  { %v2759_v31 = vpop.f32.mrf.mxu3 }
 0x31b   :  { %v2760_v2 = vadd.f32 %v2759_v31, %v2711_v44  ;;  %v2712_v49 = vpop.f32.mrf.mxu2  ;;  %v2928_v47 = vrot.slane %v2927_v39, 2  ;;  %v2924_v19 = vadd.f32 %v2923_v51, %v2922_v46 }
 0x31c   :  { %v2663_v25 = vpop.f32.mrf.mxu1  ;;  %v2713_v60 = vadd.f32 %v2712_v49, %v7051_v20 }
 0x31d   :  { %2811 = vst [vmem:[%s7229_s7 + $0x88] sm:$0xff] %v2760_v2  ;;  %v2664_v55 = vadd.f32 %v2663_v25, %v2615_v61  ;;  %v2617_v26 = vpop.f32.mrf.mxu0  ;;  %v2929_v23 = vadd.f32 %v2928_v47, %v2927_v39  ;;  %v3230_v35 = vmul.f32 0.0625, %v2924_v19 }
 0x31e   :  { %v2618_v30 = vadd.f32 %v2617_v26, %v7044_v5 }
 0x31f   :  { %2816 = vst [vmem:[%s7229_s7 + $0xb0] sm:$0xff] %v2664_v55  ;;  %v2960_v29 = vadd.f32 %v2664_v55, %v2662_v16  ;;  %v2930_v58 = vrot.slane %v2929_v23, 1 }
 0x321   :  { %v2961_v37 = vrot.slane %v2960_v29, 4  ;;  %v2931_v4 = vadd.f32 %v2930_v58, %v2929_v23 }
 0x322   :  { %v2761_v22 = vpop.f32.mrf.mxu3 }
 0x323   :  { %v2962_v15 = vadd.f32 %v2961_v37, %v2960_v29  ;;  %v2762_v12 = vadd.f32 %v2761_v22, %v2713_v60  ;;  %v2715_v10 = vpop.f32.mrf.mxu2  ;;  %v3231_v33 = vmul.f32 0.0625, %v2931_v4 }
 0x324   :  { %v2666_v18 = vpop.f32.mrf.mxu1  ;;  %v2716_v32 = vadd.f32 %v2715_v10, %v7051_v20 }
 0x325   :  { %v2963_v36 = vrot.slane %v2962_v15, 2  ;;  %2817 = vst [vmem:[%s7229_s7 + $0xb8] sm:$0xff] %v2762_v12  ;;  %v2967_v48 = vadd.f32 %v2762_v12, %v2760_v2  ;;  %v2667_v9 = vadd.f32 %v2666_v18, %v2618_v30  ;;  %v2619_v1 = vpop.f32.mrf.mxu0 }
 0x326   :  { %v2620_v0 = vadd.f32 %v2619_v1, %v7044_v5 }
 0x327   :  { %v2964_v50 = vadd.f32 %v2963_v36, %v2962_v15  ;;  %v2968_v21 = vrot.slane %v2967_v48, 4  ;;  %2822 = vst [vmem:[%s7229_s7 + $0xe0] sm:$0xff] %v2667_v9 }
 0x329   :  { %v2965_v14 = vrot.slane %v2964_v50, 1  ;;  %v2969_v11 = vadd.f32 %v2968_v21, %v2967_v48 }
 0x32a   :  { %v2764_v28 = vpop.f32.mrf.mxu3 }
 0x32b   :  { %v2966_v52 = vadd.f32 %v2965_v14, %v2964_v50  ;;  %v2970_v3 = vrot.slane %v2969_v11, 2  ;;  %v2765_v62 = vadd.f32 %v2764_v28, %v2716_v32  ;;  %v2717_v40 = vpop.f32.mrf.mxu2 }
 0x32c   :  { %v2668_v6 = vpop.f32.mrf.mxu1  ;;  %v2718_v41 = vadd.f32 %v2717_v40, %v7051_v20 }
 0x32d   :  { %v3236_v7 = vmul.f32 0.0625, %v2966_v52  ;;  %v2971_v45 = vadd.f32 %v2970_v3, %v2969_v11  ;;  %2823 = vst [vmem:[%s7229_s7 + $0xe8] sm:$0xff] %v2765_v62  ;;  %v2669_v8 = vadd.f32 %v2668_v6, %v2620_v0  ;;  %v2622_v43 = vpop.f32.mrf.mxu0 }
 0x32e   :  { %v2623_v56 = vadd.f32 %v2622_v43, %v7044_v5 }
 0x32f   :  { %v3357_v59 = vsel %vm3322_vm0, %v3236_v7, %v3230_v35  ;;  %v2972_v54 = vrot.slane %v2971_v45, 1  ;;  %2828 = vst [vmem:[%s7229_s7 + $0x110] sm:$0xff] %v2669_v8  ;;  %v3002_v27 = vadd.f32 %v2669_v8, %v2667_v9 }
 0x331   :  { %v2973_v38 = vadd.f32 %v2972_v54, %v2971_v45  ;;  %v3003_v57 = vrot.slane %v3002_v27, 4 }
 0x332   :  { %v2766_v42 = vpop.f32.mrf.mxu3 }
 0x333   :  { %v3237_v24 = vmul.f32 0.0625, %v2973_v38  ;;  %v3004_v17 = vadd.f32 %v3003_v57, %v3002_v27  ;;  %v2767_v16 = vadd.f32 %v2766_v42, %v2718_v41  ;;  %v2720_v53 = vpop.f32.mrf.mxu2 }
 0x334   :  { %v2671_v13 = vpop.f32.mrf.mxu1  ;;  %v2721_v39 = vadd.f32 %v2720_v53, %v7051_v20 }
 0x335   :  { %v3364_v44 = vsel %vm3322_vm0, %v3237_v24, %v3231_v33  ;;  %v3005_v34 = vrot.slane %v3004_v17, 2  ;;  %2829 = vst [vmem:[%s7229_s7 + $0x118] sm:$0xff] %v2767_v16  ;;  %v3009_v31 = vadd.f32 %v2767_v16, %v2765_v62  ;;  %v2672_v61 = vadd.f32 %v2671_v13, %v2623_v56  ;;  %v2624_v2 = vpop.f32.mrf.mxu0 }
 0x336   :  { %v2625_v37 = vadd.f32 %v2624_v2, %v7044_v5 }
 0x337   :  { %v3006_v25 = vadd.f32 %v3005_v34, %v3004_v17  ;;  %v3010_v49 = vrot.slane %v3009_v31, 4  ;;  %2834 = vst [vmem:[%s7229_s7 + $0x140] sm:$0xff] %v2672_v61 }
 0x339   :  { %v3007_v63 = vrot.slane %v3006_v25, 1  ;;  %v3011_v55 = vadd.f32 %v3010_v49, %v3009_v31 }
 0x33a   :  { %v2769_v26 = vpop.f32.mrf.mxu3 }
 0x33b   :  { %v3008_v29 = vadd.f32 %v3007_v63, %v3006_v25  ;;  %v3012_v46 = vrot.slane %v3011_v55, 2  ;;  %v2770_v60 = vadd.f32 %v2769_v26, %v2721_v39  ;;  %v2722_v22 = vpop.f32.mrf.mxu2 }
 0x33c   :  { %v2673_v47 = vpop.f32.mrf.mxu1  ;;  %v2723_v23 = vadd.f32 %v2722_v22, %v7051_v20 }
 0x33d   :  { %v3242_v15 = vmul.f32 0.0625, %v3008_v29  ;;  %v3013_v30 = vadd.f32 %v3012_v46, %v3011_v55  ;;  %2835 = vst [vmem:[%s7229_s7 + $0x148] sm:$0xff] %v2770_v60  ;;  %v2674_v12 = vadd.f32 %v2673_v47, %v2625_v37  ;;  %v2627_v18 = vpop.f32.mrf.mxu0 }
 0x33e   :  { %v2628_v19 = vadd.f32 %v2627_v18, %v7044_v5 }
 0x33f   :  { %v3358_v10 = vsel %vm3324_vm1, %v3242_v15, %v3357_v59  ;;  %v3014_v51 = vrot.slane %v3013_v30, 1  ;;  %2840 = vst [vmem:[%s7229_s7 + $0x170] sm:$0xff] %v2674_v12  ;;  %v3044_v36 = vadd.f32 %v2674_v12, %v2672_v61 }
 0x341   :  { %v3015_v48 = vadd.f32 %v3014_v51, %v3013_v30  ;;  %v3045_v9 = vrot.slane %v3044_v36, 4 }
 0x342   :  { %v2771_v1 = vpop.f32.mrf.mxu3 }
 0x343   :  { %v3243_v50 = vmul.f32 0.0625, %v3015_v48  ;;  %v3046_v21 = vadd.f32 %v3045_v9, %v3044_v36  ;;  %v2772_v14 = vadd.f32 %v2771_v1, %v2723_v23  ;;  %v2725_v32 = vpop.f32.mrf.mxu2 }
 0x344   :  { %v2676_v11 = vpop.f32.mrf.mxu1  ;;  %v2726_v7 = vadd.f32 %v2725_v32, %v7051_v20 }
 0x345   :  { %v3365_v58 = vsel %vm3324_vm1, %v3243_v50, %v3364_v44  ;;  %v3047_v28 = vrot.slane %v3046_v21, 2  ;;  %2841 = vst [vmem:[%s7229_s7 + $0x178] sm:$0xff] %v2772_v14  ;;  %v3051_v52 = vadd.f32 %v2772_v14, %v2770_v60  ;;  %v2677_v3 = vadd.f32 %v2676_v11, %v2628_v19  ;;  %v2629_v0 = vpop.f32.mrf.mxu0 }
 0x346   :  { %v2630_v43 = vadd.f32 %v2629_v0, %v7044_v5 }
 0x347   :  { %v3048_v62 = vadd.f32 %v3047_v28, %v3046_v21  ;;  %v3052_v6 = vrot.slane %v3051_v52, 4  ;;  %2846 = vst [vmem:[%s7229_s7 + $0x1a0] sm:$0xff] %v2677_v3 }
 0x349   :  { %v3049_v40 = vrot.slane %v3048_v62, 1  ;;  %v3053_v35 = vadd.f32 %v3052_v6, %v3051_v52 }
 0x34a   :  { %v2774_v45 = vpop.f32.mrf.mxu3 }
 0x34b   :  { %v3050_v8 = vadd.f32 %v3049_v40, %v3048_v62  ;;  %v3054_v4 = vrot.slane %v3053_v35, 2  ;;  %v2775_v59 = vadd.f32 %v2774_v45, %v2726_v7  ;;  %v2727_v27 = vpop.f32.mrf.mxu2 }
 0x34c   :  { %v2678_v54 = vpop.f32.mrf.mxu1  ;;  %v2728_v56 = vadd.f32 %v2727_v27, %v7051_v20 }
 0x34d   :  { %v3248_v38 = vmul.f32 0.0625, %v3050_v8  ;;  %v3055_v57 = vadd.f32 %v3054_v4, %v3053_v35  ;;  %2847 = vst [vmem:[%s7229_s7 + $0x1a8] sm:$0xff] %v2775_v59  ;;  %v2679_v41 = vadd.f32 %v2678_v54, %v2630_v43  ;;  %v2632_v33 = vpop.f32.mrf.mxu0 }
 0x34e   :  { %v2633_v53 = vadd.f32 %v2632_v33, %v7044_v5 }
 0x34f   :  { %v7146_v42 = vsel %vm3326_vm2, %v3248_v38, %v3358_v10  ;;  %v3056_v24 = vrot.slane %v3055_v57, 1  ;;  %2852 = vst [vmem:[%s7229_s7 + $0x1d0] sm:$0xff] %v2679_v41  ;;  %v3086_v23 = vadd.f32 %v2679_v41, %v2677_v3 }
 0x351   :  { %v3057_v17 = vadd.f32 %v3056_v24, %v3055_v57  ;;  %v3087_v32 = vrot.slane %v3086_v23, 4 }
 0x352   :  { %v2776_v16 = vpop.f32.mrf.mxu3 }
 0x353   :  { %v3249_v13 = vmul.f32 0.0625, %v3057_v17  ;;  %v2777_v44 = vadd.f32 %v2776_v16, %v2728_v56  ;;  %v2730_v31 = vpop.f32.mrf.mxu2  ;;  %v3088_v35 = vadd.f32 %v3087_v32, %v3086_v23 }
 0x354   :  { %v2681_v34 = vpop.f32.mrf.mxu1  ;;  %v2731_v49 = vadd.f32 %v2730_v31, %v7051_v20 }
 0x355   :  { %v7154_v61 = vsel %vm3326_vm2, %v3249_v13, %v3365_v58  ;;  %2853 = vst [vmem:[%s7229_s7 + $0x1d8] sm:$0xff] %v2777_v44  ;;  %v2682_v2 = vadd.f32 %v2681_v34, %v2633_v53  ;;  %v2634_v25 = vpop.f32.mrf.mxu0  ;;  %v3093_v52 = vadd.f32 %v2777_v44, %v2775_v59  ;;  %v3089_v59 = vrot.slane %v3088_v35, 2 }
 0x356   :  { %v2635_v55 = vadd.f32 %v2634_v25, %v7044_v5 }
 0x357   :  { %2858 = vst [vmem:[%s7229_s7 + $0x200] sm:$0xff] %v2682_v2  ;;  %v3094_v54 = vrot.slane %v3093_v52, 4  ;;  %v3090_v34 = vadd.f32 %v3089_v59, %v3088_v35 }
 0x359   :  { %v3095_v17 = vadd.f32 %v3094_v54, %v3093_v52 }
 0x35a   :  { %v2779_v63 = vpop.f32.mrf.mxu3 }
 0x35b   :  { %v2780_v39 = vadd.f32 %v2779_v63, %v2731_v49  ;;  %v2732_v29 = vpop.f32.mrf.mxu2  ;;  %v3096_v63 = vrot.slane %v3095_v17, 2 }
 0x35c   :  { %v2683_v26 = vpop.f32.mrf.mxu1  ;;  %v2733_v60 = vadd.f32 %v2732_v29, %v7051_v20 }
 0x35d   :  { %2859 = vst [vmem:[%s7229_s7 + $0x208] sm:$0xff] %v2780_v39  ;;  %v2684_v46 = vadd.f32 %v2683_v26, %v2635_v55  ;;  %v2637_v37 = vpop.f32.mrf.mxu0 }
 0x35e   :  { %v2638_v22 = vadd.f32 %v2637_v37, %v7044_v5 }
 0x35f   :  { %2864 = vst [vmem:[%s7229_s7 + $0x230] sm:$0xff] %v2684_v46  ;;  %v3128_v21 = vadd.f32 %v2684_v46, %v2682_v2 }
 0x361   :  { %v3129_v58 = vrot.slane %v3128_v21, 4 }
 0x362   :  { %v2781_v47 = vpop.f32.mrf.mxu3 }
 0x363   :  { %v2782_v15 = vadd.f32 %v2781_v47, %v2733_v60  ;;  %v2735_v12 = vpop.f32.mrf.mxu2  ;;  %v3130_v8 = vadd.f32 %v3129_v58, %v3128_v21 }
 0x364   :  { %v2686_v30 = vpop.f32.mrf.mxu1  ;;  %v2736_v51 = vadd.f32 %v2735_v12, %v7051_v20 }
 0x365   :  { %2865 = vst [vmem:[%s7229_s7 + $0x238] sm:$0xff] %v2782_v15  ;;  %v2687_v18 = vadd.f32 %v2686_v30, %v2638_v22  ;;  %v2639_v10 = vpop.f32.mrf.mxu0  ;;  %v3135_v62 = vadd.f32 %v2782_v15, %v2780_v39  ;;  %v3131_v33 = vrot.slane %v3130_v8, 2  ;;  %v3097_v22 = vadd.f32 %v3096_v63, %v3095_v17 }
 0x366   :  { %v2640_v48 = vadd.f32 %v2639_v10, %v7044_v5 }
 0x367   :  { %2870 = vst [vmem:[%s7229_s7 + $0x260] sm:$0xff] %v2687_v18  ;;  %v3136_v38 = vrot.slane %v3135_v62, 4  ;;  %v3132_v25 = vadd.f32 %v3131_v33, %v3130_v8 }
 0x369   :  { %v3137_v13 = vadd.f32 %v3136_v38, %v3135_v62  ;;  %v3133_v37 = vrot.slane %v3132_v25, 1 }
 0x36a   :  { %v2784_v36 = vpop.f32.mrf.mxu3 }
 0x36b   :  { %v2785_v9 = vadd.f32 %v2784_v36, %v2736_v51  ;;  %v2737_v50 = vpop.f32.mrf.mxu2  ;;  %v3138_v26 = vrot.slane %v3137_v13, 2 }
 0x36c   :  { %v2688_v1 = vpop.f32.mrf.mxu1  ;;  %v2738_v28 = vadd.f32 %v2737_v50, %v7051_v20 }
 0x36d   :  { %2871 = vst [vmem:[%s7229_s7 + $0x268] sm:$0xff] %v2785_v9  ;;  %v2689_v19 = vadd.f32 %v2688_v1, %v2640_v48  ;;  %v2642_v14 = vpop.f32.mrf.mxu0  ;;  %v3139_v12 = vadd.f32 %v3138_v26, %v3137_v13  ;;  %v3134_v48 = vadd.f32 %v3133_v37, %v3132_v25  ;;  %v3098_v1 = vrot.slane %v3097_v22, 1 }
 0x36e   :  { %v2643_v6 = vadd.f32 %v2642_v14, %v7044_v5 }
 0x36f   :  { %2876 = vst [vmem:[%s7229_s7 + $0x290] sm:$0xff] %v2689_v19  ;;  %v3170_v11 = vadd.f32 %v2689_v19, %v2687_v18  ;;  %v3140_v21 = vrot.slane %v3139_v12, 1  ;;  %v3260_v32 = vmul.f32 0.0625, %v3134_v48  ;;  %v3099_v52 = vadd.f32 %v3098_v1, %v3097_v22 }
 0x371   :  { %v3171_v3 = vrot.slane %v3170_v11, 4 }
 0x372   :  { %v2786_v0 = vpop.f32.mrf.mxu3 }
 0x373   :  { %v2787_v40 = vadd.f32 %v2786_v0, %v2738_v28  ;;  %v2740_v45 = vpop.f32.mrf.mxu2  ;;  %v3172_v27 = vadd.f32 %v3171_v3, %v3170_v11  ;;  %v3141_v0 = vadd.f32 %v3140_v21, %v3139_v12 }
 0x374   :  { %v2691_v7 = vpop.f32.mrf.mxu1  ;;  %v2741_v24 = vadd.f32 %v2740_v45, %v7051_v20 }
 0x375   :  { %2877 = vst [vmem:[%s7229_s7 + $0x298] sm:$0xff] %v2787_v40  ;;  %v3177_v4 = vadd.f32 %v2787_v40, %v2785_v9  ;;  %v2692_v43 = vadd.f32 %v2691_v7, %v2643_v6  ;;  %v2644_v41 = vpop.f32.mrf.mxu0  ;;  %v3173_v56 = vrot.slane %v3172_v27, 2  ;;  %v3261_v54 = vmul.f32 0.0625, %v3141_v0 }
 0x376   :  { %v2645_v53 = vadd.f32 %v2644_v41, %v7044_v5  ;;  %v3091_v5 = vrot.slane %v3090_v34, 1 }
 0x377   :  { %2882 = vst [vmem:[%s7229_s7 + $0x2c0] sm:$0xff] %v2692_v43  ;;  %v3178_v57 = vrot.slane %v3177_v4, 4  ;;  %v3174_v55 = vadd.f32 %v3173_v56, %v3172_v27 }
 0x378   :  { %v3092_v51 = vadd.f32 %v3091_v5, %v3090_v34 }
 0x379   :  { %v3179_v31 = vadd.f32 %v3178_v57, %v3177_v4  ;;  %v3175_v15 = vrot.slane %v3174_v55, 1  ;;  %v3255_v4 = vmul.f32 0.0625, %v3099_v52 }
 0x37a   :  { %v2789_v16 = vpop.f32.mrf.mxu3  ;;  %v3254_v14 = vmul.f32 0.0625, %v3092_v51 }
 0x37b   :  { %v2790_v44 = vadd.f32 %v2789_v16, %v2741_v24  ;;  %v2742_v39 = vpop.f32.mrf.mxu2  ;;  %v3180_v46 = vrot.slane %v3179_v31, 2  ;;  %v3176_v50 = vadd.f32 %v3175_v15, %v3174_v55 }
 0x37c   :  { %v2693_v2 = vpop.f32.mrf.mxu1  ;;  %v2743_v47 = vadd.f32 %v2742_v39, %v7051_v20  ;;  %v3360_v40 = vsel %vm3328_vm3, %v3254_v14, %v7146_v42  ;;  %v3367_v42 = vsel %vm3328_vm3, %v3255_v4, %v7154_v61 }
 0x37d   :  { %2883 = vst [vmem:[%s7229_s7 + $0x2c8] sm:$0xff] %v2790_v44  ;;  %v2694_v49 = vadd.f32 %v2693_v2, %v2645_v53  ;;  %v3181_v36 = vadd.f32 %v3180_v46, %v3179_v31  ;;  %v3266_v3 = vmul.f32 0.0625, %v3176_v50  ;;  %v3361_v7 = vsel %vm3330_vm4, %v3260_v32, %v3360_v40 }
 0x37e   :  { %v3368_v41 = vsel %vm3330_vm4, %v3261_v54, %v3367_v42 }
 0x37f   :  { %2888 = vst [vmem:[%s7229_s7 + $0x2f0] sm:$0xff] %v2694_v49  ;;  %v3212_v29 = vadd.f32 %v2694_v49, %v2692_v43  ;;  %v3182_v11 = vrot.slane %v3181_v36, 1  ;;  %v3362_v43 = vsel %vm3332_vm5, %v3266_v3, %v3361_v7 }
 0x381   :  { %v3213_v60 = vrot.slane %v3212_v29, 4  ;;  %v3183_v35 = vadd.f32 %v3182_v11, %v3181_v36 }
 0x382   :  { %v2791_v30 = vpop.f32.mrf.mxu3 }
 0x383   :  { %v3214_v18 = vadd.f32 %v3213_v60, %v3212_v29  ;;  %v2792_v10 = vadd.f32 %v2791_v30, %v2743_v47  ;;  %v3267_v59 = vmul.f32 0.0625, %v3183_v35 }
 0x385   :  { %v3215_v9 = vrot.slane %v3214_v18, 2  ;;  %2889 = vst [vmem:[%s7229_s7 + $0x2f8] sm:$0xff] %v2792_v10  ;;  %v3219_v23 = vadd.f32 %v2792_v10, %v2790_v44  ;;  %v3369_v24 = vsel %vm3332_vm5, %v3267_v59, %v3368_v41 }
 0x387   :  { %v3216_v19 = vadd.f32 %v3215_v9, %v3214_v18  ;;  %v3220_v20 = vrot.slane %v3219_v23, 4 }
 0x389   :  { %v3217_v58 = vrot.slane %v3216_v19, 1  ;;  %v3221_v28 = vadd.f32 %v3220_v20, %v3219_v23 }
 0x38b   :  { %v3218_v62 = vadd.f32 %v3217_v58, %v3216_v19  ;;  %v3222_v6 = vrot.slane %v3221_v28, 2 }
 0x38d   :  { %v3272_v45 = vmul.f32 0.0625, %v3218_v62  ;;  %v3223_v8 = vadd.f32 %v3222_v6, %v3221_v28 }
 0x38f   :  { %v3363_v27 = vsel %vm3334_vm6, %v3272_v45, %v3362_v43  ;;  %v3224_v38 = vrot.slane %v3223_v8, 1 }
 0x390   :  { %3381 = vst [vmem:[%s7230_s8 + $0x20] sm:$0xff] %v3363_v27 }
 0x391   :  { %v3225_v57 = vadd.f32 %v3224_v38, %v3223_v8 }
 0x393   :  { %v3273_v33 = vmul.f32 0.0625, %v3225_v57 }
 0x395   :  { %v3370_v17 = vsel %vm3334_vm6, %v3273_v33, %v3369_v24 }
 0x396   :  { %3382 = vst [vmem:[%s7230_s8 + $0x28] sm:$0xff] %v3370_v17 }

// kernel: model_efficientv2_forward.1
= control target key start
LH: loop header
LB: loop body
LE: loop exit
PB: predicated region body
PF: predicated region fallthrough
CT: control target
= control target key end

     0   :  { %s7222_s1 = inlined_call_operand.vmem [shape: bf16[256,256], index: 1, kind: input, shape index: {}]   ;;  %s7223_s0 = inlined_call_operand.vmem [shape: bf16[128,256], index: 0, kind: input, shape index: {}]   ;;  %s7224_s3 = inlined_call_operand.vmem [shape: bf16[256,256], index: 3, kind: input, shape index: {}]   ;;  %s7225_s2 = inlined_call_operand.vmem [shape: f32[1,256], index: 2, kind: input, shape index: {}]   ;;  %s7226_s5 = inlined_call_operand.vmem [shape: bf16[256,768], index: 5, kind: input, shape index: {}]   ;;  %s7227_s4 = inlined_call_operand.vmem [shape: f32[1,256], index: 4, kind: input, shape index: {}]   ;;  %s7228_s6 = inlined_call_operand.vmem [shape: f32[1,768], index: 6, kind: input, shape index: {}]   ;;  %s7229_s7 = inlined_call_operand.vmem [shape: f32[128,768], index: 7, kind: output, shape index: {0}]   ;;  %s7230_s8 = inlined_call_operand.vmem [shape: f32[8,768], index: 8, kind: output, shape index: {1}]  }
   0x1   :  { %v3513_v0 = vld [vmem:[%s7222_s1 + $0x70] sm:$0xf]  ;;  %v4158_v1 = vld [vmem:[%s7222_s1 + $0x74] sm:$0xf0]  ;;  %v4157_v5 = vld [vmem:[%s7222_s1 + $0x74] sm:$0xf] }
   0x2   :  { %v3577_v2 = vld [vmem:[%s7222_s1 + $0xf0] sm:$0xf]  ;;  %v3514_v3 = vor.u32 %v4158_v1, %v3513_v0  ;;  %v4174_v4 = vld [vmem:[%s7222_s1 + $0xf4] sm:$0xf0]  ;;  %v3515_v6 = vld [vmem:[%s7222_s1 + $0x78] sm:$0xf0] }
   0x3   :  { %v3578_v7 = vor.u32 %v4174_v4, %v3577_v2  ;;  %v3518_v8 = vor.u32 %v4157_v5, %v3515_v6  ;;  %v4173_v9 = vld [vmem:[%s7222_s1 + $0xf4] sm:$0xf]  ;;  %v3579_v10 = vld [vmem:[%s7222_s1 + $0xf8] sm:$0xf0]  ;;  %v3505_v11 = vld [vmem:[%s7222_s1 + $0x60] sm:$0xf] }
   0x4   :  { %322 = vmatpush.bf16.msra.mxu0 %v3514_v3  ;;  %v3582_v12 = vor.u32 %v4173_v9, %v3579_v10  ;;  %v4156_v13 = vld [vmem:[%s7222_s1 + $0x64] sm:$0xf0]  ;;  %v3569_v14 = vld [vmem:[%s7222_s1 + $0xe0] sm:$0xf]  ;;  %v4155_v18 = vld [vmem:[%s7222_s1 + $0x64] sm:$0xf] }
   0x5   :  { %v4172_v15 = vld [vmem:[%s7222_s1 + $0xe4] sm:$0xf0]  ;;  %371 = vmatpush.bf16.msra.mxu1 %v3578_v7  ;;  %420 = vmatpush.bf16.msra.mxu2 %v3518_v8  ;;  %v3506_v16 = vor.u32 %v4156_v13, %v3505_v11  ;;  %v3507_v19 = vld [vmem:[%s7222_s1 + $0x68] sm:$0xf0]  ;;  %v4171_v20 = vld [vmem:[%s7222_s1 + $0xe4] sm:$0xf] }
   0x6   :  { %v3570_v17 = vor.u32 %v4172_v15, %v3569_v14  ;;  %469 = vmatpush.bf16.msra.mxu3 %v3582_v12  ;;  %v3510_v21 = vor.u32 %v4155_v18, %v3507_v19  ;;  %v3571_v22 = vld [vmem:[%s7222_s1 + $0xe8] sm:$0xf0]  ;;  %v3497_v23 = vld [vmem:[%s7222_s1 + $0x50] sm:$0xf]  ;;  %v4154_v24 = vld [vmem:[%s7222_s1 + $0x54] sm:$0xf0] }
   0x7   :  { %v3574_v25 = vor.u32 %v4171_v20, %v3571_v22  ;;  %v3561_v26 = vld [vmem:[%s7222_s1 + $0xd0] sm:$0xf]  ;;  %v4170_v27 = vld [vmem:[%s7222_s1 + $0xd4] sm:$0xf0]  ;;  %v4153_v28 = vld [vmem:[%s7222_s1 + $0x54] sm:$0xf]  ;;  %v3498_v29 = vor.u32 %v4154_v24, %v3497_v23 }
   0x8   :  { %323 = vmatpush.bf16.msra.mxu0 %v3506_v16  ;;  %v3499_v30 = vld [vmem:[%s7222_s1 + $0x58] sm:$0xf0]  ;;  %v4169_v31 = vld [vmem:[%s7222_s1 + $0xd4] sm:$0xf]  ;;  %v3562_v33 = vor.u32 %v4170_v27, %v3561_v26  ;;  %v3489_v35 = vld [vmem:[%s7222_s1 + $0x40] sm:$0xf] }
   0x9   :  { %v3563_v32 = vld [vmem:[%s7222_s1 + $0xd8] sm:$0xf0]  ;;  %372 = vmatpush.bf16.msra.mxu1 %v3570_v17  ;;  %421 = vmatpush.bf16.msra.mxu2 %v3510_v21  ;;  %v3502_v34 = vor.u32 %v4153_v28, %v3499_v30  ;;  %v4152_v36 = vld [vmem:[%s7222_s1 + $0x44] sm:$0xf0]  ;;  %v3553_v37 = vld [vmem:[%s7222_s1 + $0xc0] sm:$0xf] }
   0xa   :  { %470 = vmatpush.bf16.msra.mxu3 %v3574_v25  ;;  %v3566_v38 = vor.u32 %v4169_v31, %v3563_v32  ;;  %v4168_v39 = vld [vmem:[%s7222_s1 + $0xc4] sm:$0xf0]  ;;  %v4151_v40 = vld [vmem:[%s7222_s1 + $0x44] sm:$0xf]  ;;  %v3491_v41 = vld [vmem:[%s7222_s1 + $0x48] sm:$0xf0]  ;;  %v3490_v44 = vor.u32 %v4152_v36, %v3489_v35 }
   0xb   :  { %v4167_v42 = vld [vmem:[%s7222_s1 + $0xc4] sm:$0xf]  ;;  %v3555_v43 = vld [vmem:[%s7222_s1 + $0xc8] sm:$0xf0]  ;;  %v3554_v45 = vor.u32 %v4168_v39, %v3553_v37  ;;  %v3494_v46 = vor.u32 %v4151_v40, %v3491_v41  ;;  %v3481_v47 = vld [vmem:[%s7222_s1 + $0x30] sm:$0xf] }
   0xc   :  { %324 = vmatpush.bf16.msra.mxu0 %v3498_v29  ;;  %v4150_v48 = vld [vmem:[%s7222_s1 + $0x34] sm:$0xf0]  ;;  %v3545_v49 = vld [vmem:[%s7222_s1 + $0xb0] sm:$0xf]  ;;  %v3558_v50 = vor.u32 %v4167_v42, %v3555_v43  ;;  %v4149_v52 = vld [vmem:[%s7222_s1 + $0x34] sm:$0xf] }
   0xd   :  { %373 = vmatpush.bf16.msra.mxu1 %v3562_v33  ;;  %422 = vmatpush.bf16.msra.mxu2 %v3502_v34  ;;  %v4166_v51 = vld [vmem:[%s7222_s1 + $0xb4] sm:$0xf0]  ;;  %v3483_v53 = vld [vmem:[%s7222_s1 + $0x38] sm:$0xf0]  ;;  %v4165_v54 = vld [vmem:[%s7222_s1 + $0xb4] sm:$0xf]  ;;  %v3482_v56 = vor.u32 %v4150_v48, %v3481_v47 }
   0xe   :  { %471 = vmatpush.bf16.msra.mxu3 %v3566_v38  ;;  %v3547_v55 = vld [vmem:[%s7222_s1 + $0xb8] sm:$0xf0]  ;;  %v3546_v57 = vor.u32 %v4166_v51, %v3545_v49  ;;  %v3486_v58 = vor.u32 %v4149_v52, %v3483_v53  ;;  %v3473_v59 = vld [vmem:[%s7222_s1 + $0x20] sm:$0xf]  ;;  %v4148_v60 = vld [vmem:[%s7222_s1 + $0x24] sm:$0xf0] }
   0xf   :  { %v3537_v61 = vld [vmem:[%s7222_s1 + $0xa0] sm:$0xf]  ;;  %v3550_v62 = vor.u32 %v4165_v54, %v3547_v55  ;;  %v4164_v63 = vld [vmem:[%s7222_s1 + $0xa4] sm:$0xf0]  ;;  %v4147_v0 = vld [vmem:[%s7222_s1 + $0x24] sm:$0xf]  ;;  %v3474_v4 = vor.u32 %v4148_v60, %v3473_v59 }
  0x10   :  { %325 = vmatpush.bf16.msra.mxu0 %v3490_v44  ;;  %v3475_v1 = vld [vmem:[%s7222_s1 + $0x28] sm:$0xf0]  ;;  %v4163_v2 = vld [vmem:[%s7222_s1 + $0xa4] sm:$0xf]  ;;  %v3538_v5 = vor.u32 %v4164_v63, %v3537_v61  ;;  %v3465_v7 = vld [vmem:[%s7222_s1 + $0x10] sm:$0xf] }
  0x11   :  { %374 = vmatpush.bf16.msra.mxu1 %v3554_v45  ;;  %423 = vmatpush.bf16.msra.mxu2 %v3494_v46  ;;  %v3539_v3 = vld [vmem:[%s7222_s1 + $0xa8] sm:$0xf0]  ;;  %v3478_v6 = vor.u32 %v4147_v0, %v3475_v1  ;;  %v4146_v8 = vld [vmem:[%s7222_s1 + $0x14] sm:$0xf0]  ;;  %v3529_v9 = vld [vmem:[%s7222_s1 + $0x90] sm:$0xf] }
  0x12   :  { %472 = vmatpush.bf16.msra.mxu3 %v3558_v50  ;;  %v3542_v10 = vor.u32 %v4163_v2, %v3539_v3  ;;  %v4162_v11 = vld [vmem:[%s7222_s1 + $0x94] sm:$0xf0]  ;;  %v4145_v12 = vld [vmem:[%s7222_s1 + $0x14] sm:$0xf]  ;;  %v3467_v13 = vld [vmem:[%s7222_s1 + $0x18] sm:$0xf0]  ;;  %v3466_v16 = vor.u32 %v4146_v8, %v3465_v7 }
  0x13   :  { %v4161_v14 = vld [vmem:[%s7222_s1 + $0x94] sm:$0xf]  ;;  %v3531_v15 = vld [vmem:[%s7222_s1 + $0x98] sm:$0xf0]  ;;  %v3530_v17 = vor.u32 %v4162_v11, %v3529_v9  ;;  %v3470_v18 = vor.u32 %v4145_v12, %v3467_v13  ;;  %v3457_v19 = vld [vmem:[%s7222_s1] sm:$0xf] }
  0x14   :  { %326 = vmatpush.bf16.msra.mxu0 %v3482_v56  ;;  %v4144_v20 = vld [vmem:[%s7222_s1 + $0x4] sm:$0xf0]  ;;  %v3521_v21 = vld [vmem:[%s7222_s1 + $0x80] sm:$0xf]  ;;  %v3534_v22 = vor.u32 %v4161_v14, %v3531_v15  ;;  %v4143_v24 = vld [vmem:[%s7222_s1 + $0x4] sm:$0xf] }
  0x15   :  { %375 = vmatpush.bf16.msra.mxu1 %v3546_v57  ;;  %424 = vmatpush.bf16.msra.mxu2 %v3486_v58  ;;  %v4160_v23 = vld [vmem:[%s7222_s1 + $0x84] sm:$0xf0]  ;;  %v3459_v25 = vld [vmem:[%s7222_s1 + $0x8] sm:$0xf0]  ;;  %v4159_v26 = vld [vmem:[%s7222_s1 + $0x84] sm:$0xf]  ;;  %v3458_v28 = vor.u32 %v4144_v20, %v3457_v19 }
  0x16   :  { %473 = vmatpush.bf16.msra.mxu3 %v3550_v62  ;;  %v3523_v27 = vld [vmem:[%s7222_s1 + $0x88] sm:$0xf0]  ;;  %v3393_v29 = vld [vmem:[%s7223_s0] sm:$0xf]  ;;  %v4128_v30 = vld [vmem:[%s7223_s0 + $0x4] sm:$0xf0]  ;;  %v3522_v31 = vor.u32 %v4160_v23, %v3521_v21  ;;  %v3462_v32 = vor.u32 %v4143_v24, %v3459_v25 }
  0x17   :  { %v4127_v33 = vld [vmem:[%s7223_s0 + $0x4] sm:$0xf]  ;;  %v3395_v34 = vld [vmem:[%s7223_s0 + $0x8] sm:$0xf0]  ;;  %v3526_v35 = vor.u32 %v4159_v26, %v3523_v27  ;;  %v3394_v36 = vor.u32 %v4128_v30, %v3393_v29  ;;  %v4189_v38 = vld [vmem:[%s7224_s3 + $0x74] sm:$0xf] }
  0x18   :  { %327 = vmatpush.bf16.msra.mxu0 %v3474_v4  ;;  %v3398_v37 = vor.u32 %v4127_v33, %v3395_v34  ;;  %v3675_v39 = vld [vmem:[%s7224_s3 + $0x78] sm:$0xf0]  ;;  %v3401_v41 = vld [vmem:[%s7223_s0 + $0x10] sm:$0xf]  ;;  %v4130_v42 = vld [vmem:[%s7223_s0 + $0x14] sm:$0xf0] }
  0x19   :  { %376 = vmatpush.bf16.msra.mxu1 %v3538_v5  ;;  %425 = vmatpush.bf16.msra.mxu2 %v3478_v6  ;;  %v3678_v40 = vor.u32 %v4189_v38, %v3675_v39  ;;  %v4129_v43 = vld [vmem:[%s7223_s0 + $0x14] sm:$0xf]  ;;  %v3403_v44 = vld [vmem:[%s7223_s0 + $0x18] sm:$0xf0]  ;;  %v3402_v45 = vor.u32 %v4130_v42, %v3401_v41  ;;  %v3673_v49 = vld [vmem:[%s7224_s3 + $0x70] sm:$0xf] }
  0x1a   :  { %474 = vmatpush.bf16.msra.mxu3 %v3542_v10  ;;  %v3406_v46 = vor.u32 %v4129_v43, %v3403_v44  ;;  %v4205_v47 = vld [vmem:[%s7224_s3 + $0xf4] sm:$0xf]  ;;  %v3739_v48 = vld [vmem:[%s7224_s3 + $0xf8] sm:$0xf0]  ;;  %v4190_v51 = vld [vmem:[%s7224_s3 + $0x74] sm:$0xf0] }
  0x1b   :  { %v3742_v50 = vor.u32 %v4205_v47, %v3739_v48  ;;  %v3737_v52 = vld [vmem:[%s7224_s3 + $0xf0] sm:$0xf]  ;;  %v4206_v53 = vld [vmem:[%s7224_s3 + $0xf4] sm:$0xf0]  ;;  %v3674_v54 = vor.u32 %v4190_v51, %v3673_v49  ;;  %v4187_v56 = vld [vmem:[%s7224_s3 + $0x64] sm:$0xf] }
  0x1c   :  { %328 = vmatpush.bf16.msra.mxu0 %v3466_v16  ;;  %v3738_v55 = vor.u32 %v4206_v53, %v3737_v52  ;;  %v3667_v57 = vld [vmem:[%s7224_s3 + $0x68] sm:$0xf0]  ;;  %v3409_v59 = vld [vmem:[%s7223_s0 + $0x20] sm:$0xf]  ;;  %v4132_v60 = vld [vmem:[%s7223_s0 + $0x24] sm:$0xf0] }
  0x1d   :  { %377 = vmatpush.bf16.msra.mxu1 %v3530_v17  ;;  %426 = vmatpush.bf16.msra.mxu2 %v3470_v18  ;;  %v3670_v58 = vor.u32 %v4187_v56, %v3667_v57  ;;  %v4131_v61 = vld [vmem:[%s7223_s0 + $0x24] sm:$0xf]  ;;  %v3411_v62 = vld [vmem:[%s7223_s0 + $0x28] sm:$0xf0]  ;;  %v3410_v63 = vor.u32 %v4132_v60, %v3409_v59  ;;  %v3665_v3 = vld [vmem:[%s7224_s3 + $0x60] sm:$0xf] }
  0x1e   :  { %475 = vmatpush.bf16.msra.mxu3 %v3534_v22  ;;  %v3414_v0 = vor.u32 %v4131_v61, %v3411_v62  ;;  %v4203_v1 = vld [vmem:[%s7224_s3 + $0xe4] sm:$0xf]  ;;  %v3731_v2 = vld [vmem:[%s7224_s3 + $0xe8] sm:$0xf0]  ;;  %v4188_v5 = vld [vmem:[%s7224_s3 + $0x64] sm:$0xf0] }
  0x1f   :  { %v3734_v4 = vor.u32 %v4203_v1, %v3731_v2  ;;  %v3729_v6 = vld [vmem:[%s7224_s3 + $0xe0] sm:$0xf]  ;;  %v4204_v7 = vld [vmem:[%s7224_s3 + $0xe4] sm:$0xf0]  ;;  %v3666_v8 = vor.u32 %v4188_v5, %v3665_v3  ;;  %v4185_v10 = vld [vmem:[%s7224_s3 + $0x54] sm:$0xf] }
  0x20   :  { %329 = vmatpush.bf16.msra.mxu0 %v3458_v28  ;;  %v3730_v9 = vor.u32 %v4204_v7, %v3729_v6  ;;  %v3659_v11 = vld [vmem:[%s7224_s3 + $0x58] sm:$0xf0]  ;;  %v3417_v13 = vld [vmem:[%s7223_s0 + $0x30] sm:$0xf]  ;;  %v4134_v14 = vld [vmem:[%s7223_s0 + $0x34] sm:$0xf0] }
  0x21   :  { %378 = vmatpush.bf16.msra.mxu1 %v3522_v31  ;;  %427 = vmatpush.bf16.msra.mxu2 %v3462_v32  ;;  %v3662_v12 = vor.u32 %v4185_v10, %v3659_v11  ;;  %v4133_v15 = vld [vmem:[%s7223_s0 + $0x34] sm:$0xf]  ;;  %v3419_v16 = vld [vmem:[%s7223_s0 + $0x38] sm:$0xf0]  ;;  %v3418_v17 = vor.u32 %v4134_v14, %v3417_v13  ;;  %v3657_v21 = vld [vmem:[%s7224_s3 + $0x50] sm:$0xf] }
  0x22   :  { %476 = vmatpush.bf16.msra.mxu3 %v3526_v35  ;;  %v3422_v18 = vor.u32 %v4133_v15, %v3419_v16  ;;  %v4201_v19 = vld [vmem:[%s7224_s3 + $0xd4] sm:$0xf]  ;;  %v3723_v20 = vld [vmem:[%s7224_s3 + $0xd8] sm:$0xf0]  ;;  %v4186_v23 = vld [vmem:[%s7224_s3 + $0x54] sm:$0xf0] }
  0x23   :  { %330 = vmatmul.bf16.vlgmr.msra.gmra.mxu0 %v3394_v36  ;;  %v3726_v22 = vor.u32 %v4201_v19, %v3723_v20  ;;  %v3721_v24 = vld [vmem:[%s7224_s3 + $0xd0] sm:$0xf]  ;;  %v4202_v25 = vld [vmem:[%s7224_s3 + $0xd4] sm:$0xf0]  ;;  %v3658_v26 = vor.u32 %v4186_v23, %v3657_v21  ;;  %v4183_v28 = vld [vmem:[%s7224_s3 + $0x44] sm:$0xf] }
  0x24   :  { %379 = vmatmul.bf16.vlgmr.msra.gmra.mxu1 %v3398_v37  ;;  %428 = vmatmul.bf16.vlgmr.msra.gmra.mxu2 %v3394_v36  ;;  %v3722_v27 = vor.u32 %v4202_v25, %v3721_v24  ;;  %v3651_v29 = vld [vmem:[%s7224_s3 + $0x48] sm:$0xf0]  ;;  %v3425_v31 = vld [vmem:[%s7223_s0 + $0x40] sm:$0xf]  ;;  %v4136_v32 = vld [vmem:[%s7223_s0 + $0x44] sm:$0xf0] }
  0x25   :  { %477 = vmatmul.bf16.vlgmr.msra.gmra.mxu3 %v3398_v37  ;;  %1470 = vmatpush.bf16.msrb.mxu2 %v3678_v40  ;;  %v3654_v30 = vor.u32 %v4183_v28, %v3651_v29  ;;  %v4135_v33 = vld [vmem:[%s7223_s0 + $0x44] sm:$0xf]  ;;  %v3427_v34 = vld [vmem:[%s7223_s0 + $0x48] sm:$0xf0]  ;;  %v3426_v35 = vor.u32 %v4136_v32, %v3425_v31  ;;  %v3649_v39 = vld [vmem:[%s7224_s3 + $0x40] sm:$0xf] }
  0x26   :  { %1519 = vmatpush.bf16.msrb.mxu3 %v3742_v50  ;;  %1372 = vmatpush.bf16.msrb.mxu0 %v3674_v54  ;;  %v3430_v36 = vor.u32 %v4135_v33, %v3427_v34  ;;  %v4199_v37 = vld [vmem:[%s7224_s3 + $0xc4] sm:$0xf]  ;;  %v3715_v38 = vld [vmem:[%s7224_s3 + $0xc8] sm:$0xf0]  ;;  %v4184_v41 = vld [vmem:[%s7224_s3 + $0x44] sm:$0xf0] }
  0x27   :  { %1421 = vmatpush.bf16.msrb.mxu1 %v3738_v55  ;;  %v3718_v40 = vor.u32 %v4199_v37, %v3715_v38  ;;  %v3713_v42 = vld [vmem:[%s7224_s3 + $0xc0] sm:$0xf]  ;;  %v4200_v43 = vld [vmem:[%s7224_s3 + $0xc4] sm:$0xf0]  ;;  %v3650_v44 = vor.u32 %v4184_v41, %v3649_v39  ;;  %v3643_v47 = vld [vmem:[%s7224_s3 + $0x38] sm:$0xf0] }
  0x28   :  { %v3433_v49 = vld [vmem:[%s7223_s0 + $0x50] sm:$0xf]  ;;  %v4138_v50 = vld [vmem:[%s7223_s0 + $0x54] sm:$0xf0]  ;;  %v4137_v51 = vld [vmem:[%s7223_s0 + $0x54] sm:$0xf] }
  0x29   :  { %1471 = vmatpush.bf16.msrb.mxu2 %v3670_v58  ;;  %v3435_v52 = vld [vmem:[%s7223_s0 + $0x58] sm:$0xf0]  ;;  %v3434_v53 = vor.u32 %v4138_v50, %v3433_v49  ;;  %v4197_v55 = vld [vmem:[%s7224_s3 + $0xb4] sm:$0xf]  ;;  %v3641_v57 = vld [vmem:[%s7224_s3 + $0x30] sm:$0xf] }
  0x2a   :  { %1520 = vmatpush.bf16.msrb.mxu3 %v3734_v4  ;;  %1373 = vmatpush.bf16.msrb.mxu0 %v3666_v8  ;;  %v3438_v54 = vor.u32 %v4137_v51, %v3435_v52  ;;  %v3707_v56 = vld [vmem:[%s7224_s3 + $0xb8] sm:$0xf0]  ;;  %v4182_v59 = vld [vmem:[%s7224_s3 + $0x34] sm:$0xf0]  ;;  %v3705_v60 = vld [vmem:[%s7224_s3 + $0xb0] sm:$0xf] }
  0x2b   :  { %1422 = vmatpush.bf16.msrb.mxu1 %v3730_v9  ;;  %v3710_v58 = vor.u32 %v4197_v55, %v3707_v56  ;;  %v4198_v61 = vld [vmem:[%s7224_s3 + $0xb4] sm:$0xf0]  ;;  %v3642_v62 = vor.u32 %v4182_v59, %v3641_v57  ;;  %v4140_v1 = vld [vmem:[%s7223_s0 + $0x64] sm:$0xf0]  ;;  %v4139_v2 = vld [vmem:[%s7223_s0 + $0x64] sm:$0xf] }
  0x2c   :  { %v3443_v3 = vld [vmem:[%s7223_s0 + $0x68] sm:$0xf0]  ;;  %v3449_v6 = vld [vmem:[%s7223_s0 + $0x70] sm:$0xf]  ;;  %v4142_v7 = vld [vmem:[%s7223_s0 + $0x74] sm:$0xf0] }
  0x2d   :  { %1472 = vmatpush.bf16.msrb.mxu2 %v3662_v12  ;;  %v3446_v5 = vor.u32 %v4139_v2, %v3443_v3  ;;  %v4141_v8 = vld [vmem:[%s7223_s0 + $0x74] sm:$0xf]  ;;  %v3451_v9 = vld [vmem:[%s7223_s0 + $0x78] sm:$0xf0]  ;;  %v3450_v10 = vor.u32 %v4142_v7, %v3449_v6  ;;  %v76_v12 = vld [vmem:[%s7225_s2] sm:$0x3] }
  0x2e   :  { %1521 = vmatpush.bf16.msrb.mxu3 %v3726_v22  ;;  %1374 = vmatpush.bf16.msrb.mxu0 %v3658_v26  ;;  %v3454_v11 = vor.u32 %v4141_v8, %v3451_v9  ;;  %v4888_v13 = vperm.slane %v76_v12, 0  ;;  %v4195_v19 = vld [vmem:[%s7224_s3 + $0xa4] sm:$0xf]  ;;  %v3699_v21 = vld [vmem:[%s7224_s3 + $0xa8] sm:$0xf0] }
  0x2f   :  { %1423 = vmatpush.bf16.msrb.mxu1 %v3722_v27  ;;  %v3633_v22 = vld [vmem:[%s7224_s3 + $0x20] sm:$0xf]  ;;  %v4180_v23 = vld [vmem:[%s7224_s3 + $0x24] sm:$0xf0]  ;;  %v3702_v25 = vor.u32 %v4195_v19, %v3699_v21  ;;  %v4911_v27 = vperm.slane %v76_v12, 1 }
  0x30   :  { %v3634_v26 = vor.u32 %v4180_v23, %v3633_v22  ;;  %v4196_v31 = vld [vmem:[%s7224_s3 + $0xa4] sm:$0xf0]  ;;  %v3627_v37 = vld [vmem:[%s7224_s3 + $0x18] sm:$0xf0]  ;;  %v3625_v38 = vld [vmem:[%s7224_s3 + $0x10] sm:$0xf] }
  0x31   :  { %1473 = vmatpush.bf16.msrb.mxu2 %v3654_v30  ;;  %v3697_v30 = vld [vmem:[%s7224_s3 + $0xa0] sm:$0xf]  ;;  %v4193_v50 = vld [vmem:[%s7224_s3 + $0x94] sm:$0xf]  ;;  %v3691_v51 = vld [vmem:[%s7224_s3 + $0x98] sm:$0xf0] }
  0x32   :  { %1522 = vmatpush.bf16.msrb.mxu3 %v3718_v40  ;;  %1375 = vmatpush.bf16.msrb.mxu0 %v3650_v44  ;;  %v3698_v34 = vor.u32 %v4196_v31, %v3697_v30  ;;  %v4194_v55 = vld [vmem:[%s7224_s3 + $0x94] sm:$0xf0]  ;;  %v4175_v56 = vld [vmem:[%s7224_s3 + $0x4] sm:$0xf]  ;;  %v3619_v59 = vld [vmem:[%s7224_s3 + $0x8] sm:$0xf0] }
  0x33   :  { %335 = vmatmul.bf16.gmra.mxu0 %v3402_v45  ;;  %v4176_v2 = vld [vmem:[%s7224_s3 + $0x4] sm:$0xf0]  ;;  %v3683_v19 = vld [vmem:[%s7224_s3 + $0x88] sm:$0xf0]  ;;  %v3681_v22 = vld [vmem:[%s7224_s3 + $0x80] sm:$0xf] }
  0x34   :  { %384 = vmatmul.bf16.gmra.mxu1 %v3406_v46  ;;  %433 = vmatmul.bf16.gmra.mxu2 %v3402_v45  ;;  %v3714_v45 = vor.u32 %v4200_v43, %v3713_v42  ;;  %v4178_v42 = vld [vmem:[%s7224_s3 + $0x14] sm:$0xf0]  ;;  %v4192_v23 = vld [vmem:[%s7224_s3 + $0x84] sm:$0xf0] }
  0x35   :  { %482 = vmatmul.bf16.gmra.mxu3 %v3406_v46  ;;  %v4181_v46 = vld [vmem:[%s7224_s3 + $0x34] sm:$0xf]  ;;  %v3626_v44 = vor.u32 %v4178_v42, %v3625_v38  ;;  %v3682_v31 = vor.u32 %v4192_v23, %v3681_v22 }
  0x36   :  { %v3646_v48 = vor.u32 %v4181_v46, %v3643_v47  ;;  %1424 = vmatpush.bf16.msrb.mxu1 %v3714_v45  ;;  %1523 = vmatpush.bf16.msrb.mxu3 %v3710_v58 }
  0x37   :  { %1376 = vmatpush.bf16.msrb.mxu0 %v3642_v62 }
  0x38   :  { %1474 = vmatpush.bf16.msrb.mxu2 %v3646_v48 }
  0x3a   :  { %1524 = vmatpush.bf16.msrb.mxu3 %v3702_v25 }
  0x3b   :  { %1377 = vmatpush.bf16.msrb.mxu0 %v3634_v26 }
  0x3f   :  { %1378 = vmatpush.bf16.msrb.mxu0 %v3626_v44 }
  0x43   :  { %340 = vmatmul.bf16.gmra.mxu0 %v3410_v63 }
  0x44   :  { %389 = vmatmul.bf16.gmra.mxu1 %v3414_v0  ;;  %438 = vmatmul.bf16.gmra.mxu2 %v3410_v63  ;;  %v3706_v63 = vor.u32 %v4198_v61, %v3705_v60 }
  0x45   :  { %487 = vmatmul.bf16.gmra.mxu3 %v3414_v0  ;;  %v3441_v0 = vld [vmem:[%s7223_s0 + $0x60] sm:$0xf] }
  0x46   :  { %1425 = vmatpush.bf16.msrb.mxu1 %v3706_v63  ;;  %v3442_v4 = vor.u32 %v4140_v1, %v3441_v0  ;;  %v3622_v0 = vor.u32 %v4175_v56, %v3619_v59  ;;  %v3617_v1 = vld [vmem:[%s7224_s3] sm:$0xf] }
  0x47   :  { %v3618_v3 = vor.u32 %v4176_v2, %v3617_v1 }
  0x49   :  { %1379 = vmatpush.bf16.msrb.mxu0 %v3618_v3 }
  0x4a   :  { %1426 = vmatpush.bf16.msrb.mxu1 %v3698_v34 }
  0x53   :  { %345 = vmatmul.bf16.gmra.mxu0 %v3418_v17 }
  0x54   :  { %394 = vmatmul.bf16.gmra.mxu1 %v3422_v18  ;;  %443 = vmatmul.bf16.gmra.mxu2 %v3418_v17  ;;  %v4179_v17 = vld [vmem:[%s7224_s3 + $0x24] sm:$0xf] }
  0x55   :  { %492 = vmatmul.bf16.gmra.mxu3 %v3422_v18  ;;  %v3635_v18 = vld [vmem:[%s7224_s3 + $0x28] sm:$0xf0] }
  0x56   :  { %v3638_v20 = vor.u32 %v4179_v17, %v3635_v18  ;;  %v4191_v18 = vld [vmem:[%s7224_s3 + $0x84] sm:$0xf] }
  0x57   :  { %v3686_v30 = vor.u32 %v4191_v18, %v3683_v19 }
  0x58   :  { %1475 = vmatpush.bf16.msrb.mxu2 %v3638_v20 }
  0x63   :  { %350 = vmatmul.bf16.gmra.mxu0 %v3426_v35 }
  0x64   :  { %399 = vmatmul.bf16.gmra.mxu1 %v3430_v36  ;;  %448 = vmatmul.bf16.gmra.mxu2 %v3426_v35 }
  0x65   :  { %497 = vmatmul.bf16.gmra.mxu3 %v3430_v36  ;;  %v4177_v36 = vld [vmem:[%s7224_s3 + $0x14] sm:$0xf] }
  0x66   :  { %v3630_v41 = vor.u32 %v4177_v36, %v3627_v37 }
  0x68   :  { %1476 = vmatpush.bf16.msrb.mxu2 %v3630_v41 }
  0x6c   :  { %1477 = vmatpush.bf16.msrb.mxu2 %v3622_v0 }
  0x73   :  { %355 = vmatmul.bf16.gmra.mxu0 %v3434_v53 }
  0x74   :  { %404 = vmatmul.bf16.gmra.mxu1 %v3438_v54  ;;  %453 = vmatmul.bf16.gmra.mxu2 %v3434_v53  ;;  %v3694_v53 = vor.u32 %v4193_v50, %v3691_v51 }
  0x75   :  { %502 = vmatmul.bf16.gmra.mxu3 %v3438_v54  ;;  %v3689_v54 = vld [vmem:[%s7224_s3 + $0x90] sm:$0xf] }
  0x76   :  { %1525 = vmatpush.bf16.msrb.mxu3 %v3694_v53  ;;  %v3690_v63 = vor.u32 %v4194_v55, %v3689_v54 }
  0x78   :  { %1427 = vmatpush.bf16.msrb.mxu1 %v3690_v63 }
  0x7a   :  { %1526 = vmatpush.bf16.msrb.mxu3 %v3686_v30 }
  0x7c   :  { %1428 = vmatpush.bf16.msrb.mxu1 %v3682_v31 }
  0x83   :  { %360 = vmatmul.bf16.gmra.mxu0 %v3442_v4 }
  0x84   :  { %409 = vmatmul.bf16.gmra.mxu1 %v3446_v5  ;;  %458 = vmatmul.bf16.gmra.mxu2 %v3442_v4 }
  0x85   :  { %507 = vmatmul.bf16.gmra.mxu3 %v3446_v5 }
  0x93   :  { %365 = vmatmul.bf16.gmra.mxu0 %v3450_v10 }
  0x94   :  { %414 = vmatmul.bf16.gmra.mxu1 %v3454_v11  ;;  %463 = vmatmul.bf16.gmra.mxu2 %v3450_v10 }
  0x95   :  { %512 = vmatmul.bf16.gmra.mxu3 %v3454_v11 }
  0xa0   :  { %v331_v14 = vpop.f32.mrf.mxu0 }
  0xa1   :  { %v332_v15 = vadd.f32 %v331_v14, %v4888_v13  ;;  %v380_v16 = vpop.f32.mrf.mxu1 }
  0xa3   :  { %v4909_v24 = vadd.f32 %v380_v16, %v332_v15 }
  0xa5   :  { %v3583_v28 = vmul.f32 -1.442695, %v4909_v24 }
  0xa7   :  { %4303 = vpow2.f32 %v3583_v28  ;;  %v429_v29 = vpop.f32.mrf.mxu2 }
  0xa8   :  { %v430_v32 = vadd.f32 %v429_v29, %v4911_v27  ;;  %v478_v33 = vpop.f32.mrf.mxu3  ;;  %v333_v35 = vpop.f32.mrf.mxu0 }
  0xa9   :  { %v334_v39 = vadd.f32 %v333_v35, %v4888_v13  ;;  %v382_v40 = vpop.f32.mrf.mxu1 }
  0xaa   :  { %v4934_v43 = vadd.f32 %v478_v33, %v430_v32 }
  0xab   :  { %v4936_v45 = vadd.f32 %v382_v40, %v334_v39 }
  0xac   :  { %v3584_v46 = vmul.f32 -1.442695, %v4934_v43 }
  0xad   :  { %v4304_v47 = vpop.eup %4303  ;;  %v3585_v48 = vmul.f32 -1.442695, %v4936_v45 }
  0xae   :  { %v4940_v49 = vadd.f32 1.0, %v4304_v47  ;;  %4305 = vpow2.f32 %v3584_v46 }
  0xaf   :  { %4307 = vpow2.f32 %v3585_v48  ;;  %v431_v52 = vpop.f32.mrf.mxu2 }
  0xb0   :  { %4309 = vrcp.f32 %v4940_v49  ;;  %v480_v57 = vpop.f32.mrf.mxu3  ;;  %v336_v58 = vpop.f32.mrf.mxu0  ;;  %v432_v60 = vadd.f32 %v431_v52, %v4911_v27  ;;  %vm651_vm1 = vweird.f32 %v4940_v49  ;;  %v655_v53 = vand.u32 2147483647, %v4940_v49 }
  0xb1   :  { %v337_v61 = vadd.f32 %v336_v58, %v4888_v13  ;;  %v385_v62 = vpop.f32.mrf.mxu1  ;;  %v657_v54 = vand.u32 2147483648, %v4940_v49 }
  0xb2   :  { %v4969_v4 = vadd.f32 %v480_v57, %v432_v60  ;;  %vm656_vm5 = vcmp.eq.f32.partialorder %v655_v53, 8.507059e+37 }
  0xb3   :  { %v4971_v5 = vadd.f32 %v385_v62, %v337_v61  ;;  %v658_v0 = vor.u32 1.1754944e-38, %v657_v54 }
  0xb4   :  { %v4306_v6 = vpop.eup %4305  ;;  %v3586_v9 = vmul.f32 -1.442695, %v4969_v4 }
  0xb5   :  { %v4308_v7 = vpop.eup %4307  ;;  %v4973_v8 = vadd.f32 1.0, %v4306_v6  ;;  %v3587_v12 = vmul.f32 -1.442695, %v4971_v5 }
  0xb6   :  { %v4976_v10 = vpop.eup %4309  ;;  %v4978_v11 = vadd.f32 1.0, %v4308_v7 }
  0xb7   :  { %v647_v14 = vmul.f32 %v4976_v10, %v4940_v49  ;;  %4311 = vrcp.f32 %v4973_v8  ;;  %v434_v15 = vpop.f32.mrf.mxu2  ;;  %vm652_vm0 = vweird.f32 %v4976_v10  ;;  %v672_v1 = vand.u32 2147483648, %v4973_v8 }
  0xb8   :  { %4313 = vrcp.f32 %v4978_v11  ;;  %v483_v16 = vpop.f32.mrf.mxu3  ;;  %v338_v17 = vpop.f32.mrf.mxu0  ;;  %v435_v25 = vadd.f32 %v434_v15, %v4911_v27  ;;  %v687_v55 = vand.u32 2147483648, %v4978_v11  ;;  %vm5024_vm2 = vmor %vm651_vm1, %vm652_vm0  ;;  %v685_v58 = vand.u32 2147483647, %v4978_v11 }
  0xb9   :  { %v648_v20 = vsub.f32 1.0, %v647_v14  ;;  %4315 = vpow2.f32 %v3586_v9  ;;  %v387_v21 = vpop.f32.mrf.mxu1  ;;  %v339_v26 = vadd.f32 %v338_v17, %v4888_v13  ;;  %vm681_vm4 = vweird.f32 %v4978_v11 }
  0xba   :  { %4317 = vpow2.f32 %v3587_v12  ;;  %v5000_v29 = vadd.f32 %v483_v16, %v435_v25  ;;  %v688_v2 = vor.u32 1.1754944e-38, %v687_v55  ;;  %vm686_vm8 = vcmp.eq.f32.partialorder %v685_v58, 8.507059e+37 }
  0xbb   :  { %v649_v28 = vmul.f32 %v4976_v10, %v648_v20  ;;  %v5004_v33 = vadd.f32 %v387_v21, %v339_v26  ;;  %vm666_vm9 = vweird.f32 %v4973_v8  ;;  %v670_v22 = vand.u32 2147483647, %v4973_v8 }
  0xbc   :  { %v3588_v36 = vmul.f32 -1.442695, %v5000_v29 }
  0xbd   :  { %v5002_v32 = vpop.eup %4311  ;;  %v3589_v39 = vmul.f32 -1.442695, %v5004_v33  ;;  %v650_v42 = vadd.f32 %v4976_v10, %v649_v28  ;;  %v673_v28 = vor.u32 1.1754944e-38, %v672_v1  ;;  %vm671_vm12 = vcmp.eq.f32.partialorder %v670_v22, 8.507059e+37 }
  0xbe   :  { %v4314_v34 = vpop.eup %4313  ;;  %v662_v35 = vmul.f32 %v5002_v32, %v4973_v8  ;;  %4319 = vpow2.f32 %v3588_v36  ;;  %vm667_vm7 = vweird.f32 %v5002_v32 }
  0xbf   :  { %v4316_v37 = vpop.eup %4315  ;;  %v677_v38 = vmul.f32 %v4314_v34, %v4978_v11  ;;  %v436_v40 = vpop.f32.mrf.mxu2  ;;  %4321 = vpow2.f32 %v3589_v39  ;;  %vm682_vm3 = vweird.f32 %v4314_v34  ;;  %v654_v59 = vsel %vm5024_vm2, %v4976_v10, %v650_v42  ;;  %vm5059_vm10 = vmor %vm666_vm9, %vm667_vm7 }
  0xc0   :  { %v4318_v41 = vpop.eup %4317  ;;  %v663_v44 = vsub.f32 1.0, %v662_v35  ;;  %v5013_v46 = vadd.f32 1.0, %v4316_v37  ;;  %v485_v47 = vpop.f32.mrf.mxu3  ;;  %v437_v61 = vadd.f32 %v436_v40, %v4911_v27  ;;  %vm683_vm6 = vmor %vm681_vm4, %vm682_vm3  ;;  %v659_v11 = vsel %vm656_vm5, %v658_v0, %v654_v59 }
  0xc1   :  { %v341_v48 = vpop.f32.mrf.mxu0  ;;  %v678_v50 = vsub.f32 1.0, %v677_v38  ;;  %v5016_v51 = vadd.f32 1.0, %v4318_v41  ;;  %v390_v52 = vpop.f32.mrf.mxu1  ;;  %v1126_v26 = vmul.f32 %v659_v11, %v4909_v24 }
  0xc2   :  { %4323 = vrcp.f32 %v5013_v46  ;;  %v664_v49 = vmul.f32 %v5002_v32, %v663_v44  ;;  %v342_v62 = vadd.f32 %v341_v48, %v4888_v13  ;;  %v5048_v20 = vadd.f32 %v485_v47, %v437_v61 }
  0xc3   :  { %v679_v57 = vmul.f32 %v4314_v34, %v678_v50  ;;  %4325 = vrcp.f32 %v5016_v51  ;;  %v700_v31 = vand.u32 2147483647, %v5013_v46  ;;  %v702_v35 = vand.u32 2147483648, %v5013_v46 }
  0xc4   :  { %v4320_v63 = vpop.eup %4319  ;;  %v5043_v15 = vadd.f32 %v390_v52, %v342_v62  ;;  %v665_v18 = vadd.f32 %v5002_v32, %v664_v49  ;;  %v3590_v37 = vmul.f32 -1.442695, %v5048_v20  ;;  %vm696_vm13 = vweird.f32 %v5013_v46 }
  0xc5   :  { %v680_v60 = vadd.f32 %v4314_v34, %v679_v57  ;;  %v4322_v3 = vpop.eup %4321  ;;  %v5039_v7 = vadd.f32 1.0, %v4320_v63  ;;  %vm701_vm15 = vcmp.eq.f32.partialorder %v700_v31, 8.507059e+37  ;;  %v717_v11 = vand.u32 2147483648, %v5016_v51 }
  0xc6   :  { %v5041_v14 = vadd.f32 1.0, %v4322_v3  ;;  %v669_v24 = vsel %vm5059_vm10, %v5002_v32, %v665_v18  ;;  %v703_v32 = vor.u32 1.1754944e-38, %v702_v35  ;;  %vm711_vm1 = vweird.f32 %v5016_v51 }
  0xc7   :  { %v684_v6 = vsel %vm683_vm6, %v4314_v34, %v680_v60  ;;  %v439_v9 = vpop.f32.mrf.mxu2  ;;  %4327 = vrcp.f32 %v5039_v7  ;;  %v674_v47 = vsel %vm671_vm12, %v673_v28, %v669_v24  ;;  %v718_v35 = vor.u32 1.1754944e-38, %v717_v11 }
  0xc8   :  { %v4324_v10 = vpop.eup %4323  ;;  %v689_v12 = vsel %vm686_vm8, %v688_v2, %v684_v6  ;;  %v488_v16 = vpop.f32.mrf.mxu3  ;;  %4329 = vrcp.f32 %v5041_v14  ;;  %v440_v8 = vadd.f32 %v439_v9, %v4911_v27  ;;  %v1127_v49 = vmul.f32 %v674_v47, %v4934_v43 }
  0xc9   :  { %v343_v17 = vpop.f32.mrf.mxu0  ;;  %v692_v19 = vmul.f32 %v4324_v10, %v5013_v46  ;;  %v392_v21 = vpop.f32.mrf.mxu1  ;;  %v1128_v23 = vmul.f32 %v689_v12, %v4936_v45  ;;  %v3591_v45 = vmul.f32 -1.442695, %v5043_v15  ;;  %vm697_vm11 = vweird.f32 %v4324_v10 }
  0xca   :  { %v5053_v25 = vpop.eup %4325  ;;  %v5073_v39 = vadd.f32 %v488_v16, %v440_v8  ;;  %vm698_vm14 = vmor %vm696_vm13, %vm697_vm11  ;;  %v344_v54 = vadd.f32 %v343_v17, %v4888_v13  ;;  %vm741_vm2 = vweird.f32 %v5041_v14  ;;  %vm726_vm7 = vweird.f32 %v5039_v7 }
  0xcb   :  { %v693_v30 = vsub.f32 1.0, %v692_v19  ;;  %v707_v38 = vmul.f32 %v5053_v25, %v5016_v51  ;;  %4331 = vpow2.f32 %v3591_v45  ;;  %v1158_v40 = vpack.c.bf16 %v1128_v23, %v1126_v26 }
  0xcc   :  { %v3592_v48 = vmul.f32 -1.442695, %v5073_v39  ;;  %4333 = vpow2.f32 %v3590_v37  ;;  %v5092_v1 = vadd.f32 %v392_v21, %v344_v54  ;;  %vm712_vm0 = vweird.f32 %v5053_v25 }
  0xcd   :  { %v694_v36 = vmul.f32 %v4324_v10, %v693_v30  ;;  %v5075_v41 = vpop.eup %4327  ;;  %1380 = vmatmul.bf16.vlgmr.msrb.gmra.mxu0 %v1158_v40  ;;  %1478 = vmatmul.bf16.vlgmr.msrb.gmra.mxu2 %v1158_v40  ;;  %v708_v58 = vsub.f32 1.0, %v707_v38  ;;  %v715_v30 = vand.u32 2147483647, %v5016_v51  ;;  %vm5120_vm3 = vmor %vm711_vm1, %vm712_vm0  ;;  %v747_v40 = vand.u32 2147483648, %v5041_v14 }
  0xce   :  { %v5081_v57 = vpop.eup %4329  ;;  %v722_v59 = vmul.f32 %v5075_v41, %v5039_v7  ;;  %4335 = vpow2.f32 %v3592_v48  ;;  %v3593_v19 = vmul.f32 -1.442695, %v5092_v1  ;;  %vm727_vm4 = vweird.f32 %v5075_v41 }
  0xcf   :  { %v695_v42 = vadd.f32 %v4324_v10, %v694_v36  ;;  %v441_v44 = vpop.f32.mrf.mxu2  ;;  %v737_v3 = vmul.f32 %v5081_v57, %v5041_v14  ;;  %v709_v6 = vmul.f32 %v5053_v25, %v708_v58  ;;  %vm742_vm5 = vweird.f32 %v5081_v57  ;;  %vm5149_vm9 = vmor %vm726_vm7, %vm727_vm4 }
  0xd0   :  { %v490_v50 = vpop.f32.mrf.mxu3  ;;  %v442_v62 = vadd.f32 %v441_v44, %v4911_v27  ;;  %v723_v9 = vsub.f32 1.0, %v722_v59  ;;  %vm716_vm6 = vcmp.eq.f32.partialorder %v715_v30, 8.507059e+37  ;;  %vm5143_vm8 = vmor %vm741_vm2, %vm742_vm5  ;;  %v748_v58 = vor.u32 1.1754944e-38, %v747_v40  ;;  %v3915_v40 = vld [vmem:[%s7226_s5 + $0x168] sm:$0xf0] }
  0xd1   :  { %v346_v52 = vpop.f32.mrf.mxu0  ;;  %v699_v53 = vsel %vm698_vm14, %v4324_v10, %v695_v42  ;;  %v395_v56 = vpop.f32.mrf.mxu1  ;;  %v738_v18 = vsub.f32 1.0, %v737_v3  ;;  %v710_v22 = vadd.f32 %v5053_v25, %v709_v6 }
  0xd2   :  { %v347_v55 = vadd.f32 %v346_v52, %v4888_v13  ;;  %v704_v46 = vsel %vm701_vm15, %v703_v32, %v699_v53  ;;  %v4332_v61 = vpop.eup %4331  ;;  %v5100_v12 = vadd.f32 %v490_v50, %v442_v62  ;;  %v724_v23 = vmul.f32 %v5075_v41, %v723_v9 }
  0xd3   :  { %v1129_v60 = vmul.f32 %v704_v46, %v4969_v4  ;;  %v5090_v0 = vadd.f32 1.0, %v4332_v61  ;;  %v4334_v4 = vpop.eup %4333  ;;  %v739_v8 = vmul.f32 %v5081_v57, %v738_v18  ;;  %v714_v37 = vsel %vm5120_vm3, %v5053_v25, %v710_v22 }
  0xd4   :  { %v5088_v63 = vadd.f32 %v395_v56, %v347_v55  ;;  %v4336_v21 = vpop.eup %4335  ;;  %v5107_v26 = vadd.f32 1.0, %v4334_v4  ;;  %v3594_v45 = vmul.f32 -1.442695, %v5100_v12  ;;  %v725_v38 = vadd.f32 %v5075_v41, %v724_v23 }
  0xd5   :  { %v1159_v2 = vpack.c.bf16 %v1129_v60, %v1127_v49  ;;  %4337 = vrcp.f32 %v5090_v0  ;;  %v5125_v51 = vadd.f32 1.0, %v4336_v21  ;;  %v740_v47 = vadd.f32 %v5081_v57, %v739_v8 }
  0xd6   :  { %v3595_v43 = vmul.f32 -1.442695, %v5088_v63  ;;  %v745_v32 = vand.u32 2147483647, %v5041_v14  ;;  %v732_v25 = vand.u32 2147483648, %v5039_v7  ;;  %v719_v53 = vsel %vm716_vm6, %v718_v35, %v714_v37 }
  0xd7   :  { %1429 = vmatmul.bf16.vlgmr.msrb.gmra.mxu1 %v1159_v2  ;;  %1527 = vmatmul.bf16.vlgmr.msrb.gmra.mxu3 %v1159_v2  ;;  %v444_v10 = vpop.f32.mrf.mxu2  ;;  %v730_v55 = vand.u32 2147483647, %v5039_v7  ;;  %v744_v14 = vsel %vm5143_vm8, %v5081_v57, %v740_v47  ;;  %v729_v56 = vsel %vm5149_vm9, %v5075_v41, %v725_v38  ;;  %v777_v57 = vand.u32 2147483648, %v5090_v0 }
  0xd8   :  { %v445_v16 = vadd.f32 %v444_v10, %v4911_v27  ;;  %4339 = vpow2.f32 %v3595_v43  ;;  %v493_v28 = vpop.f32.mrf.mxu3  ;;  %vm746_vm10 = vcmp.eq.f32.partialorder %v745_v32, 8.507059e+37  ;;  %v733_v2 = vor.u32 1.1754944e-38, %v732_v25 }
  0xd9   :  { %v348_v17 = vpop.f32.mrf.mxu0  ;;  %v397_v34 = vpop.f32.mrf.mxu1  ;;  %4341 = vpow2.f32 %v3593_v19  ;;  %v749_v3 = vsel %vm746_vm10, %v748_v58, %v744_v14  ;;  %v1130_v41 = vmul.f32 %v719_v53, %v4971_v5  ;;  %vm731_vm11 = vcmp.eq.f32.partialorder %v730_v55, 8.507059e+37 }
  0xda   :  { %v5111_v31 = vadd.f32 %v493_v28, %v445_v16  ;;  %4343 = vrcp.f32 %v5107_v26  ;;  %v349_v46 = vadd.f32 %v348_v17, %v4888_v13  ;;  %v1132_v6 = vmul.f32 %v749_v3, %v5004_v33 }
  0xdb   :  { %v5116_v24 = vpop.eup %4337  ;;  %4345 = vpow2.f32 %v3594_v45  ;;  %v734_v4 = vsel %vm731_vm11, %v733_v2, %v729_v56  ;;  %v775_v10 = vand.u32 2147483647, %v5090_v0  ;;  %v5183_v21 = vor.u32 1.1754944e-38, %v777_v57 }
  0xdc   :  { %v767_v42 = vmul.f32 %v5116_v24, %v5090_v0  ;;  %v3596_v44 = vmul.f32 -1.442695, %v5111_v31  ;;  %4347 = vrcp.f32 %v5125_v51  ;;  %v5179_v5 = vadd.f32 %v397_v34, %v349_v46  ;;  %v4249_v34 = vld [vmem:[%s7226_s5 + $0x154] sm:$0xf] }
  0xdd   :  { %v790_v22 = vand.u32 2147483647, %v5125_v51  ;;  %v1160_v23 = vpack.c.bf16 %v1132_v6, %v1130_v41  ;;  %vm771_vm12 = vweird.f32 %v5090_v0  ;;  %v792_v30 = vand.u32 2147483648, %v5125_v51 }
  0xde   :  { %v4340_v48 = vpop.eup %4339  ;;  %v768_v61 = vsub.f32 1.0, %v767_v42  ;;  %4349 = vpow2.f32 %v3596_v44  ;;  %v5195_v8 = vmul.f32 %v734_v4, %v5000_v29  ;;  %vm5197_vm13 = vcmp.eq.f32.partialorder %v775_v10, 8.507059e+37  ;;  %v4297_v29 = vld [vmem:[%s7226_s5 + $0x2d4] sm:$0xf]  ;;  %v4107_v42 = vld [vmem:[%s7226_s5 + $0x2e8] sm:$0xf0] }
  0xdf   :  { %v446_v59 = vpop.f32.mrf.mxu2  ;;  %v4342_v60 = vpop.eup %4341  ;;  %v5163_v62 = vadd.f32 1.0, %v4340_v48  ;;  %1385 = vmatmul.bf16.gmra.mxu0 %v1160_v23  ;;  %1483 = vmatmul.bf16.gmra.mxu2 %v1160_v23  ;;  %vm772_vm14 = vweird.f32 %v5116_v24  ;;  %v3597_v47 = vmul.f32 -1.442695, %v5179_v5  ;;  %v760_v25 = vand.u32 2147483647, %v5107_v26 }
  0xe0   :  { %v5165_v7 = vpop.eup %4343  ;;  %v5171_v11 = vadd.f32 1.0, %v4342_v60  ;;  %v495_v16 = vpop.f32.mrf.mxu3  ;;  %v769_v19 = vmul.f32 %v5116_v24, %v768_v61  ;;  %v447_v38 = vadd.f32 %v446_v59, %v4911_v27  ;;  %v762_v55 = vand.u32 2147483648, %v5107_v26  ;;  %vm5233_vm1 = vmor %vm771_vm12, %vm772_vm14  ;;  %v4252_v4 = vld [vmem:[%s7226_s5 + $0x164] sm:$0xf0]  ;;  %v4105_v23 = vld [vmem:[%s7226_s5 + $0x2d0] sm:$0xf] }
  0xe1   :  { %v351_v52 = vpop.f32.mrf.mxu0  ;;  %v400_v9 = vpop.f32.mrf.mxu1  ;;  %4351 = vrcp.f32 %v5163_v62  ;;  %v752_v33 = vmul.f32 %v5165_v7, %v5107_v26  ;;  %vm757_vm15 = vweird.f32 %v5165_v7  ;;  %v3918_v14 = vor.u32 %v4249_v34, %v3915_v40 }
  0xe2   :  { %v352_v49 = vadd.f32 %v351_v52, %v4888_v13  ;;  %v4346_v43 = vpop.eup %4345  ;;  %4353 = vrcp.f32 %v5171_v11  ;;  %v770_v44 = vadd.f32 %v5116_v24, %v769_v19  ;;  %v4110_v56 = vor.u32 %v4297_v29, %v4107_v42 }
  0xe3   :  { %v5175_v18 = vpop.eup %4347  ;;  %v5188_v35 = vadd.f32 1.0, %v4346_v43  ;;  %v753_v32 = vsub.f32 1.0, %v752_v33  ;;  %v5226_v58 = vadd.f32 %v495_v16, %v447_v38  ;;  %vm756_vm0 = vweird.f32 %v5107_v26  ;;  %2304 = vmatpush.bf16.msra.mxu2 %v3918_v14  ;;  %v4300_v38 = vld [vmem:[%s7226_s5 + $0x2e4] sm:$0xf0] }
  0xe4   :  { %v5173_v17 = vadd.f32 %v400_v9, %v352_v49  ;;  %v4350_v28 = vpop.eup %4349  ;;  %v782_v37 = vmul.f32 %v5175_v18, %v5125_v51  ;;  %2353 = vmatpush.bf16.msra.mxu3 %v4110_v56  ;;  %v774_v26 = vsel %vm5233_vm1, %v5116_v24, %v770_v44  ;;  %vm786_vm2 = vweird.f32 %v5125_v51  ;;  %vm758_vm3 = vmor %vm756_vm0, %vm757_vm15  ;;  %v3913_v24 = vld [vmem:[%s7226_s5 + $0x150] sm:$0xf] }
  0xe5   :  { %v5217_v48 = vadd.f32 1.0, %v4350_v28  ;;  %v754_v54 = vmul.f32 %v5165_v7, %v753_v32  ;;  %v763_v57 = vor.u32 1.1754944e-38, %v762_v55  ;;  %vm761_vm4 = vcmp.eq.f32.partialorder %v760_v25, 8.507059e+37 }
  0xe6   :  { %v3599_v45 = vmul.f32 -1.442695, %v5173_v17  ;;  %v783_v46 = vsub.f32 1.0, %v782_v37  ;;  %v837_v19 = vand.u32 2147483648, %v5163_v62  ;;  %v779_v28 = vsel %vm5197_vm13, %v5183_v21, %v774_v26 }
  0xe7   :  { %v449_v50 = vpop.f32.mrf.mxu2  ;;  %v5221_v53 = vpop.eup %4351  ;;  %v755_v49 = vadd.f32 %v5165_v7, %v754_v54  ;;  %vm5282_vm5 = vcmp.eq.f32.partialorder %v790_v22, 8.507059e+37  ;;  %v3914_v42 = vor.u32 %v4252_v4, %v3913_v24  ;;  %vm787_vm6 = vweird.f32 %v5175_v18 }
  0xe8   :  { %4355 = vpow2.f32 %v3599_v45  ;;  %v450_v60 = vadd.f32 %v449_v50, %v4911_v27  ;;  %v5240_v2 = vpop.eup %4353  ;;  %v827_v0 = vmul.f32 %v5221_v53, %v5163_v62  ;;  %v498_v3 = vpop.f32.mrf.mxu3  ;;  %v784_v16 = vmul.f32 %v5175_v18, %v783_v46  ;;  %vm5312_vm8 = vmor %vm786_vm2, %vm787_vm6 }
  0xe9   :  { %v353_v52 = vpop.f32.mrf.mxu0  ;;  %4357 = vrcp.f32 %v5188_v35  ;;  %v402_v41 = vpop.f32.mrf.mxu1  ;;  %v759_v6 = vsel %vm758_vm3, %v5165_v7, %v755_v49  ;;  %v3598_v7 = vmul.f32 -1.442695, %v5226_v58  ;;  %v835_v32 = vand.u32 2147483647, %v5163_v62  ;;  %2206 = vmatpush.bf16.msra.mxu0 %v3914_v42 }
  0xea   :  { %4359 = vpow2.f32 %v3597_v47  ;;  %v354_v61 = vadd.f32 %v353_v52, %v4888_v13  ;;  %v5252_v9 = vadd.f32 %v498_v3, %v450_v60  ;;  %v764_v33 = vsel %vm761_vm4, %v763_v57, %v759_v6 }
  0xeb   :  { %4361 = vrcp.f32 %v5217_v48  ;;  %v1133_v34 = vmul.f32 %v764_v33, %v5048_v20  ;;  %v828_v36 = vsub.f32 1.0, %v827_v0  ;;  %v797_v20 = vmul.f32 %v5240_v2, %v5171_v11 }
  0xec   :  { %v5254_v43 = vadd.f32 %v402_v41, %v354_v61  ;;  %v3600_v37 = vmul.f32 -1.442695, %v5252_v9  ;;  %v793_v47 = vor.u32 1.1754944e-38, %v792_v30  ;;  %v785_v25 = vadd.f32 %v5175_v18, %v784_v16 }
  0xed   :  { %vm831_vm7 = vweird.f32 %v5163_v62  ;;  %v1161_v50 = vpack.c.bf16 %v1133_v34, %v5195_v8  ;;  %v4106_v52 = vor.u32 %v4300_v38, %v4105_v23  ;;  %v5300_v14 = vmul.f32 %v779_v28, %v5043_v15  ;;  %v4243_v62 = vld [vmem:[%s7226_s5 + $0x124] sm:$0xf] }
  0xee   :  { %v4356_v10 = vpop.eup %4355  ;;  %v3601_v21 = vmul.f32 -1.442695, %v5254_v43  ;;  %v5302_v30 = vor.u32 1.1754944e-38, %v837_v19  ;;  %v850_v56 = vand.u32 2147483647, %v5217_v48  ;;  %v829_v46 = vmul.f32 %v5221_v53, %v828_v36 }
  0xef   :  { %v5271_v45 = vadd.f32 1.0, %v4356_v10  ;;  %v5278_v40 = vpop.eup %4357  ;;  %v451_v54 = vpop.f32.mrf.mxu2  ;;  %1434 = vmatmul.bf16.gmra.mxu1 %v1161_v50  ;;  %1532 = vmatmul.bf16.gmra.mxu3 %v1161_v50  ;;  %v798_v8 = vsub.f32 1.0, %v797_v20  ;;  %v789_v0 = vsel %vm5312_vm8, %v5175_v18, %v785_v25  ;;  %vm832_vm9 = vweird.f32 %v5221_v53 }
  0xf0   :  { %v4360_v44 = vpop.eup %4359  ;;  %2255 = vmatpush.bf16.msra.mxu1 %v4106_v52  ;;  %v452_v60 = vadd.f32 %v451_v54, %v4911_v27  ;;  %v812_v26 = vmul.f32 %v5278_v40, %v5188_v35  ;;  %vm802_vm10 = vweird.f32 %v5240_v2  ;;  %v500_v57 = vpop.f32.mrf.mxu3  ;;  %v807_v6 = vand.u32 2147483648, %v5171_v11  ;;  %vm5365_vm14 = vmor %vm831_vm7, %vm832_vm9  ;;  %v4291_v54 = vld [vmem:[%s7226_s5 + $0x2a4] sm:$0xf] }
  0xf1   :  { %4363 = vrcp.f32 %v5271_v45  ;;  %v5294_v22 = vpop.eup %4361  ;;  %v356_v55 = vpop.f32.mrf.mxu0  ;;  %v5306_v59 = vadd.f32 1.0, %v4360_v44  ;;  %v799_v51 = vmul.f32 %v5240_v2, %v798_v8  ;;  %v830_v18 = vadd.f32 %v5221_v53, %v829_v46 }
  0xf2   :  { %4365 = vpow2.f32 %v3600_v37  ;;  %v842_v49 = vmul.f32 %v5294_v22, %v5217_v48  ;;  %v357_v61 = vadd.f32 %v356_v55, %v4888_v13  ;;  %v405_v3 = vpop.f32.mrf.mxu1  ;;  %v5331_v24 = vadd.f32 %v500_v57, %v452_v60  ;;  %v4083_v55 = vld [vmem:[%s7226_s5 + $0x2b8] sm:$0xf0] }
  0xf3   :  { %4367 = vpow2.f32 %v3601_v21  ;;  %v813_v10 = vsub.f32 1.0, %v812_v26  ;;  %v800_v19 = vadd.f32 %v5240_v2, %v799_v51  ;;  %vm801_vm11 = vweird.f32 %v5171_v11 }
  0xf4   :  { %4369 = vpow2.f32 %v3598_v7  ;;  %v5333_v4 = vadd.f32 %v405_v3, %v357_v61  ;;  %v805_v7 = vand.u32 2147483647, %v5171_v11  ;;  %v794_v23 = vsel %vm5282_vm5, %v793_v47, %v789_v0  ;;  %vm5350_vm13 = vmor %vm801_vm11, %vm802_vm10 }
  0xf5   :  { %vm5341_vm12 = vcmp.eq.f32.partialorder %v835_v32, 8.507059e+37  ;;  %v843_v34 = vsub.f32 1.0, %v842_v49  ;;  %v852_v37 = vand.u32 2147483648, %v5217_v48  ;;  %4371 = vrcp.f32 %v5306_v59  ;;  %v4081_v49 = vld [vmem:[%s7226_s5 + $0x2a0] sm:$0xf] }
  0xf6   :  { %v804_v21 = vsel %vm5350_vm13, %v5240_v2, %v800_v19  ;;  %v3602_v42 = vmul.f32 -1.442695, %v5331_v24  ;;  %vm846_vm15 = vweird.f32 %v5217_v48  ;;  %v808_v47 = vor.u32 1.1754944e-38, %v807_v6 }
  0xf7   :  { %v5328_v41 = vpop.eup %4363  ;;  %v3603_v32 = vmul.f32 -1.442695, %v5333_v4  ;;  %v814_v2 = vmul.f32 %v5278_v40, %v813_v10  ;;  %v834_v25 = vsel %vm5365_vm14, %v5221_v53, %v830_v18  ;;  %vm847_vm0 = vweird.f32 %v5294_v22  ;;  %v3891_v53 = vld [vmem:[%s7226_s5 + $0x138] sm:$0xf0]  ;;  %v454_v15 = vpop.f32.mrf.mxu2 }
  0xf8   :  { %v4366_v16 = vpop.eup %4365  ;;  %v887_v44 = vmul.f32 %v5328_v41, %v5271_v45  ;;  %vm806_vm1 = vcmp.eq.f32.partialorder %v805_v7, 8.507059e+37  ;;  %v844_v50 = vmul.f32 %v5294_v22, %v843_v34  ;;  %vm817_vm2 = vweird.f32 %v5278_v40  ;;  %vm5437_vm7 = vmor %vm846_vm15, %vm847_vm0 }
  0xf9   :  { %v4368_v33 = vpop.eup %4367  ;;  %v5346_v38 = vadd.f32 1.0, %v4366_v16  ;;  %v809_v52 = vsel %vm806_vm1, %v808_v47, %v804_v21  ;;  %vm816_vm3 = vweird.f32 %v5188_v35  ;;  %v820_v8 = vand.u32 2147483647, %v5188_v35  ;;  %v358_v0 = vpop.f32.mrf.mxu0 }
  0xfa   :  { %v4370_v11 = vpop.eup %4369  ;;  %v5355_v29 = vadd.f32 1.0, %v4368_v33  ;;  %v1136_v46 = vmul.f32 %v809_v52, %v5092_v1  ;;  %vm5399_vm4 = vcmp.eq.f32.partialorder %v850_v56, 8.507059e+37  ;;  %v888_v60 = vsub.f32 1.0, %v887_v44  ;;  %vm5412_vm5 = vmor %vm816_vm3, %vm817_vm2  ;;  %v503_v33 = vpop.f32.mrf.mxu3 }
  0xfb   :  { %4373 = vrcp.f32 %v5346_v38  ;;  %v815_v61 = vadd.f32 %v5278_v40, %v814_v2  ;;  %v822_v26 = vand.u32 2147483648, %v5188_v35  ;;  %v5405_v1 = vpop.eup %4371  ;;  %v5407_v51 = vadd.f32 1.0, %v4370_v11 }
  0xfc   :  { %4375 = vrcp.f32 %v5355_v29  ;;  %v1162_v57 = vpack.c.bf16 %v1136_v46, %v5300_v14  ;;  %v3894_v3 = vor.u32 %v4243_v62, %v3891_v53  ;;  %v4086_v6 = vor.u32 %v4291_v54, %v4083_v55  ;;  %v4246_v53 = vld [vmem:[%s7226_s5 + $0x134] sm:$0xf0] }
  0xfd   :  { %4377 = vpow2.f32 %v3602_v42  ;;  %v845_v10 = vadd.f32 %v5294_v22, %v844_v50  ;;  %v819_v35 = vsel %vm5412_vm5, %v5278_v40, %v815_v61  ;;  %v823_v16 = vor.u32 1.1754944e-38, %v822_v26 }
  0xfe   :  { %4379 = vpow2.f32 %v3603_v32  ;;  %v455_v18 = vadd.f32 %v454_v15, %v4911_v27  ;;  %v1135_v14 = vmul.f32 %v794_v23, %v5073_v39  ;;  %v839_v7 = vsel %vm5341_vm12, %v5302_v30, %v834_v25  ;;  %1390 = vmatmul.bf16.gmra.mxu0 %v1162_v57  ;;  %1488 = vmatmul.bf16.gmra.mxu2 %v1162_v57  ;;  %v407_v39 = vpop.f32.mrf.mxu1 }
  0xff   :  { %vm821_vm6 = vcmp.eq.f32.partialorder %v820_v8, 8.507059e+37  ;;  %v359_v34 = vadd.f32 %v358_v0, %v4888_v13  ;;  %v853_v40 = vor.u32 1.1754944e-38, %v852_v37  ;;  %v889_v11 = vmul.f32 %v5328_v41, %v888_v60  ;;  %2305 = vmatpush.bf16.msra.mxu2 %v3894_v3  ;;  %2354 = vmatpush.bf16.msra.mxu3 %v4086_v6  ;;  %v456_v3 = vpop.f32.mrf.mxu2 }
 0x100   :  { %v824_v21 = vsel %vm821_vm6, %v823_v16, %v819_v35  ;;  %v5431_v42 = vadd.f32 %v503_v33, %v455_v18  ;;  %4381 = vrcp.f32 %v5407_v51  ;;  %v895_v28 = vand.u32 2147483647, %v5271_v45 }
 0x101   :  { %v5421_v19 = vpop.eup %4373  ;;  %v1137_v37 = vmul.f32 %v824_v21, %v5100_v12  ;;  %v5444_v20 = vadd.f32 %v407_v39, %v359_v34  ;;  %v5447_v47 = vmul.f32 %v839_v7, %v5088_v63  ;;  %v849_v48 = vsel %vm5437_vm7, %v5294_v22, %v845_v10  ;;  %v3889_v22 = vld [vmem:[%s7226_s5 + $0x120] sm:$0xf] }
 0x102   :  { %v5428_v36 = vpop.eup %4375  ;;  %v902_v32 = vmul.f32 %v5421_v19, %v5346_v38  ;;  %v3604_v50 = vmul.f32 -1.442695, %v5431_v42  ;;  %v890_v63 = vadd.f32 %v5328_v41, %v889_v11  ;;  %vm892_vm8 = vweird.f32 %v5328_v41  ;;  %v505_v7 = vpop.f32.mrf.mxu3 }
 0x103   :  { %v4378_v23 = vpop.eup %4377  ;;  %v917_v25 = vmul.f32 %v5428_v36, %v5355_v29  ;;  %v1163_v12 = vpack.c.bf16 %v1137_v37, %v1135_v14  ;;  %v897_v52 = vand.u32 2147483648, %v5271_v45  ;;  %v854_v54 = vsel %vm5399_vm4, %v853_v40, %v849_v48  ;;  %v361_v40 = vpop.f32.mrf.mxu0 }
 0x104   :  { %v4380_v44 = vpop.eup %4379  ;;  %v5454_v2 = vadd.f32 1.0, %v4378_v23  ;;  %vm891_vm9 = vweird.f32 %v5271_v45  ;;  %vm5474_vm10 = vcmp.eq.f32.partialorder %v895_v28, 8.507059e+37  ;;  %v3605_v46 = vmul.f32 -1.442695, %v5444_v20  ;;  %v4294_v45 = vld [vmem:[%s7226_s5 + $0x2b4] sm:$0xf0] }
 0x105   :  { %v5458_v62 = vadd.f32 1.0, %v4380_v44  ;;  %1439 = vmatmul.bf16.gmra.mxu1 %v1163_v12  ;;  %1537 = vmatmul.bf16.gmra.mxu3 %v1163_v12  ;;  %v912_v8 = vand.u32 2147483648, %v5346_v38  ;;  %v927_v15 = vand.u32 2147483648, %v5355_v29  ;;  %v857_v60 = vmul.f32 %v5405_v1, %v5306_v59  ;;  %vm5494_vm11 = vmor %vm891_vm9, %vm892_vm8 }
 0x106   :  { %4383 = vrcp.f32 %v5454_v2  ;;  %v5490_v61 = vpop.eup %4381  ;;  %v903_v0 = vsub.f32 1.0, %v902_v32  ;;  %v918_v57 = vsub.f32 1.0, %v917_v25  ;;  %v3890_v56 = vor.u32 %v4246_v53, %v3889_v22  ;;  %v410_v11 = vpop.f32.mrf.mxu1 }
 0x107   :  { %4385 = vrcp.f32 %v5458_v62  ;;  %v5499_v6 = vmul.f32 %v854_v54, %v5111_v31  ;;  %v894_v10 = vsel %vm5494_vm11, %v5328_v41, %v890_v63  ;;  %v898_v35 = vor.u32 1.1754944e-38, %v897_v52 }
 0x108   :  { %4387 = vpow2.f32 %v3604_v50  ;;  %vm906_vm12 = vweird.f32 %v5346_v38  ;;  %v910_v16 = vand.u32 2147483647, %v5346_v38  ;;  %v925_v18 = vand.u32 2147483647, %v5355_v29  ;;  %2207 = vmatpush.bf16.msra.mxu0 %v3890_v56  ;;  %v5564_v56 = vpop.f32.mrf.mxu2 }
 0x109   :  { %4389 = vpow2.f32 %v3605_v46  ;;  %v4082_v14 = vor.u32 %v4294_v45, %v4081_v49  ;;  %v5509_v34 = vor.u32 1.1754944e-38, %v912_v8  ;;  %vm921_vm13 = vweird.f32 %v5355_v29 }
 0x10a   :  { %v5512_v31 = vor.u32 1.1754944e-38, %v927_v15  ;;  %v858_v41 = vsub.f32 1.0, %v857_v60  ;;  %v899_v21 = vsel %vm5474_vm10, %v898_v35, %v894_v10  ;;  %v904_v39 = vmul.f32 %v5421_v19, %v903_v0 }
 0x10b   :  { %v919_v23 = vmul.f32 %v5428_v36, %v918_v57  ;;  %2256 = vmatpush.bf16.msra.mxu1 %v4082_v14  ;;  %v457_v30 = vadd.f32 %v456_v3, %v4911_v27  ;;  %v865_v48 = vand.u32 2147483647, %v5306_v59  ;;  %v867_v32 = vand.u32 2147483648, %v5306_v59 }
 0x10c   :  { %v5507_v33 = vpop.eup %4383  ;;  %v859_v44 = vmul.f32 %v5405_v1, %v858_v41  ;;  %vm907_vm14 = vweird.f32 %v5421_v19  ;;  %vm5527_vm15 = vcmp.eq.f32.partialorder %v910_v16, 8.507059e+37  ;;  %vm5531_vm0 = vcmp.eq.f32.partialorder %v925_v18, 8.507059e+37  ;;  %v5584_v18 = vpop.f32.mrf.mxu3 }
 0x10d   :  { %v5519_v28 = vpop.eup %4385  ;;  %v932_v37 = vmul.f32 %v5507_v33, %v5454_v2  ;;  %vm862_vm1 = vweird.f32 %v5405_v1  ;;  %v5536_v63 = vadd.f32 %v505_v7, %v457_v30  ;;  %v362_v52 = vadd.f32 %v361_v40, %v4888_v13  ;;  %vm5554_vm6 = vmor %vm906_vm12, %vm907_vm14  ;;  %v4237_v30 = vld [vmem:[%s7226_s5 + $0xf4] sm:$0xf] }
 0x10e   :  { %v4388_v25 = vpop.eup %4387  ;;  %vm922_vm2 = vweird.f32 %v5428_v36  ;;  %v860_v53 = vadd.f32 %v5405_v1, %v859_v44  ;;  %vm861_vm3 = vweird.f32 %v5306_v59  ;;  %v905_v55 = vadd.f32 %v5421_v19, %v904_v39  ;;  %v5591_v39 = vpop.f32.mrf.mxu1 }
 0x10f   :  { %v5540_v22 = vadd.f32 1.0, %v4388_v25  ;;  %v4390_v54 = vpop.eup %4389  ;;  %v920_v46 = vadd.f32 %v5428_v36, %v919_v23  ;;  %v947_v8 = vmul.f32 %v5519_v28, %v5458_v62  ;;  %v3606_v15 = vmul.f32 -1.442695, %v5536_v63  ;;  %vm863_vm4 = vmor %vm861_vm3, %vm862_vm1 }
 0x110   :  { %v933_v49 = vsub.f32 1.0, %v932_v37  ;;  %v942_v45 = vand.u32 2147483648, %v5454_v2  ;;  %vm866_vm5 = vcmp.eq.f32.partialorder %v865_v48, 8.507059e+37  ;;  %v868_v60 = vor.u32 1.1754944e-38, %v867_v32  ;;  %vm5570_vm7 = vmor %vm921_vm13, %vm922_vm2  ;;  %v3867_v37 = vld [vmem:[%s7226_s5 + $0x108] sm:$0xf0]  ;;  %v5644_v59 = vpop.f32.mrf.mxu2 }
 0x111   :  { %4391 = vrcp.f32 %v5540_v22  ;;  %v5559_v26 = vadd.f32 1.0, %v4390_v54  ;;  %v864_v0 = vsel %vm863_vm4, %v5405_v1, %v860_v53  ;;  %v5562_v57 = vadd.f32 %v410_v11, %v362_v52  ;;  %v363_v11 = vpop.f32.mrf.mxu0  ;;  %v4285_v48 = vld [vmem:[%s7226_s5 + $0x274] sm:$0xf]  ;;  %v4059_v32 = vld [vmem:[%s7226_s5 + $0x288] sm:$0xf0] }
 0x112   :  { %v957_v3 = vand.u32 2147483648, %v5458_v62  ;;  %v869_v10 = vsel %vm866_vm5, %v868_v60, %v864_v0  ;;  %4393 = vpow2.f32 %v3606_v15  ;;  %v872_v35 = vmul.f32 %v5490_v61, %v5407_v51 }
 0x113   :  { %v909_v1 = vsel %vm5554_vm6, %v5421_v19, %v905_v55  ;;  %v924_v16 = vsel %vm5570_vm7, %v5428_v36, %v920_v46  ;;  %v948_v29 = vsub.f32 1.0, %v947_v8  ;;  %4395 = vrcp.f32 %v5559_v26 }
 0x114   :  { %v934_v14 = vmul.f32 %v5507_v33, %v933_v49  ;;  %v940_v7 = vand.u32 2147483647, %v5454_v2  ;;  %v5588_v41 = vor.u32 1.1754944e-38, %v942_v45  ;;  %v955_v40 = vand.u32 2147483647, %v5458_v62 }
 0x115   :  { %v5594_v19 = vmul.f32 %v899_v21, %v5173_v17  ;;  %vm936_vm8 = vweird.f32 %v5454_v2  ;;  %v1140_v36 = vmul.f32 %v869_v10, %v5179_v5  ;;  %v3607_v23 = vmul.f32 -1.442695, %v5562_v57 }
 0x116   :  { %v914_v44 = vsel %vm5527_vm15, %v5509_v34, %v909_v1  ;;  %v929_v17 = vsel %vm5531_vm0, %v5512_v31, %v924_v16  ;;  %v5611_v21 = vor.u32 1.1754944e-38, %v957_v3  ;;  %v873_v5 = vsub.f32 1.0, %v872_v35 }
 0x117   :  { %v5619_v25 = vpop.eup %4391  ;;  %vm937_vm9 = vweird.f32 %v5507_v33  ;;  %v949_v34 = vmul.f32 %v5519_v28, %v948_v29  ;;  %vm951_vm10 = vweird.f32 %v5458_v62  ;;  %v1164_v31 = vpack.c.bf16 %v1140_v36, %v5447_v47 }
 0x118   :  { %4397 = vpow2.f32 %v3607_v23  ;;  %v4394_v12 = vpop.eup %4393  ;;  %v935_v50 = vadd.f32 %v5507_v33, %v934_v14  ;;  %vm5626_vm11 = vcmp.eq.f32.partialorder %v940_v7, 8.507059e+37  ;;  %v874_v53 = vmul.f32 %v5490_v61, %v873_v5  ;;  %vm5662_vm0 = vmor %vm936_vm8, %vm937_vm9  ;;  %v510_v7 = vpop.f32.mrf.mxu3 }
 0x119   :  { %vm877_vm12 = vweird.f32 %v5490_v61  ;;  %v882_v54 = vand.u32 2147483648, %v5407_v51  ;;  %v5633_v55 = vpop.eup %4395  ;;  %1395 = vmatmul.bf16.gmra.mxu0 %v1164_v31  ;;  %1493 = vmatmul.bf16.gmra.mxu2 %v1164_v31  ;;  %v5635_v46 = vadd.f32 1.0, %v4394_v12  ;;  %v880_v47 = vand.u32 2147483647, %v5407_v51  ;;  %v366_v1 = vpop.f32.mrf.mxu0  ;;  %v3865_v31 = vld [vmem:[%s7226_s5 + $0xf0] sm:$0xf] }
 0x11a   :  { %v3870_v8 = vor.u32 %v4237_v30, %v3867_v37  ;;  %v4062_v15 = vor.u32 %v4285_v48, %v4059_v32  ;;  %v962_v49 = vmul.f32 %v5619_v25, %v5540_v22  ;;  %v977_v45 = vmul.f32 %v5633_v55, %v5559_v26  ;;  %v4240_v12 = vld [vmem:[%s7226_s5 + $0x104] sm:$0xf0] }
 0x11b   :  { %v875_v60 = vadd.f32 %v5490_v61, %v874_v53  ;;  %vm876_vm13 = vweird.f32 %v5407_v51  ;;  %v5647_v0 = vmul.f32 %v914_v44, %v5252_v9  ;;  %v1144_v38 = vmul.f32 %v929_v17, %v5254_v43 }
 0x11c   :  { %vm952_vm14 = vweird.f32 %v5519_v28  ;;  %4399 = vrcp.f32 %v5635_v46  ;;  %vm5654_vm15 = vmor %vm876_vm13, %vm877_vm12  ;;  %2306 = vmatpush.bf16.msra.mxu2 %v3870_v8  ;;  %2355 = vmatpush.bf16.msra.mxu3 %v4062_v15  ;;  %v5667_v43 = vadd.f32 %v5519_v28, %v949_v34  ;;  %v972_v51 = vand.u32 2147483648, %v5540_v22  ;;  %v464_v15 = vpop.f32.mrf.mxu2 }
 0x11d   :  { %v879_v10 = vsel %vm5654_vm15, %v5490_v61, %v875_v60  ;;  %v883_v35 = vor.u32 1.1754944e-38, %v882_v54  ;;  %v939_v2 = vsel %vm5662_vm0, %v5507_v33, %v935_v50  ;;  %vm881_vm1 = vcmp.eq.f32.partialorder %v880_v47, 8.507059e+37  ;;  %v415_v61 = vpop.f32.mrf.mxu1  ;;  %vm5694_vm3 = vmor %vm951_vm10, %vm952_vm14  ;;  %v4288_v54 = vld [vmem:[%s7226_s5 + $0x284] sm:$0xf0] }
 0x11e   :  { %v4398_v16 = vpop.eup %4397  ;;  %v460_v29 = vadd.f32 %v5564_v56, %v4911_v27  ;;  %v364_v14 = vadd.f32 %v363_v11, %v4888_v13  ;;  %v963_v36 = vsub.f32 1.0, %v962_v49  ;;  %v978_v23 = vsub.f32 1.0, %v977_v45  ;;  %v4234_v49 = vld [vmem:[%s7226_s5 + $0xd4] sm:$0xf0] }
 0x11f   :  { %v5679_v30 = vadd.f32 1.0, %v4398_v16  ;;  %v884_v37 = vsel %vm881_vm1, %v883_v35, %v879_v10  ;;  %vm966_vm2 = vweird.f32 %v5540_v22  ;;  %v987_v44 = vand.u32 2147483648, %v5559_v26 }
 0x120   :  { %v1141_v17 = vmul.f32 %v884_v37, %v5226_v58  ;;  %v5685_v33 = vadd.f32 %v5584_v18, %v460_v29  ;;  %v5688_v56 = vadd.f32 %v5591_v39, %v364_v14  ;;  %v970_v5 = vand.u32 2147483647, %v5540_v22  ;;  %v3843_v37 = vld [vmem:[%s7226_s5 + $0xd8] sm:$0xf0] }
 0x121   :  { %v5699_v48 = vor.u32 1.1754944e-38, %v972_v51  ;;  %v985_v58 = vand.u32 2147483647, %v5559_v26  ;;  %4401 = vrcp.f32 %v5679_v30  ;;  %v944_v39 = vsel %vm5626_vm11, %v5588_v41, %v939_v2  ;;  %v368_v9 = vpop.f32.mrf.mxu0 }
 0x122   :  { %v5703_v18 = vpop.eup %4399  ;;  %v954_v32 = vsel %vm5694_vm3, %v5519_v28, %v5667_v43  ;;  %vm981_vm4 = vweird.f32 %v5559_v26  ;;  %v1165_v34 = vpack.c.bf16 %v1141_v17, %v5499_v6  ;;  %v964_v50 = vmul.f32 %v5619_v25, %v963_v36  ;;  %v4057_v6 = vld [vmem:[%s7226_s5 + $0x270] sm:$0xf]  ;;  %v4033_v28 = vld [vmem:[%s7226_s5 + $0x240] sm:$0xf] }
 0x123   :  { %v979_v41 = vmul.f32 %v5633_v55, %v978_v23  ;;  %v992_v52 = vmul.f32 %v5703_v18, %v5635_v46  ;;  %v3608_v53 = vmul.f32 -1.442695, %v5685_v33  ;;  %vm967_vm5 = vweird.f32 %v5619_v25  ;;  %v4231_v23 = vld [vmem:[%s7226_s5 + $0xc4] sm:$0xf] }
 0x124   :  { %vm982_vm6 = vweird.f32 %v5633_v55  ;;  %v5733_v47 = vor.u32 1.1754944e-38, %v987_v44  ;;  %1444 = vmatmul.bf16.gmra.mxu1 %v1165_v34  ;;  %1542 = vmatmul.bf16.gmra.mxu3 %v1165_v34  ;;  %v3609_v8 = vmul.f32 -1.442695, %v5688_v56  ;;  %vm5736_vm7 = vcmp.eq.f32.partialorder %v985_v58, 8.507059e+37  ;;  %v513_v44 = vpop.f32.mrf.mxu3  ;;  %vm5779_vm10 = vmor %vm966_vm2, %vm967_vm5 }
 0x125   :  { %v993_v45 = vsub.f32 1.0, %v992_v52  ;;  %v1002_v60 = vand.u32 2147483648, %v5635_v46  ;;  %4403 = vpow2.f32 %v3608_v53  ;;  %v3866_v3 = vor.u32 %v4240_v12, %v3865_v31  ;;  %vm5795_vm11 = vmor %vm981_vm4, %vm982_vm6 }
 0x126   :  { %vm5743_vm8 = vcmp.eq.f32.partialorder %v955_v40, 8.507059e+37  ;;  %4405 = vpow2.f32 %v3609_v8  ;;  %v4058_v10 = vor.u32 %v4288_v54, %v4057_v6  ;;  %v1166_v35 = vpack.c.bf16 %v1144_v38, %v5594_v19 }
 0x127   :  { %v462_v16 = vadd.f32 %v5644_v59, %v4911_v27  ;;  %v5750_v2 = vpop.eup %4401  ;;  %v965_v29 = vadd.f32 %v5619_v25, %v964_v50  ;;  %vm5753_vm9 = vcmp.eq.f32.partialorder %v970_v5, 8.507059e+37  ;;  %v980_v62 = vadd.f32 %v5633_v55, %v979_v41  ;;  %2208 = vmatpush.bf16.msra.mxu0 %v3866_v3 }
 0x128   :  { %v367_v40 = vadd.f32 %v366_v1, %v4888_v13  ;;  %v465_v36 = vadd.f32 %v464_v15, %v4911_v27  ;;  %v1145_v19 = vmul.f32 %v944_v39, %v5331_v24  ;;  %v1007_v59 = vmul.f32 %v5750_v2, %v5679_v30  ;;  %2257 = vmatpush.bf16.msra.mxu1 %v4058_v10  ;;  %v4279_v1 = vld [vmem:[%s7226_s5 + $0x244] sm:$0xf]  ;;  %v4035_v39 = vld [vmem:[%s7226_s5 + $0x258] sm:$0xf0] }
 0x129   :  { %v5763_v38 = vadd.f32 %v510_v7, %v462_v16  ;;  %v369_v24 = vadd.f32 %v368_v9, %v4888_v13  ;;  %v994_v17 = vmul.f32 %v5703_v18, %v993_v45  ;;  %v3846_v58 = vor.u32 %v4231_v23, %v3843_v37  ;;  %v417_v13 = vpop.f32.mrf.mxu1  ;;  %1400 = vmatmul.bf16.gmra.mxu0 %v1166_v35 }
 0x12a   :  { %v5784_v5 = vadd.f32 %v415_v61, %v367_v40  ;;  %v5789_v34 = vadd.f32 %v513_v44, %v465_v36  ;;  %v1008_v31 = vsub.f32 1.0, %v1007_v59  ;;  %1498 = vmatmul.bf16.gmra.mxu2 %v1166_v35  ;;  %v4038_v12 = vor.u32 %v4279_v1, %v4035_v39  ;;  %v466_v39 = vpop.f32.mrf.mxu2  ;;  %v4228_v59 = vld [vmem:[%s7226_s5 + $0xa4] sm:$0xf0] }
 0x12b   :  { %v3610_v61 = vmul.f32 -1.442695, %v5763_v38  ;;  %v5800_v50 = vadd.f32 %v417_v13, %v369_v24  ;;  %v4404_v41 = vpop.eup %4403  ;;  %v969_v52 = vsel %vm5779_vm10, %v5619_v25, %v965_v29  ;;  %v984_v26 = vsel %vm5795_vm11, %v5633_v55, %v980_v62  ;;  %2307 = vmatpush.bf16.msra.mxu2 %v3846_v58 }
 0x12c   :  { %v1000_v53 = vand.u32 2147483647, %v5635_v46  ;;  %v3611_v6 = vmul.f32 -1.442695, %v5784_v5  ;;  %v4406_v54 = vpop.eup %4405  ;;  %vm997_vm12 = vweird.f32 %v5703_v18  ;;  %v5811_v8 = vadd.f32 1.0, %v4404_v41  ;;  %2356 = vmatpush.bf16.msra.mxu3 %v4038_v12 }
 0x12d   :  { %4407 = vpow2.f32 %v3610_v61  ;;  %v3612_v15 = vmul.f32 -1.442695, %v5789_v34  ;;  %v995_v25 = vadd.f32 %v5703_v18, %v994_v17  ;;  %v5815_v45 = vadd.f32 1.0, %v4406_v54 }
 0x12e   :  { %4409 = vpow2.f32 %v3611_v6  ;;  %v3613_v55 = vmul.f32 -1.442695, %v5800_v50  ;;  %v989_v3 = vsel %vm5736_vm7, %v5733_v47, %v984_v26  ;;  %v1003_v9 = vor.u32 1.1754944e-38, %v1002_v60  ;;  %v3841_v47 = vld [vmem:[%s7226_s5 + $0xc0] sm:$0xf] }
 0x12f   :  { %v1009_v10 = vmul.f32 %v5750_v2, %v1008_v31  ;;  %4411 = vrcp.f32 %v5811_v8  ;;  %v959_v35 = vsel %vm5743_vm8, %v5611_v21, %v954_v32  ;;  %vm996_vm13 = vweird.f32 %v5635_v46  ;;  %v4282_v32 = vld [vmem:[%s7226_s5 + $0x254] sm:$0xf0]  ;;  %v3819_v46 = vld [vmem:[%s7226_s5 + $0xa8] sm:$0xf0] }
 0x130   :  { %4413 = vrcp.f32 %v5815_v45  ;;  %v974_v21 = vsel %vm5753_vm9, %v5699_v48, %v969_v52  ;;  %vm5847_vm14 = vmor %vm996_vm13, %vm997_vm12  ;;  %v1015_v43 = vand.u32 2147483647, %v5679_v30  ;;  %v1167_v11 = vpack.c.bf16 %v1145_v19, %v5647_v0 }
 0x131   :  { %4415 = vpow2.f32 %v3612_v15  ;;  %v1148_v60 = vmul.f32 %v989_v3, %v5444_v20  ;;  %v999_v48 = vsel %vm5847_vm14, %v5703_v18, %v995_v25  ;;  %v1017_v51 = vand.u32 2147483648, %v5679_v30 }
 0x132   :  { %4417 = vpow2.f32 %v3613_v55  ;;  %v1010_v29 = vadd.f32 %v5750_v2, %v1009_v10  ;;  %vm1012_vm15 = vweird.f32 %v5750_v2  ;;  %v3842_v0 = vor.u32 %v4234_v49, %v3841_v47  ;;  %v515_v47 = vpop.f32.mrf.mxu3 }
 0x133   :  { %v4408_v16 = vpop.eup %4407  ;;  %v4034_v14 = vor.u32 %v4282_v32, %v4033_v28  ;;  %v1146_v40 = vmul.f32 %v959_v35, %v5333_v4  ;;  %vm1001_vm0 = vcmp.eq.f32.partialorder %v1000_v53, 8.507059e+37  ;;  %vm1011_vm1 = vweird.f32 %v5679_v30  ;;  %v4273_v32 = vld [vmem:[%s7226_s5 + $0x214] sm:$0xf] }
 0x134   :  { %v4410_v62 = vpop.eup %4409  ;;  %v5865_v20 = vadd.f32 1.0, %v4408_v16  ;;  %v1147_v18 = vmul.f32 %v974_v21, %v5431_v42  ;;  %v1004_v19 = vsel %vm1001_vm0, %v1003_v9, %v999_v48  ;;  %vm5870_vm2 = vcmp.eq.f32.partialorder %v1015_v43, 8.507059e+37  ;;  %1449 = vmatmul.bf16.gmra.mxu1 %v1167_v11  ;;  %1547 = vmatmul.bf16.gmra.mxu3 %v1167_v11  ;;  %vm5878_vm3 = vmor %vm1011_vm1, %vm1012_vm15  ;;  %v4225_v21 = vld [vmem:[%s7226_s5 + $0x94] sm:$0xf] }
 0x135   :  { %v5867_v36 = vpop.eup %4411  ;;  %v5874_v23 = vadd.f32 1.0, %v4410_v62  ;;  %v1018_v30 = vor.u32 1.1754944e-38, %v1017_v51  ;;  %2209 = vmatpush.bf16.msra.mxu0 %v3842_v0  ;;  %2258 = vmatpush.bf16.msra.mxu1 %v4034_v14  ;;  %v1168_v1 = vpack.c.bf16 %v1148_v60, %v1146_v40  ;;  %v1014_v24 = vsel %vm5878_vm3, %v5750_v2, %v1010_v29  ;;  %v4011_v60 = vld [vmem:[%s7226_s5 + $0x228] sm:$0xf0] }
 0x136   :  { %v4414_v37 = vpop.eup %4413  ;;  %v1022_v42 = vmul.f32 %v5867_v36, %v5811_v8  ;;  %4419 = vrcp.f32 %v5865_v20  ;;  %v1032_v7 = vand.u32 2147483648, %v5811_v8  ;;  %v1045_v58 = vand.u32 2147483647, %v5815_v45 }
 0x137   :  { %v4416_v44 = vpop.eup %4415  ;;  %v1037_v17 = vmul.f32 %v4414_v37, %v5815_v45  ;;  %v1149_v22 = vmul.f32 %v1004_v19, %v5536_v63  ;;  %vm1026_vm4 = vweird.f32 %v5811_v8  ;;  %v1047_v31 = vand.u32 2147483648, %v5815_v45  ;;  %v3817_v19 = vld [vmem:[%s7226_s5 + $0x90] sm:$0xf] }
 0x138   :  { %v4418_v13 = vpop.eup %4417  ;;  %4421 = vrcp.f32 %v5874_v23  ;;  %v1023_v61 = vsub.f32 1.0, %v1022_v42  ;;  %v1030_v12 = vand.u32 2147483647, %v5811_v8  ;;  %vm1041_vm5 = vweird.f32 %v5815_v45 }
 0x139   :  { %v1038_v2 = vsub.f32 1.0, %v1037_v17  ;;  %v5899_v41 = vsel %vm5870_vm2, %v1018_v30, %v1014_v24  ;;  %v5901_v52 = vadd.f32 1.0, %v4416_v44  ;;  %v5903_v26 = vadd.f32 1.0, %v4418_v13  ;;  %1405 = vmatmul.bf16.gmra.mxu0 %v1168_v1  ;;  %v4276_v17 = vld [vmem:[%s7226_s5 + $0x224] sm:$0xf0] }
 0x13a   :  { %v467_v63 = vadd.f32 %v466_v39, %v4911_v27  ;;  %v5906_v53 = vor.u32 1.1754944e-38, %v1032_v7  ;;  %vm1042_vm6 = vweird.f32 %v4414_v37  ;;  %vm5908_vm7 = vcmp.eq.f32.partialorder %v1045_v58, 8.507059e+37  ;;  %1503 = vmatmul.bf16.gmra.mxu2 %v1168_v1  ;;  %v4009_v7 = vld [vmem:[%s7226_s5 + $0x210] sm:$0xf]  ;;  %v4219_v58 = vld [vmem:[%s7226_s5 + $0x64] sm:$0xf] }
 0x13b   :  { %v1039_v6 = vmul.f32 %v4414_v37, %v1038_v2  ;;  %v1048_v25 = vor.u32 1.1754944e-38, %v1047_v31  ;;  %v1060_v55 = vand.u32 2147483647, %v5865_v20  ;;  %v1062_v3 = vand.u32 2147483648, %v5865_v20  ;;  %vm1043_vm9 = vmor %vm1041_vm5, %vm1042_vm6  ;;  %v3795_v13 = vld [vmem:[%s7226_s5 + $0x78] sm:$0xf0] }
 0x13c   :  { %v5912_v15 = vpop.eup %4419  ;;  %v1169_v9 = vpack.c.bf16 %v1149_v22, %v1147_v18  ;;  %v1024_v27 = vmul.f32 %v5867_v36, %v1023_v61  ;;  %4423 = vrcp.f32 %v5901_v52  ;;  %vm1027_vm8 = vweird.f32 %v5867_v36  ;;  %v4267_v22 = vld [vmem:[%s7226_s5 + $0x1e4] sm:$0xf]  ;;  %v3987_v31 = vld [vmem:[%s7226_s5 + $0x1f8] sm:$0xf0]  ;;  %v3793_v2 = vld [vmem:[%s7226_s5 + $0x60] sm:$0xf] }
 0x13d   :  { %v1040_v10 = vadd.f32 %v4414_v37, %v1039_v6  ;;  %v1052_v35 = vmul.f32 %v5912_v15, %v5865_v20  ;;  %vm1056_vm10 = vweird.f32 %v5865_v20  ;;  %4425 = vrcp.f32 %v5903_v26  ;;  %vm5959_vm13 = vmor %vm1026_vm4, %vm1027_vm8  ;;  %v3985_v6 = vld [vmem:[%s7226_s5 + $0x1e0] sm:$0xf]  ;;  %v4210_v44 = vld [vmem:[%s7226_s5 + $0x14] sm:$0xf0] }
 0x13e   :  { %v5920_v49 = vpop.eup %4421  ;;  %v5928_v28 = vadd.f32 %v515_v47, %v467_v63  ;;  %vm1057_vm11 = vweird.f32 %v5912_v15  ;;  %vm5947_vm12 = vcmp.eq.f32.partialorder %v1060_v55, 8.507059e+37  ;;  %v1063_v16 = vor.u32 1.1754944e-38, %v1062_v3  ;;  %v4222_v63 = vld [vmem:[%s7226_s5 + $0x74] sm:$0xf0]  ;;  %v4213_v55 = vld [vmem:[%s7226_s5 + $0x34] sm:$0xf] }
 0x13f   :  { %v1044_v43 = vsel %vm1043_vm9, %v4414_v37, %v1040_v10  ;;  %v1053_v11 = vsub.f32 1.0, %v1052_v35  ;;  %v1067_v45 = vmul.f32 %v5920_v49, %v5874_v23  ;;  %v1075_v29 = vand.u32 2147483647, %v5874_v23  ;;  %vm5975_vm14 = vmor %vm1056_vm10, %vm1057_vm11  ;;  %v3771_v3 = vld [vmem:[%s7226_s5 + $0x48] sm:$0xf0] }
 0x140   :  { %v1049_v48 = vsel %vm5908_vm7, %v1048_v25, %v1044_v43  ;;  %v5953_v0 = vadd.f32 %v5867_v36, %v1024_v27  ;;  %v1077_v18 = vand.u32 2147483648, %v5874_v23  ;;  %v1105_v37 = vand.u32 2147483647, %v5903_v26  ;;  %v4270_v25 = vld [vmem:[%s7226_s5 + $0x1f4] sm:$0xf0] }
 0x141   :  { %v1054_v62 = vmul.f32 %v5912_v15, %v1053_v11  ;;  %v1068_v40 = vsub.f32 1.0, %v1067_v45  ;;  %v3614_v4 = vmul.f32 -1.442695, %v5928_v28  ;;  %v3822_v30 = vor.u32 %v4225_v21, %v3819_v46  ;;  %v4261_v10 = vld [vmem:[%s7226_s5 + $0x1b4] sm:$0xf] }
 0x142   :  { %v4014_v42 = vor.u32 %v4273_v32, %v4011_v60  ;;  %v5981_v1 = vpop.eup %4423  ;;  %vm5983_vm15 = vcmp.eq.f32.partialorder %v1030_v12, 8.507059e+37  ;;  %v1152_v24 = vmul.f32 %v1049_v48, %v5688_v56  ;;  %v3818_v56 = vor.u32 %v4228_v59, %v3817_v19  ;;  %v3963_v35 = vld [vmem:[%s7226_s5 + $0x1c8] sm:$0xf0]  ;;  %v3769_v43 = vld [vmem:[%s7226_s5 + $0x30] sm:$0xf] }
 0x143   :  { %v1055_v20 = vadd.f32 %v5912_v15, %v1054_v62  ;;  %v5998_v39 = vpop.eup %4425  ;;  %4427 = vpow2.f32 %v3614_v4  ;;  %2308 = vmatpush.bf16.msra.mxu2 %v3822_v30  ;;  %v1150_v61 = vmul.f32 %v5899_v41, %v5562_v57  ;;  %v1029_v57 = vsel %vm5959_vm13, %v5867_v36, %v5953_v0  ;;  %v4216_v32 = vld [vmem:[%s7226_s5 + $0x44] sm:$0xf0]  ;;  %v3961_v60 = vld [vmem:[%s7226_s5 + $0x1b0] sm:$0xf]  ;;  %v4207_v30 = vld [vmem:[%s7226_s5 + $0x4] sm:$0xf] }
 0x144   :  { %2357 = vmatpush.bf16.msra.mxu3 %v4014_v42  ;;  %v1097_v12 = vmul.f32 %v5998_v39, %v5903_v26  ;;  %1454 = vmatmul.bf16.gmra.mxu1 %v1169_v9  ;;  %v4010_v54 = vor.u32 %v4276_v17, %v4009_v7  ;;  %v1069_v36 = vmul.f32 %v5920_v49, %v1068_v40  ;;  %vm1102_vm0 = vweird.f32 %v5998_v39  ;;  %v4264_v48 = vld [vmem:[%s7226_s5 + $0x1c4] sm:$0xf0]  ;;  %v3747_v42 = vld [vmem:[%s7226_s5 + $0x18] sm:$0xf0]  ;;  %v4255_v17 = vld [vmem:[%s7226_s5 + $0x184] sm:$0xf] }
 0x145   :  { %1552 = vmatmul.bf16.gmra.mxu3 %v1169_v9  ;;  %v1059_v41 = vsel %vm5975_vm14, %v5912_v15, %v1055_v20  ;;  %2210 = vmatpush.bf16.msra.mxu0 %v3818_v56  ;;  %v6041_v9 = vmul.f32 %v5981_v1, %v5901_v52  ;;  %v1170_v27 = vpack.c.bf16 %v1152_v24, %v1150_v61  ;;  %vm1072_vm1 = vweird.f32 %v5920_v49  ;;  %v3745_v56 = vld [vmem:[%s7226_s5] sm:$0xf] }
 0x146   :  { %v1098_v15 = vsub.f32 1.0, %v1097_v12  ;;  %2259 = vmatpush.bf16.msra.mxu1 %v4010_v54  ;;  %v3798_v47 = vor.u32 %v4219_v58, %v3795_v13  ;;  %v3990_v21 = vor.u32 %v4267_v22, %v3987_v31  ;;  %v3794_v46 = vor.u32 %v4222_v63, %v3793_v2  ;;  %v3939_v58 = vld [vmem:[%s7226_s5 + $0x198] sm:$0xf0]  ;;  %v3937_v22 = vld [vmem:[%s7226_s5 + $0x180] sm:$0xf] }
 0x147   :  { %v1064_v11 = vsel %vm5947_vm12, %v1063_v16, %v1059_v41  ;;  %vm1101_vm2 = vweird.f32 %v5903_v26  ;;  %v1107_v16 = vand.u32 2147483648, %v5903_v26  ;;  %v3986_v0 = vor.u32 %v4270_v25, %v3985_v6 }
 0x148   :  { %v1099_v45 = vmul.f32 %v5998_v39, %v1098_v15  ;;  %2309 = vmatpush.bf16.msra.mxu2 %v3798_v47  ;;  %2358 = vmatpush.bf16.msra.mxu3 %v3990_v21  ;;  %v3774_v14 = vor.u32 %v4213_v55, %v3771_v3  ;;  %v3966_v62 = vor.u32 %v4261_v10, %v3963_v35  ;;  %v1083_v19 = vsub.f32 1.0, %v6041_v9  ;;  %vm6073_vm3 = vmor %vm1101_vm2, %vm1102_vm0  ;;  %v4250_v3 = vld [vmem:[%s7226_s5 + $0x15c] sm:$0xf] }
 0x149   :  { %v4428_v51 = vpop.eup %4427  ;;  %v1070_v40 = vadd.f32 %v5920_v49, %v1069_v36  ;;  %1410 = vmatmul.bf16.gmra.mxu0 %v1170_v27  ;;  %v1034_v24 = vsel %vm5983_vm15, %v5906_v53, %v1029_v57  ;;  %v3770_v20 = vor.u32 %v4216_v32, %v3769_v43  ;;  %v3962_v7 = vor.u32 %v4264_v48, %v3961_v60  ;;  %v1206_v32 = vld [vmem:[%s7227_s4] sm:$0x3] }
 0x14a   :  { %v1100_v59 = vadd.f32 %v5998_v39, %v1099_v45  ;;  %v6077_v4 = vadd.f32 1.0, %v4428_v51  ;;  %1508 = vmatmul.bf16.gmra.mxu2 %v1170_v27  ;;  %2211 = vmatpush.bf16.msra.mxu0 %v3794_v46  ;;  %v1153_v13 = vmul.f32 %v1064_v11, %v5763_v38  ;;  %vm1071_vm4 = vweird.f32 %v5874_v23  ;;  %v4258_v38 = vld [vmem:[%s7226_s5 + $0x194] sm:$0xf0]  ;;  %v6126_v41 = vpop.f32.mrf.mxu0  ;;  %v3923_v23 = vld [vmem:[%s7226_s5 + $0x170] sm:$0xf0] }
 0x14b   :  { %2260 = vmatpush.bf16.msra.mxu1 %v3986_v0  ;;  %vm6114_vm5 = vmor %vm1071_vm4, %vm1072_vm1  ;;  %v3750_v61 = vor.u32 %v4207_v30, %v3747_v42  ;;  %v1151_v12 = vmul.f32 %v1034_v24, %v5685_v33  ;;  %vm1106_vm6 = vcmp.eq.f32.partialorder %v1105_v37, 8.507059e+37  ;;  %v3942_v63 = vor.u32 %v4255_v17, %v3939_v58  ;;  %v4115_v27 = vld [vmem:[%s7226_s5 + $0x2f0] sm:$0xf0]  ;;  %v4253_v30 = vld [vmem:[%s7226_s5 + $0x16c] sm:$0xf0] }
 0x14c   :  { %v1104_v53 = vsel %vm6073_vm3, %v5998_v39, %v1100_v59  ;;  %4429 = vrcp.f32 %v6077_v4  ;;  %v1108_v39 = vor.u32 1.1754944e-38, %v1107_v16  ;;  %2310 = vmatpush.bf16.msra.mxu2 %v3774_v14  ;;  %2359 = vmatpush.bf16.msra.mxu3 %v3966_v62  ;;  %v1074_v2 = vsel %vm6114_vm5, %v5920_v49, %v1070_v40  ;;  %v4113_v58 = vld [vmem:[%s7226_s5 + $0x2d8] sm:$0xf] }
 0x14d   :  { %v1078_v6 = vor.u32 1.1754944e-38, %v1077_v18  ;;  %v3746_v54 = vor.u32 %v4210_v44, %v3745_v56  ;;  %v3938_v25 = vor.u32 %v4258_v38, %v3937_v22  ;;  %vm1076_vm7 = vcmp.eq.f32.partialorder %v1075_v29, 8.507059e+37  ;;  %v4301_v56 = vld [vmem:[%s7226_s5 + $0x2ec] sm:$0xf0] }
 0x14e   :  { %v1109_v57 = vsel %vm1106_vm6, %v1108_v39, %v1104_v53  ;;  %2212 = vmatpush.bf16.msra.mxu0 %v3770_v20  ;;  %v1084_v33 = vmul.f32 %v5981_v1, %v1083_v19  ;;  %v1171_v49 = vpack.c.bf16 %v1153_v13, %v1151_v12  ;;  %v3926_v36 = vor.u32 %v4250_v3, %v3923_v23  ;;  %v4244_v12 = vld [vmem:[%s7226_s5 + $0x12c] sm:$0xf]  ;;  %v3897_v23 = vld [vmem:[%s7226_s5 + $0x128] sm:$0xf] }
 0x14f   :  { %2261 = vmatpush.bf16.msra.mxu1 %v3962_v7  ;;  %v1079_v55 = vsel %vm1076_vm7, %v1078_v6, %v1074_v2  ;;  %v1156_v18 = vmul.f32 %v1109_v57, %v5800_v50  ;;  %vm1087_vm8 = vweird.f32 %v5981_v1  ;;  %v4298_v50 = vld [vmem:[%s7226_s5 + $0x2dc] sm:$0xf]  ;;  %v1092_v10 = vand.u32 2147483648, %v5901_v52  ;;  %v3899_v2 = vld [vmem:[%s7226_s5 + $0x140] sm:$0xf0] }
 0x150   :  { %2311 = vmatpush.bf16.msra.mxu2 %v3750_v61  ;;  %2360 = vmatpush.bf16.msra.mxu3 %v3942_v63  ;;  %v1154_v9 = vmul.f32 %v1079_v55, %v5784_v5  ;;  %v1085_v15 = vadd.f32 %v5981_v1, %v1084_v33  ;;  %v4118_v47 = vor.u32 %v4298_v50, %v4115_v27  ;;  %vm1086_vm9 = vweird.f32 %v5901_v52  ;;  %v1479_v51 = vpop.f32.mrf.mxu2  ;;  %v4292_v63 = vld [vmem:[%s7226_s5 + $0x2ac] sm:$0xf]  ;;  %v4091_v57 = vld [vmem:[%s7226_s5 + $0x2c0] sm:$0xf0] }
 0x151   :  { %v1090_v5 = vand.u32 2147483647, %v5901_v52  ;;  %v1122_v21 = vand.u32 2147483648, %v6077_v4  ;;  %vm6154_vm10 = vmor %vm1086_vm9, %vm1087_vm8  ;;  %v1120_v45 = vand.u32 2147483647, %v6077_v4  ;;  %v1093_v60 = vor.u32 1.1754944e-38, %v1092_v10 }
 0x152   :  { %v4430_v37 = vpop.eup %4429  ;;  %2213 = vmatpush.bf16.msra.mxu0 %v3746_v54  ;;  %v1172_v46 = vpack.c.bf16 %v1156_v18, %v1154_v9  ;;  %v1089_v52 = vsel %vm6154_vm10, %v5981_v1, %v1085_v15  ;;  %vm1116_vm12 = vweird.f32 %v6077_v4  ;;  %v1383_v16 = vpop.f32.mrf.mxu0  ;;  %v6166_v14 = vperm.slane %v1206_v32, 0 }
 0x153   :  { %v1112_v29 = vmul.f32 %v4430_v37, %v6077_v4  ;;  %2262 = vmatpush.bf16.msra.mxu1 %v3938_v25  ;;  %vm1117_vm11 = vweird.f32 %v4430_v37  ;;  %vm1091_vm13 = vcmp.eq.f32.partialorder %v1090_v5, 8.507059e+37  ;;  %v1123_v0 = vor.u32 1.1754944e-38, %v1122_v21  ;;  %v3921_v4 = vld [vmem:[%s7226_s5 + $0x158] sm:$0xf]  ;;  %v4089_v5 = vld [vmem:[%s7226_s5 + $0x2a8] sm:$0xf] }
 0x154   :  { %v6131_v26 = vpop.f32.mrf.mxu1  ;;  %1459 = vmatmul.bf16.gmra.mxu1 %v1171_v49  ;;  %2500 = vmatpush.bf16.msrb.mxu2 %v3926_v36  ;;  %vm1118_vm14 = vmor %vm1116_vm12, %vm1117_vm11  ;;  %v1094_v62 = vsel %vm1091_vm13, %v1093_v60, %v1089_v52  ;;  %vm1121_vm15 = vcmp.eq.f32.partialorder %v1120_v45, 8.507059e+37  ;;  %v1384_v1 = vadd.f32 %v1383_v16, %v6166_v14  ;;  %v3922_v24 = vor.u32 %v4253_v30, %v3921_v4  ;;  %v4295_v21 = vld [vmem:[%s7226_s5 + $0x2bc] sm:$0xf0]  ;;  %v3875_v4 = vld [vmem:[%s7226_s5 + $0x110] sm:$0xf0] }
 0x155   :  { %1557 = vmatmul.bf16.gmra.mxu3 %v1171_v49  ;;  %v1113_v35 = vsub.f32 1.0, %v1112_v29  ;;  %v1155_v20 = vmul.f32 %v1094_v62, %v5789_v34  ;;  %v1382_v7 = vadd.f32 %v6126_v41, %v6166_v14  ;;  %v4114_v13 = vor.u32 %v4301_v56, %v4113_v58  ;;  %v4247_v29 = vld [vmem:[%s7226_s5 + $0x13c] sm:$0xf0]  ;;  %v4286_v30 = vld [vmem:[%s7226_s5 + $0x27c] sm:$0xf] }
 0x156   :  { %2549 = vmatpush.bf16.msrb.mxu3 %v4118_v47  ;;  %2402 = vmatpush.bf16.msrb.mxu0 %v3922_v24  ;;  %v6186_v38 = vperm.slane %v1206_v32, 1  ;;  %v3902_v6 = vor.u32 %v4244_v12, %v3899_v2  ;;  %v4094_v25 = vor.u32 %v4292_v63, %v4091_v57  ;;  %v3898_v36 = vor.u32 %v4247_v29, %v3897_v23  ;;  %v4067_v24 = vld [vmem:[%s7226_s5 + $0x290] sm:$0xf0]  ;;  %v4241_v12 = vld [vmem:[%s7226_s5 + $0x10c] sm:$0xf0] }
 0x157   :  { %v1114_v11 = vmul.f32 %v4430_v37, %v1113_v35  ;;  %2451 = vmatpush.bf16.msrb.mxu1 %v4114_v13  ;;  %v4090_v43 = vor.u32 %v4295_v21, %v4089_v5  ;;  %v4065_v63 = vld [vmem:[%s7226_s5 + $0x278] sm:$0xf]  ;;  %vm3322_vm0 = vcmask 1041409   ;;  %vm3324_vm1 = vcmask 1042434  }
 0x158   :  { %v1481_v34 = vpop.f32.mrf.mxu2  ;;  %v1480_v41 = vadd.f32 %v1479_v51, %v6186_v38  ;;  %2501 = vmatpush.bf16.msrb.mxu2 %v3902_v6  ;;  %v4289_v6 = vld [vmem:[%s7226_s5 + $0x28c] sm:$0xf0]  ;;  %vm3326_vm2 = vcmask 1043459   ;;  %vm3328_vm3 = vcmask 1044484   ;;  %vm3330_vm4 = vcmask 1045509  }
 0x159   :  { %v1115_v48 = vadd.f32 %v4430_v37, %v1114_v11  ;;  %1415 = vmatmul.bf16.gmra.mxu0 %v1172_v46  ;;  %v1482_v61 = vadd.f32 %v1481_v34, %v6186_v38  ;;  %vm3332_vm5 = vcmask 1046534   ;;  %vm3334_vm6 = vcmask 1047559  }
 0x15a   :  { %1513 = vmatmul.bf16.gmra.mxu2 %v1172_v46  ;;  %v1528_v19 = vpop.f32.mrf.mxu3  ;;  %2550 = vmatpush.bf16.msrb.mxu3 %v4094_v25  ;;  %v4066_v25 = vor.u32 %v4289_v6, %v4065_v63 }
 0x15b   :  { %v1119_v40 = vsel %vm1118_vm14, %v4430_v37, %v1115_v48  ;;  %v1529_v49 = vadd.f32 %v1528_v19, %v1480_v41  ;;  %2403 = vmatpush.bf16.msrb.mxu0 %v3898_v36  ;;  %2452 = vmatpush.bf16.msrb.mxu1 %v4090_v43  ;;  %v4280_v36 = vld [vmem:[%s7226_s5 + $0x24c] sm:$0xf] }
 0x15c   :  { %v1432_v59 = vpop.f32.mrf.mxu1  ;;  %v1124_v8 = vsel %vm1121_vm15, %v1123_v0, %v1119_v40  ;;  %v1386_v33 = vpop.f32.mrf.mxu0 }
 0x15d   :  { %v1157_v42 = vmul.f32 %v1124_v8, %v5928_v28  ;;  %v1433_v17 = vadd.f32 %v1432_v59, %v1384_v1  ;;  %v1431_v28 = vadd.f32 %v6131_v26, %v1382_v7  ;;  %v1569_v26 = vmax.f32 %v1529_v49, 0.0  ;;  %v4238_v1 = vld [vmem:[%s7226_s5 + $0xfc] sm:$0xf] }
 0x15e   :  { %v1387_v15 = vadd.f32 %v1386_v33, %v6166_v14 }
 0x15f   :  { %v1173_v53 = vpack.c.bf16 %v1157_v42, %v1155_v20  ;;  %v1570_v44 = vmax.f32 %v1433_v17, 0.0  ;;  %v1568_v22 = vmax.f32 %v1431_v28, 0.0  ;;  %v3878_v42 = vor.u32 %v4238_v1, %v3875_v4  ;;  %2453 = vmatpush.bf16.msrb.mxu1 %v4066_v25  ;;  %v3803_v25 = vld [vmem:[%s7226_s5 + $0x80] sm:$0xf0] }
 0x160   :  { %v4070_v20 = vor.u32 %v4286_v30, %v4067_v24 }
 0x161   :  { %v6188_v39 = vpack.c.bf16 %v1570_v44, %v1568_v22  ;;  %2502 = vmatpush.bf16.msrb.mxu2 %v3878_v42 }
 0x162   :  { %v1530_v31 = vpop.f32.mrf.mxu3  ;;  %v1484_v18 = vpop.f32.mrf.mxu2  ;;  %2551 = vmatpush.bf16.msrb.mxu3 %v4070_v20 }
 0x163   :  { %v1531_v54 = vadd.f32 %v1530_v31, %v1482_v61  ;;  %v1485_v45 = vadd.f32 %v1484_v18, %v6186_v38  ;;  %v3873_v61 = vld [vmem:[%s7226_s5 + $0xf8] sm:$0xf]  ;;  %v3851_v18 = vld [vmem:[%s7226_s5 + $0xe0] sm:$0xf0] }
 0x164   :  { %1464 = vmatmul.bf16.gmra.mxu1 %v1173_v53  ;;  %v1388_v9 = vpop.f32.mrf.mxu0  ;;  %v3874_v2 = vor.u32 %v4241_v12, %v3873_v61 }
 0x165   :  { %1562 = vmatmul.bf16.gmra.mxu3 %v1173_v53  ;;  %v1571_v55 = vmax.f32 %v1531_v54, 0.0  ;;  %v1389_v10 = vadd.f32 %v1388_v9, %v6166_v14  ;;  %v4043_v9 = vld [vmem:[%s7226_s5 + $0x260] sm:$0xf0] }
 0x166   :  { %2404 = vmatpush.bf16.msrb.mxu0 %v3874_v2 }
 0x167   :  { %v6206_v3 = vpack.c.bf16 %v1571_v55, %v1569_v26 }
 0x169   :  { %2214 = vmatmul.bf16.vlgmr.msra.gmra.mxu0 %v6188_v39 }
 0x16a   :  { %2312 = vmatmul.bf16.vlgmr.msra.gmra.mxu2 %v6188_v39  ;;  %v1486_v46 = vpop.f32.mrf.mxu2 }
 0x16b   :  { %v1487_v48 = vadd.f32 %v1486_v46, %v6186_v38  ;;  %v4283_v46 = vld [vmem:[%s7226_s5 + $0x25c] sm:$0xf0] }
 0x16c   :  { %v1435_v37 = vpop.f32.mrf.mxu1 }
 0x16d   :  { %v1436_v27 = vadd.f32 %v1435_v37, %v1387_v15  ;;  %v4232_v37 = vld [vmem:[%s7226_s5 + $0xcc] sm:$0xf] }
 0x16e   :  { %v3854_v23 = vor.u32 %v4232_v37, %v3851_v18  ;;  %v3995_v37 = vld [vmem:[%s7226_s5 + $0x200] sm:$0xf0] }
 0x16f   :  { %v1572_v11 = vmax.f32 %v1436_v27, 0.0 }
 0x170   :  { %2503 = vmatpush.bf16.msrb.mxu2 %v3854_v23 }
 0x172   :  { %v1533_v50 = vpop.f32.mrf.mxu3 }
 0x173   :  { %v1534_v52 = vadd.f32 %v1533_v50, %v1485_v45  ;;  %v4046_v50 = vor.u32 %v4280_v36, %v4043_v9  ;;  %v4226_v45 = vld [vmem:[%s7226_s5 + $0x9c] sm:$0xf] }
 0x174   :  { %2263 = vmatmul.bf16.vlgmr.msra.gmra.mxu1 %v6206_v3  ;;  %v1437_v35 = vpop.f32.mrf.mxu1 }
 0x175   :  { %2361 = vmatmul.bf16.vlgmr.msra.gmra.mxu3 %v6206_v3  ;;  %v1438_v47 = vadd.f32 %v1437_v35, %v1389_v10  ;;  %v1573_v62 = vmax.f32 %v1534_v52, 0.0  ;;  %v3849_v10 = vld [vmem:[%s7226_s5 + $0xc8] sm:$0xf]  ;;  %v4235_v35 = vld [vmem:[%s7226_s5 + $0xdc] sm:$0xf0] }
 0x176   :  { %2552 = vmatpush.bf16.msrb.mxu3 %v4046_v50  ;;  %v3850_v21 = vor.u32 %v4235_v35, %v3849_v10 }
 0x177   :  { %v1574_v32 = vmax.f32 %v1438_v47, 0.0  ;;  %v4041_v47 = vld [vmem:[%s7226_s5 + $0x248] sm:$0xf] }
 0x178   :  { %v4042_v43 = vor.u32 %v4283_v46, %v4041_v47  ;;  %2405 = vmatpush.bf16.msrb.mxu0 %v3850_v21 }
 0x179   :  { %v6225_v60 = vpack.c.bf16 %v1574_v32, %v1572_v11  ;;  %v3827_v32 = vld [vmem:[%s7226_s5 + $0xb0] sm:$0xf0] }
 0x17a   :  { %v1535_v16 = vpop.f32.mrf.mxu3  ;;  %2454 = vmatpush.bf16.msrb.mxu1 %v4042_v43 }
 0x17b   :  { %v1391_v51 = vpop.f32.mrf.mxu0  ;;  %v1536_v0 = vadd.f32 %v1535_v16, %v1487_v48  ;;  %2219 = vmatmul.bf16.gmra.mxu0 %v6225_v60  ;;  %2317 = vmatmul.bf16.gmra.mxu2 %v6225_v60  ;;  %v3830_v48 = vor.u32 %v4226_v45, %v3827_v32  ;;  %v4274_v16 = vld [vmem:[%s7226_s5 + $0x21c] sm:$0xf]  ;;  %v4223_v45 = vld [vmem:[%s7226_s5 + $0x7c] sm:$0xf0]  ;;  %v3993_v32 = vld [vmem:[%s7226_s5 + $0x1e8] sm:$0xf] }
 0x17c   :  { %v1392_v17 = vadd.f32 %v1391_v51, %v6166_v14 }
 0x17d   :  { %v1575_v40 = vmax.f32 %v1536_v0, 0.0  ;;  %v4019_v0 = vld [vmem:[%s7226_s5 + $0x230] sm:$0xf0]  ;;  %2504 = vmatpush.bf16.msrb.mxu2 %v3830_v48 }
 0x17f   :  { %v6230_v19 = vpack.c.bf16 %v1575_v40, %v1573_v62 }
 0x181   :  { %v1489_v8 = vpop.f32.mrf.mxu2 }
 0x182   :  { %v1440_v59 = vpop.f32.mrf.mxu1  ;;  %v1490_v22 = vadd.f32 %v1489_v8, %v6186_v38 }
 0x183   :  { %v1393_v7 = vpop.f32.mrf.mxu0  ;;  %v1441_v56 = vadd.f32 %v1440_v59, %v1392_v17  ;;  %v4022_v59 = vor.u32 %v4274_v16, %v4019_v0  ;;  %v4271_v16 = vld [vmem:[%s7226_s5 + $0x1fc] sm:$0xf0] }
 0x184   :  { %2268 = vmatmul.bf16.gmra.mxu1 %v6230_v19  ;;  %v1394_v13 = vadd.f32 %v1393_v7, %v6166_v14 }
 0x185   :  { %2366 = vmatmul.bf16.gmra.mxu3 %v6230_v19  ;;  %v1576_v34 = vmax.f32 %v1441_v56, 0.0 }
 0x186   :  { %2553 = vmatpush.bf16.msrb.mxu3 %v4022_v59 }
 0x188   :  { %v1538_v58 = vpop.f32.mrf.mxu3 }
 0x189   :  { %v1491_v44 = vpop.f32.mrf.mxu2  ;;  %v1539_v57 = vadd.f32 %v1538_v58, %v1490_v22 }
 0x18a   :  { %v1442_v53 = vpop.f32.mrf.mxu1  ;;  %v1492_v54 = vadd.f32 %v1491_v44, %v6186_v38 }
 0x18b   :  { %v1443_v28 = vadd.f32 %v1442_v53, %v1394_v13  ;;  %v1577_v55 = vmax.f32 %v1539_v57, 0.0  ;;  %v3825_v13 = vld [vmem:[%s7226_s5 + $0x98] sm:$0xf]  ;;  %v4229_v53 = vld [vmem:[%s7226_s5 + $0xac] sm:$0xf0] }
 0x18c   :  { %v3826_v22 = vor.u32 %v4229_v53, %v3825_v13 }
 0x18d   :  { %v1578_v31 = vmax.f32 %v1443_v28, 0.0  ;;  %v4017_v28 = vld [vmem:[%s7226_s5 + $0x218] sm:$0xf] }
 0x18e   :  { %2406 = vmatpush.bf16.msrb.mxu0 %v3826_v22 }
 0x18f   :  { %v6261_v41 = vpack.c.bf16 %v1578_v31, %v1576_v34  ;;  %v4277_v31 = vld [vmem:[%s7226_s5 + $0x22c] sm:$0xf0] }
 0x190   :  { %v1540_v33 = vpop.f32.mrf.mxu3  ;;  %v4018_v12 = vor.u32 %v4277_v31, %v4017_v28 }
 0x191   :  { %v1541_v49 = vadd.f32 %v1540_v33, %v1492_v54  ;;  %2224 = vmatmul.bf16.gmra.mxu0 %v6261_v41  ;;  %2322 = vmatmul.bf16.gmra.mxu2 %v6261_v41  ;;  %v4220_v54 = vld [vmem:[%s7226_s5 + $0x6c] sm:$0xf] }
 0x192   :  { %2455 = vmatpush.bf16.msrb.mxu1 %v4018_v12 }
 0x193   :  { %v1579_v26 = vmax.f32 %v1541_v49, 0.0  ;;  %v3806_v49 = vor.u32 %v4220_v54, %v3803_v25  ;;  %v3777_v25 = vld [vmem:[%s7226_s5 + $0x38] sm:$0xf] }
 0x195   :  { %v6272_v29 = vpack.c.bf16 %v1579_v26, %v1577_v55  ;;  %v4268_v26 = vld [vmem:[%s7226_s5 + $0x1ec] sm:$0xf]  ;;  %2505 = vmatpush.bf16.msrb.mxu2 %v3806_v49  ;;  %v3969_v49 = vld [vmem:[%s7226_s5 + $0x1b8] sm:$0xf] }
 0x196   :  { %v1396_v15 = vpop.f32.mrf.mxu0  ;;  %v3998_v36 = vor.u32 %v4268_v26, %v3995_v37 }
 0x197   :  { %2273 = vmatmul.bf16.gmra.mxu1 %v6272_v29  ;;  %2371 = vmatmul.bf16.gmra.mxu3 %v6272_v29  ;;  %v1397_v51 = vadd.f32 %v1396_v15, %v6166_v14 }
 0x198   :  { %2554 = vmatpush.bf16.msrb.mxu3 %v3998_v36 }
 0x19c   :  { %v1494_v27 = vpop.f32.mrf.mxu2 }
 0x19d   :  { %v1495_v24 = vadd.f32 %v1494_v27, %v6186_v38 }
 0x19e   :  { %v1398_v5 = vpop.f32.mrf.mxu0 }
 0x19f   :  { %v1399_v1 = vadd.f32 %v1398_v5, %v6166_v14 }
 0x1a1   :  { %v1445_v11 = vpop.f32.mrf.mxu1 }
 0x1a2   :  { %v1446_v8 = vadd.f32 %v1445_v11, %v1397_v51  ;;  %v3801_v11 = vld [vmem:[%s7226_s5 + $0x68] sm:$0xf] }
 0x1a3   :  { %v3802_v51 = vor.u32 %v4223_v45, %v3801_v11  ;;  %v3947_v11 = vld [vmem:[%s7226_s5 + $0x1a0] sm:$0xf0]  ;;  %v3753_v45 = vld [vmem:[%s7226_s5 + $0x8] sm:$0xf] }
 0x1a4   :  { %v1496_v52 = vpop.f32.mrf.mxu2  ;;  %v1580_v42 = vmax.f32 %v1446_v8, 0.0 }
 0x1a5   :  { %v1497_v56 = vadd.f32 %v1496_v52, %v6186_v38  ;;  %2407 = vmatpush.bf16.msrb.mxu0 %v3802_v51  ;;  %v4211_v51 = vld [vmem:[%s7226_s5 + $0x1c] sm:$0xf0] }
 0x1a6   :  { %v1401_v40 = vpop.f32.mrf.mxu0 }
 0x1a7   :  { %v1543_v62 = vpop.f32.mrf.mxu3  ;;  %v1402_v55 = vadd.f32 %v1401_v40, %v6166_v14 }
 0x1a8   :  { %v1544_v17 = vadd.f32 %v1543_v62, %v1495_v24  ;;  %v3994_v62 = vor.u32 %v4271_v16, %v3993_v32  ;;  %v3945_v16 = vld [vmem:[%s7226_s5 + $0x188] sm:$0xf] }
 0x1a9   :  { %v1447_v4 = vpop.f32.mrf.mxu1 }
 0x1aa   :  { %v1448_v30 = vadd.f32 %v1447_v4, %v1399_v1  ;;  %v1581_v63 = vmax.f32 %v1544_v17, 0.0  ;;  %2456 = vmatpush.bf16.msrb.mxu1 %v3994_v62  ;;  %v4214_v4 = vld [vmem:[%s7226_s5 + $0x3c] sm:$0xf]  ;;  %v3971_v17 = vld [vmem:[%s7226_s5 + $0x1d0] sm:$0xf0] }
 0x1ac   :  { %v1582_v20 = vmax.f32 %v1448_v30, 0.0  ;;  %v3779_v30 = vld [vmem:[%s7226_s5 + $0x50] sm:$0xf0] }
 0x1ad   :  { %v1499_v7 = vpop.f32.mrf.mxu2  ;;  %v3782_v24 = vor.u32 %v4214_v4, %v3779_v30 }
 0x1ae   :  { %v6309_v58 = vpack.c.bf16 %v1582_v20, %v1580_v42  ;;  %v1403_v34 = vpop.f32.mrf.mxu0  ;;  %v1500_v35 = vadd.f32 %v1499_v7, %v6186_v38  ;;  %v4262_v7 = vld [vmem:[%s7226_s5 + $0x1bc] sm:$0xf] }
 0x1af   :  { %v1545_v44 = vpop.f32.mrf.mxu3  ;;  %v1404_v15 = vadd.f32 %v1403_v34, %v6166_v14  ;;  %2506 = vmatpush.bf16.msrb.mxu2 %v3782_v24  ;;  %v3974_v53 = vor.u32 %v4262_v7, %v3971_v17 }
 0x1b0   :  { %v1546_v61 = vadd.f32 %v1545_v44, %v1497_v56  ;;  %2229 = vmatmul.bf16.gmra.mxu0 %v6309_v58  ;;  %2327 = vmatmul.bf16.gmra.mxu2 %v6309_v58 }
 0x1b1   :  { %v1450_v2 = vpop.f32.mrf.mxu1  ;;  %2555 = vmatpush.bf16.msrb.mxu3 %v3974_v53 }
 0x1b2   :  { %v1583_v6 = vmax.f32 %v1546_v61, 0.0  ;;  %v1451_v9 = vadd.f32 %v1450_v2, %v1402_v55 }
 0x1b4   :  { %v6326_v57 = vpack.c.bf16 %v1583_v6, %v1581_v63  ;;  %v1584_v10 = vmax.f32 %v1451_v9, 0.0 }
 0x1b5   :  { %v1501_v33 = vpop.f32.mrf.mxu2 }
 0x1b6   :  { %2278 = vmatmul.bf16.gmra.mxu1 %v6326_v57  ;;  %2376 = vmatmul.bf16.gmra.mxu3 %v6326_v57  ;;  %v1406_v23 = vpop.f32.mrf.mxu0  ;;  %v1502_v43 = vadd.f32 %v1501_v33, %v6186_v38  ;;  %v4217_v33 = vld [vmem:[%s7226_s5 + $0x4c] sm:$0xf0] }
 0x1b7   :  { %v1548_v18 = vpop.f32.mrf.mxu3  ;;  %v1407_v20 = vadd.f32 %v1406_v23, %v6166_v14  ;;  %v3778_v37 = vor.u32 %v4217_v33, %v3777_v25  ;;  %v4299_v33 = vld [vmem:[%s7226_s5 + $0x2e4] sm:$0xf] }
 0x1b8   :  { %v1549_v21 = vadd.f32 %v1548_v18, %v1500_v35  ;;  %v4265_v18 = vld [vmem:[%s7226_s5 + $0x1cc] sm:$0xf0]  ;;  %v3755_v35 = vld [vmem:[%s7226_s5 + $0x20] sm:$0xf0] }
 0x1b9   :  { %v1452_v50 = vpop.f32.mrf.mxu1  ;;  %v3970_v36 = vor.u32 %v4265_v18, %v3969_v49  ;;  %2408 = vmatpush.bf16.msrb.mxu0 %v3778_v37  ;;  %v4123_v49 = vld [vmem:[%s7226_s5 + $0x2f8] sm:$0xf0] }
 0x1ba   :  { %v1453_v27 = vadd.f32 %v1452_v50, %v1404_v15  ;;  %v1585_v59 = vmax.f32 %v1549_v21, 0.0  ;;  %v4126_v18 = vor.u32 %v4299_v33, %v4123_v49 }
 0x1bb   :  { %2457 = vmatpush.bf16.msrb.mxu1 %v3970_v36 }
 0x1bc   :  { %v1586_v47 = vmax.f32 %v1453_v27, 0.0 }
 0x1bd   :  { %v1504_v5 = vpop.f32.mrf.mxu2 }
 0x1be   :  { %v6345_v46 = vpack.c.bf16 %v1586_v47, %v1584_v10  ;;  %v1408_v48 = vpop.f32.mrf.mxu0  ;;  %v1505_v61 = vadd.f32 %v1504_v5, %v6186_v38  ;;  %v4208_v10 = vld [vmem:[%s7226_s5 + $0xc] sm:$0xf] }
 0x1bf   :  { %v1550_v52 = vpop.f32.mrf.mxu3  ;;  %v1409_v44 = vadd.f32 %v1408_v48, %v6166_v14  ;;  %v3758_v5 = vor.u32 %v4208_v10, %v3755_v35  ;;  %v6461_v10 = vld [vmem:[%s7228_s6] sm:$0x3f] }
 0x1c0   :  { %v1551_v0 = vadd.f32 %v1550_v52, %v1502_v43  ;;  %2234 = vmatmul.bf16.gmra.mxu0 %v6345_v46  ;;  %2332 = vmatmul.bf16.gmra.mxu2 %v6345_v46  ;;  %v4256_v43 = vld [vmem:[%s7226_s5 + $0x18c] sm:$0xf] }
 0x1c1   :  { %v1455_v40 = vpop.f32.mrf.mxu1  ;;  %2507 = vmatpush.bf16.msrb.mxu2 %v3758_v5  ;;  %v3950_v48 = vor.u32 %v4256_v43, %v3947_v11  ;;  %v4302_v5 = vld [vmem:[%s7226_s5 + $0x2f4] sm:$0xf0] }
 0x1c2   :  { %v1587_v8 = vmax.f32 %v1551_v0, 0.0  ;;  %v1456_v28 = vadd.f32 %v1455_v40, %v1407_v20  ;;  %v4259_v0 = vld [vmem:[%s7226_s5 + $0x19c] sm:$0xf0] }
 0x1c3   :  { %2556 = vmatpush.bf16.msrb.mxu3 %v3950_v48 }
 0x1c4   :  { %v6362_v1 = vpack.c.bf16 %v1587_v8, %v1585_v59  ;;  %v1588_v31 = vmax.f32 %v1456_v28, 0.0  ;;  %v3754_v59 = vor.u32 %v4211_v51, %v3753_v45  ;;  %v3946_v8 = vor.u32 %v4259_v0, %v3945_v16 }
 0x1c5   :  { %v1506_v42 = vpop.f32.mrf.mxu2  ;;  %v6471_v45 = vperm.slane %v6461_v10, 0 }
 0x1c6   :  { %2283 = vmatmul.bf16.gmra.mxu1 %v6362_v1  ;;  %2381 = vmatmul.bf16.gmra.mxu3 %v6362_v1  ;;  %v1411_v13 = vpop.f32.mrf.mxu0  ;;  %v1507_v54 = vadd.f32 %v1506_v42, %v6186_v38 }
 0x1c7   :  { %v1412_v21 = vadd.f32 %v1411_v13, %v6166_v14  ;;  %2409 = vmatpush.bf16.msrb.mxu0 %v3754_v59  ;;  %2458 = vmatpush.bf16.msrb.mxu1 %v3946_v8  ;;  %v3907_v59 = vld [vmem:[%s7226_s5 + $0x148] sm:$0xf0] }
 0x1c8   :  { %v1553_v56 = vpop.f32.mrf.mxu3  ;;  %2745 = vmatpush.bf16.msra.mxu3 %v4126_v18 }
 0x1c9   :  { %v1457_v34 = vpop.f32.mrf.mxu1  ;;  %v1554_v63 = vadd.f32 %v1553_v56, %v1505_v61 }
 0x1ca   :  { %v1458_v22 = vadd.f32 %v1457_v34, %v1409_v44  ;;  %v4251_v34 = vld [vmem:[%s7226_s5 + $0x164] sm:$0xf] }
 0x1cb   :  { %v1589_v15 = vmax.f32 %v1554_v63, 0.0 }
 0x1cc   :  { %v1590_v12 = vmax.f32 %v1458_v22, 0.0  ;;  %v3931_v22 = vld [vmem:[%s7226_s5 + $0x178] sm:$0xf0] }
 0x1cd   :  { %v1509_v2 = vpop.f32.mrf.mxu2  ;;  %v3934_v61 = vor.u32 %v4251_v34, %v3931_v22 }
 0x1ce   :  { %v6381_v6 = vpack.c.bf16 %v1590_v12, %v1588_v31  ;;  %v1413_v26 = vpop.f32.mrf.mxu0  ;;  %v1510_v24 = vadd.f32 %v1509_v2, %v6186_v38 }
 0x1cf   :  { %v1414_v40 = vadd.f32 %v1413_v26, %v6166_v14  ;;  %2696 = vmatpush.bf16.msra.mxu2 %v3934_v61 }
 0x1d0   :  { %v1555_v55 = vpop.f32.mrf.mxu3  ;;  %2239 = vmatmul.bf16.gmra.mxu0 %v6381_v6  ;;  %2337 = vmatmul.bf16.gmra.mxu2 %v6381_v6 }
 0x1d1   :  { %v1556_v23 = vadd.f32 %v1555_v55, %v1507_v54  ;;  %v1460_v9 = vpop.f32.mrf.mxu1  ;;  %v3929_v55 = vld [vmem:[%s7226_s5 + $0x160] sm:$0xf] }
 0x1d2   :  { %v1461_v62 = vadd.f32 %v1460_v9, %v1412_v21 }
 0x1d3   :  { %v1591_v50 = vmax.f32 %v1556_v23, 0.0  ;;  %v4254_v23 = vld [vmem:[%s7226_s5 + $0x174] sm:$0xf0] }
 0x1d4   :  { %v1592_v42 = vmax.f32 %v1461_v62, 0.0 }
 0x1d5   :  { %v6398_v27 = vpack.c.bf16 %v1591_v50, %v1589_v15  ;;  %v1511_v47 = vpop.f32.mrf.mxu2  ;;  %v3930_v15 = vor.u32 %v4254_v23, %v3929_v55  ;;  %v4097_v55 = vld [vmem:[%s7226_s5 + $0x2b0] sm:$0xf] }
 0x1d6   :  { %v1416_v52 = vpop.f32.mrf.mxu0  ;;  %v1512_v13 = vadd.f32 %v1511_v47, %v6186_v38  ;;  %v4121_v47 = vld [vmem:[%s7226_s5 + $0x2e0] sm:$0xf] }
 0x1d7   :  { %2288 = vmatmul.bf16.gmra.mxu1 %v6398_v27  ;;  %2386 = vmatmul.bf16.gmra.mxu3 %v6398_v27  ;;  %v1417_v25 = vadd.f32 %v1416_v52, %v6166_v14  ;;  %v4122_v21 = vor.u32 %v4302_v5, %v4121_v47 }
 0x1d8   :  { %v1558_v32 = vpop.f32.mrf.mxu3  ;;  %2598 = vmatpush.bf16.msra.mxu0 %v3930_v15 }
 0x1d9   :  { %v1462_v4 = vpop.f32.mrf.mxu1  ;;  %v1559_v17 = vadd.f32 %v1558_v32, %v1510_v24  ;;  %2647 = vmatpush.bf16.msra.mxu1 %v4122_v21  ;;  %v4239_v21 = vld [vmem:[%s7226_s5 + $0x104] sm:$0xf] }
 0x1da   :  { %v1463_v30 = vadd.f32 %v1462_v4, %v1414_v40  ;;  %v4245_v40 = vld [vmem:[%s7226_s5 + $0x134] sm:$0xf] }
 0x1db   :  { %v1593_v12 = vmax.f32 %v1559_v17, 0.0 }
 0x1dc   :  { %v1594_v20 = vmax.f32 %v1463_v30, 0.0  ;;  %v3910_v30 = vor.u32 %v4245_v40, %v3907_v59  ;;  %v3881_v59 = vld [vmem:[%s7226_s5 + $0x100] sm:$0xf] }
 0x1dd   :  { %v1514_v7 = vpop.f32.mrf.mxu2 }
 0x1de   :  { %v6429_v56 = vpack.c.bf16 %v1594_v20, %v1592_v42  ;;  %v1418_v28 = vpop.f32.mrf.mxu0  ;;  %v1515_v43 = vadd.f32 %v1514_v7, %v6186_v38  ;;  %v6486_v20 = vperm.slane %v6461_v10, 1  ;;  %2697 = vmatpush.bf16.msra.mxu2 %v3910_v30 }
 0x1df   :  { %v1419_v9 = vadd.f32 %v1418_v28, %v6166_v14  ;;  %v3905_v28 = vld [vmem:[%s7226_s5 + $0x130] sm:$0xf] }
 0x1e0   :  { %v1560_v53 = vpop.f32.mrf.mxu3  ;;  %2244 = vmatmul.bf16.gmra.mxu0 %v6429_v56  ;;  %2342 = vmatmul.bf16.gmra.mxu2 %v6429_v56 }
 0x1e1   :  { %v1561_v44 = vadd.f32 %v1560_v53, %v1512_v13  ;;  %v1465_v31 = vpop.f32.mrf.mxu1  ;;  %v4293_v13 = vld [vmem:[%s7226_s5 + $0x2b4] sm:$0xf]  ;;  %v4099_v53 = vld [vmem:[%s7226_s5 + $0x2c8] sm:$0xf0] }
 0x1e2   :  { %v1466_v36 = vadd.f32 %v1465_v31, %v1417_v25  ;;  %v4102_v22 = vor.u32 %v4293_v13, %v4099_v53  ;;  %v4248_v31 = vld [vmem:[%s7226_s5 + $0x144] sm:$0xf0] }
 0x1e3   :  { %v1595_v2 = vmax.f32 %v1561_v44, 0.0 }
 0x1e4   :  { %v1596_v14 = vmax.f32 %v1466_v36, 0.0  ;;  %2746 = vmatpush.bf16.msra.mxu3 %v4102_v22 }
 0x1e5   :  { %v6440_v63 = vpack.c.bf16 %v1595_v2, %v1593_v12  ;;  %v1516_v54 = vpop.f32.mrf.mxu2  ;;  %v3906_v2 = vor.u32 %v4248_v31, %v3905_v28 }
 0x1e6   :  { %v2215_v37 = vpop.f32.mrf.mxu0  ;;  %v1517_v51 = vadd.f32 %v1516_v54, %v6186_v38 }
 0x1e7   :  { %2293 = vmatmul.bf16.gmra.mxu1 %v6440_v63  ;;  %2391 = vmatmul.bf16.gmra.mxu3 %v6440_v63  ;;  %v2216_v62 = vadd.f32 %v2215_v37, %v6471_v45 }
 0x1e8   :  { %v1563_v26 = vpop.f32.mrf.mxu3  ;;  %2599 = vmatpush.bf16.msra.mxu0 %v3906_v2 }
 0x1e9   :  { %v1467_v50 = vpop.f32.mrf.mxu1  ;;  %v1564_v52 = vadd.f32 %v1563_v26, %v1515_v43  ;;  %v4296_v26 = vld [vmem:[%s7226_s5 + $0x2c4] sm:$0xf0] }
 0x1ea   :  { %v1468_v35 = vadd.f32 %v1467_v50, %v1419_v9  ;;  %v4098_v37 = vor.u32 %v4296_v26, %v4097_v55 }
 0x1eb   :  { %v1597_v38 = vmax.f32 %v1564_v52, 0.0 }
 0x1ec   :  { %v1598_v11 = vmax.f32 %v1468_v35, 0.0  ;;  %2648 = vmatpush.bf16.msra.mxu1 %v4098_v37 }
 0x1ed   :  { %v2313_v32 = vpop.f32.mrf.mxu2 }
 0x1ee   :  { %v6473_v48 = vpack.c.bf16 %v1598_v11, %v1596_v14  ;;  %v2217_v4 = vpop.f32.mrf.mxu0  ;;  %v2314_v17 = vadd.f32 %v2313_v32, %v6486_v20  ;;  %v3883_v14 = vld [vmem:[%s7226_s5 + $0x118] sm:$0xf0] }
 0x1ef   :  { %v2218_v61 = vadd.f32 %v2217_v4, %v6471_v45  ;;  %v3886_v43 = vor.u32 %v4239_v21, %v3883_v14  ;;  %v4233_v14 = vld [vmem:[%s7226_s5 + $0xd4] sm:$0xf] }
 0x1f0   :  { %v1565_v16 = vpop.f32.mrf.mxu3  ;;  %2249 = vmatmul.bf16.gmra.mxu0 %v6473_v48  ;;  %2347 = vmatmul.bf16.gmra.mxu2 %v6473_v48 }
 0x1f1   :  { %v1566_v0 = vadd.f32 %v1565_v16, %v1517_v51  ;;  %v2264_v8 = vpop.f32.mrf.mxu1  ;;  %2698 = vmatpush.bf16.msra.mxu2 %v3886_v43  ;;  %v4287_v51 = vld [vmem:[%s7226_s5 + $0x284] sm:$0xf]  ;;  %v4075_v16 = vld [vmem:[%s7226_s5 + $0x298] sm:$0xf0]  ;;  %v3859_v43 = vld [vmem:[%s7226_s5 + $0xe8] sm:$0xf0] }
 0x1f2   :  { %v2265_v24 = vadd.f32 %v2264_v8, %v2216_v62  ;;  %v4078_v40 = vor.u32 %v4287_v51, %v4075_v16  ;;  %v4242_v8 = vld [vmem:[%s7226_s5 + $0x114] sm:$0xf0]  ;;  %v4051_v51 = vld [vmem:[%s7226_s5 + $0x268] sm:$0xf0] }
 0x1f3   :  { %v1599_v42 = vmax.f32 %v1566_v0, 0.0 }
 0x1f4   :  { %2794 = vst [vmem:[%s7229_s7] sm:$0xff] %v2265_v24  ;;  %2747 = vmatpush.bf16.msra.mxu3 %v4078_v40 }
 0x1f5   :  { %v6488_v7 = vpack.c.bf16 %v1599_v42, %v1597_v38  ;;  %v2315_v34 = vpop.f32.mrf.mxu2  ;;  %v3882_v38 = vor.u32 %v4242_v8, %v3881_v59 }
 0x1f6   :  { %v2316_v18 = vadd.f32 %v2315_v34, %v6486_v20 }
 0x1f7   :  { %2298 = vmatmul.bf16.gmra.mxu1 %v6488_v7  ;;  %2396 = vmatmul.bf16.gmra.mxu3 %v6488_v7 }
 0x1f8   :  { %v2362_v44 = vpop.f32.mrf.mxu3  ;;  %v2220_v33 = vpop.f32.mrf.mxu0  ;;  %2600 = vmatpush.bf16.msra.mxu0 %v3882_v38 }
 0x1f9   :  { %v2363_v12 = vadd.f32 %v2362_v44, %v2314_v17  ;;  %v2266_v54 = vpop.f32.mrf.mxu1  ;;  %v2221_v36 = vadd.f32 %v2220_v33, %v6471_v45  ;;  %v4290_v33 = vld [vmem:[%s7226_s5 + $0x294] sm:$0xf0] }
 0x1fa   :  { %v2267_v25 = vadd.f32 %v2266_v54, %v2218_v61 }
 0x1fb   :  { %2795 = vst [vmem:[%s7229_s7 + $0x8] sm:$0xff] %v2363_v12 }
 0x1fc   :  { %2800 = vst [vmem:[%s7229_s7 + $0x30] sm:$0xff] %v2267_v25  ;;  %v2890_v49 = vadd.f32 %v2267_v25, %v2265_v24  ;;  %v4073_v25 = vld [vmem:[%s7226_s5 + $0x280] sm:$0xf] }
 0x1fe   :  { %v2318_v50 = vpop.f32.mrf.mxu2  ;;  %v2891_v35 = vrot.slane %v2890_v49, 4 }
 0x1ff   :  { %v2319_v52 = vadd.f32 %v2318_v50, %v6486_v20 }
 0x200   :  { %v2364_v23 = vpop.f32.mrf.mxu3  ;;  %2410 = vmatmul.bf16.vlgmr.msrb.gmra.mxu0 %v6188_v39  ;;  %2508 = vmatmul.bf16.vlgmr.msrb.gmra.mxu2 %v6188_v39  ;;  %v2222_v11 = vpop.f32.mrf.mxu0  ;;  %v2892_v32 = vadd.f32 %v2891_v35, %v2890_v49  ;;  %v4074_v49 = vor.u32 %v4290_v33, %v4073_v25 }
 0x201   :  { %v2365_v9 = vadd.f32 %v2364_v23, %v2316_v18  ;;  %v2269_v15 = vpop.f32.mrf.mxu1  ;;  %v2223_v4 = vadd.f32 %v2222_v11, %v6471_v45 }
 0x202   :  { %v2270_v5 = vadd.f32 %v2269_v15, %v2221_v36  ;;  %v2893_v24 = vrot.slane %v2892_v32, 2  ;;  %2649 = vmatpush.bf16.msra.mxu1 %v4074_v49 }
 0x203   :  { %2801 = vst [vmem:[%s7229_s7 + $0x38] sm:$0xff] %v2365_v9  ;;  %v2897_v47 = vadd.f32 %v2365_v9, %v2363_v12 }
 0x204   :  { %2806 = vst [vmem:[%s7229_s7 + $0x60] sm:$0xff] %v2270_v5  ;;  %v2894_v44 = vadd.f32 %v2893_v24, %v2892_v32  ;;  %v3862_v32 = vor.u32 %v4233_v14, %v3859_v43 }
 0x205   :  { %v2898_v0 = vrot.slane %v2897_v47, 4 }
 0x206   :  { %v2320_v53 = vpop.f32.mrf.mxu2  ;;  %v2895_v55 = vrot.slane %v2894_v44, 1  ;;  %2699 = vmatpush.bf16.msra.mxu2 %v3862_v32  ;;  %v4284_v32 = vld [vmem:[%s7226_s5 + $0x264] sm:$0xf0] }
 0x207   :  { %2459 = vmatmul.bf16.vlgmr.msrb.gmra.mxu1 %v6206_v3  ;;  %2557 = vmatmul.bf16.vlgmr.msrb.gmra.mxu3 %v6206_v3  ;;  %v2899_v13 = vadd.f32 %v2898_v0, %v2897_v47  ;;  %v2321_v22 = vadd.f32 %v2320_v53, %v6486_v20 }
 0x208   :  { %v2367_v62 = vpop.f32.mrf.mxu3  ;;  %v2896_v35 = vadd.f32 %v2895_v55, %v2894_v44  ;;  %v4236_v44 = vld [vmem:[%s7226_s5 + $0xe4] sm:$0xf0] }
 0x209   :  { %v2368_v30 = vadd.f32 %v2367_v62, %v2319_v52  ;;  %v2271_v42 = vpop.f32.mrf.mxu1  ;;  %v2900_v31 = vrot.slane %v2899_v13, 2  ;;  %v4281_v52 = vld [vmem:[%s7226_s5 + $0x254] sm:$0xf] }
 0x20a   :  { %v2272_v17 = vadd.f32 %v2271_v42, %v2223_v4  ;;  %v4054_v62 = vor.u32 %v4281_v52, %v4051_v51  ;;  %v3226_v59 = vmul.f32 0.0625, %v2896_v35 }
 0x20b   :  { %2807 = vst [vmem:[%s7229_s7 + $0x68] sm:$0xff] %v2368_v30  ;;  %v2901_v18 = vadd.f32 %v2900_v31, %v2899_v13 }
 0x20c   :  { %2812 = vst [vmem:[%s7229_s7 + $0x90] sm:$0xff] %v2272_v17  ;;  %v2932_v28 = vadd.f32 %v2272_v17, %v2270_v5  ;;  %2748 = vmatpush.bf16.msra.mxu3 %v4054_v62 }
 0x20d   :  { %v2902_v11 = vrot.slane %v2901_v18, 1 }
 0x20e   :  { %v2933_v34 = vrot.slane %v2932_v28, 4  ;;  %v2225_v61 = vpop.f32.mrf.mxu0 }
 0x20f   :  { %v2226_v36 = vadd.f32 %v2225_v61, %v6471_v45  ;;  %v2903_v38 = vadd.f32 %v2902_v11, %v2901_v18  ;;  %v4049_v11 = vld [vmem:[%s7226_s5 + $0x250] sm:$0xf] }
 0x210   :  { %v2369_v12 = vpop.f32.mrf.mxu3  ;;  %2415 = vmatmul.bf16.gmra.mxu0 %v6225_v60  ;;  %2513 = vmatmul.bf16.gmra.mxu2 %v6225_v60  ;;  %v2934_v2 = vadd.f32 %v2933_v34, %v2932_v28  ;;  %v3857_v28 = vld [vmem:[%s7226_s5 + $0xd0] sm:$0xf]  ;;  %v4050_v52 = vor.u32 %v4284_v32, %v4049_v11  ;;  %v4221_v11 = vld [vmem:[%s7226_s5 + $0x74] sm:$0xf]  ;;  %v3811_v32 = vld [vmem:[%s7226_s5 + $0x88] sm:$0xf0] }
 0x211   :  { %v2370_v54 = vadd.f32 %v2369_v12, %v2321_v22  ;;  %v3858_v22 = vor.u32 %v4236_v44, %v3857_v28 }
 0x212   :  { %v2935_v26 = vrot.slane %v2934_v2, 2  ;;  %2650 = vmatpush.bf16.msra.mxu1 %v4050_v52 }
 0x213   :  { %2813 = vst [vmem:[%s7229_s7 + $0x98] sm:$0xff] %v2370_v54  ;;  %v2939_v37 = vadd.f32 %v2370_v54, %v2368_v30  ;;  %2601 = vmatpush.bf16.msra.mxu0 %v3858_v22 }
 0x214   :  { %v2936_v23 = vadd.f32 %v2935_v26, %v2934_v2  ;;  %v2274_v15 = vpop.f32.mrf.mxu1  ;;  %v2323_v50 = vpop.f32.mrf.mxu2  ;;  %v3227_v2 = vmul.f32 0.0625, %v2903_v38  ;;  %v3835_v38 = vld [vmem:[%s7226_s5 + $0xb8] sm:$0xf0] }
 0x215   :  { %v2940_v9 = vrot.slane %v2939_v37, 4  ;;  %v2275_v21 = vadd.f32 %v2274_v15, %v2226_v36  ;;  %v2324_v30 = vadd.f32 %v2323_v50, %v6486_v20 }
 0x216   :  { %v2937_v47 = vrot.slane %v2936_v23, 1  ;;  %v2227_v40 = vpop.f32.mrf.mxu0 }
 0x217   :  { %2464 = vmatmul.bf16.gmra.mxu1 %v6230_v19  ;;  %2562 = vmatmul.bf16.gmra.mxu3 %v6230_v19  ;;  %v2941_v5 = vadd.f32 %v2940_v9, %v2939_v37  ;;  %2818 = vst [vmem:[%s7229_s7 + $0xc0] sm:$0xff] %v2275_v21  ;;  %v2228_v13 = vadd.f32 %v2227_v40, %v6471_v45 }
 0x218   :  { %v2938_v16 = vadd.f32 %v2937_v47, %v2936_v23 }
 0x219   :  { %v2942_v0 = vrot.slane %v2941_v5, 2 }
 0x21a   :  { %v3232_v8 = vmul.f32 0.0625, %v2938_v16  ;;  %v2372_v42 = vpop.f32.mrf.mxu3 }
 0x21b   :  { %v2943_v4 = vadd.f32 %v2942_v0, %v2941_v5  ;;  %v2373_v53 = vadd.f32 %v2372_v42, %v2324_v30  ;;  %v4227_v30 = vld [vmem:[%s7226_s5 + $0xa4] sm:$0xf] }
 0x21c   :  { %v3323_v24 = vsel %vm3322_vm0, %v3232_v8, %v3226_v59  ;;  %v2276_v34 = vpop.f32.mrf.mxu1  ;;  %v2325_v12 = vpop.f32.mrf.mxu2 }
 0x21d   :  { %v2944_v17 = vrot.slane %v2943_v4, 1  ;;  %2819 = vst [vmem:[%s7229_s7 + $0xc8] sm:$0xff] %v2373_v53  ;;  %v2277_v61 = vadd.f32 %v2276_v34, %v2228_v13  ;;  %v2326_v55 = vadd.f32 %v2325_v12, %v6486_v20  ;;  %v4027_v13 = vld [vmem:[%s7226_s5 + $0x238] sm:$0xf0]  ;;  %v4230_v34 = vld [vmem:[%s7226_s5 + $0xb4] sm:$0xf0] }
 0x21f   :  { %v2945_v31 = vadd.f32 %v2944_v17, %v2943_v4  ;;  %2824 = vst [vmem:[%s7229_s7 + $0xf0] sm:$0xff] %v2277_v61  ;;  %v2974_v25 = vadd.f32 %v2277_v61, %v2275_v21  ;;  %v4275_v17 = vld [vmem:[%s7226_s5 + $0x224] sm:$0xf] }
 0x220   :  { %2420 = vmatmul.bf16.gmra.mxu0 %v6261_v41  ;;  %2518 = vmatmul.bf16.gmra.mxu2 %v6261_v41  ;;  %v4030_v44 = vor.u32 %v4275_v17, %v4027_v13 }
 0x221   :  { %v3233_v54 = vmul.f32 0.0625, %v2945_v31  ;;  %v2975_v49 = vrot.slane %v2974_v25, 4 }
 0x222   :  { %v2374_v26 = vpop.f32.mrf.mxu3  ;;  %2749 = vmatpush.bf16.msra.mxu3 %v4030_v44 }
 0x223   :  { %v3336_v33 = vsel %vm3322_vm0, %v3233_v54, %v3227_v2  ;;  %v2976_v37 = vadd.f32 %v2975_v49, %v2974_v25  ;;  %v2375_v18 = vadd.f32 %v2374_v26, %v2326_v55  ;;  %v4025_v26 = vld [vmem:[%s7226_s5 + $0x220] sm:$0xf] }
 0x225   :  { %v2977_v23 = vrot.slane %v2976_v37, 2  ;;  %2825 = vst [vmem:[%s7229_s7 + $0xf8] sm:$0xff] %v2375_v18  ;;  %v2981_v36 = vadd.f32 %v2375_v18, %v2373_v53  ;;  %v3833_v53 = vld [vmem:[%s7226_s5 + $0xa0] sm:$0xf] }
 0x226   :  { %v3834_v22 = vor.u32 %v4230_v34, %v3833_v53 }
 0x227   :  { %2469 = vmatmul.bf16.gmra.mxu1 %v6272_v29  ;;  %2567 = vmatmul.bf16.gmra.mxu3 %v6272_v29  ;;  %v2978_v9 = vadd.f32 %v2977_v23, %v2976_v37  ;;  %v2982_v15 = vrot.slane %v2981_v36, 4  ;;  %v4278_v37 = vld [vmem:[%s7226_s5 + $0x234] sm:$0xf0] }
 0x228   :  { %2602 = vmatpush.bf16.msra.mxu0 %v3834_v22  ;;  %v4026_v18 = vor.u32 %v4278_v37, %v4025_v26  ;;  %v4272_v26 = vld [vmem:[%s7226_s5 + $0x204] sm:$0xf0] }
 0x229   :  { %v2979_v50 = vrot.slane %v2978_v9, 1  ;;  %v2983_v35 = vadd.f32 %v2982_v15, %v2981_v36 }
 0x22a   :  { %2651 = vmatpush.bf16.msra.mxu1 %v4026_v18 }
 0x22b   :  { %v2980_v47 = vadd.f32 %v2979_v50, %v2978_v9  ;;  %v2984_v5 = vrot.slane %v2983_v35, 2 }
 0x22d   :  { %v2230_v21 = vpop.f32.mrf.mxu0  ;;  %v3238_v14 = vmul.f32 0.0625, %v2980_v47  ;;  %v2985_v43 = vadd.f32 %v2984_v5, %v2983_v35 }
 0x22e   :  { %v2231_v0 = vadd.f32 %v2230_v21, %v6471_v45 }
 0x22f   :  { %v6620_v51 = vsel %vm3324_vm1, %v3238_v14, %v3323_v24  ;;  %v2986_v16 = vrot.slane %v2985_v43, 1  ;;  %v3838_v24 = vor.u32 %v4227_v30, %v3835_v38 }
 0x230   :  { %2425 = vmatmul.bf16.gmra.mxu0 %v6309_v58  ;;  %2523 = vmatmul.bf16.gmra.mxu2 %v6309_v58 }
 0x231   :  { %v2987_v62 = vadd.f32 %v2986_v16, %v2985_v43  ;;  %2700 = vmatpush.bf16.msra.mxu2 %v3838_v24  ;;  %v3814_v16 = vor.u32 %v4221_v11, %v3811_v32 }
 0x233   :  { %v2279_v40 = vpop.f32.mrf.mxu1  ;;  %v2328_v59 = vpop.f32.mrf.mxu2  ;;  %v3239_v8 = vmul.f32 0.0625, %v2987_v62  ;;  %v4003_v62 = vld [vmem:[%s7226_s5 + $0x208] sm:$0xf0] }
 0x234   :  { %v2280_v4 = vadd.f32 %v2279_v40, %v2231_v0  ;;  %v2329_v31 = vadd.f32 %v2328_v59, %v6486_v20  ;;  %v4269_v0 = vld [vmem:[%s7226_s5 + $0x1f4] sm:$0xf]  ;;  %v3809_v40 = vld [vmem:[%s7226_s5 + $0x70] sm:$0xf] }
 0x235   :  { %v2232_v42 = vpop.f32.mrf.mxu0  ;;  %v6641_v28 = vsel %vm3324_vm1, %v3239_v8, %v3336_v33  ;;  %2701 = vmatpush.bf16.msra.mxu2 %v3814_v16  ;;  %v4006_v30 = vor.u32 %v4269_v0, %v4003_v62  ;;  %v3785_v16 = vld [vmem:[%s7226_s5 + $0x40] sm:$0xf]  ;;  %v4218_v0 = vld [vmem:[%s7226_s5 + $0x54] sm:$0xf0] }
 0x236   :  { %2830 = vst [vmem:[%s7229_s7 + $0x120] sm:$0xff] %v2280_v4  ;;  %v2233_v12 = vadd.f32 %v2232_v42, %v6471_v45 }
 0x237   :  { %2474 = vmatmul.bf16.gmra.mxu1 %v6326_v57  ;;  %2572 = vmatmul.bf16.gmra.mxu3 %v6326_v57 }
 0x238   :  { %2750 = vmatpush.bf16.msra.mxu3 %v4006_v30 }
 0x239   :  { %v2377_v61 = vpop.f32.mrf.mxu3 }
 0x23a   :  { %v2378_v2 = vadd.f32 %v2377_v61, %v2329_v31 }
 0x23b   :  { %v2281_v54 = vpop.f32.mrf.mxu1  ;;  %v2330_v25 = vpop.f32.mrf.mxu2 }
 0x23c   :  { %2831 = vst [vmem:[%s7229_s7 + $0x128] sm:$0xff] %v2378_v2  ;;  %v2282_v33 = vadd.f32 %v2281_v54, %v2233_v12  ;;  %v2331_v36 = vadd.f32 %v2330_v25, %v6486_v20 }
 0x23d   :  { %v2235_v49 = vpop.f32.mrf.mxu0 }
 0x23e   :  { %2836 = vst [vmem:[%s7229_s7 + $0x150] sm:$0xff] %v2282_v33  ;;  %v3016_v55 = vadd.f32 %v2282_v33, %v2280_v4  ;;  %v2236_v50 = vadd.f32 %v2235_v49, %v6471_v45  ;;  %v4224_v4 = vld [vmem:[%s7226_s5 + $0x84] sm:$0xf0] }
 0x23f   :  { %v3810_v38 = vor.u32 %v4224_v4, %v3809_v40  ;;  %v3786_v40 = vor.u32 %v4218_v0, %v3785_v16 }
 0x240   :  { %v3017_v23 = vrot.slane %v3016_v55, 4  ;;  %2430 = vmatmul.bf16.gmra.mxu0 %v6345_v46  ;;  %2528 = vmatmul.bf16.gmra.mxu2 %v6345_v46 }
 0x241   :  { %v2379_v9 = vpop.f32.mrf.mxu3  ;;  %2603 = vmatpush.bf16.msra.mxu0 %v3810_v38 }
 0x242   :  { %v3018_v15 = vadd.f32 %v3017_v23, %v3016_v55  ;;  %v2380_v35 = vadd.f32 %v2379_v9, %v2331_v36  ;;  %v4001_v55 = vld [vmem:[%s7226_s5 + $0x1f0] sm:$0xf] }
 0x243   :  { %v2284_v47 = vpop.f32.mrf.mxu1  ;;  %v2333_v5 = vpop.f32.mrf.mxu2  ;;  %v4002_v37 = vor.u32 %v4272_v26, %v4001_v55  ;;  %v4209_v55 = vld [vmem:[%s7226_s5 + $0x14] sm:$0xf]  ;;  %v3763_v26 = vld [vmem:[%s7226_s5 + $0x28] sm:$0xf0] }
 0x244   :  { %v3019_v21 = vrot.slane %v3018_v15, 2  ;;  %2837 = vst [vmem:[%s7229_s7 + $0x158] sm:$0xff] %v2380_v35  ;;  %v3023_v14 = vadd.f32 %v2380_v35, %v2378_v2  ;;  %v6672_v43 = vadd.f32 %v2284_v47, %v2236_v50  ;;  %v2334_v17 = vadd.f32 %v2333_v5, %v6486_v20 }
 0x245   :  { %v2237_v52 = vpop.f32.mrf.mxu0  ;;  %2652 = vmatpush.bf16.msra.mxu1 %v4002_v37  ;;  %2604 = vmatpush.bf16.msra.mxu0 %v3786_v40  ;;  %v3953_v40 = vld [vmem:[%s7226_s5 + $0x190] sm:$0xf] }
 0x246   :  { %v3020_v59 = vadd.f32 %v3019_v21, %v3018_v15  ;;  %v3024_v8 = vrot.slane %v3023_v14, 4  ;;  %2842 = vst [vmem:[%s7229_s7 + $0x180] sm:$0xff] %v6672_v43  ;;  %v2238_v34 = vadd.f32 %v2237_v52, %v6471_v45  ;;  %v4215_v21 = vld [vmem:[%s7226_s5 + $0x44] sm:$0xf]  ;;  %v3979_v52 = vld [vmem:[%s7226_s5 + $0x1d8] sm:$0xf0] }
 0x247   :  { %2479 = vmatmul.bf16.gmra.mxu1 %v6362_v1  ;;  %2577 = vmatmul.bf16.gmra.mxu3 %v6362_v1 }
 0x248   :  { %v3021_v42 = vrot.slane %v3020_v59, 1  ;;  %v3025_v24 = vadd.f32 %v3024_v8, %v3023_v14  ;;  %v3787_v14 = vld [vmem:[%s7226_s5 + $0x58] sm:$0xf0] }
 0x249   :  { %v2382_v13 = vpop.f32.mrf.mxu3  ;;  %v3790_v32 = vor.u32 %v4215_v21, %v3787_v14 }
 0x24a   :  { %v3022_v53 = vadd.f32 %v3021_v42, %v3020_v59  ;;  %v3026_v44 = vrot.slane %v3025_v24, 2  ;;  %v6700_v22 = vadd.f32 %v2382_v13, %v2334_v17  ;;  %v3977_v13 = vld [vmem:[%s7226_s5 + $0x1c0] sm:$0xf] }
 0x24b   :  { %v2286_v31 = vpop.f32.mrf.mxu1  ;;  %v2335_v61 = vpop.f32.mrf.mxu2  ;;  %2702 = vmatpush.bf16.msra.mxu2 %v3790_v32 }
 0x24c   :  { %v3244_v12 = vmul.f32 0.0625, %v3022_v53  ;;  %v3027_v2 = vadd.f32 %v3026_v44, %v3025_v24  ;;  %2843 = vst [vmem:[%s7229_s7 + $0x188] sm:$0xff] %v6700_v22  ;;  %v6706_v54 = vadd.f32 %v2286_v31, %v2238_v34  ;;  %v2336_v23 = vadd.f32 %v2335_v61, %v6486_v20  ;;  %v4266_v53 = vld [vmem:[%s7226_s5 + $0x1d4] sm:$0xf0] }
 0x24d   :  { %v2240_v25 = vpop.f32.mrf.mxu0  ;;  %v3978_v44 = vor.u32 %v4266_v53, %v3977_v13 }
 0x24e   :  { %v6710_v33 = vsel %vm3326_vm2, %v3244_v12, %v6620_v51  ;;  %v3028_v49 = vrot.slane %v3027_v2, 1  ;;  %2848 = vst [vmem:[%s7229_s7 + $0x1b0] sm:$0xff] %v6706_v54  ;;  %v2241_v9 = vadd.f32 %v2240_v25, %v6471_v45 }
 0x24f   :  { %2653 = vmatpush.bf16.msra.mxu1 %v3978_v44 }
 0x250   :  { %v3029_v18 = vadd.f32 %v3028_v49, %v3027_v2  ;;  %2435 = vmatmul.bf16.gmra.mxu0 %v6381_v6  ;;  %2533 = vmatmul.bf16.gmra.mxu2 %v6381_v6 }
 0x251   :  { %v2384_v51 = vpop.f32.mrf.mxu3 }
 0x252   :  { %v3245_v36 = vmul.f32 0.0625, %v3029_v18  ;;  %v6726_v15 = vadd.f32 %v2384_v51, %v2336_v23  ;;  %v3766_v18 = vor.u32 %v4209_v55, %v3763_v26  ;;  %v4257_v23 = vld [vmem:[%s7226_s5 + $0x194] sm:$0xf]  ;;  %v3955_v51 = vld [vmem:[%s7226_s5 + $0x1a8] sm:$0xf0] }
 0x253   :  { %v2338_v35 = vpop.f32.mrf.mxu2 }
 0x254   :  { %v2289_v50 = vpop.f32.mrf.mxu1  ;;  %v6730_v47 = vsel %vm3326_vm2, %v3245_v36, %v6641_v28  ;;  %2849 = vst [vmem:[%s7229_s7 + $0x1b8] sm:$0xff] %v6726_v15  ;;  %v4263_v28 = vld [vmem:[%s7226_s5 + $0x1c4] sm:$0xf]  ;;  %v2339_v59 = vadd.f32 %v2338_v35, %v6486_v20  ;;  %v3761_v36 = vld [vmem:[%s7226_s5 + $0x10] sm:$0xf]  ;;  %2703 = vmatpush.bf16.msra.mxu2 %v3766_v18 }
 0x255   :  { %v2290_v5 = vadd.f32 %v2289_v50, %v2241_v9  ;;  %v2242_v11 = vpop.f32.mrf.mxu0  ;;  %v3982_v62 = vor.u32 %v4263_v28, %v3979_v52  ;;  %v4212_v9 = vld [vmem:[%s7226_s5 + $0x24] sm:$0xf0]  ;;  %v3958_v50 = vor.u32 %v4257_v23, %v3955_v51  ;;  %v3058_v28 = vadd.f32 %v6706_v54, %v6672_v43 }
 0x256   :  { %v2243_v4 = vadd.f32 %v2242_v11, %v6471_v45  ;;  %v3762_v35 = vor.u32 %v4212_v9, %v3761_v36 }
 0x257   :  { %2854 = vst [vmem:[%s7229_s7 + $0x1e0] sm:$0xff] %v2290_v5  ;;  %2484 = vmatmul.bf16.gmra.mxu1 %v6398_v27  ;;  %2582 = vmatmul.bf16.gmra.mxu3 %v6398_v27  ;;  %v3059_v54 = vrot.slane %v3058_v28, 4 }
 0x258   :  { %2751 = vmatpush.bf16.msra.mxu3 %v3982_v62  ;;  %2605 = vmatpush.bf16.msra.mxu0 %v3762_v35 }
 0x25a   :  { %v2387_v8 = vpop.f32.mrf.mxu3 }
 0x25b   :  { %v2388_v30 = vadd.f32 %v2387_v8, %v2339_v59  ;;  %v2340_v42 = vpop.f32.mrf.mxu2  ;;  %v4260_v59 = vld [vmem:[%s7226_s5 + $0x1a4] sm:$0xf0] }
 0x25c   :  { %v2291_v38 = vpop.f32.mrf.mxu1  ;;  %v2341_v34 = vadd.f32 %v2340_v42, %v6486_v20  ;;  %2752 = vmatpush.bf16.msra.mxu3 %v3958_v50  ;;  %v3065_v42 = vadd.f32 %v6726_v15, %v6700_v22 }
 0x25d   :  { %2855 = vst [vmem:[%s7229_s7 + $0x1e8] sm:$0xff] %v2388_v30  ;;  %v2292_v24 = vadd.f32 %v2291_v38, %v2243_v4  ;;  %v2245_v17 = vpop.f32.mrf.mxu0  ;;  %v3954_v4 = vor.u32 %v4260_v59, %v3953_v40  ;;  %v6842_v59 = vperm.slane %v6461_v10, 2 }
 0x25e   :  { %v2246_v61 = vadd.f32 %v2245_v17, %v6471_v45  ;;  %v3066_v55 = vrot.slane %v3065_v42, 4 }
 0x25f   :  { %2860 = vst [vmem:[%s7229_s7 + $0x210] sm:$0xff] %v2292_v24  ;;  %v3100_v52 = vadd.f32 %v2292_v24, %v2290_v5  ;;  %2654 = vmatpush.bf16.msra.mxu1 %v3954_v4 }
 0x260   :  { %2440 = vmatmul.bf16.gmra.mxu0 %v6429_v56  ;;  %2538 = vmatmul.bf16.gmra.mxu2 %v6429_v56  ;;  %v3067_v23 = vadd.f32 %v3066_v55, %v3065_v42  ;;  %v6852_v55 = vperm.slane %v6461_v10, 3 }
 0x261   :  { %v3101_v5 = vrot.slane %v3100_v52, 4 }
 0x262   :  { %v2389_v31 = vpop.f32.mrf.mxu3 }
 0x263   :  { %v2390_v12 = vadd.f32 %v2389_v31, %v2341_v34  ;;  %v2343_v25 = vpop.f32.mrf.mxu2  ;;  %v3060_v34 = vadd.f32 %v3059_v54, %v3058_v28  ;;  %v3102_v31 = vadd.f32 %v3101_v5, %v3100_v52 }
 0x264   :  { %v2294_v2 = vpop.f32.mrf.mxu1  ;;  %v2344_v21 = vadd.f32 %v2343_v25, %v6486_v20 }
 0x265   :  { %2861 = vst [vmem:[%s7229_s7 + $0x218] sm:$0xff] %v2390_v12  ;;  %v2295_v49 = vadd.f32 %v2294_v2, %v2246_v61  ;;  %v2247_v37 = vpop.f32.mrf.mxu0  ;;  %v3107_v24 = vadd.f32 %v2390_v12, %v2388_v30  ;;  %v3061_v15 = vrot.slane %v3060_v34, 2  ;;  %v3103_v30 = vrot.slane %v3102_v31, 2 }
 0x266   :  { %v2248_v11 = vadd.f32 %v2247_v37, %v6471_v45 }
 0x267   :  { %2866 = vst [vmem:[%s7229_s7 + $0x240] sm:$0xff] %v2295_v49  ;;  %2489 = vmatmul.bf16.gmra.mxu1 %v6440_v63  ;;  %2587 = vmatmul.bf16.gmra.mxu3 %v6440_v63  ;;  %v3108_v26 = vrot.slane %v3107_v24, 4 }
 0x269   :  { %v3109_v51 = vadd.f32 %v3108_v26, %v3107_v24 }
 0x26a   :  { %v2392_v14 = vpop.f32.mrf.mxu3 }
 0x26b   :  { %v2393_v32 = vadd.f32 %v2392_v14, %v2344_v21  ;;  %v2345_v0 = vpop.f32.mrf.mxu2  ;;  %v3062_v21 = vadd.f32 %v3061_v15, %v3060_v34  ;;  %v3104_v14 = vadd.f32 %v3103_v30, %v3102_v31 }
 0x26c   :  { %v2296_v16 = vpop.f32.mrf.mxu1  ;;  %v2346_v38 = vadd.f32 %v2345_v0, %v6486_v20  ;;  %v3110_v0 = vrot.slane %v3109_v51, 2 }
 0x26d   :  { %2867 = vst [vmem:[%s7229_s7 + $0x248] sm:$0xff] %v2393_v32  ;;  %v2297_v62 = vadd.f32 %v2296_v16, %v2248_v11  ;;  %v2250_v8 = vpop.f32.mrf.mxu0  ;;  %v3068_v16 = vrot.slane %v3067_v23, 2  ;;  %v3105_v4 = vrot.slane %v3104_v14, 1 }
 0x26e   :  { %v2251_v53 = vadd.f32 %v2250_v8, %v6471_v45  ;;  %v3063_v8 = vrot.slane %v3062_v21, 1  ;;  %v3111_v42 = vadd.f32 %v3110_v0, %v3109_v51 }
 0x26f   :  { %2872 = vst [vmem:[%s7229_s7 + $0x270] sm:$0xff] %v2297_v62  ;;  %v3142_v43 = vadd.f32 %v2297_v62, %v2295_v49  ;;  %v3106_v31 = vadd.f32 %v3105_v4, %v3104_v14 }
 0x270   :  { %2445 = vmatmul.bf16.gmra.mxu0 %v6473_v48  ;;  %2543 = vmatmul.bf16.gmra.mxu2 %v6473_v48  ;;  %v3064_v34 = vadd.f32 %v3063_v8, %v3062_v21 }
 0x271   :  { %v3143_v17 = vrot.slane %v3142_v43, 4  ;;  %v3256_v10 = vmul.f32 0.0625, %v3106_v31 }
 0x272   :  { %v2394_v13 = vpop.f32.mrf.mxu3 }
 0x273   :  { %v2395_v44 = vadd.f32 %v2394_v13, %v2346_v38  ;;  %v2348_v2 = vpop.f32.mrf.mxu2  ;;  %v3144_v37 = vadd.f32 %v3143_v17, %v3142_v43  ;;  %v3069_v38 = vadd.f32 %v3068_v16, %v3067_v23 }
 0x274   :  { %v2299_v61 = vpop.f32.mrf.mxu1  ;;  %v2349_v18 = vadd.f32 %v2348_v2, %v6486_v20 }
 0x275   :  { %2873 = vst [vmem:[%s7229_s7 + $0x278] sm:$0xff] %v2395_v44  ;;  %v3149_v25 = vadd.f32 %v2395_v44, %v2393_v32  ;;  %v2300_v49 = vadd.f32 %v2299_v61, %v2251_v53  ;;  %v2252_v22 = vpop.f32.mrf.mxu0  ;;  %v3145_v36 = vrot.slane %v3144_v37, 2  ;;  %v3070_v26 = vrot.slane %v3069_v38, 1 }
 0x276   :  { %v2253_v50 = vadd.f32 %v2252_v22, %v6471_v45 }
 0x277   :  { %2878 = vst [vmem:[%s7229_s7 + $0x2a0] sm:$0xff] %v2300_v49  ;;  %2494 = vmatmul.bf16.gmra.mxu1 %v6488_v7  ;;  %2592 = vmatmul.bf16.gmra.mxu3 %v6488_v7  ;;  %v3150_v12 = vrot.slane %v3149_v25, 4  ;;  %v3146_v62 = vadd.f32 %v3145_v36, %v3144_v37  ;;  %v3112_v37 = vrot.slane %v3111_v42, 1 }
 0x279   :  { %v3151_v11 = vadd.f32 %v3150_v12, %v3149_v25  ;;  %v3147_v24 = vrot.slane %v3146_v62, 1 }
 0x27a   :  { %v2397_v9 = vpop.f32.mrf.mxu3 }
 0x27b   :  { %v2398_v35 = vadd.f32 %v2397_v9, %v2349_v18  ;;  %v2350_v28 = vpop.f32.mrf.mxu2  ;;  %v3152_v43 = vrot.slane %v3151_v11, 2  ;;  %v3148_v22 = vadd.f32 %v3147_v24, %v3146_v62  ;;  %v3250_v18 = vmul.f32 0.0625, %v3064_v34 }
 0x27c   :  { %v2301_v32 = vpop.f32.mrf.mxu1  ;;  %v2351_v5 = vadd.f32 %v2350_v28, %v6486_v20 }
 0x27d   :  { %2879 = vst [vmem:[%s7229_s7 + $0x2a8] sm:$0xff] %v2398_v35  ;;  %v2302_v52 = vadd.f32 %v2301_v32, %v2253_v50  ;;  %v2411_v40 = vpop.f32.mrf.mxu0  ;;  %v3153_v61 = vadd.f32 %v3152_v43, %v3151_v11  ;;  %v3071_v50 = vadd.f32 %v3070_v26, %v3069_v38  ;;  %v3262_v21 = vmul.f32 0.0625, %v3148_v22 }
 0x27e   :  { %v2412_v53 = vadd.f32 %v2411_v40, %v6842_v59 }
 0x27f   :  { %2884 = vst [vmem:[%s7229_s7 + $0x2d0] sm:$0xff] %v2302_v52  ;;  %v3184_v45 = vadd.f32 %v2302_v52, %v2300_v49  ;;  %v3154_v23 = vrot.slane %v3153_v61, 1  ;;  %v3251_v43 = vmul.f32 0.0625, %v3071_v50 }
 0x280   :  { %2606 = vmatmul.bf16.vlgmr.msra.gmra.mxu0 %v6188_v39  ;;  %2704 = vmatmul.bf16.vlgmr.msra.gmra.mxu2 %v6188_v39 }
 0x281   :  { %v3185_v54 = vrot.slane %v3184_v45, 4  ;;  %v3155_v16 = vadd.f32 %v3154_v23, %v3153_v61 }
 0x282   :  { %v2399_v17 = vpop.f32.mrf.mxu3 }
 0x283   :  { %v3186_v13 = vadd.f32 %v3185_v54, %v3184_v45  ;;  %v2400_v44 = vadd.f32 %v2399_v17, %v2351_v5  ;;  %v2509_v25 = vpop.f32.mrf.mxu2  ;;  %v3263_v17 = vmul.f32 0.0625, %v3155_v16 }
 0x284   :  { %v2460_v2 = vpop.f32.mrf.mxu1  ;;  %v2510_v9 = vadd.f32 %v2509_v25, %v6852_v55 }
 0x285   :  { %v3187_v49 = vrot.slane %v3186_v13, 2  ;;  %2885 = vst [vmem:[%s7229_s7 + $0x2d8] sm:$0xff] %v2400_v44  ;;  %v3191_v20 = vadd.f32 %v2400_v44, %v2398_v35  ;;  %v2461_v39 = vadd.f32 %v2460_v2, %v2412_v53  ;;  %v2413_v15 = vpop.f32.mrf.mxu0  ;;  %v3113_v35 = vadd.f32 %v3112_v37, %v3111_v42 }
 0x286   :  { %v2414_v28 = vadd.f32 %v2413_v15, %v6842_v59  ;;  %v3339_v44 = vsel %vm3328_vm3, %v3251_v43, %v6730_v47 }
 0x287   :  { %v3188_v30 = vadd.f32 %v3187_v49, %v3186_v13  ;;  %v3192_v12 = vrot.slane %v3191_v20, 4  ;;  %2796 = vst [vmem:[%s7229_s7 + $0x10] sm:$0xff] %v2461_v39  ;;  %2655 = vmatmul.bf16.vlgmr.msra.gmra.mxu1 %v6206_v3  ;;  %2753 = vmatmul.bf16.vlgmr.msra.gmra.mxu3 %v6206_v3  ;;  %v3329_v3 = vsel %vm3328_vm3, %v3250_v18, %v6710_v33  ;;  %v3257_v38 = vmul.f32 0.0625, %v3113_v35 }
 0x288   :  { %v3331_v40 = vsel %vm3330_vm4, %v3256_v10, %v3329_v3 }
 0x289   :  { %v3189_v51 = vrot.slane %v3188_v30, 1  ;;  %v3193_v36 = vadd.f32 %v3192_v12, %v3191_v20  ;;  %v3333_v54 = vsel %vm3332_vm5, %v3262_v21, %v3331_v40  ;;  %v3340_v31 = vsel %vm3330_vm4, %v3257_v38, %v3339_v44 }
 0x28a   :  { %v2558_v14 = vpop.f32.mrf.mxu3  ;;  %v3341_v49 = vsel %vm3332_vm5, %v3263_v17, %v3340_v31 }
 0x28b   :  { %v3190_v11 = vadd.f32 %v3189_v51, %v3188_v30  ;;  %v3194_v32 = vrot.slane %v3193_v36, 2  ;;  %v2559_v52 = vadd.f32 %v2558_v14, %v2510_v9  ;;  %v2511_v62 = vpop.f32.mrf.mxu2 }
 0x28c   :  { %v2462_v0 = vpop.f32.mrf.mxu1  ;;  %v2512_v53 = vadd.f32 %v2511_v62, %v6852_v55 }
 0x28d   :  { %v3268_v45 = vmul.f32 0.0625, %v3190_v11  ;;  %v3195_v8 = vadd.f32 %v3194_v32, %v3193_v36  ;;  %2797 = vst [vmem:[%s7229_s7 + $0x18] sm:$0xff] %v2559_v52  ;;  %v2463_v4 = vadd.f32 %v2462_v0, %v2414_v28  ;;  %v2416_v5 = vpop.f32.mrf.mxu0 }
 0x28e   :  { %v2417_v2 = vadd.f32 %v2416_v5, %v6842_v59 }
 0x28f   :  { %v3335_v33 = vsel %vm3334_vm6, %v3268_v45, %v3333_v54  ;;  %v3196_v42 = vrot.slane %v3195_v8, 1  ;;  %2802 = vst [vmem:[%s7229_s7 + $0x40] sm:$0xff] %v2463_v4  ;;  %v2904_v24 = vadd.f32 %v2463_v4, %v2461_v39 }
 0x290   :  { %3377 = vst [vmem:[%s7230_s8] sm:$0xff] %v3335_v33  ;;  %2611 = vmatmul.bf16.gmra.mxu0 %v6225_v60  ;;  %2709 = vmatmul.bf16.gmra.mxu2 %v6225_v60 }
 0x291   :  { %v3197_v13 = vadd.f32 %v3196_v42, %v3195_v8  ;;  %v2905_v37 = vrot.slane %v2904_v24, 4 }
 0x292   :  { %v2560_v34 = vpop.f32.mrf.mxu3 }
 0x293   :  { %v3269_v61 = vmul.f32 0.0625, %v3197_v13  ;;  %v2561_v25 = vadd.f32 %v2560_v34, %v2512_v53  ;;  %v2514_v39 = vpop.f32.mrf.mxu2  ;;  %v2906_v15 = vadd.f32 %v2905_v37, %v2904_v24 }
 0x294   :  { %v2465_v20 = vpop.f32.mrf.mxu1  ;;  %v2515_v30 = vadd.f32 %v2514_v39, %v6852_v55 }
 0x295   :  { %v3342_v26 = vsel %vm3334_vm6, %v3269_v61, %v3341_v49  ;;  %2803 = vst [vmem:[%s7229_s7 + $0x48] sm:$0xff] %v2561_v25  ;;  %v2911_v60 = vadd.f32 %v2561_v25, %v2559_v52  ;;  %v2466_v47 = vadd.f32 %v2465_v20, %v2417_v2  ;;  %v2418_v22 = vpop.f32.mrf.mxu0  ;;  %v2907_v9 = vrot.slane %v2906_v15, 2 }
 0x296   :  { %3378 = vst [vmem:[%s7230_s8 + $0x8] sm:$0xff] %v3342_v26  ;;  %v2419_v23 = vadd.f32 %v2418_v22, %v6842_v59 }
 0x297   :  { %2808 = vst [vmem:[%s7229_s7 + $0x70] sm:$0xff] %v2466_v47  ;;  %2660 = vmatmul.bf16.gmra.mxu1 %v6230_v19  ;;  %2758 = vmatmul.bf16.gmra.mxu3 %v6230_v19  ;;  %v2912_v12 = vrot.slane %v2911_v60, 4  ;;  %v2908_v14 = vadd.f32 %v2907_v9, %v2906_v15 }
 0x299   :  { %v2913_v35 = vadd.f32 %v2912_v12, %v2911_v60  ;;  %v2909_v45 = vrot.slane %v2908_v14, 1 }
 0x29a   :  { %v2563_v18 = vpop.f32.mrf.mxu3 }
 0x29b   :  { %v2564_v10 = vadd.f32 %v2563_v18, %v2515_v30  ;;  %v2516_v36 = vpop.f32.mrf.mxu2  ;;  %v2914_v28 = vrot.slane %v2913_v35, 2  ;;  %v2910_v33 = vadd.f32 %v2909_v45, %v2908_v14 }
 0x29c   :  { %v2467_v51 = vpop.f32.mrf.mxu1  ;;  %v2517_v32 = vadd.f32 %v2516_v36, %v6852_v55 }
 0x29d   :  { %2809 = vst [vmem:[%s7229_s7 + $0x78] sm:$0xff] %v2564_v10  ;;  %v2468_v50 = vadd.f32 %v2467_v51, %v2419_v23  ;;  %v2421_v21 = vpop.f32.mrf.mxu0  ;;  %v2915_v54 = vadd.f32 %v2914_v28, %v2913_v35  ;;  %v3228_v49 = vmul.f32 0.0625, %v2910_v33 }
 0x29e   :  { %v2422_v16 = vadd.f32 %v2421_v21, %v6842_v59 }
 0x29f   :  { %2814 = vst [vmem:[%s7229_s7 + $0xa0] sm:$0xff] %v2468_v50  ;;  %v2946_v19 = vadd.f32 %v2468_v50, %v2466_v47  ;;  %v2916_v13 = vrot.slane %v2915_v54, 1 }
 0x2a0   :  { %2616 = vmatmul.bf16.gmra.mxu0 %v6261_v41  ;;  %2714 = vmatmul.bf16.gmra.mxu2 %v6261_v41 }
 0x2a1   :  { %v2947_v11 = vrot.slane %v2946_v19, 4  ;;  %v2917_v26 = vadd.f32 %v2916_v13, %v2915_v54 }
 0x2a2   :  { %v2565_v52 = vpop.f32.mrf.mxu3 }
 0x2a3   :  { %v2948_v3 = vadd.f32 %v2947_v11, %v2946_v19  ;;  %v2566_v0 = vadd.f32 %v2565_v52, %v2517_v32  ;;  %v2519_v40 = vpop.f32.mrf.mxu2  ;;  %v3229_v18 = vmul.f32 0.0625, %v2917_v26 }
 0x2a4   :  { %v2470_v62 = vpop.f32.mrf.mxu1  ;;  %v2520_v17 = vadd.f32 %v2519_v40, %v6852_v55 }
 0x2a5   :  { %v2949_v8 = vrot.slane %v2948_v3, 2  ;;  %2815 = vst [vmem:[%s7229_s7 + $0xa8] sm:$0xff] %v2566_v0  ;;  %v2953_v4 = vadd.f32 %v2566_v0, %v2564_v10  ;;  %v2471_v43 = vadd.f32 %v2470_v62, %v2422_v16  ;;  %v2423_v5 = vpop.f32.mrf.mxu0 }
 0x2a6   :  { %v2424_v31 = vadd.f32 %v2423_v5, %v6842_v59 }
 0x2a7   :  { %v2950_v38 = vadd.f32 %v2949_v8, %v2948_v3  ;;  %v2954_v41 = vrot.slane %v2953_v4, 4  ;;  %2820 = vst [vmem:[%s7229_s7 + $0xd0] sm:$0xff] %v2471_v43  ;;  %2665 = vmatmul.bf16.gmra.mxu1 %v6272_v29  ;;  %2763 = vmatmul.bf16.gmra.mxu3 %v6272_v29 }
 0x2a9   :  { %v2951_v42 = vrot.slane %v2950_v38, 1  ;;  %v2955_v24 = vadd.f32 %v2954_v41, %v2953_v4 }
 0x2aa   :  { %v2568_v53 = vpop.f32.mrf.mxu3 }
 0x2ab   :  { %v2952_v44 = vadd.f32 %v2951_v42, %v2950_v38  ;;  %v2956_v34 = vrot.slane %v2955_v24, 2  ;;  %v2569_v61 = vadd.f32 %v2568_v53, %v2520_v17  ;;  %v2521_v25 = vpop.f32.mrf.mxu2 }
 0x2ac   :  { %v2472_v2 = vpop.f32.mrf.mxu1  ;;  %v2522_v12 = vadd.f32 %v2521_v25, %v6852_v55 }
 0x2ad   :  { %v3234_v20 = vmul.f32 0.0625, %v2952_v44  ;;  %v2957_v39 = vadd.f32 %v2956_v34, %v2955_v24  ;;  %2821 = vst [vmem:[%s7229_s7 + $0xd8] sm:$0xff] %v2569_v61  ;;  %v2473_v29 = vadd.f32 %v2472_v2, %v2424_v31  ;;  %v2426_v37 = vpop.f32.mrf.mxu0 }
 0x2ae   :  { %v2427_v36 = vadd.f32 %v2426_v37, %v6842_v59 }
 0x2af   :  { %v3343_v60 = vsel %vm3322_vm0, %v3234_v20, %v3228_v49  ;;  %v2958_v47 = vrot.slane %v2957_v39, 1  ;;  %2826 = vst [vmem:[%s7229_s7 + $0x100] sm:$0xff] %v2473_v29  ;;  %v2988_v22 = vadd.f32 %v2473_v29, %v2471_v43 }
 0x2b0   :  { %2621 = vmatmul.bf16.gmra.mxu0 %v6309_v58  ;;  %2719 = vmatmul.bf16.gmra.mxu2 %v6309_v58 }
 0x2b1   :  { %v2959_v15 = vadd.f32 %v2958_v47, %v2957_v39  ;;  %v2989_v30 = vrot.slane %v2988_v22, 4 }
 0x2b2   :  { %v2570_v23 = vpop.f32.mrf.mxu3 }
 0x2b3   :  { %v3235_v10 = vmul.f32 0.0625, %v2959_v15  ;;  %v2990_v51 = vadd.f32 %v2989_v30, %v2988_v22  ;;  %v2571_v9 = vadd.f32 %v2570_v23, %v2522_v12  ;;  %v2524_v35 = vpop.f32.mrf.mxu2 }
 0x2b4   :  { %v2475_v50 = vpop.f32.mrf.mxu1  ;;  %v2525_v16 = vadd.f32 %v2524_v35, %v6852_v55 }
 0x2b5   :  { %v3350_v21 = vsel %vm3322_vm0, %v3235_v10, %v3229_v18  ;;  %v2991_v19 = vrot.slane %v2990_v51, 2  ;;  %2827 = vst [vmem:[%s7229_s7 + $0x108] sm:$0xff] %v2571_v9  ;;  %v2995_v14 = vadd.f32 %v2571_v9, %v2569_v61  ;;  %v2476_v11 = vadd.f32 %v2475_v50, %v2427_v36  ;;  %v2428_v32 = vpop.f32.mrf.mxu0 }
 0x2b6   :  { %v2429_v45 = vadd.f32 %v2428_v32, %v6842_v59 }
 0x2b7   :  { %v2992_v58 = vadd.f32 %v2991_v19, %v2990_v51  ;;  %v2996_v28 = vrot.slane %v2995_v14, 4  ;;  %2832 = vst [vmem:[%s7229_s7 + $0x130] sm:$0xff] %v2476_v11  ;;  %2670 = vmatmul.bf16.gmra.mxu1 %v6326_v57  ;;  %2768 = vmatmul.bf16.gmra.mxu3 %v6326_v57 }
 0x2b9   :  { %v2993_v52 = vrot.slane %v2992_v58, 1  ;;  %v2997_v3 = vadd.f32 %v2996_v28, %v2995_v14 }
 0x2ba   :  { %v2573_v0 = vpop.f32.mrf.mxu3 }
 0x2bb   :  { %v2994_v62 = vadd.f32 %v2993_v52, %v2992_v58  ;;  %v2998_v40 = vrot.slane %v2997_v3, 2  ;;  %v2574_v8 = vadd.f32 %v2573_v0, %v2525_v16  ;;  %v2526_v43 = vpop.f32.mrf.mxu2 }
 0x2bc   :  { %v2477_v4 = vpop.f32.mrf.mxu1  ;;  %v2527_v13 = vadd.f32 %v2526_v43, %v6852_v55 }
 0x2bd   :  { %v3240_v54 = vmul.f32 0.0625, %v2994_v62  ;;  %v2999_v5 = vadd.f32 %v2998_v40, %v2997_v3  ;;  %2833 = vst [vmem:[%s7229_s7 + $0x138] sm:$0xff] %v2574_v8  ;;  %v2478_v38 = vadd.f32 %v2477_v4, %v2429_v45  ;;  %v2431_v57 = vpop.f32.mrf.mxu0 }
 0x2be   :  { %v2432_v31 = vadd.f32 %v2431_v57, %v6842_v59 }
 0x2bf   :  { %v3344_v41 = vsel %vm3324_vm1, %v3240_v54, %v3343_v60  ;;  %v3000_v33 = vrot.slane %v2999_v5, 1  ;;  %2838 = vst [vmem:[%s7229_s7 + $0x160] sm:$0xff] %v2478_v38  ;;  %v3030_v42 = vadd.f32 %v2478_v38, %v2476_v11 }
 0x2c0   :  { %2626 = vmatmul.bf16.gmra.mxu0 %v6345_v46  ;;  %2724 = vmatmul.bf16.gmra.mxu2 %v6345_v46 }
 0x2c1   :  { %v3001_v24 = vadd.f32 %v3000_v33, %v2999_v5  ;;  %v3031_v17 = vrot.slane %v3030_v42, 4 }
 0x2c2   :  { %v2575_v53 = vpop.f32.mrf.mxu3 }
 0x2c3   :  { %v3241_v44 = vmul.f32 0.0625, %v3001_v24  ;;  %v3032_v34 = vadd.f32 %v3031_v17, %v3030_v42  ;;  %v2576_v61 = vadd.f32 %v2575_v53, %v2527_v13  ;;  %v2529_v25 = vpop.f32.mrf.mxu2 }
 0x2c4   :  { %v2480_v2 = vpop.f32.mrf.mxu1  ;;  %v2530_v22 = vadd.f32 %v2529_v25, %v6852_v55 }
 0x2c5   :  { %v3351_v49 = vsel %vm3324_vm1, %v3241_v44, %v3350_v21  ;;  %v3033_v20 = vrot.slane %v3032_v34, 2  ;;  %2839 = vst [vmem:[%s7229_s7 + $0x168] sm:$0xff] %v2576_v61  ;;  %v3037_v39 = vadd.f32 %v2576_v61, %v2574_v8  ;;  %v6954_v29 = vadd.f32 %v2480_v2, %v2432_v31  ;;  %v2433_v26 = vpop.f32.mrf.mxu0 }
 0x2c6   :  { %v2434_v18 = vadd.f32 %v2433_v26, %v6842_v59 }
 0x2c7   :  { %v3034_v46 = vadd.f32 %v3033_v20, %v3032_v34  ;;  %v3038_v37 = vrot.slane %v3037_v39, 4  ;;  %2844 = vst [vmem:[%s7229_s7 + $0x190] sm:$0xff] %v6954_v29  ;;  %2675 = vmatmul.bf16.gmra.mxu1 %v6362_v1  ;;  %2773 = vmatmul.bf16.gmra.mxu3 %v6362_v1 }
 0x2c9   :  { %v3035_v60 = vrot.slane %v3034_v46, 1  ;;  %v3039_v47 = vadd.f32 %v3038_v37, %v3037_v39 }
 0x2ca   :  { %v2578_v15 = vpop.f32.mrf.mxu3 }
 0x2cb   :  { %v3036_v30 = vadd.f32 %v3035_v60, %v3034_v46  ;;  %v3040_v12 = vrot.slane %v3039_v47, 2  ;;  %v6964_v23 = vadd.f32 %v2578_v15, %v2530_v22  ;;  %v2531_v51 = vpop.f32.mrf.mxu2 }
 0x2cc   :  { %v2482_v10 = vpop.f32.mrf.mxu1  ;;  %v2532_v14 = vadd.f32 %v2531_v51, %v6852_v55 }
 0x2cd   :  { %v3246_v36 = vmul.f32 0.0625, %v3036_v30  ;;  %v3041_v9 = vadd.f32 %v3040_v12, %v3039_v47  ;;  %2845 = vst [vmem:[%s7229_s7 + $0x198] sm:$0xff] %v6964_v23  ;;  %v2483_v1 = vadd.f32 %v2482_v10, %v2434_v18  ;;  %v2436_v50 = vpop.f32.mrf.mxu0 }
 0x2ce   :  { %v2437_v58 = vadd.f32 %v2436_v50, %v6842_v59 }
 0x2cf   :  { %v6971_v35 = vsel %vm3326_vm2, %v3246_v36, %v3344_v41  ;;  %v3042_v21 = vrot.slane %v3041_v9, 1  ;;  %2850 = vst [vmem:[%s7229_s7 + $0x1c0] sm:$0xff] %v2483_v1  ;;  %v3072_v34 = vadd.f32 %v2483_v1, %v6954_v29 }
 0x2d0   :  { %2631 = vmatmul.bf16.gmra.mxu0 %v6381_v6  ;;  %2729 = vmatmul.bf16.gmra.mxu2 %v6381_v6 }
 0x2d1   :  { %v3043_v19 = vadd.f32 %v3042_v21, %v3041_v9  ;;  %v3073_v20 = vrot.slane %v3072_v34, 4 }
 0x2d2   :  { %v2580_v11 = vpop.f32.mrf.mxu3 }
 0x2d3   :  { %v3247_v32 = vmul.f32 0.0625, %v3043_v19  ;;  %v2581_v28 = vadd.f32 %v2580_v11, %v2532_v14  ;;  %v2534_v3 = vpop.f32.mrf.mxu2  ;;  %v3074_v15 = vadd.f32 %v3073_v20, %v3072_v34 }
 0x2d4   :  { %v2485_v52 = vpop.f32.mrf.mxu1  ;;  %v2535_v6 = vadd.f32 %v2534_v3, %v6852_v55 }
 0x2d5   :  { %v6981_v16 = vsel %vm3326_vm2, %v3247_v32, %v3351_v49  ;;  %2851 = vst [vmem:[%s7229_s7 + $0x1c8] sm:$0xff] %v2581_v28  ;;  %v2486_v0 = vadd.f32 %v2485_v52, %v2437_v58  ;;  %v2438_v62 = vpop.f32.mrf.mxu0  ;;  %v3079_v29 = vadd.f32 %v2581_v28, %v6964_v23  ;;  %v3075_v1 = vrot.slane %v3074_v15, 2 }
 0x2d6   :  { %v2439_v45 = vadd.f32 %v2438_v62, %v6842_v59 }
 0x2d7   :  { %2856 = vst [vmem:[%s7229_s7 + $0x1f0] sm:$0xff] %v2486_v0  ;;  %2680 = vmatmul.bf16.gmra.mxu1 %v6398_v27  ;;  %2778 = vmatmul.bf16.gmra.mxu3 %v6398_v27  ;;  %v3080_v36 = vrot.slane %v3079_v29, 4  ;;  %v3076_v3 = vadd.f32 %v3075_v1, %v3074_v15 }
 0x2d9   :  { %v3081_v14 = vadd.f32 %v3080_v36, %v3079_v29 }
 0x2da   :  { %v2583_v40 = vpop.f32.mrf.mxu3 }
 0x2db   :  { %v2584_v8 = vadd.f32 %v2583_v40, %v2535_v6  ;;  %v2536_v43 = vpop.f32.mrf.mxu2 }
 0x2dc   :  { %v2487_v4 = vpop.f32.mrf.mxu1  ;;  %v2537_v27 = vadd.f32 %v2536_v43, %v6852_v55 }
 0x2dd   :  { %2857 = vst [vmem:[%s7229_s7 + $0x1f8] sm:$0xff] %v2584_v8  ;;  %v2488_v54 = vadd.f32 %v2487_v4, %v2439_v45  ;;  %v2441_v5 = vpop.f32.mrf.mxu0  ;;  %v3082_v45 = vrot.slane %v3081_v14, 2 }
 0x2de   :  { %v2442_v57 = vadd.f32 %v2441_v5, %v6842_v59 }
 0x2df   :  { %2862 = vst [vmem:[%s7229_s7 + $0x220] sm:$0xff] %v2488_v54  ;;  %v3114_v31 = vadd.f32 %v2488_v54, %v2486_v0  ;;  %v4431_v54 = vld [vmem:[%s7228_s6] sm:$0x3f] }
 0x2e0   :  { %2636 = vmatmul.bf16.gmra.mxu0 %v6429_v56  ;;  %2734 = vmatmul.bf16.gmra.mxu2 %v6429_v56  ;;  %v7044_v5 = vperm.slane %v4431_v54, 4  ;;  %v7051_v20 = vperm.slane %v4431_v54, 5 }
 0x2e1   :  { %v3115_v39 = vrot.slane %v3114_v31, 4 }
 0x2e2   :  { %v2585_v38 = vpop.f32.mrf.mxu3 }
 0x2e3   :  { %v2586_v41 = vadd.f32 %v2585_v38, %v2537_v27  ;;  %v2539_v42 = vpop.f32.mrf.mxu2  ;;  %v3116_v30 = vadd.f32 %v3115_v39, %v3114_v31  ;;  %v3077_v27 = vrot.slane %v3076_v3, 1 }
 0x2e4   :  { %v2490_v33 = vpop.f32.mrf.mxu1  ;;  %v2540_v56 = vadd.f32 %v2539_v42, %v6852_v55  ;;  %v3083_v42 = vadd.f32 %v3082_v45, %v3081_v14 }
 0x2e5   :  { %2863 = vst [vmem:[%s7229_s7 + $0x228] sm:$0xff] %v2586_v41  ;;  %v2491_v24 = vadd.f32 %v2490_v33, %v2442_v57  ;;  %v2443_v17 = vpop.f32.mrf.mxu0  ;;  %v3121_v46 = vadd.f32 %v2586_v41, %v2584_v8  ;;  %v3117_v50 = vrot.slane %v3116_v30, 2  ;;  %v3078_v34 = vadd.f32 %v3077_v27, %v3076_v3 }
 0x2e6   :  { %v2444_v53 = vadd.f32 %v2443_v17, %v6842_v59  ;;  %v3084_v39 = vrot.slane %v3083_v42, 1 }
 0x2e7   :  { %2868 = vst [vmem:[%s7229_s7 + $0x250] sm:$0xff] %v2491_v24  ;;  %2685 = vmatmul.bf16.gmra.mxu1 %v6440_v63  ;;  %2783 = vmatmul.bf16.gmra.mxu3 %v6440_v63  ;;  %v3118_v0 = vadd.f32 %v3117_v50, %v3116_v30 }
 0x2e9   :  { %v3119_v38 = vrot.slane %v3118_v0, 1 }
 0x2ea   :  { %v2588_v13 = vpop.f32.mrf.mxu3 }
 0x2eb   :  { %v2589_v44 = vadd.f32 %v2588_v13, %v2540_v56  ;;  %v2541_v2 = vpop.f32.mrf.mxu2  ;;  %v3120_v31 = vadd.f32 %v3119_v38, %v3118_v0 }
 0x2ec   :  { %v2492_v61 = vpop.f32.mrf.mxu1  ;;  %v2542_v26 = vadd.f32 %v2541_v2, %v6852_v55 }
 0x2ed   :  { %2869 = vst [vmem:[%s7229_s7 + $0x258] sm:$0xff] %v2589_v44  ;;  %v2493_v25 = vadd.f32 %v2492_v61, %v2444_v53  ;;  %v2446_v49 = vpop.f32.mrf.mxu0  ;;  %v3258_v15 = vmul.f32 0.0625, %v3120_v31 }
 0x2ee   :  { %v2447_v47 = vadd.f32 %v2446_v49, %v6842_v59 }
 0x2ef   :  { %2874 = vst [vmem:[%s7229_s7 + $0x280] sm:$0xff] %v2493_v25  ;;  %v3156_v63 = vadd.f32 %v2493_v25, %v2491_v24 }
 0x2f0   :  { %2641 = vmatmul.bf16.gmra.mxu0 %v6473_v48  ;;  %2739 = vmatmul.bf16.gmra.mxu2 %v6473_v48  ;;  %v3122_v48 = vrot.slane %v3121_v46, 4 }
 0x2f1   :  { %v3157_v37 = vrot.slane %v3156_v63, 4 }
 0x2f2   :  { %v2590_v60 = vpop.f32.mrf.mxu3  ;;  %v3123_v11 = vadd.f32 %v3122_v48, %v3121_v46 }
 0x2f3   :  { %v2591_v22 = vadd.f32 %v2590_v60, %v2542_v26  ;;  %v2544_v18 = vpop.f32.mrf.mxu2  ;;  %v3158_v9 = vadd.f32 %v3157_v37, %v3156_v63 }
 0x2f4   :  { %v2495_v12 = vpop.f32.mrf.mxu1  ;;  %v2545_v19 = vadd.f32 %v2544_v18, %v6852_v55  ;;  %v3124_v8 = vrot.slane %v3123_v11, 2 }
 0x2f5   :  { %2875 = vst [vmem:[%s7229_s7 + $0x288] sm:$0xff] %v2591_v22  ;;  %v3163_v10 = vadd.f32 %v2591_v22, %v2589_v44  ;;  %v2496_v51 = vadd.f32 %v2495_v12, %v2447_v47  ;;  %v2448_v23 = vpop.f32.mrf.mxu0  ;;  %v3159_v32 = vrot.slane %v3158_v9, 2  ;;  %v3252_v47 = vmul.f32 0.0625, %v3078_v34 }
 0x2f6   :  { %v2449_v28 = vadd.f32 %v2448_v23, %v6842_v59  ;;  %v3125_v24 = vadd.f32 %v3124_v8, %v3123_v11 }
 0x2f7   :  { %2880 = vst [vmem:[%s7229_s7 + $0x2b0] sm:$0xff] %v2496_v51  ;;  %2690 = vmatmul.bf16.gmra.mxu1 %v6488_v7  ;;  %2788 = vmatmul.bf16.gmra.mxu3 %v6488_v7  ;;  %v3164_v21 = vrot.slane %v3163_v10, 4  ;;  %v3160_v4 = vadd.f32 %v3159_v32, %v3158_v9 }
 0x2f8   :  { %v3126_v26 = vrot.slane %v3125_v24, 1 }
 0x2f9   :  { %v3165_v62 = vadd.f32 %v3164_v21, %v3163_v10  ;;  %v3161_v17 = vrot.slane %v3160_v4, 1  ;;  %v3085_v10 = vadd.f32 %v3084_v39, %v3083_v42  ;;  %v3346_v21 = vsel %vm3328_vm3, %v3252_v47, %v6971_v35 }
 0x2fa   :  { %v2593_v58 = vpop.f32.mrf.mxu3  ;;  %v3347_v32 = vsel %vm3330_vm4, %v3258_v15, %v3346_v21 }
 0x2fb   :  { %v2594_v52 = vadd.f32 %v2593_v58, %v2545_v19  ;;  %v2546_v40 = vpop.f32.mrf.mxu2  ;;  %v3166_v57 = vrot.slane %v3165_v62, 2  ;;  %v3162_v29 = vadd.f32 %v3161_v17, %v3160_v4  ;;  %v3253_v3 = vmul.f32 0.0625, %v3085_v10 }
 0x2fc   :  { %v2497_v6 = vpop.f32.mrf.mxu1  ;;  %v2547_v33 = vadd.f32 %v2546_v40, %v6852_v55 }
 0x2fd   :  { %2881 = vst [vmem:[%s7229_s7 + $0x2b8] sm:$0xff] %v2594_v52  ;;  %v2498_v7 = vadd.f32 %v2497_v6, %v2449_v28  ;;  %v2607_v43 = vpop.f32.mrf.mxu0  ;;  %v3167_v61 = vadd.f32 %v3166_v57, %v3165_v62  ;;  %v3264_v36 = vmul.f32 0.0625, %v3162_v29 }
 0x2fe   :  { %v2608_v53 = vadd.f32 %v2607_v43, %v7044_v5  ;;  %v3353_v43 = vsel %vm3328_vm3, %v3253_v3, %v6981_v16 }
 0x2ff   :  { %2886 = vst [vmem:[%s7229_s7 + $0x2e0] sm:$0xff] %v2498_v7  ;;  %v3198_v59 = vadd.f32 %v2498_v7, %v2496_v51  ;;  %v3168_v22 = vrot.slane %v3167_v61, 1  ;;  %v3127_v51 = vadd.f32 %v3126_v26, %v3125_v24  ;;  %v3348_v0 = vsel %vm3332_vm5, %v3264_v36, %v3347_v32 }
 0x301   :  { %v3199_v41 = vrot.slane %v3198_v59, 4  ;;  %v3169_v19 = vadd.f32 %v3168_v22, %v3167_v61  ;;  %v3259_v6 = vmul.f32 0.0625, %v3127_v51 }
 0x302   :  { %v2595_v56 = vpop.f32.mrf.mxu3 }
 0x303   :  { %v3200_v13 = vadd.f32 %v3199_v41, %v3198_v59  ;;  %v2596_v44 = vadd.f32 %v2595_v56, %v2547_v33  ;;  %v2705_v25 = vpop.f32.mrf.mxu2  ;;  %v3265_v45 = vmul.f32 0.0625, %v3169_v19  ;;  %v3354_v54 = vsel %vm3330_vm4, %v3259_v6, %v3353_v43 }
 0x304   :  { %v2656_v2 = vpop.f32.mrf.mxu1  ;;  %v2706_v18 = vadd.f32 %v2705_v25, %v7051_v20 }
 0x305   :  { %v3201_v49 = vrot.slane %v3200_v13, 2  ;;  %2887 = vst [vmem:[%s7229_s7 + $0x2e8] sm:$0xff] %v2596_v44  ;;  %v3205_v63 = vadd.f32 %v2596_v44, %v2594_v52  ;;  %v2657_v55 = vadd.f32 %v2656_v2, %v2608_v53  ;;  %v2609_v46 = vpop.f32.mrf.mxu0  ;;  %v3355_v41 = vsel %vm3332_vm5, %v3265_v45, %v3354_v54 }
 0x306   :  { %v2610_v1 = vadd.f32 %v2609_v46, %v7044_v5 }
 0x307   :  { %v3202_v37 = vadd.f32 %v3201_v49, %v3200_v13  ;;  %v3206_v60 = vrot.slane %v3205_v63, 4  ;;  %2798 = vst [vmem:[%s7229_s7 + $0x20] sm:$0xff] %v2657_v55 }
 0x309   :  { %v3203_v30 = vrot.slane %v3202_v37, 1  ;;  %v3207_v12 = vadd.f32 %v3206_v60, %v3205_v63 }
 0x30a   :  { %v2754_v48 = vpop.f32.mrf.mxu3 }
 0x30b   :  { %v3204_v9 = vadd.f32 %v3203_v30, %v3202_v37  ;;  %v3208_v23 = vrot.slane %v3207_v12, 2  ;;  %v2755_v50 = vadd.f32 %v2754_v48, %v2706_v18  ;;  %v2707_v11 = vpop.f32.mrf.mxu2 }
 0x30c   :  { %v2658_v14 = vpop.f32.mrf.mxu1  ;;  %v2708_v4 = vadd.f32 %v2707_v11, %v7051_v20 }
 0x30d   :  { %v3270_v58 = vmul.f32 0.0625, %v3204_v9  ;;  %v3209_v28 = vadd.f32 %v3208_v23, %v3207_v12  ;;  %2799 = vst [vmem:[%s7229_s7 + $0x28] sm:$0xff] %v2755_v50  ;;  %v2659_v52 = vadd.f32 %v2658_v14, %v2610_v1  ;;  %v2612_v62 = vpop.f32.mrf.mxu0 }
 0x30e   :  { %v2613_v38 = vadd.f32 %v2612_v62, %v7044_v5 }
 0x30f   :  { %v3349_v40 = vsel %vm3334_vm6, %v3270_v58, %v3348_v0  ;;  %v3210_v35 = vrot.slane %v3209_v28, 1  ;;  %2804 = vst [vmem:[%s7229_s7 + $0x50] sm:$0xff] %v2659_v52  ;;  %v2918_v7 = vadd.f32 %v2659_v52, %v2657_v55 }
 0x310   :  { %3379 = vst [vmem:[%s7230_s8 + $0x10] sm:$0xff] %v3349_v40 }
 0x311   :  { %v3211_v8 = vadd.f32 %v3210_v35, %v3209_v28  ;;  %v2919_v17 = vrot.slane %v2918_v7, 4 }
 0x312   :  { %v2756_v59 = vpop.f32.mrf.mxu3 }
 0x313   :  { %v3271_v27 = vmul.f32 0.0625, %v3211_v8  ;;  %v2757_v57 = vadd.f32 %v2756_v59, %v2708_v4  ;;  %v2710_v42 = vpop.f32.mrf.mxu2  ;;  %v2920_v53 = vadd.f32 %v2919_v17, %v2918_v7 }
 0x314   :  { %v2661_v33 = vpop.f32.mrf.mxu1  ;;  %v2711_v44 = vadd.f32 %v2710_v42, %v7051_v20 }
 0x315   :  { %v3356_v24 = vsel %vm3334_vm6, %v3271_v27, %v3355_v41  ;;  %2805 = vst [vmem:[%s7229_s7 + $0x58] sm:$0xff] %v2757_v57  ;;  %v2925_v56 = vadd.f32 %v2757_v57, %v2755_v50  ;;  %v2662_v16 = vadd.f32 %v2661_v33, %v2613_v38  ;;  %v2614_v13 = vpop.f32.mrf.mxu0  ;;  %v2921_v63 = vrot.slane %v2920_v53, 2 }
 0x316   :  { %3380 = vst [vmem:[%s7230_s8 + $0x18] sm:$0xff] %v3356_v24  ;;  %v2615_v61 = vadd.f32 %v2614_v13, %v7044_v5 }
 0x317   :  { %2810 = vst [vmem:[%s7229_s7 + $0x80] sm:$0xff] %v2662_v16  ;;  %v2926_v34 = vrot.slane %v2925_v56, 4  ;;  %v2922_v46 = vadd.f32 %v2921_v63, %v2920_v53 }
 0x319   :  { %v2927_v39 = vadd.f32 %v2926_v34, %v2925_v56  ;;  %v2923_v51 = vrot.slane %v2922_v46, 1 }
 0x31a   :  { %v2759_v31 = vpop.f32.mrf.mxu3 }
 0x31b   :  { %v2760_v2 = vadd.f32 %v2759_v31, %v2711_v44  ;;  %v2712_v49 = vpop.f32.mrf.mxu2  ;;  %v2928_v47 = vrot.slane %v2927_v39, 2  ;;  %v2924_v19 = vadd.f32 %v2923_v51, %v2922_v46 }
 0x31c   :  { %v2663_v25 = vpop.f32.mrf.mxu1  ;;  %v2713_v60 = vadd.f32 %v2712_v49, %v7051_v20 }
 0x31d   :  { %2811 = vst [vmem:[%s7229_s7 + $0x88] sm:$0xff] %v2760_v2  ;;  %v2664_v55 = vadd.f32 %v2663_v25, %v2615_v61  ;;  %v2617_v26 = vpop.f32.mrf.mxu0  ;;  %v2929_v23 = vadd.f32 %v2928_v47, %v2927_v39  ;;  %v3230_v35 = vmul.f32 0.0625, %v2924_v19 }
 0x31e   :  { %v2618_v30 = vadd.f32 %v2617_v26, %v7044_v5 }
 0x31f   :  { %2816 = vst [vmem:[%s7229_s7 + $0xb0] sm:$0xff] %v2664_v55  ;;  %v2960_v29 = vadd.f32 %v2664_v55, %v2662_v16  ;;  %v2930_v58 = vrot.slane %v2929_v23, 1 }
 0x321   :  { %v2961_v37 = vrot.slane %v2960_v29, 4  ;;  %v2931_v4 = vadd.f32 %v2930_v58, %v2929_v23 }
 0x322   :  { %v2761_v22 = vpop.f32.mrf.mxu3 }
 0x323   :  { %v2962_v15 = vadd.f32 %v2961_v37, %v2960_v29  ;;  %v2762_v12 = vadd.f32 %v2761_v22, %v2713_v60  ;;  %v2715_v10 = vpop.f32.mrf.mxu2  ;;  %v3231_v33 = vmul.f32 0.0625, %v2931_v4 }
 0x324   :  { %v2666_v18 = vpop.f32.mrf.mxu1  ;;  %v2716_v32 = vadd.f32 %v2715_v10, %v7051_v20 }
 0x325   :  { %v2963_v36 = vrot.slane %v2962_v15, 2  ;;  %2817 = vst [vmem:[%s7229_s7 + $0xb8] sm:$0xff] %v2762_v12  ;;  %v2967_v48 = vadd.f32 %v2762_v12, %v2760_v2  ;;  %v2667_v9 = vadd.f32 %v2666_v18, %v2618_v30  ;;  %v2619_v1 = vpop.f32.mrf.mxu0 }
 0x326   :  { %v2620_v0 = vadd.f32 %v2619_v1, %v7044_v5 }
 0x327   :  { %v2964_v50 = vadd.f32 %v2963_v36, %v2962_v15  ;;  %v2968_v21 = vrot.slane %v2967_v48, 4  ;;  %2822 = vst [vmem:[%s7229_s7 + $0xe0] sm:$0xff] %v2667_v9 }
 0x329   :  { %v2965_v14 = vrot.slane %v2964_v50, 1  ;;  %v2969_v11 = vadd.f32 %v2968_v21, %v2967_v48 }
 0x32a   :  { %v2764_v28 = vpop.f32.mrf.mxu3 }
 0x32b   :  { %v2966_v52 = vadd.f32 %v2965_v14, %v2964_v50  ;;  %v2970_v3 = vrot.slane %v2969_v11, 2  ;;  %v2765_v62 = vadd.f32 %v2764_v28, %v2716_v32  ;;  %v2717_v40 = vpop.f32.mrf.mxu2 }
 0x32c   :  { %v2668_v6 = vpop.f32.mrf.mxu1  ;;  %v2718_v41 = vadd.f32 %v2717_v40, %v7051_v20 }
 0x32d   :  { %v3236_v7 = vmul.f32 0.0625, %v2966_v52  ;;  %v2971_v45 = vadd.f32 %v2970_v3, %v2969_v11  ;;  %2823 = vst [vmem:[%s7229_s7 + $0xe8] sm:$0xff] %v2765_v62  ;;  %v2669_v8 = vadd.f32 %v2668_v6, %v2620_v0  ;;  %v2622_v43 = vpop.f32.mrf.mxu0 }
 0x32e   :  { %v2623_v56 = vadd.f32 %v2622_v43, %v7044_v5 }
 0x32f   :  { %v3357_v59 = vsel %vm3322_vm0, %v3236_v7, %v3230_v35  ;;  %v2972_v54 = vrot.slane %v2971_v45, 1  ;;  %2828 = vst [vmem:[%s7229_s7 + $0x110] sm:$0xff] %v2669_v8  ;;  %v3002_v27 = vadd.f32 %v2669_v8, %v2667_v9 }
 0x331   :  { %v2973_v38 = vadd.f32 %v2972_v54, %v2971_v45  ;;  %v3003_v57 = vrot.slane %v3002_v27, 4 }
 0x332   :  { %v2766_v42 = vpop.f32.mrf.mxu3 }
 0x333   :  { %v3237_v24 = vmul.f32 0.0625, %v2973_v38  ;;  %v3004_v17 = vadd.f32 %v3003_v57, %v3002_v27  ;;  %v2767_v16 = vadd.f32 %v2766_v42, %v2718_v41  ;;  %v2720_v53 = vpop.f32.mrf.mxu2 }
 0x334   :  { %v2671_v13 = vpop.f32.mrf.mxu1  ;;  %v2721_v39 = vadd.f32 %v2720_v53, %v7051_v20 }
 0x335   :  { %v3364_v44 = vsel %vm3322_vm0, %v3237_v24, %v3231_v33  ;;  %v3005_v34 = vrot.slane %v3004_v17, 2  ;;  %2829 = vst [vmem:[%s7229_s7 + $0x118] sm:$0xff] %v2767_v16  ;;  %v3009_v31 = vadd.f32 %v2767_v16, %v2765_v62  ;;  %v2672_v61 = vadd.f32 %v2671_v13, %v2623_v56  ;;  %v2624_v2 = vpop.f32.mrf.mxu0 }
 0x336   :  { %v2625_v37 = vadd.f32 %v2624_v2, %v7044_v5 }
 0x337   :  { %v3006_v25 = vadd.f32 %v3005_v34, %v3004_v17  ;;  %v3010_v49 = vrot.slane %v3009_v31, 4  ;;  %2834 = vst [vmem:[%s7229_s7 + $0x140] sm:$0xff] %v2672_v61 }
 0x339   :  { %v3007_v63 = vrot.slane %v3006_v25, 1  ;;  %v3011_v55 = vadd.f32 %v3010_v49, %v3009_v31 }
 0x33a   :  { %v2769_v26 = vpop.f32.mrf.mxu3 }
 0x33b   :  { %v3008_v29 = vadd.f32 %v3007_v63, %v3006_v25  ;;  %v3012_v46 = vrot.slane %v3011_v55, 2  ;;  %v2770_v60 = vadd.f32 %v2769_v26, %v2721_v39  ;;  %v2722_v22 = vpop.f32.mrf.mxu2 }
 0x33c   :  { %v2673_v47 = vpop.f32.mrf.mxu1  ;;  %v2723_v23 = vadd.f32 %v2722_v22, %v7051_v20 }
 0x33d   :  { %v3242_v15 = vmul.f32 0.0625, %v3008_v29  ;;  %v3013_v30 = vadd.f32 %v3012_v46, %v3011_v55  ;;  %2835 = vst [vmem:[%s7229_s7 + $0x148] sm:$0xff] %v2770_v60  ;;  %v2674_v12 = vadd.f32 %v2673_v47, %v2625_v37  ;;  %v2627_v18 = vpop.f32.mrf.mxu0 }
 0x33e   :  { %v2628_v19 = vadd.f32 %v2627_v18, %v7044_v5 }
 0x33f   :  { %v3358_v10 = vsel %vm3324_vm1, %v3242_v15, %v3357_v59  ;;  %v3014_v51 = vrot.slane %v3013_v30, 1  ;;  %2840 = vst [vmem:[%s7229_s7 + $0x170] sm:$0xff] %v2674_v12  ;;  %v3044_v36 = vadd.f32 %v2674_v12, %v2672_v61 }
 0x341   :  { %v3015_v48 = vadd.f32 %v3014_v51, %v3013_v30  ;;  %v3045_v9 = vrot.slane %v3044_v36, 4 }
 0x342   :  { %v2771_v1 = vpop.f32.mrf.mxu3 }
 0x343   :  { %v3243_v50 = vmul.f32 0.0625, %v3015_v48  ;;  %v3046_v21 = vadd.f32 %v3045_v9, %v3044_v36  ;;  %v2772_v14 = vadd.f32 %v2771_v1, %v2723_v23  ;;  %v2725_v32 = vpop.f32.mrf.mxu2 }
 0x344   :  { %v2676_v11 = vpop.f32.mrf.mxu1  ;;  %v2726_v7 = vadd.f32 %v2725_v32, %v7051_v20 }
 0x345   :  { %v3365_v58 = vsel %vm3324_vm1, %v3243_v50, %v3364_v44  ;;  %v3047_v28 = vrot.slane %v3046_v21, 2  ;;  %2841 = vst [vmem:[%s7229_s7 + $0x178] sm:$0xff] %v2772_v14  ;;  %v3051_v52 = vadd.f32 %v2772_v14, %v2770_v60  ;;  %v2677_v3 = vadd.f32 %v2676_v11, %v2628_v19  ;;  %v2629_v0 = vpop.f32.mrf.mxu0 }
 0x346   :  { %v2630_v43 = vadd.f32 %v2629_v0, %v7044_v5 }
 0x347   :  { %v3048_v62 = vadd.f32 %v3047_v28, %v3046_v21  ;;  %v3052_v6 = vrot.slane %v3051_v52, 4  ;;  %2846 = vst [vmem:[%s7229_s7 + $0x1a0] sm:$0xff] %v2677_v3 }
 0x349   :  { %v3049_v40 = vrot.slane %v3048_v62, 1  ;;  %v3053_v35 = vadd.f32 %v3052_v6, %v3051_v52 }
 0x34a   :  { %v2774_v45 = vpop.f32.mrf.mxu3 }
 0x34b   :  { %v3050_v8 = vadd.f32 %v3049_v40, %v3048_v62  ;;  %v3054_v4 = vrot.slane %v3053_v35, 2  ;;  %v2775_v59 = vadd.f32 %v2774_v45, %v2726_v7  ;;  %v2727_v27 = vpop.f32.mrf.mxu2 }
 0x34c   :  { %v2678_v54 = vpop.f32.mrf.mxu1  ;;  %v2728_v56 = vadd.f32 %v2727_v27, %v7051_v20 }
 0x34d   :  { %v3248_v38 = vmul.f32 0.0625, %v3050_v8  ;;  %v3055_v57 = vadd.f32 %v3054_v4, %v3053_v35  ;;  %2847 = vst [vmem:[%s7229_s7 + $0x1a8] sm:$0xff] %v2775_v59  ;;  %v2679_v41 = vadd.f32 %v2678_v54, %v2630_v43  ;;  %v2632_v33 = vpop.f32.mrf.mxu0 }
 0x34e   :  { %v2633_v53 = vadd.f32 %v2632_v33, %v7044_v5 }
 0x34f   :  { %v7146_v42 = vsel %vm3326_vm2, %v3248_v38, %v3358_v10  ;;  %v3056_v24 = vrot.slane %v3055_v57, 1  ;;  %2852 = vst [vmem:[%s7229_s7 + $0x1d0] sm:$0xff] %v2679_v41  ;;  %v3086_v23 = vadd.f32 %v2679_v41, %v2677_v3 }
 0x351   :  { %v3057_v17 = vadd.f32 %v3056_v24, %v3055_v57  ;;  %v3087_v32 = vrot.slane %v3086_v23, 4 }
 0x352   :  { %v2776_v16 = vpop.f32.mrf.mxu3 }
 0x353   :  { %v3249_v13 = vmul.f32 0.0625, %v3057_v17  ;;  %v2777_v44 = vadd.f32 %v2776_v16, %v2728_v56  ;;  %v2730_v31 = vpop.f32.mrf.mxu2  ;;  %v3088_v35 = vadd.f32 %v3087_v32, %v3086_v23 }
 0x354   :  { %v2681_v34 = vpop.f32.mrf.mxu1  ;;  %v2731_v49 = vadd.f32 %v2730_v31, %v7051_v20 }
 0x355   :  { %v7154_v61 = vsel %vm3326_vm2, %v3249_v13, %v3365_v58  ;;  %2853 = vst [vmem:[%s7229_s7 + $0x1d8] sm:$0xff] %v2777_v44  ;;  %v2682_v2 = vadd.f32 %v2681_v34, %v2633_v53  ;;  %v2634_v25 = vpop.f32.mrf.mxu0  ;;  %v3093_v52 = vadd.f32 %v2777_v44, %v2775_v59  ;;  %v3089_v59 = vrot.slane %v3088_v35, 2 }
 0x356   :  { %v2635_v55 = vadd.f32 %v2634_v25, %v7044_v5 }
 0x357   :  { %2858 = vst [vmem:[%s7229_s7 + $0x200] sm:$0xff] %v2682_v2  ;;  %v3094_v54 = vrot.slane %v3093_v52, 4  ;;  %v3090_v34 = vadd.f32 %v3089_v59, %v3088_v35 }
 0x359   :  { %v3095_v17 = vadd.f32 %v3094_v54, %v3093_v52 }
 0x35a   :  { %v2779_v63 = vpop.f32.mrf.mxu3 }
 0x35b   :  { %v2780_v39 = vadd.f32 %v2779_v63, %v2731_v49  ;;  %v2732_v29 = vpop.f32.mrf.mxu2  ;;  %v3096_v63 = vrot.slane %v3095_v17, 2 }
 0x35c   :  { %v2683_v26 = vpop.f32.mrf.mxu1  ;;  %v2733_v60 = vadd.f32 %v2732_v29, %v7051_v20 }
 0x35d   :  { %2859 = vst [vmem:[%s7229_s7 + $0x208] sm:$0xff] %v2780_v39  ;;  %v2684_v46 = vadd.f32 %v2683_v26, %v2635_v55  ;;  %v2637_v37 = vpop.f32.mrf.mxu0 }
 0x35e   :  { %v2638_v22 = vadd.f32 %v2637_v37, %v7044_v5 }
 0x35f   :  { %2864 = vst [vmem:[%s7229_s7 + $0x230] sm:$0xff] %v2684_v46  ;;  %v3128_v21 = vadd.f32 %v2684_v46, %v2682_v2 }
 0x361   :  { %v3129_v58 = vrot.slane %v3128_v21, 4 }
 0x362   :  { %v2781_v47 = vpop.f32.mrf.mxu3 }
 0x363   :  { %v2782_v15 = vadd.f32 %v2781_v47, %v2733_v60  ;;  %v2735_v12 = vpop.f32.mrf.mxu2  ;;  %v3130_v8 = vadd.f32 %v3129_v58, %v3128_v21 }
 0x364   :  { %v2686_v30 = vpop.f32.mrf.mxu1  ;;  %v2736_v51 = vadd.f32 %v2735_v12, %v7051_v20 }
 0x365   :  { %2865 = vst [vmem:[%s7229_s7 + $0x238] sm:$0xff] %v2782_v15  ;;  %v2687_v18 = vadd.f32 %v2686_v30, %v2638_v22  ;;  %v2639_v10 = vpop.f32.mrf.mxu0  ;;  %v3135_v62 = vadd.f32 %v2782_v15, %v2780_v39  ;;  %v3131_v33 = vrot.slane %v3130_v8, 2  ;;  %v3097_v22 = vadd.f32 %v3096_v63, %v3095_v17 }
 0x366   :  { %v2640_v48 = vadd.f32 %v2639_v10, %v7044_v5 }
 0x367   :  { %2870 = vst [vmem:[%s7229_s7 + $0x260] sm:$0xff] %v2687_v18  ;;  %v3136_v38 = vrot.slane %v3135_v62, 4  ;;  %v3132_v25 = vadd.f32 %v3131_v33, %v3130_v8 }
 0x369   :  { %v3137_v13 = vadd.f32 %v3136_v38, %v3135_v62  ;;  %v3133_v37 = vrot.slane %v3132_v25, 1 }
 0x36a   :  { %v2784_v36 = vpop.f32.mrf.mxu3 }
 0x36b   :  { %v2785_v9 = vadd.f32 %v2784_v36, %v2736_v51  ;;  %v2737_v50 = vpop.f32.mrf.mxu2  ;;  %v3138_v26 = vrot.slane %v3137_v13, 2 }
 0x36c   :  { %v2688_v1 = vpop.f32.mrf.mxu1  ;;  %v2738_v28 = vadd.f32 %v2737_v50, %v7051_v20 }
 0x36d   :  { %2871 = vst [vmem:[%s7229_s7 + $0x268] sm:$0xff] %v2785_v9  ;;  %v2689_v19 = vadd.f32 %v2688_v1, %v2640_v48  ;;  %v2642_v14 = vpop.f32.mrf.mxu0  ;;  %v3139_v12 = vadd.f32 %v3138_v26, %v3137_v13  ;;  %v3134_v48 = vadd.f32 %v3133_v37, %v3132_v25  ;;  %v3098_v1 = vrot.slane %v3097_v22, 1 }
 0x36e   :  { %v2643_v6 = vadd.f32 %v2642_v14, %v7044_v5 }
 0x36f   :  { %2876 = vst [vmem:[%s7229_s7 + $0x290] sm:$0xff] %v2689_v19  ;;  %v3170_v11 = vadd.f32 %v2689_v19, %v2687_v18  ;;  %v3140_v21 = vrot.slane %v3139_v12, 1  ;;  %v3260_v32 = vmul.f32 0.0625, %v3134_v48  ;;  %v3099_v52 = vadd.f32 %v3098_v1, %v3097_v22 }
 0x371   :  { %v3171_v3 = vrot.slane %v3170_v11, 4 }
 0x372   :  { %v2786_v0 = vpop.f32.mrf.mxu3 }
 0x373   :  { %v2787_v40 = vadd.f32 %v2786_v0, %v2738_v28  ;;  %v2740_v45 = vpop.f32.mrf.mxu2  ;;  %v3172_v27 = vadd.f32 %v3171_v3, %v3170_v11  ;;  %v3141_v0 = vadd.f32 %v3140_v21, %v3139_v12 }
 0x374   :  { %v2691_v7 = vpop.f32.mrf.mxu1  ;;  %v2741_v24 = vadd.f32 %v2740_v45, %v7051_v20 }
 0x375   :  { %2877 = vst [vmem:[%s7229_s7 + $0x298] sm:$0xff] %v2787_v40  ;;  %v3177_v4 = vadd.f32 %v2787_v40, %v2785_v9  ;;  %v2692_v43 = vadd.f32 %v2691_v7, %v2643_v6  ;;  %v2644_v41 = vpop.f32.mrf.mxu0  ;;  %v3173_v56 = vrot.slane %v3172_v27, 2  ;;  %v3261_v54 = vmul.f32 0.0625, %v3141_v0 }
 0x376   :  { %v2645_v53 = vadd.f32 %v2644_v41, %v7044_v5  ;;  %v3091_v5 = vrot.slane %v3090_v34, 1 }
 0x377   :  { %2882 = vst [vmem:[%s7229_s7 + $0x2c0] sm:$0xff] %v2692_v43  ;;  %v3178_v57 = vrot.slane %v3177_v4, 4  ;;  %v3174_v55 = vadd.f32 %v3173_v56, %v3172_v27 }
 0x378   :  { %v3092_v51 = vadd.f32 %v3091_v5, %v3090_v34 }
 0x379   :  { %v3179_v31 = vadd.f32 %v3178_v57, %v3177_v4  ;;  %v3175_v15 = vrot.slane %v3174_v55, 1  ;;  %v3255_v4 = vmul.f32 0.0625, %v3099_v52 }
 0x37a   :  { %v2789_v16 = vpop.f32.mrf.mxu3  ;;  %v3254_v14 = vmul.f32 0.0625, %v3092_v51 }
 0x37b   :  { %v2790_v44 = vadd.f32 %v2789_v16, %v2741_v24  ;;  %v2742_v39 = vpop.f32.mrf.mxu2  ;;  %v3180_v46 = vrot.slane %v3179_v31, 2  ;;  %v3176_v50 = vadd.f32 %v3175_v15, %v3174_v55 }
 0x37c   :  { %v2693_v2 = vpop.f32.mrf.mxu1  ;;  %v2743_v47 = vadd.f32 %v2742_v39, %v7051_v20  ;;  %v3360_v40 = vsel %vm3328_vm3, %v3254_v14, %v7146_v42  ;;  %v3367_v42 = vsel %vm3328_vm3, %v3255_v4, %v7154_v61 }
 0x37d   :  { %2883 = vst [vmem:[%s7229_s7 + $0x2c8] sm:$0xff] %v2790_v44  ;;  %v2694_v49 = vadd.f32 %v2693_v2, %v2645_v53  ;;  %v3181_v36 = vadd.f32 %v3180_v46, %v3179_v31  ;;  %v3266_v3 = vmul.f32 0.0625, %v3176_v50  ;;  %v3361_v7 = vsel %vm3330_vm4, %v3260_v32, %v3360_v40 }
 0x37e   :  { %v3368_v41 = vsel %vm3330_vm4, %v3261_v54, %v3367_v42 }
 0x37f   :  { %2888 = vst [vmem:[%s7229_s7 + $0x2f0] sm:$0xff] %v2694_v49  ;;  %v3212_v29 = vadd.f32 %v2694_v49, %v2692_v43  ;;  %v3182_v11 = vrot.slane %v3181_v36, 1  ;;  %v3362_v43 = vsel %vm3332_vm5, %v3266_v3, %v3361_v7 }
 0x381   :  { %v3213_v60 = vrot.slane %v3212_v29, 4  ;;  %v3183_v35 = vadd.f32 %v3182_v11, %v3181_v36 }
 0x382   :  { %v2791_v30 = vpop.f32.mrf.mxu3 }
 0x383   :  { %v3214_v18 = vadd.f32 %v3213_v60, %v3212_v29  ;;  %v2792_v10 = vadd.f32 %v2791_v30, %v2743_v47  ;;  %v3267_v59 = vmul.f32 0.0625, %v3183_v35 }
 0x385   :  { %v3215_v9 = vrot.slane %v3214_v18, 2  ;;  %2889 = vst [vmem:[%s7229_s7 + $0x2f8] sm:$0xff] %v2792_v10  ;;  %v3219_v23 = vadd.f32 %v2792_v10, %v2790_v44  ;;  %v3369_v24 = vsel %vm3332_vm5, %v3267_v59, %v3368_v41 }
 0x387   :  { %v3216_v19 = vadd.f32 %v3215_v9, %v3214_v18  ;;  %v3220_v20 = vrot.slane %v3219_v23, 4 }
 0x389   :  { %v3217_v58 = vrot.slane %v3216_v19, 1  ;;  %v3221_v28 = vadd.f32 %v3220_v20, %v3219_v23 }
 0x38b   :  { %v3218_v62 = vadd.f32 %v3217_v58, %v3216_v19  ;;  %v3222_v6 = vrot.slane %v3221_v28, 2 }
 0x38d   :  { %v3272_v45 = vmul.f32 0.0625, %v3218_v62  ;;  %v3223_v8 = vadd.f32 %v3222_v6, %v3221_v28 }
 0x38f   :  { %v3363_v27 = vsel %vm3334_vm6, %v3272_v45, %v3362_v43  ;;  %v3224_v38 = vrot.slane %v3223_v8, 1 }
 0x390   :  { %3381 = vst [vmem:[%s7230_s8 + $0x20] sm:$0xff] %v3363_v27 }
 0x391   :  { %v3225_v57 = vadd.f32 %v3224_v38, %v3223_v8 }
 0x393   :  { %v3273_v33 = vmul.f32 0.0625, %v3225_v57 }
 0x395   :  { %v3370_v17 = vsel %vm3334_vm6, %v3273_v33, %v3369_v24 }
 0x396   :  { %3382 = vst [vmem:[%s7230_s8 + $0x28] sm:$0xff] %v3370_v17 }

</bundles_post_ra>
